<compile_context>
chip_gen: v7x
topology: tpu7x:2x2x1
jax: 0.10.0
libtpu: 0.0.40
codegen_flags: <defaults>
</compile_context>

<pallas_src>
import functools

import jax
import jax.numpy as jnp
from jax import lax
from jax.experimental import pallas as pl
from jax.experimental.pallas import tpu as pltpu

EPS = 1e-5
LANES = 128
LPAD = 8                            # left zero-pad inside the slab (keeps fills 8-aligned)
VMEM_LIMIT = 32 * 1024 * 1024       # strips are budgeted to a few MB -> 32 MiB is ample
IM2COL_BUDGET = 4 * 1024 * 1024     # per-strip im2col slab budget (v7x has 64 MiB VMEM)


def _round_up(x, m):
    return (x + m - 1) // m * m


def _pick_strip_rows(h2, w2, k_total):
    """Rows per conv strip: divisor of h2 with the im2col slab under budget."""
    def ok(r):
        return (h2 % r == 0 and r * w2 * k_total * 2 <= IM2COL_BUDGET
                and r * w2 <= 4096)
    best = 1
    for r in range(1, h2 + 1):
        if ok(r):
            best = r
    # prefer >= 2 strips per image (pipelining + v7x dual-core balance)
    if best == h2 and h2 > 1:
        for r in range(h2 - 1, 0, -1):
            if ok(r):
                return r
    return best


def _pick_convt_rows(h, w):
    best = 1
    for r in range(1, h + 1):
        if h % r == 0 and r * w <= 2048:
            best = r
    if best == h and h > 1:
        for r in range(h - 1, 0, -1):
            if h % r == 0 and r * w <= 2048:
                return r
    return best


def _pick_out_rows(h2, w2):
    """Rows per step of the final kernel; (rows*w2) % 128 == 0 when possible."""
    cand = [r for r in range(1, h2 + 1)
            if h2 % r == 0 and (r * w2) % 128 == 0 and r * w2 <= 4096]
    if not cand:
        return h2
    multi = [r for r in cand if h2 // r >= 2]
    return max(multi) if multi else max(cand)


# --------------------------- ConvTranspose 2x2 / s2 ---------------------------

def _convt_kernel(x_ref, w_ref, b_ref, o_ref, *, rows, w, k2):
    lhs = x_ref[...].reshape(rows * w, x_ref.shape[-1])
    acc = jnp.dot(lhs, w_ref[...], preferred_element_type=jnp.float32) + b_ref[...]
    o_ref[...] = acc.reshape(rows, 1, w, k2).astype(o_ref.dtype)


def conv_transpose_2x2(x, w_t, b_t):
    """x: (N,H,W,cpi) bf16 -> (N,H,2,W,2*cp) bf16; dim2=dy, last dim=(dx, ch)."""
    n, h, w, cpi = x.shape
    k2 = w_t.shape[-1]
    rows = _pick_convt_rows(h, w)
    kernel = functools.partial(_convt_kernel, rows=rows, w=w, k2=k2)
    return pl.pallas_call(
        kernel,
        out_shape=jax.ShapeDtypeStruct((n, h, 2, w, k2), jnp.bfloat16),
        grid=(n, h // rows, 2),
        in_specs=[
            pl.BlockSpec((None, rows, w, cpi), lambda ni, hi, dy: (ni, hi, 0, 0)),
            pl.BlockSpec((None, cpi, k2), lambda ni, hi, dy: (dy, 0, 0)),
            pl.BlockSpec((1, k2), lambda ni, hi, dy: (0, 0)),
        ],
        out_specs=pl.BlockSpec((None, rows, 1, w, k2),
                               lambda ni, hi, dy: (ni, hi, dy, 0, 0)),
        compiler_params=pltpu.CompilerParams(
            dimension_semantics=("parallel", "parallel", "parallel"),
            vmem_limit_bytes=VMEM_LIMIT),
    )(x, w_t, b_t)


# --------------------------- Fused 3x3 conv (strip) ---------------------------

def _zero_pad_cols(slab_ref, *, rows, w2, kin):
    # Only the two columns actually read by the dx = -1 / +1 taps need zeroing.
    # Done every step (cheap) because scratch is per-core under megacore
    # partitioning, so a "first grid step only" guard is not safe.
    z = jnp.zeros((rows + 2, 1, kin), jnp.bfloat16)
    slab_ref[:, LPAD - 1:LPAD, :] = z
    slab_ref[:, LPAD + w2:LPAD + w2 + 1, :] = z


def _im2col_dot_epilogue(slab_ref, col_ref, w_ref, z_ref, sum_ref, sq_ref,
                         *, rows, w2, kin, cp):
    m = rows * w2
    # 9 shifted slab copies -> one big-K matmul (K = 9*kin), no per-tap
    # f32 accumulator read-modify-writes.
    for t in range(9):
        dy, dx = divmod(t, 3)
        col_ref[:, t * kin:(t + 1) * kin] = (
            slab_ref[dy:dy + rows, LPAD - 1 + dx:LPAD - 1 + dx + w2, :]
            .reshape(m, kin))
    acc = jnp.dot(col_ref[...], w_ref[...], preferred_element_type=jnp.float32)
    z_ref[...] = acc.reshape(rows, w2, cp).astype(z_ref.dtype)
    sum_ref[0] = jnp.broadcast_to(jnp.sum(acc, axis=0, keepdims=True), (8, cp))
    sq_ref[0] = jnp.broadcast_to(jnp.sum(acc * acc, axis=0, keepdims=True), (8, cp))


def _conv1_kernel(yc_ref, yt_ref, yb_ref, sc_ref, st_ref, sb_ref, w_ref,
                  z_ref, sum_ref, sq_ref, slab_ref, col_ref, *, rows, w2, cp):
    s = pl.program_id(1)
    last = pl.num_programs(1) - 1
    k2 = 2 * cp

    _zero_pad_cols(slab_ref, rows=rows, w2=w2, kin=k2)

    # concat-free: upsampled y and skip are two lane/K partitions of the slab.
    slab_ref[1:rows + 1, LPAD:LPAD + w2, 0:cp] = yc_ref[...]
    slab_ref[1:rows + 1, LPAD:LPAD + w2, cp:k2] = sc_ref[...]

    # 1-row halos; zero at the image top / bottom (3x3 conv zero padding).
    top_y = jnp.where(s > 0, yt_ref[0], jnp.zeros_like(yt_ref[0]))
    top_s = jnp.where(s > 0, st_ref[0], jnp.zeros_like(st_ref[0]))
    bot_y = jnp.where(s < last, yb_ref[0], jnp.zeros_like(yb_ref[0]))
    bot_s = jnp.where(s < last, sb_ref[0], jnp.zeros_like(sb_ref[0]))
    slab_ref[0, LPAD:LPAD + w2, 0:cp] = top_y
    slab_ref[0, LPAD:LPAD + w2, cp:k2] = top_s
    slab_ref[rows + 1, LPAD:LPAD + w2, 0:cp] = bot_y
    slab_ref[rows + 1, LPAD:LPAD + w2, cp:k2] = bot_s

    _im2col_dot_epilogue(slab_ref, col_ref, w_ref, z_ref, sum_ref, sq_ref,
                         rows=rows, w2=w2, kin=k2, cp=cp)


def _conv2_kernel(xc_ref, xt_ref, xb_ref, scale_ref, shift_ref, w_ref,
                  z_ref, sum_ref, sq_ref, slab_ref, col_ref, *, rows, w2, cp):
    s = pl.program_id(1)
    last = pl.num_programs(1) - 1
    sc = scale_ref[...]
    sh = shift_ref[...]

    def bn1(v):   # previous BatchNorm affine fused into the slab fill
        return (v.astype(jnp.float32) * sc + sh).astype(jnp.bfloat16)

    _zero_pad_cols(slab_ref, rows=rows, w2=w2, kin=cp)

    slab_ref[1:rows + 1, LPAD:LPAD + w2, :] = bn1(xc_ref[...])
    zero_row = jnp.zeros((w2, cp), jnp.bfloat16)
    slab_ref[0, LPAD:LPAD + w2, :] = jnp.where(s > 0, bn1(xt_ref[0]), zero_row)
    slab_ref[rows + 1, LPAD:LPAD + w2, :] = jnp.where(s < last, bn1(xb_ref[0]),
                                                      zero_row)

    _im2col_dot_epilogue(slab_ref, col_ref, w_ref, z_ref, sum_ref, sq_ref,
                         rows=rows, w2=w2, kin=cp, cp=cp)


def _strip_specs(h2, w2, cp, rows):
    cen = pl.BlockSpec((None, rows, w2, cp), lambda ni, si: (ni, si, 0, 0))
    top = pl.BlockSpec((None, 1, w2, cp),
                       lambda ni, si: (ni, jnp.maximum(si * rows - 1, 0), 0, 0))
    bot = pl.BlockSpec((None, 1, w2, cp),
                       lambda ni, si: (ni, jnp.minimum((si + 1) * rows, h2 - 1),
                                       0, 0))
    return cen, top, bot


def _conv_outputs(n, h2, w2, cp, rows):
    s_cnt = h2 // rows
    out_shape = (
        jax.ShapeDtypeStruct((n, h2, w2, cp), jnp.bfloat16),
        jax.ShapeDtypeStruct((n, s_cnt, 8, cp), jnp.float32),
        jax.ShapeDtypeStruct((n, s_cnt, 8, cp), jnp.float32),
    )
    out_specs = (
        pl.BlockSpec((None, rows, w2, cp), lambda ni, si: (ni, si, 0, 0)),
        pl.BlockSpec((None, 1, 8, cp), lambda ni, si: (ni, si, 0, 0)),
        pl.BlockSpec((None, 1, 8, cp), lambda ni, si: (ni, si, 0, 0)),
    )
    return out_shape, out_specs


def fused_conv1(y, skip, w1):
    n, h2, w2, cp = y.shape
    k2 = 2 * cp
    rows = _pick_strip_rows(h2, w2, 9 * k2)
    s_cnt = h2 // rows
    cen, top, bot = _strip_specs(h2, w2, cp, rows)
    out_shape, out_specs = _conv_outputs(n, h2, w2, cp, rows)
    kernel = functools.partial(_conv1_kernel, rows=rows, w2=w2, cp=cp)
    z, ssum, ssq = pl.pallas_call(
        kernel,
        out_shape=out_shape,
        grid=(n, s_cnt),
        in_specs=[cen, top, bot, cen, top, bot,
                  pl.BlockSpec((9 * k2, cp), lambda ni, si: (0, 0))],
        out_specs=out_specs,
        scratch_shapes=[
            pltpu.VMEM((rows + 2, LPAD + w2 + 8, k2), jnp.bfloat16),  # width-padded slab
            pltpu.VMEM((rows * w2, 9 * k2), jnp.bfloat16),            # im2col (big-K LHS)
        ],
        compiler_params=pltpu.CompilerParams(
            dimension_semantics=("parallel", "parallel"),
            vmem_limit_bytes=VMEM_LIMIT),
    )(y, y, y, skip, skip, skip, w1)
    return z, ssum[:, :, 0, :].sum(axis=(0, 1)), ssq[:, :, 0, :].sum(axis=(0, 1))


def fused_conv2(x, scale1, shift1, w2m):
    n, h2, w2, cp = x.shape
    rows = _pick_strip_rows(h2, w2, 9 * cp)
    s_cnt = h2 // rows
    cen, top, bot = _strip_specs(h2, w2, cp, rows)
    out_shape, out_specs = _conv_outputs(n, h2, w2, cp, rows)
    kernel = functools.partial(_conv2_kernel, rows=rows, w2=w2, cp=cp)
    z, ssum, ssq = pl.pallas_call(
        kernel,
        out_shape=out_shape,
        grid=(n, s_cnt),
        in_specs=[cen, top, bot,
                  pl.BlockSpec((1, cp), lambda ni, si: (0, 0)),
                  pl.BlockSpec((1, cp), lambda ni, si: (0, 0)),
                  pl.BlockSpec((9 * cp, cp), lambda ni, si: (0, 0))],
        out_specs=out_specs,
        scratch_shapes=[
            pltpu.VMEM((rows + 2, LPAD + w2 + 8, cp), jnp.bfloat16),
            pltpu.VMEM((rows * w2, 9 * cp), jnp.bfloat16),
        ],
        compiler_params=pltpu.CompilerParams(
            dimension_semantics=("parallel", "parallel"),
            vmem_limit_bytes=VMEM_LIMIT),
    )(x, x, x, scale1, shift1, w2m)
    return z, ssum[:, :, 0, :].sum(axis=(0, 1)), ssq[:, :, 0, :].sum(axis=(0, 1))


# ----------------------- Final BN2 affine + ReLU -> NCHW -----------------------

def _bn_relu_nchw_kernel(x_ref, e_ref, s_ref, t_ref, o_ref, *, rows, w2):
    m = rows * w2
    x = x_ref[...].reshape(m, x_ref.shape[-1])
    # channel-slice + transpose in one small MXU op: (out_c, cp) x (m, cp)^T
    xt = lax.dot_general(e_ref[...], x, (((1,), (1,)), ((), ())),
                         preferred_element_type=jnp.float32)       # (out_c, m)
    y = xt * s_ref[...] + t_ref[...]
    o_ref[...] = jnp.maximum(y, 0.0)


def bn_relu_to_nchw(z, e_mat, scale_t, shift_t):
    n, h2, w2, cp = z.shape
    out_c = e_mat.shape[0]
    rows = _pick_out_rows(h2, w2)
    tp = rows * w2
    kernel = functools.partial(_bn_relu_nchw_kernel, rows=rows, w2=w2)
    return pl.pallas_call(
        kernel,
        out_shape=jax.ShapeDtypeStruct((n, out_c, h2 * w2), jnp.float32),
        grid=(n, h2 // rows),
        in_specs=[
            pl.BlockSpec((None, rows, w2, cp), lambda ni, ji: (ni, ji, 0, 0)),
            pl.BlockSpec((out_c, cp), lambda ni, ji: (0, 0)),
            pl.BlockSpec((out_c, 1), lambda ni, ji: (0, 0)),
            pl.BlockSpec((out_c, 1), lambda ni, ji: (0, 0)),
        ],
        out_specs=pl.BlockSpec((None, out_c, tp), lambda ni, ji: (ni, 0, ji)),
        compiler_params=pltpu.CompilerParams(
            dimension_semantics=("parallel", "parallel"),
            vmem_limit_bytes=VMEM_LIMIT),
    )(z, e_mat, scale_t, shift_t)


# --------------------------------- JAX glue -----------------------------------

def _pad_vec(v, cp):
    return jnp.zeros((cp,), jnp.float32).at[: v.shape[0]].set(v)


def _bn_scale_shift(ssum, ssq, gamma_p, beta_p, count):
    mean = ssum / count
    var = jnp.maximum(ssq / count - mean * mean, 0.0)   # clamp cancellation
    scale = gamma_p / jnp.sqrt(var + EPS)
    shift = beta_p - mean * scale
    return scale.reshape(1, -1), shift.reshape(1, -1)


def _to_nhwc_lanes(x_nchw, cpad):
    n, c, h, w = x_nchw.shape
    x = jnp.transpose(x_nchw, (0, 2, 3, 1))
    x = jnp.pad(x, ((0, 0), (0, 0), (0, 0), (0, cpad - c)))
    return x.astype(jnp.bfloat16)


def _prep_convt_w(w, cpi, cp):
    """(in_c, out_c, 2, 2) -> (2[dy], cpi, 2*cp) bf16; columns = (dx, ch)."""
    in_c, out_c = w.shape[0], w.shape[1]
    wt = jnp.transpose(w, (2, 0, 3, 1))                    # (dy, ci, dx, co)
    full = jnp.zeros((2, cpi, 2, cp), jnp.float32)
    full = full.at[:, :in_c, :, :out_c].set(wt)
    return full.reshape(2, cpi, 2 * cp).astype(jnp.bfloat16)


def _prep_convt_b(b, cp):
    full = jnp.zeros((2, cp), jnp.float32).at[:, : b.shape[0]].set(b)
    return full.reshape(1, 2 * cp)


def _prep_conv1_w(w, cp):
    """(out_c, 2*out_c, 3, 3) -> (9*2*cp, cp) bf16; rows = (tap, [y_ch, skip_ch])."""
    out_c = w.shape[0]
    wt = jnp.transpose(w, (2, 3, 1, 0))                    # (ky, kx, ci, co)
    full = jnp.zeros((3, 3, 2, cp, cp), jnp.float32)
    full = full.at[:, :, 0, :out_c, :out_c].set(wt[:, :, :out_c, :])
    full = full.at[:, :, 1, :out_c, :out_c].set(wt[:, :, out_c:, :])
    return full.reshape(9 * 2 * cp, cp).astype(jnp.bfloat16)


def _prep_conv2_w(w, cp):
    """(out_c, out_c, 3, 3) -> (9*cp, cp) bf16; rows = (tap, ch)."""
    out_c = w.shape[0]
    wt = jnp.transpose(w, (2, 3, 1, 0))
    full = jnp.zeros((3, 3, cp, cp), jnp.float32)
    full = full.at[:, :, :out_c, :out_c].set(wt)
    return full.reshape(9 * cp, cp).astype(jnp.bfloat16)


def up_forward(inputs_nchw, skip_nchw, params):
    n, in_c, h, w = inputs_nchw.shape
    out_c = params["up_b"].shape[0]
    h2, w2 = 2 * h, 2 * w
    cpi = _round_up(in_c, LANES)
    cp = _round_up(out_c, LANES)

    x = _to_nhwc_lanes(inputs_nchw, cpi)          # (n, h, w, cpi) bf16
    skip = _to_nhwc_lanes(skip_nchw, cp)          # (n, h2, w2, cp) bf16

    # ConvTranspose2d(k=2, s=2)
    w_t = _prep_convt_w(params["up_w"], cpi, cp)
    b_t = _prep_convt_b(params["up_b"], cp)
    y5 = conv_transpose_2x2(x, w_t, b_t)          # (n, h, 2, w, 2*cp)
    # TODO(synk): pure reshape, but XLA may still materialize one copy here.
    y = y5.reshape(n, h2, w2, cp)

    # conv1 (concat-free, big-K, BN1 sums in-kernel).  Conv biases are dropped:
    # training-mode BatchNorm's mean subtraction cancels them exactly.
    w1 = _prep_conv1_w(params["c1_w"], cp)
    z1, s1, q1 = fused_conv1(y, skip, w1)
    scale1, shift1 = _bn_scale_shift(s1, q1, _pad_vec(params["g1"], cp),
                                     _pad_vec(params["b1"], cp), n * h2 * w2)

    # conv2 (BN1 affine fused into the slab fill; no ReLU before it by spec).
    w2m = _prep_conv2_w(params["c2_w"], cp)
    z2, s2, q2 = fused_conv2(z1, scale1, shift1, w2m)
    scale2, shift2 = _bn_scale_shift(s2, q2, _pad_vec(params["g2"], cp),
                                     _pad_vec(params["b2"], cp), n * h2 * w2)

    # final BN2 affine + ReLU, written directly as (n, out_c, pixels) f32.
    e_mat = jnp.eye(out_c, cp, dtype=jnp.bfloat16)
    out = bn_relu_to_nchw(z2, e_mat,
                          scale2[0, :out_c].reshape(out_c, 1),
                          shift2[0, :out_c].reshape(out_c, 1))
    return out.reshape(n, out_c, h2, w2)


def init_params(key, in_c, out_c):
    ks = jax.random.split(key, 8)
    f32 = jnp.float32
    return {
        # ConvTranspose2d(in_c, out_c, 2, 2): weight (in_c, out_c, 2, 2)
        "up_w": 0.1 * jax.random.normal(ks[0], (in_c, out_c, 2, 2), f32),
        "up_b": 0.05 * jax.random.normal(ks[1], (out_c,), f32),
        # Conv2d(2*out_c, out_c, 3, pad=1)  (bias kept for spec fidelity; it is
        # mathematically cancelled by the training-mode BatchNorm that follows)
        "c1_w": 0.1 * jax.random.normal(ks[2], (out_c, 2 * out_c, 3, 3), f32),
        "c1_b": 0.05 * jax.random.normal(ks[3], (out_c,), f32),
        "g1": jnp.ones((out_c,), f32),
        "b1": jnp.zeros((out_c,), f32),
        # Conv2d(out_c, out_c, 3, pad=1)
        "c2_w": 0.1 * jax.random.normal(ks[4], (out_c, out_c, 3, 3), f32),
        "c2_b": 0.05 * jax.random.normal(ks[5], (out_c,), f32),
        "g2": jnp.ones((out_c,), f32),
        "b2": jnp.zeros((out_c,), f32),
    }


if __name__ == "__main__":
    key = jax.random.PRNGKey(0)
    k_in, k_skip, k_param = jax.random.split(key, 3)

    in_c, out_c = 8, 4
    N, H, W = 2, 8, 8

    inputs = jax.random.normal(k_in, (N, in_c, H, W), jnp.float32)           # NCHW
    skip = jax.random.normal(k_skip, (N, out_c, 2 * H, 2 * W), jnp.float32)  # NCHW
    params = init_params(k_param, in_c, out_c)

    out = jax.jit(up_forward)(inputs, skip, params)
    out = jax.block_until_ready(out)
    assert out.shape == (N, out_c, 2 * H, 2 * W), out.shape
    print("KERNEL_OK")
</pallas_src>

<mosaic_0001>
module attributes {stable_mosaic.version = 11 : i64} {
  func.func @_convt_kernel(%arg0: i32, %arg1: i32, %arg2: i32, %arg3: memref<1x4x8x128xbf16, #tpu.memory_space<vmem>>, %arg4: memref<1x128x256xbf16, #tpu.memory_space<vmem>>, %arg5: memref<1x256xf32, #tpu.memory_space<vmem>>, %arg6: memref<1x4x1x8x256xbf16, #tpu.memory_space<vmem>>) attributes {dimension_semantics = [#tpu.dimension_semantics<parallel>, #tpu.dimension_semantics<parallel>, #tpu.dimension_semantics<parallel>], iteration_bounds = array<i64: 2, 2, 2>, scalar_prefetch = 0 : i64, scratch_operands = 0 : i64, tpu.core_type = #tpu.core_type<tc>, window_params = [{transform_indices = @transform_0, window_bounds = array<i64: 1, 4, 8, 128>}, {transform_indices = @transform_1, window_bounds = array<i64: 1, 128, 256>}, {pipeline_mode = #tpu.pipeline_mode<synchronous>, transform_indices = @transform_2, window_bounds = array<i64: 1, 256>}, {transform_indices = @transform_3, window_bounds = array<i64: 1, 4, 1, 8, 256>}]} {
    %c0 = arith.constant 0 : index
    %c0_0 = arith.constant 0 : index
    %c0_1 = arith.constant 0 : index
    %c0_2 = arith.constant 0 : index
    %0 = vector.load %arg3[%c0, %c0_0, %c0_1, %c0_2] : memref<1x4x8x128xbf16, #tpu.memory_space<vmem>>, vector<1x4x8x128xbf16>
    %1 = vector.shape_cast %0 : vector<1x4x8x128xbf16> to vector<4x8x128xbf16>
    %2 = vector.shape_cast %1 : vector<4x8x128xbf16> to vector<32x128xbf16>
    %c0_3 = arith.constant 0 : index
    %c0_4 = arith.constant 0 : index
    %c0_5 = arith.constant 0 : index
    %3 = vector.load %arg4[%c0_3, %c0_4, %c0_5] : memref<1x128x256xbf16, #tpu.memory_space<vmem>>, vector<1x128x256xbf16>
    %4 = vector.shape_cast %3 : vector<1x128x256xbf16> to vector<128x256xbf16>
    %cst = arith.constant dense<0.000000e+00> : vector<32x256xf32>
    %5 = tpu.matmul %2, %4, %cst {dimension_numbers = #tpu.dot_dimension_numbers<[1], [0], [0], [1], [0, 0, 1, 1], [], []>} : vector<32x128xbf16>, vector<128x256xbf16>, vector<32x256xf32> -> vector<32x256xf32>
    %c0_6 = arith.constant 0 : index
    %c0_7 = arith.constant 0 : index
    %6 = vector.load %arg5[%c0_6, %c0_7] : memref<1x256xf32, #tpu.memory_space<vmem>>, vector<1x256xf32>
    %7 = vector.broadcast %6 : vector<1x256xf32> to vector<32x256xf32>
    %8 = arith.addf %5, %7 : vector<32x256xf32>
    %9 = vector.shape_cast %8 : vector<32x256xf32> to vector<4x1x8x256xf32>
    %10 = arith.truncf %9 : vector<4x1x8x256xf32> to vector<4x1x8x256xbf16>
    %c0_8 = arith.constant 0 : index
    %c0_9 = arith.constant 0 : index
    %c0_10 = arith.constant 0 : index
    %c0_11 = arith.constant 0 : index
    %c0_12 = arith.constant 0 : index
    %11 = vector.load %arg6[%c0_8, %c0_9, %c0_10, %c0_11, %c0_12] : memref<1x4x1x8x256xbf16, #tpu.memory_space<vmem>>, vector<1x4x1x8x256xbf16>
    %12 = vector.shape_cast %11 : vector<1x4x1x8x256xbf16> to vector<4x1x8x256xbf16>
    %13 = vector.shape_cast %10 : vector<4x1x8x256xbf16> to vector<1x4x1x8x256xbf16>
    tpu.vector_store %arg6[%c0_8, %c0_9, %c0_10, %c0_11, %c0_12], %13 {strides = array<i32>} : memref<1x4x1x8x256xbf16, #tpu.memory_space<vmem>>, vector<1x4x1x8x256xbf16>,
    return
  }
  func.func @transform_0(%arg0: i32, %arg1: i32, %arg2: i32) -> (i32, i32, i32, i32) {
    %c0_i32 = arith.constant 0 : i32
    %c0_i32_0 = arith.constant 0 : i32
    %c0_i32_1 = arith.constant 0 : i32
    return %arg0, %arg1, %c0_i32, %c0_i32_0 : i32, i32, i32, i32
  }
  func.func @transform_1(%arg0: i32, %arg1: i32, %arg2: i32) -> (i32, i32, i32) {
    %c0_i32 = arith.constant 0 : i32
    %c0_i32_0 = arith.constant 0 : i32
    %c0_i32_1 = arith.constant 0 : i32
    return %arg2, %c0_i32, %c0_i32_0 : i32, i32, i32
  }
  func.func @transform_2(%arg0: i32, %arg1: i32, %arg2: i32) -> (i32, i32) {
    %c0_i32 = arith.constant 0 : i32
    %c0_i32_0 = arith.constant 0 : i32
    %c0_i32_1 = arith.constant 0 : i32
    return %c0_i32, %c0_i32_0 : i32, i32
  }
  func.func @transform_3(%arg0: i32, %arg1: i32, %arg2: i32) -> (i32, i32, i32, i32, i32) {
    %c0_i32 = arith.constant 0 : i32
    %c0_i32_0 = arith.constant 0 : i32
    %c0_i32_1 = arith.constant 0 : i32
    return %arg0, %arg1, %arg2, %c0_i32, %c0_i32_0 : i32, i32, i32, i32, i32
  }
}

module attributes {stable_mosaic.version = 11 : i64} {
  func.func @_conv1_kernel(%arg0: i32, %arg1: i32, %arg2: memref<1x8x16x128xbf16, #tpu.memory_space<vmem>>, %arg3: memref<1x1x16x128xbf16, #tpu.memory_space<vmem>>, %arg4: memref<1x1x16x128xbf16, #tpu.memory_space<vmem>>, %arg5: memref<1x8x16x128xbf16, #tpu.memory_space<vmem>>, %arg6: memref<1x1x16x128xbf16, #tpu.memory_space<vmem>>, %arg7: memref<1x1x16x128xbf16, #tpu.memory_space<vmem>>, %arg8: memref<2304x128xbf16, #tpu.memory_space<vmem>>, %arg9: memref<1x8x16x128xbf16, #tpu.memory_space<vmem>>, %arg10: memref<1x1x8x128xf32, #tpu.memory_space<vmem>>, %arg11: memref<1x1x8x128xf32, #tpu.memory_space<vmem>>, %arg12: memref<10x32x256xbf16, #tpu.memory_space<vmem>>, %arg13: memref<128x2304xbf16, #tpu.memory_space<vmem>>) attributes {dimension_semantics = [#tpu.dimension_semantics<parallel>, #tpu.dimension_semantics<parallel>], iteration_bounds = array<i64: 2, 2>, scalar_prefetch = 0 : i64, scratch_operands = 2 : i64, tpu.core_type = #tpu.core_type<tc>, window_params = [{transform_indices = @transform_0, window_bounds = array<i64: 1, 8, 16, 128>}, {transform_indices = @transform_1, window_bounds = array<i64: 1, 1, 16, 128>}, {transform_indices = @transform_2, window_bounds = array<i64: 1, 1, 16, 128>}, {transform_indices = @transform_3, window_bounds = array<i64: 1, 8, 16, 128>}, {transform_indices = @transform_4, window_bounds = array<i64: 1, 1, 16, 128>}, {transform_indices = @transform_5, window_bounds = array<i64: 1, 1, 16, 128>}, {pipeline_mode = #tpu.pipeline_mode<synchronous>, transform_indices = @transform_6, window_bounds = array<i64: 2304, 128>}, {transform_indices = @transform_7, window_bounds = array<i64: 1, 8, 16, 128>}, {transform_indices = @transform_8, window_bounds = array<i64: 1, 1, 8, 128>}, {transform_indices = @transform_9, window_bounds = array<i64: 1, 1, 8, 128>}]} {
    %cst = arith.constant 0.000000e+00 : bf16
    %0 = vector.broadcast %cst : bf16 to vector<10x1x256xbf16>
    %c0 = arith.constant 0 : index
    %c7 = arith.constant 7 : index
    %c0_0 = arith.constant 0 : index
    %1 = vector.load %arg12[%c0, %c7, %c0_0] : memref<10x32x256xbf16, #tpu.memory_space<vmem>>, vector<10x1x256xbf16>
    tpu.vector_store %arg12[%c0, %c7, %c0_0], %0 {strides = array<i32>} : memref<10x32x256xbf16, #tpu.memory_space<vmem>>, vector<10x1x256xbf16>,
    %c0_1 = arith.constant 0 : index
    %c24 = arith.constant 24 : index
    %c0_2 = arith.constant 0 : index
    %2 = vector.load %arg12[%c0_1, %c24, %c0_2] : memref<10x32x256xbf16, #tpu.memory_space<vmem>>, vector<10x1x256xbf16>
    tpu.vector_store %arg12[%c0_1, %c24, %c0_2], %0 {strides = array<i32>} : memref<10x32x256xbf16, #tpu.memory_space<vmem>>, vector<10x1x256xbf16>,
    %c0_3 = arith.constant 0 : index
    %c0_4 = arith.constant 0 : index
    %c0_5 = arith.constant 0 : index
    %c0_6 = arith.constant 0 : index
    %3 = vector.load %arg2[%c0_3, %c0_4, %c0_5, %c0_6] : memref<1x8x16x128xbf16, #tpu.memory_space<vmem>>, vector<1x8x16x128xbf16>
    %4 = vector.shape_cast %3 : vector<1x8x16x128xbf16> to vector<8x16x128xbf16>
    %c1 = arith.constant 1 : index
    %c8 = arith.constant 8 : index
    %c0_7 = arith.constant 0 : index
    %5 = vector.load %arg12[%c1, %c8, %c0_7] : memref<10x32x256xbf16, #tpu.memory_space<vmem>>, vector<8x16x128xbf16>
    tpu.vector_store %arg12[%c1, %c8, %c0_7], %4 {strides = array<i32>} : memref<10x32x256xbf16, #tpu.memory_space<vmem>>, vector<8x16x128xbf16>,
    %c0_8 = arith.constant 0 : index
    %c0_9 = arith.constant 0 : index
    %c0_10 = arith.constant 0 : index
    %c0_11 = arith.constant 0 : index
    %6 = vector.load %arg5[%c0_8, %c0_9, %c0_10, %c0_11] : memref<1x8x16x128xbf16, #tpu.memory_space<vmem>>, vector<1x8x16x128xbf16>
    %7 = vector.shape_cast %6 : vector<1x8x16x128xbf16> to vector<8x16x128xbf16>
    %c1_12 = arith.constant 1 : index
    %c8_13 = arith.constant 8 : index
    %c128 = arith.constant 128 : index
    %8 = vector.load %arg12[%c1_12, %c8_13, %c128] : memref<10x32x256xbf16, #tpu.memory_space<vmem>>, vector<8x16x128xbf16>
    tpu.vector_store %arg12[%c1_12, %c8_13, %c128], %7 {strides = array<i32>} : memref<10x32x256xbf16, #tpu.memory_space<vmem>>, vector<8x16x128xbf16>,
    %c0_i32 = arith.constant 0 : i32
    %9 = arith.cmpi sgt, %arg1, %c0_i32 : i32
    %c0_14 = arith.constant 0 : index
    %c0_15 = arith.constant 0 : index
    %c0_16 = arith.constant 0 : index
    %c0_17 = arith.constant 0 : index
    %10 = vector.load %arg3[%c0_14, %c0_15, %c0_16, %c0_17] : memref<1x1x16x128xbf16, #tpu.memory_space<vmem>>, vector<1x1x16x128xbf16>
    %11 = vector.shape_cast %10 : vector<1x1x16x128xbf16> to vector<16x128xbf16>
    %cst_18 = arith.constant 0.000000e+00 : bf16
    %12 = vector.broadcast %cst_18 : bf16 to vector<16x128xbf16>
    %13 = arith.select %9, %11, %12 : vector<16x128xbf16>
    %c0_i32_19 = arith.constant 0 : i32
    %14 = arith.cmpi sgt, %arg1, %c0_i32_19 : i32
    %c0_20 = arith.constant 0 : index
    %c0_21 = arith.constant 0 : index
    %c0_22 = arith.constant 0 : index
    %c0_23 = arith.constant 0 : index
    %15 = vector.load %arg6[%c0_20, %c0_21, %c0_22, %c0_23] : memref<1x1x16x128xbf16, #tpu.memory_space<vmem>>, vector<1x1x16x128xbf16>
    %16 = vector.shape_cast %15 : vector<1x1x16x128xbf16> to vector<16x128xbf16>
    %cst_24 = arith.constant 0.000000e+00 : bf16
    %17 = vector.broadcast %cst_24 : bf16 to vector<16x128xbf16>
    %18 = arith.select %14, %16, %17 : vector<16x128xbf16>
    %c1_i32 = arith.constant 1 : i32
    %19 = arith.cmpi slt, %arg1, %c1_i32 : i32
    %c0_25 = arith.constant 0 : index
    %c0_26 = arith.constant 0 : index
    %c0_27 = arith.constant 0 : index
    %c0_28 = arith.constant 0 : index
    %20 = vector.load %arg4[%c0_25, %c0_26, %c0_27, %c0_28] : memref<1x1x16x128xbf16, #tpu.memory_space<vmem>>, vector<1x1x16x128xbf16>
    %21 = vector.shape_cast %20 : vector<1x1x16x128xbf16> to vector<16x128xbf16>
    %cst_29 = arith.constant 0.000000e+00 : bf16
    %22 = vector.broadcast %cst_29 : bf16 to vector<16x128xbf16>
    %23 = arith.select %19, %21, %22 : vector<16x128xbf16>
    %c1_i32_30 = arith.constant 1 : i32
    %24 = arith.cmpi slt, %arg1, %c1_i32_30 : i32
    %c0_31 = arith.constant 0 : index
    %c0_32 = arith.constant 0 : index
    %c0_33 = arith.constant 0 : index
    %c0_34 = arith.constant 0 : index
    %25 = vector.load %arg7[%c0_31, %c0_32, %c0_33, %c0_34] : memref<1x1x16x128xbf16, #tpu.memory_space<vmem>>, vector<1x1x16x128xbf16>
    %26 = vector.shape_cast %25 : vector<1x1x16x128xbf16> to vector<16x128xbf16>
    %cst_35 = arith.constant 0.000000e+00 : bf16
    %27 = vector.broadcast %cst_35 : bf16 to vector<16x128xbf16>
    %28 = arith.select %24, %26, %27 : vector<16x128xbf16>
    %c0_36 = arith.constant 0 : index
    %c8_37 = arith.constant 8 : index
    %c0_38 = arith.constant 0 : index
    %29 = vector.load %arg12[%c0_36, %c8_37, %c0_38] : memref<10x32x256xbf16, #tpu.memory_space<vmem>>, vector<1x16x128xbf16>
    %30 = vector.shape_cast %29 : vector<1x16x128xbf16> to vector<16x128xbf16>
    %31 = vector.shape_cast %13 : vector<16x128xbf16> to vector<1x16x128xbf16>
    tpu.vector_store %arg12[%c0_36, %c8_37, %c0_38], %31 {strides = array<i32>} : memref<10x32x256xbf16, #tpu.memory_space<vmem>>, vector<1x16x128xbf16>,
    %c0_39 = arith.constant 0 : index
    %c8_40 = arith.constant 8 : index
    %c128_41 = arith.constant 128 : index
    %32 = vector.load %arg12[%c0_39, %c8_40, %c128_41] : memref<10x32x256xbf16, #tpu.memory_space<vmem>>, vector<1x16x128xbf16>
    %33 = vector.shape_cast %32 : vector<1x16x128xbf16> to vector<16x128xbf16>
    %34 = vector.shape_cast %18 : vector<16x128xbf16> to vector<1x16x128xbf16>
    tpu.vector_store %arg12[%c0_39, %c8_40, %c128_41], %34 {strides = array<i32>} : memref<10x32x256xbf16, #tpu.memory_space<vmem>>, vector<1x16x128xbf16>,
    %c9 = arith.constant 9 : index
    %c8_42 = arith.constant 8 : index
    %c0_43 = arith.constant 0 : index
    %35 = vector.load %arg12[%c9, %c8_42, %c0_43] : memref<10x32x256xbf16, #tpu.memory_space<vmem>>, vector<1x16x128xbf16>
    %36 = vector.shape_cast %35 : vector<1x16x128xbf16> to vector<16x128xbf16>
    %37 = vector.shape_cast %23 : vector<16x128xbf16> to vector<1x16x128xbf16>
    tpu.vector_store %arg12[%c9, %c8_42, %c0_43], %37 {strides = array<i32>} : memref<10x32x256xbf16, #tpu.memory_space<vmem>>, vector<1x16x128xbf16>,
    %c9_44 = arith.constant 9 : index
    %c8_45 = arith.constant 8 : index
    %c128_46 = arith.constant 128 : index
    %38 = vector.load %arg12[%c9_44, %c8_45, %c128_46] : memref<10x32x256xbf16, #tpu.memory_space<vmem>>, vector<1x16x128xbf16>
    %39 = vector.shape_cast %38 : vector<1x16x128xbf16> to vector<16x128xbf16>
    %40 = vector.shape_cast %28 : vector<16x128xbf16> to vector<1x16x128xbf16>
    tpu.vector_store %arg12[%c9_44, %c8_45, %c128_46], %40 {strides = array<i32>} : memref<10x32x256xbf16, #tpu.memory_space<vmem>>, vector<1x16x128xbf16>,
    %c0_47 = arith.constant 0 : index
    %c7_48 = arith.constant 7 : index
    %c0_49 = arith.constant 0 : index
    %41 = vector.load %arg12[%c0_47, %c7_48, %c0_49] : memref<10x32x256xbf16, #tpu.memory_space<vmem>>, vector<8x16x256xbf16>
    %42 = vector.shape_cast %41 : vector<8x16x256xbf16> to vector<128x256xbf16>
    %c0_50 = arith.constant 0 : index
    %c0_51 = arith.constant 0 : index
    %43 = vector.load %arg13[%c0_50, %c0_51] : memref<128x2304xbf16, #tpu.memory_space<vmem>>, vector<128x256xbf16>
    tpu.vector_store %arg13[%c0_50, %c0_51], %42 {strides = array<i32>} : memref<128x2304xbf16, #tpu.memory_space<vmem>>, vector<128x256xbf16>,
    %c0_52 = arith.constant 0 : index
    %c8_53 = arith.constant 8 : index
    %c0_54 = arith.constant 0 : index
    %44 = vector.load %arg12[%c0_52, %c8_53, %c0_54] : memref<10x32x256xbf16, #tpu.memory_space<vmem>>, vector<8x16x256xbf16>
    %45 = vector.shape_cast %44 : vector<8x16x256xbf16> to vector<128x256xbf16>
    %c0_55 = arith.constant 0 : index
    %c256 = arith.constant 256 : index
    %46 = vector.load %arg13[%c0_55, %c256] : memref<128x2304xbf16, #tpu.memory_space<vmem>>, vector<128x256xbf16>
    tpu.vector_store %arg13[%c0_55, %c256], %45 {strides = array<i32>} : memref<128x2304xbf16, #tpu.memory_space<vmem>>, vector<128x256xbf16>,
    %c0_56 = arith.constant 0 : index
    %c9_57 = arith.constant 9 : index
    %c0_58 = arith.constant 0 : index
    %47 = vector.load %arg12[%c0_56, %c9_57, %c0_58] : memref<10x32x256xbf16, #tpu.memory_space<vmem>>, vector<8x16x256xbf16>
    %48 = vector.shape_cast %47 : vector<8x16x256xbf16> to vector<128x256xbf16>
    %c0_59 = arith.constant 0 : index
    %c512 = arith.constant 512 : index
    %49 = vector.load %arg13[%c0_59, %c512] : memref<128x2304xbf16, #tpu.memory_space<vmem>>, vector<128x256xbf16>
    tpu.vector_store %arg13[%c0_59, %c512], %48 {strides = array<i32>} : memref<128x2304xbf16, #tpu.memory_space<vmem>>, vector<128x256xbf16>,
    %c1_60 = arith.constant 1 : index
    %c7_61 = arith.constant 7 : index
    %c0_62 = arith.constant 0 : index
    %50 = vector.load %arg12[%c1_60, %c7_61, %c0_62] : memref<10x32x256xbf16, #tpu.memory_space<vmem>>, vector<8x16x256xbf16>
    %51 = vector.shape_cast %50 : vector<8x16x256xbf16> to vector<128x256xbf16>
    %c0_63 = arith.constant 0 : index
    %c768 = arith.constant 768 : index
    %52 = vector.load %arg13[%c0_63, %c768] : memref<128x2304xbf16, #tpu.memory_space<vmem>>, vector<128x256xbf16>
    tpu.vector_store %arg13[%c0_63, %c768], %51 {strides = array<i32>} : memref<128x2304xbf16, #tpu.memory_space<vmem>>, vector<128x256xbf16>,
    %c1_64 = arith.constant 1 : index
    %c8_65 = arith.constant 8 : index
    %c0_66 = arith.constant 0 : index
    %53 = vector.load %arg12[%c1_64, %c8_65, %c0_66] : memref<10x32x256xbf16, #tpu.memory_space<vmem>>, vector<8x16x256xbf16>
    %54 = vector.shape_cast %53 : vector<8x16x256xbf16> to vector<128x256xbf16>
    %c0_67 = arith.constant 0 : index
    %c1024 = arith.constant 1024 : index
    %55 = vector.load %arg13[%c0_67, %c1024] : memref<128x2304xbf16, #tpu.memory_space<vmem>>, vector<128x256xbf16>
    tpu.vector_store %arg13[%c0_67, %c1024], %54 {strides = array<i32>} : memref<128x2304xbf16, #tpu.memory_space<vmem>>, vector<128x256xbf16>,
    %c1_68 = arith.constant 1 : index
    %c9_69 = arith.constant 9 : index
    %c0_70 = arith.constant 0 : index
    %56 = vector.load %arg12[%c1_68, %c9_69, %c0_70] : memref<10x32x256xbf16, #tpu.memory_space<vmem>>, vector<8x16x256xbf16>
    %57 = vector.shape_cast %56 : vector<8x16x256xbf16> to vector<128x256xbf16>
    %c0_71 = arith.constant 0 : index
    %c1280 = arith.constant 1280 : index
    %58 = vector.load %arg13[%c0_71, %c1280] : memref<128x2304xbf16, #tpu.memory_space<vmem>>, vector<128x256xbf16>
    tpu.vector_store %arg13[%c0_71, %c1280], %57 {strides = array<i32>} : memref<128x2304xbf16, #tpu.memory_space<vmem>>, vector<128x256xbf16>,
    %c2 = arith.constant 2 : index
    %c7_72 = arith.constant 7 : index
    %c0_73 = arith.constant 0 : index
    %59 = vector.load %arg12[%c2, %c7_72, %c0_73] : memref<10x32x256xbf16, #tpu.memory_space<vmem>>, vector<8x16x256xbf16>
    %60 = vector.shape_cast %59 : vector<8x16x256xbf16> to vector<128x256xbf16>
    %c0_74 = arith.constant 0 : index
    %c1536 = arith.constant 1536 : index
    %61 = vector.load %arg13[%c0_74, %c1536] : memref<128x2304xbf16, #tpu.memory_space<vmem>>, vector<128x256xbf16>
    tpu.vector_store %arg13[%c0_74, %c1536], %60 {strides = array<i32>} : memref<128x2304xbf16, #tpu.memory_space<vmem>>, vector<128x256xbf16>,
    %c2_75 = arith.constant 2 : index
    %c8_76 = arith.constant 8 : index
    %c0_77 = arith.constant 0 : index
    %62 = vector.load %arg12[%c2_75, %c8_76, %c0_77] : memref<10x32x256xbf16, #tpu.memory_space<vmem>>, vector<8x16x256xbf16>
    %63 = vector.shape_cast %62 : vector<8x16x256xbf16> to vector<128x256xbf16>
    %c0_78 = arith.constant 0 : index
    %c1792 = arith.constant 1792 : index
    %64 = vector.load %arg13[%c0_78, %c1792] : memref<128x2304xbf16, #tpu.memory_space<vmem>>, vector<128x256xbf16>
    tpu.vector_store %arg13[%c0_78, %c1792], %63 {strides = array<i32>} : memref<128x2304xbf16, #tpu.memory_space<vmem>>, vector<128x256xbf16>,
    %c2_79 = arith.constant 2 : index
    %c9_80 = arith.constant 9 : index
    %c0_81 = arith.constant 0 : index
    %65 = vector.load %arg12[%c2_79, %c9_80, %c0_81] : memref<10x32x256xbf16, #tpu.memory_space<vmem>>, vector<8x16x256xbf16>
    %66 = vector.shape_cast %65 : vector<8x16x256xbf16> to vector<128x256xbf16>
    %c0_82 = arith.constant 0 : index
    %c2048 = arith.constant 2048 : index
    %67 = vector.load %arg13[%c0_82, %c2048] : memref<128x2304xbf16, #tpu.memory_space<vmem>>, vector<128x256xbf16>
    tpu.vector_store %arg13[%c0_82, %c2048], %66 {strides = array<i32>} : memref<128x2304xbf16, #tpu.memory_space<vmem>>, vector<128x256xbf16>,
    %c0_83 = arith.constant 0 : index
    %c0_84 = arith.constant 0 : index
    %68 = vector.load %arg13[%c0_83, %c0_84] : memref<128x2304xbf16, #tpu.memory_space<vmem>>, vector<128x2304xbf16>
    %c0_85 = arith.constant 0 : index
    %c0_86 = arith.constant 0 : index
    %69 = vector.load %arg8[%c0_85, %c0_86] : memref<2304x128xbf16, #tpu.memory_space<vmem>>, vector<2304x128xbf16>
    %cst_87 = arith.constant dense<0.000000e+00> : vector<128x128xf32>
    %70 = tpu.matmul %68, %69, %cst_87 {dimension_numbers = #tpu.dot_dimension_numbers<[1], [0], [0], [1], [0, 0, 1, 1], [], []>} : vector<128x2304xbf16>, vector<2304x128xbf16>, vector<128x128xf32> -> vector<128x128xf32>
    %71 = vector.shape_cast %70 : vector<128x128xf32> to vector<8x16x128xf32>
    %72 = arith.truncf %71 : vector<8x16x128xf32> to vector<8x16x128xbf16>
    %c0_88 = arith.constant 0 : index
    %c0_89 = arith.constant 0 : index
    %c0_90 = arith.constant 0 : index
    %c0_91 = arith.constant 0 : index
    %73 = vector.load %arg9[%c0_88, %c0_89, %c0_90, %c0_91] : memref<1x8x16x128xbf16, #tpu.memory_space<vmem>>, vector<1x8x16x128xbf16>
    %74 = vector.shape_cast %73 : vector<1x8x16x128xbf16> to vector<8x16x128xbf16>
    %75 = vector.shape_cast %72 : vector<8x16x128xbf16> to vector<1x8x16x128xbf16>
    tpu.vector_store %arg9[%c0_88, %c0_89, %c0_90, %c0_91], %75 {strides = array<i32>} : memref<1x8x16x128xbf16, #tpu.memory_space<vmem>>, vector<1x8x16x128xbf16>,
    %cst_92 = arith.constant dense<0.000000e+00> : vector<128xf32>
    %76 = vector.multi_reduction <add>, %70, %cst_92 [0] : vector<128x128xf32> to vector<128xf32>
    %77 = vector.shape_cast %76 : vector<128xf32> to vector<1x128xf32>
    %78 = vector.shape_cast %77 : vector<1x128xf32> to vector<1x128xf32>
    %79 = vector.broadcast %78 : vector<1x128xf32> to vector<8x128xf32>
    %c0_93 = arith.constant 0 : index
    %c0_94 = arith.constant 0 : index
    %c0_95 = arith.constant 0 : index
    %c0_96 = arith.constant 0 : index
    %80 = vector.load %arg10[%c0_93, %c0_94, %c0_95, %c0_96] : memref<1x1x8x128xf32, #tpu.memory_space<vmem>>, vector<1x1x8x128xf32>
    %81 = vector.shape_cast %80 : vector<1x1x8x128xf32> to vector<8x128xf32>
    %82 = vector.shape_cast %79 : vector<8x128xf32> to vector<1x1x8x128xf32>
    tpu.vector_store %arg10[%c0_93, %c0_94, %c0_95, %c0_96], %82 {strides = array<i32>} : memref<1x1x8x128xf32, #tpu.memory_space<vmem>>, vector<1x1x8x128xf32>,
    %83 = arith.mulf %70, %70 : vector<128x128xf32>
    %cst_97 = arith.constant dense<0.000000e+00> : vector<128xf32>
    %84 = vector.multi_reduction <add>, %83, %cst_97 [0] : vector<128x128xf32> to vector<128xf32>
    %85 = vector.shape_cast %84 : vector<128xf32> to vector<1x128xf32>
    %86 = vector.shape_cast %85 : vector<1x128xf32> to vector<1x128xf32>
    %87 = vector.broadcast %86 : vector<1x128xf32> to vector<8x128xf32>
    %c0_98 = arith.constant 0 : index
    %c0_99 = arith.constant 0 : index
    %c0_100 = arith.constant 0 : index
    %c0_101 = arith.constant 0 : index
    %88 = vector.load %arg11[%c0_98, %c0_99, %c0_100, %c0_101] : memref<1x1x8x128xf32, #tpu.memory_space<vmem>>, vector<1x1x8x128xf32>
    %89 = vector.shape_cast %88 : vector<1x1x8x128xf32> to vector<8x128xf32>
    %90 = vector.shape_cast %87 : vector<8x128xf32> to vector<1x1x8x128xf32>
    tpu.vector_store %arg11[%c0_98, %c0_99, %c0_100, %c0_101], %90 {strides = array<i32>} : memref<1x1x8x128xf32, #tpu.memory_space<vmem>>, vector<1x1x8x128xf32>,
    return
  }
  func.func @transform_0(%arg0: i32, %arg1: i32) -> (i32, i32, i32, i32) {
    %c0_i32 = arith.constant 0 : i32
    %c0_i32_0 = arith.constant 0 : i32
    %c0_i32_1 = arith.constant 0 : i32
    return %arg0, %arg1, %c0_i32, %c0_i32_0 : i32, i32, i32, i32
  }
  func.func @transform_1(%arg0: i32, %arg1: i32) -> (i32, i32, i32, i32) {
    %c8_i32 = arith.constant 8 : i32
    %0 = arith.muli %arg1, %c8_i32 : i32
    %c1_i32 = arith.constant 1 : i32
    %1 = arith.subi %0, %c1_i32 : i32
    %c0_i32 = arith.constant 0 : i32
    %2 = arith.maxsi %1, %c0_i32 : i32
    %c0_i32_0 = arith.constant 0 : i32
    %c0_i32_1 = arith.constant 0 : i32
    %c0_i32_2 = arith.constant 0 : i32
    return %arg0, %2, %c0_i32_0, %c0_i32_1 : i32, i32, i32, i32
  }
  func.func @transform_2(%arg0: i32, %arg1: i32) -> (i32, i32, i32, i32) {
    %c1_i32 = arith.constant 1 : i32
    %0 = arith.addi %arg1, %c1_i32 : i32
    %c8_i32 = arith.constant 8 : i32
    %1 = arith.muli %0, %c8_i32 : i32
    %c15_i32 = arith.constant 15 : i32
    %2 = arith.minsi %1, %c15_i32 : i32
    %c0_i32 = arith.constant 0 : i32
    %c0_i32_0 = arith.constant 0 : i32
    %c0_i32_1 = arith.constant 0 : i32
    return %arg0, %2, %c0_i32, %c0_i32_0 : i32, i32, i32, i32
  }
  func.func @transform_3(%arg0: i32, %arg1: i32) -> (i32, i32, i32, i32) {
    %c0_i32 = arith.constant 0 : i32
    %c0_i32_0 = arith.constant 0 : i32
    %c0_i32_1 = arith.constant 0 : i32
    return %arg0, %arg1, %c0_i32, %c0_i32_0 : i32, i32, i32, i32
  }
  func.func @transform_4(%arg0: i32, %arg1: i32) -> (i32, i32, i32, i32) {
    %c8_i32 = arith.constant 8 : i32
    %0 = arith.muli %arg1, %c8_i32 : i32
    %c1_i32 = arith.constant 1 : i32
    %1 = arith.subi %0, %c1_i32 : i32
    %c0_i32 = arith.constant 0 : i32
    %2 = arith.maxsi %1, %c0_i32 : i32
    %c0_i32_0 = arith.constant 0 : i32
    %c0_i32_1 = arith.constant 0 : i32
    %c0_i32_2 = arith.constant 0 : i32
    return %arg0, %2, %c0_i32_0, %c0_i32_1 : i32, i32, i32, i32
  }
  func.func @transform_5(%arg0: i32, %arg1: i32) -> (i32, i32, i32, i32) {
    %c1_i32 = arith.constant 1 : i32
    %0 = arith.addi %arg1, %c1_i32 : i32
    %c8_i32 = arith.constant 8 : i32
    %1 = arith.muli %0, %c8_i32 : i32
    %c15_i32 = arith.constant 15 : i32
    %2 = arith.minsi %1, %c15_i32 : i32
    %c0_i32 = arith.constant 0 : i32
    %c0_i32_0 = arith.constant 0 : i32
    %c0_i32_1 = arith.constant 0 : i32
    return %arg0, %2, %c0_i32, %c0_i32_0 : i32, i32, i32, i32
  }
  func.func @transform_6(%arg0: i32, %arg1: i32) -> (i32, i32) {
    %c0_i32 = arith.constant 0 : i32
    %c0_i32_0 = arith.constant 0 : i32
    %c0_i32_1 = arith.constant 0 : i32
    return %c0_i32, %c0_i32_0 : i32, i32
  }
  func.func @transform_7(%arg0: i32, %arg1: i32) -> (i32, i32, i32, i32) {
    %c0_i32 = arith.constant 0 : i32
    %c0_i32_0 = arith.constant 0 : i32
    %c0_i32_1 = arith.constant 0 : i32
    return %arg0, %arg1, %c0_i32, %c0_i32_0 : i32, i32, i32, i32
  }
  func.func @transform_8(%arg0: i32, %arg1: i32) -> (i32, i32, i32, i32) {
    %c0_i32 = arith.constant 0 : i32
    %c0_i32_0 = arith.constant 0 : i32
    %c0_i32_1 = arith.constant 0 : i32
    return %arg0, %arg1, %c0_i32, %c0_i32_0 : i32, i32, i32, i32
  }
  func.func @transform_9(%arg0: i32, %arg1: i32) -> (i32, i32, i32, i32) {
    %c0_i32 = arith.constant 0 : i32
    %c0_i32_0 = arith.constant 0 : i32
    %c0_i32_1 = arith.constant 0 : i32
    return %arg0, %arg1, %c0_i32, %c0_i32_0 : i32, i32, i32, i32
  }
}

module attributes {stable_mosaic.version = 11 : i64} {
  func.func @_conv2_kernel(%arg0: i32, %arg1: i32, %arg2: memref<1x8x16x128xbf16, #tpu.memory_space<vmem>>, %arg3: memref<1x1x16x128xbf16, #tpu.memory_space<vmem>>, %arg4: memref<1x1x16x128xbf16, #tpu.memory_space<vmem>>, %arg5: memref<1x128xf32, #tpu.memory_space<vmem>>, %arg6: memref<1x128xf32, #tpu.memory_space<vmem>>, %arg7: memref<1152x128xbf16, #tpu.memory_space<vmem>>, %arg8: memref<1x8x16x128xbf16, #tpu.memory_space<vmem>>, %arg9: memref<1x1x8x128xf32, #tpu.memory_space<vmem>>, %arg10: memref<1x1x8x128xf32, #tpu.memory_space<vmem>>, %arg11: memref<10x32x128xbf16, #tpu.memory_space<vmem>>, %arg12: memref<128x1152xbf16, #tpu.memory_space<vmem>>) attributes {dimension_semantics = [#tpu.dimension_semantics<parallel>, #tpu.dimension_semantics<parallel>], iteration_bounds = array<i64: 2, 2>, scalar_prefetch = 0 : i64, scratch_operands = 2 : i64, tpu.core_type = #tpu.core_type<tc>, window_params = [{transform_indices = @transform_0, window_bounds = array<i64: 1, 8, 16, 128>}, {transform_indices = @transform_1, window_bounds = array<i64: 1, 1, 16, 128>}, {transform_indices = @transform_2, window_bounds = array<i64: 1, 1, 16, 128>}, {pipeline_mode = #tpu.pipeline_mode<synchronous>, transform_indices = @transform_3, window_bounds = array<i64: 1, 128>}, {pipeline_mode = #tpu.pipeline_mode<synchronous>, transform_indices = @transform_4, window_bounds = array<i64: 1, 128>}, {pipeline_mode = #tpu.pipeline_mode<synchronous>, transform_indices = @transform_5, window_bounds = array<i64: 1152, 128>}, {transform_indices = @transform_6, window_bounds = array<i64: 1, 8, 16, 128>}, {transform_indices = @transform_7, window_bounds = array<i64: 1, 1, 8, 128>}, {transform_indices = @transform_8, window_bounds = array<i64: 1, 1, 8, 128>}]} {
    %c0 = arith.constant 0 : index
    %c0_0 = arith.constant 0 : index
    %0 = vector.load %arg5[%c0, %c0_0] : memref<1x128xf32, #tpu.memory_space<vmem>>, vector<1x128xf32>
    %c0_1 = arith.constant 0 : index
    %c0_2 = arith.constant 0 : index
    %1 = vector.load %arg6[%c0_1, %c0_2] : memref<1x128xf32, #tpu.memory_space<vmem>>, vector<1x128xf32>
    %cst = arith.constant 0.000000e+00 : bf16
    %2 = vector.broadcast %cst : bf16 to vector<10x1x128xbf16>
    %c0_3 = arith.constant 0 : index
    %c7 = arith.constant 7 : index
    %c0_4 = arith.constant 0 : index
    %3 = vector.load %arg11[%c0_3, %c7, %c0_4] : memref<10x32x128xbf16, #tpu.memory_space<vmem>>, vector<10x1x128xbf16>
    tpu.vector_store %arg11[%c0_3, %c7, %c0_4], %2 {strides = array<i32>} : memref<10x32x128xbf16, #tpu.memory_space<vmem>>, vector<10x1x128xbf16>,
    %c0_5 = arith.constant 0 : index
    %c24 = arith.constant 24 : index
    %c0_6 = arith.constant 0 : index
    %4 = vector.load %arg11[%c0_5, %c24, %c0_6] : memref<10x32x128xbf16, #tpu.memory_space<vmem>>, vector<10x1x128xbf16>
    tpu.vector_store %arg11[%c0_5, %c24, %c0_6], %2 {strides = array<i32>} : memref<10x32x128xbf16, #tpu.memory_space<vmem>>, vector<10x1x128xbf16>,
    %c0_7 = arith.constant 0 : index
    %c0_8 = arith.constant 0 : index
    %c0_9 = arith.constant 0 : index
    %c0_10 = arith.constant 0 : index
    %5 = vector.load %arg2[%c0_7, %c0_8, %c0_9, %c0_10] : memref<1x8x16x128xbf16, #tpu.memory_space<vmem>>, vector<1x8x16x128xbf16>
    %6 = vector.shape_cast %5 : vector<1x8x16x128xbf16> to vector<8x16x128xbf16>
    %7 = arith.extf %6 : vector<8x16x128xbf16> to vector<8x16x128xf32>
    %8 = vector.shape_cast %0 : vector<1x128xf32> to vector<1x1x128xf32>
    %9 = vector.broadcast %8 : vector<1x1x128xf32> to vector<8x16x128xf32>
    %10 = arith.mulf %7, %9 : vector<8x16x128xf32>
    %11 = vector.shape_cast %1 : vector<1x128xf32> to vector<1x1x128xf32>
    %12 = vector.broadcast %11 : vector<1x1x128xf32> to vector<8x16x128xf32>
    %13 = arith.addf %10, %12 : vector<8x16x128xf32>
    %14 = arith.truncf %13 : vector<8x16x128xf32> to vector<8x16x128xbf16>
    %c1 = arith.constant 1 : index
    %c8 = arith.constant 8 : index
    %c0_11 = arith.constant 0 : index
    %15 = vector.load %arg11[%c1, %c8, %c0_11] : memref<10x32x128xbf16, #tpu.memory_space<vmem>>, vector<8x16x128xbf16>
    tpu.vector_store %arg11[%c1, %c8, %c0_11], %14 {strides = array<i32>} : memref<10x32x128xbf16, #tpu.memory_space<vmem>>, vector<8x16x128xbf16>,
    %cst_12 = arith.constant 0.000000e+00 : bf16
    %16 = vector.broadcast %cst_12 : bf16 to vector<16x128xbf16>
    %c0_i32 = arith.constant 0 : i32
    %17 = arith.cmpi sgt, %arg1, %c0_i32 : i32
    %c0_13 = arith.constant 0 : index
    %c0_14 = arith.constant 0 : index
    %c0_15 = arith.constant 0 : index
    %c0_16 = arith.constant 0 : index
    %18 = vector.load %arg3[%c0_13, %c0_14, %c0_15, %c0_16] : memref<1x1x16x128xbf16, #tpu.memory_space<vmem>>, vector<1x1x16x128xbf16>
    %19 = vector.shape_cast %18 : vector<1x1x16x128xbf16> to vector<16x128xbf16>
    %20 = arith.extf %19 : vector<16x128xbf16> to vector<16x128xf32>
    %21 = vector.broadcast %0 : vector<1x128xf32> to vector<16x128xf32>
    %22 = arith.mulf %20, %21 : vector<16x128xf32>
    %23 = vector.broadcast %1 : vector<1x128xf32> to vector<16x128xf32>
    %24 = arith.addf %22, %23 : vector<16x128xf32>
    %25 = arith.truncf %24 : vector<16x128xf32> to vector<16x128xbf16>
    %26 = arith.select %17, %25, %16 : vector<16x128xbf16>
    %c0_17 = arith.constant 0 : index
    %c8_18 = arith.constant 8 : index
    %c0_19 = arith.constant 0 : index
    %27 = vector.load %arg11[%c0_17, %c8_18, %c0_19] : memref<10x32x128xbf16, #tpu.memory_space<vmem>>, vector<1x16x128xbf16>
    %28 = vector.shape_cast %27 : vector<1x16x128xbf16> to vector<16x128xbf16>
    %29 = vector.shape_cast %26 : vector<16x128xbf16> to vector<1x16x128xbf16>
    tpu.vector_store %arg11[%c0_17, %c8_18, %c0_19], %29 {strides = array<i32>} : memref<10x32x128xbf16, #tpu.memory_space<vmem>>, vector<1x16x128xbf16>,
    %c1_i32 = arith.constant 1 : i32
    %30 = arith.cmpi slt, %arg1, %c1_i32 : i32
    %c0_20 = arith.constant 0 : index
    %c0_21 = arith.constant 0 : index
    %c0_22 = arith.constant 0 : index
    %c0_23 = arith.constant 0 : index
    %31 = vector.load %arg4[%c0_20, %c0_21, %c0_22, %c0_23] : memref<1x1x16x128xbf16, #tpu.memory_space<vmem>>, vector<1x1x16x128xbf16>
    %32 = vector.shape_cast %31 : vector<1x1x16x128xbf16> to vector<16x128xbf16>
    %33 = arith.extf %32 : vector<16x128xbf16> to vector<16x128xf32>
    %34 = vector.broadcast %0 : vector<1x128xf32> to vector<16x128xf32>
    %35 = arith.mulf %33, %34 : vector<16x128xf32>
    %36 = vector.broadcast %1 : vector<1x128xf32> to vector<16x128xf32>
    %37 = arith.addf %35, %36 : vector<16x128xf32>
    %38 = arith.truncf %37 : vector<16x128xf32> to vector<16x128xbf16>
    %39 = arith.select %30, %38, %16 : vector<16x128xbf16>
    %c9 = arith.constant 9 : index
    %c8_24 = arith.constant 8 : index
    %c0_25 = arith.constant 0 : index
    %40 = vector.load %arg11[%c9, %c8_24, %c0_25] : memref<10x32x128xbf16, #tpu.memory_space<vmem>>, vector<1x16x128xbf16>
    %41 = vector.shape_cast %40 : vector<1x16x128xbf16> to vector<16x128xbf16>
    %42 = vector.shape_cast %39 : vector<16x128xbf16> to vector<1x16x128xbf16>
    tpu.vector_store %arg11[%c9, %c8_24, %c0_25], %42 {strides = array<i32>} : memref<10x32x128xbf16, #tpu.memory_space<vmem>>, vector<1x16x128xbf16>,
    %c0_26 = arith.constant 0 : index
    %c7_27 = arith.constant 7 : index
    %c0_28 = arith.constant 0 : index
    %43 = vector.load %arg11[%c0_26, %c7_27, %c0_28] : memref<10x32x128xbf16, #tpu.memory_space<vmem>>, vector<8x16x128xbf16>
    %44 = vector.shape_cast %43 : vector<8x16x128xbf16> to vector<128x128xbf16>
    %c0_29 = arith.constant 0 : index
    %c0_30 = arith.constant 0 : index
    %45 = vector.load %arg12[%c0_29, %c0_30] : memref<128x1152xbf16, #tpu.memory_space<vmem>>, vector<128x128xbf16>
    tpu.vector_store %arg12[%c0_29, %c0_30], %44 {strides = array<i32>} : memref<128x1152xbf16, #tpu.memory_space<vmem>>, vector<128x128xbf16>,
    %c0_31 = arith.constant 0 : index
    %c8_32 = arith.constant 8 : index
    %c0_33 = arith.constant 0 : index
    %46 = vector.load %arg11[%c0_31, %c8_32, %c0_33] : memref<10x32x128xbf16, #tpu.memory_space<vmem>>, vector<8x16x128xbf16>
    %47 = vector.shape_cast %46 : vector<8x16x128xbf16> to vector<128x128xbf16>
    %c0_34 = arith.constant 0 : index
    %c128 = arith.constant 128 : index
    %48 = vector.load %arg12[%c0_34, %c128] : memref<128x1152xbf16, #tpu.memory_space<vmem>>, vector<128x128xbf16>
    tpu.vector_store %arg12[%c0_34, %c128], %47 {strides = array<i32>} : memref<128x1152xbf16, #tpu.memory_space<vmem>>, vector<128x128xbf16>,
    %c0_35 = arith.constant 0 : index
    %c9_36 = arith.constant 9 : index
    %c0_37 = arith.constant 0 : index
    %49 = vector.load %arg11[%c0_35, %c9_36, %c0_37] : memref<10x32x128xbf16, #tpu.memory_space<vmem>>, vector<8x16x128xbf16>
    %50 = vector.shape_cast %49 : vector<8x16x128xbf16> to vector<128x128xbf16>
    %c0_38 = arith.constant 0 : index
    %c256 = arith.constant 256 : index
    %51 = vector.load %arg12[%c0_38, %c256] : memref<128x1152xbf16, #tpu.memory_space<vmem>>, vector<128x128xbf16>
    tpu.vector_store %arg12[%c0_38, %c256], %50 {strides = array<i32>} : memref<128x1152xbf16, #tpu.memory_space<vmem>>, vector<128x128xbf16>,
    %c1_39 = arith.constant 1 : index
    %c7_40 = arith.constant 7 : index
    %c0_41 = arith.constant 0 : index
    %52 = vector.load %arg11[%c1_39, %c7_40, %c0_41] : memref<10x32x128xbf16, #tpu.memory_space<vmem>>, vector<8x16x128xbf16>
    %53 = vector.shape_cast %52 : vector<8x16x128xbf16> to vector<128x128xbf16>
    %c0_42 = arith.constant 0 : index
    %c384 = arith.constant 384 : index
    %54 = vector.load %arg12[%c0_42, %c384] : memref<128x1152xbf16, #tpu.memory_space<vmem>>, vector<128x128xbf16>
    tpu.vector_store %arg12[%c0_42, %c384], %53 {strides = array<i32>} : memref<128x1152xbf16, #tpu.memory_space<vmem>>, vector<128x128xbf16>,
    %c1_43 = arith.constant 1 : index
    %c8_44 = arith.constant 8 : index
    %c0_45 = arith.constant 0 : index
    %55 = vector.load %arg11[%c1_43, %c8_44, %c0_45] : memref<10x32x128xbf16, #tpu.memory_space<vmem>>, vector<8x16x128xbf16>
    %56 = vector.shape_cast %55 : vector<8x16x128xbf16> to vector<128x128xbf16>
    %c0_46 = arith.constant 0 : index
    %c512 = arith.constant 512 : index
    %57 = vector.load %arg12[%c0_46, %c512] : memref<128x1152xbf16, #tpu.memory_space<vmem>>, vector<128x128xbf16>
    tpu.vector_store %arg12[%c0_46, %c512], %56 {strides = array<i32>} : memref<128x1152xbf16, #tpu.memory_space<vmem>>, vector<128x128xbf16>,
    %c1_47 = arith.constant 1 : index
    %c9_48 = arith.constant 9 : index
    %c0_49 = arith.constant 0 : index
    %58 = vector.load %arg11[%c1_47, %c9_48, %c0_49] : memref<10x32x128xbf16, #tpu.memory_space<vmem>>, vector<8x16x128xbf16>
    %59 = vector.shape_cast %58 : vector<8x16x128xbf16> to vector<128x128xbf16>
    %c0_50 = arith.constant 0 : index
    %c640 = arith.constant 640 : index
    %60 = vector.load %arg12[%c0_50, %c640] : memref<128x1152xbf16, #tpu.memory_space<vmem>>, vector<128x128xbf16>
    tpu.vector_store %arg12[%c0_50, %c640], %59 {strides = array<i32>} : memref<128x1152xbf16, #tpu.memory_space<vmem>>, vector<128x128xbf16>,
    %c2 = arith.constant 2 : index
    %c7_51 = arith.constant 7 : index
    %c0_52 = arith.constant 0 : index
    %61 = vector.load %arg11[%c2, %c7_51, %c0_52] : memref<10x32x128xbf16, #tpu.memory_space<vmem>>, vector<8x16x128xbf16>
    %62 = vector.shape_cast %61 : vector<8x16x128xbf16> to vector<128x128xbf16>
    %c0_53 = arith.constant 0 : index
    %c768 = arith.constant 768 : index
    %63 = vector.load %arg12[%c0_53, %c768] : memref<128x1152xbf16, #tpu.memory_space<vmem>>, vector<128x128xbf16>
    tpu.vector_store %arg12[%c0_53, %c768], %62 {strides = array<i32>} : memref<128x1152xbf16, #tpu.memory_space<vmem>>, vector<128x128xbf16>,
    %c2_54 = arith.constant 2 : index
    %c8_55 = arith.constant 8 : index
    %c0_56 = arith.constant 0 : index
    %64 = vector.load %arg11[%c2_54, %c8_55, %c0_56] : memref<10x32x128xbf16, #tpu.memory_space<vmem>>, vector<8x16x128xbf16>
    %65 = vector.shape_cast %64 : vector<8x16x128xbf16> to vector<128x128xbf16>
    %c0_57 = arith.constant 0 : index
    %c896 = arith.constant 896 : index
    %66 = vector.load %arg12[%c0_57, %c896] : memref<128x1152xbf16, #tpu.memory_space<vmem>>, vector<128x128xbf16>
    tpu.vector_store %arg12[%c0_57, %c896], %65 {strides = array<i32>} : memref<128x1152xbf16, #tpu.memory_space<vmem>>, vector<128x128xbf16>,
    %c2_58 = arith.constant 2 : index
    %c9_59 = arith.constant 9 : index
    %c0_60 = arith.constant 0 : index
    %67 = vector.load %arg11[%c2_58, %c9_59, %c0_60] : memref<10x32x128xbf16, #tpu.memory_space<vmem>>, vector<8x16x128xbf16>
    %68 = vector.shape_cast %67 : vector<8x16x128xbf16> to vector<128x128xbf16>
    %c0_61 = arith.constant 0 : index
    %c1024 = arith.constant 1024 : index
    %69 = vector.load %arg12[%c0_61, %c1024] : memref<128x1152xbf16, #tpu.memory_space<vmem>>, vector<128x128xbf16>
    tpu.vector_store %arg12[%c0_61, %c1024], %68 {strides = array<i32>} : memref<128x1152xbf16, #tpu.memory_space<vmem>>, vector<128x128xbf16>,
    %c0_62 = arith.constant 0 : index
    %c0_63 = arith.constant 0 : index
    %70 = vector.load %arg12[%c0_62, %c0_63] : memref<128x1152xbf16, #tpu.memory_space<vmem>>, vector<128x1152xbf16>
    %c0_64 = arith.constant 0 : index
    %c0_65 = arith.constant 0 : index
    %71 = vector.load %arg7[%c0_64, %c0_65] : memref<1152x128xbf16, #tpu.memory_space<vmem>>, vector<1152x128xbf16>
    %cst_66 = arith.constant dense<0.000000e+00> : vector<128x128xf32>
    %72 = tpu.matmul %70, %71, %cst_66 {dimension_numbers = #tpu.dot_dimension_numbers<[1], [0], [0], [1], [0, 0, 1, 1], [], []>} : vector<128x1152xbf16>, vector<1152x128xbf16>, vector<128x128xf32> -> vector<128x128xf32>
    %73 = vector.shape_cast %72 : vector<128x128xf32> to vector<8x16x128xf32>
    %74 = arith.truncf %73 : vector<8x16x128xf32> to vector<8x16x128xbf16>
    %c0_67 = arith.constant 0 : index
    %c0_68 = arith.constant 0 : index
    %c0_69 = arith.constant 0 : index
    %c0_70 = arith.constant 0 : index
    %75 = vector.load %arg8[%c0_67, %c0_68, %c0_69, %c0_70] : memref<1x8x16x128xbf16, #tpu.memory_space<vmem>>, vector<1x8x16x128xbf16>
    %76 = vector.shape_cast %75 : vector<1x8x16x128xbf16> to vector<8x16x128xbf16>
    %77 = vector.shape_cast %74 : vector<8x16x128xbf16> to vector<1x8x16x128xbf16>
    tpu.vector_store %arg8[%c0_67, %c0_68, %c0_69, %c0_70], %77 {strides = array<i32>} : memref<1x8x16x128xbf16, #tpu.memory_space<vmem>>, vector<1x8x16x128xbf16>,
    %cst_71 = arith.constant dense<0.000000e+00> : vector<128xf32>
    %78 = vector.multi_reduction <add>, %72, %cst_71 [0] : vector<128x128xf32> to vector<128xf32>
    %79 = vector.shape_cast %78 : vector<128xf32> to vector<1x128xf32>
    %80 = vector.shape_cast %79 : vector<1x128xf32> to vector<1x128xf32>
    %81 = vector.broadcast %80 : vector<1x128xf32> to vector<8x128xf32>
    %c0_72 = arith.constant 0 : index
    %c0_73 = arith.constant 0 : index
    %c0_74 = arith.constant 0 : index
    %c0_75 = arith.constant 0 : index
    %82 = vector.load %arg9[%c0_72, %c0_73, %c0_74, %c0_75] : memref<1x1x8x128xf32, #tpu.memory_space<vmem>>, vector<1x1x8x128xf32>
    %83 = vector.shape_cast %82 : vector<1x1x8x128xf32> to vector<8x128xf32>
    %84 = vector.shape_cast %81 : vector<8x128xf32> to vector<1x1x8x128xf32>
    tpu.vector_store %arg9[%c0_72, %c0_73, %c0_74, %c0_75], %84 {strides = array<i32>} : memref<1x1x8x128xf32, #tpu.memory_space<vmem>>, vector<1x1x8x128xf32>,
    %85 = arith.mulf %72, %72 : vector<128x128xf32>
    %cst_76 = arith.constant dense<0.000000e+00> : vector<128xf32>
    %86 = vector.multi_reduction <add>, %85, %cst_76 [0] : vector<128x128xf32> to vector<128xf32>
    %87 = vector.shape_cast %86 : vector<128xf32> to vector<1x128xf32>
    %88 = vector.shape_cast %87 : vector<1x128xf32> to vector<1x128xf32>
    %89 = vector.broadcast %88 : vector<1x128xf32> to vector<8x128xf32>
    %c0_77 = arith.constant 0 : index
    %c0_78 = arith.constant 0 : index
    %c0_79 = arith.constant 0 : index
    %c0_80 = arith.constant 0 : index
    %90 = vector.load %arg10[%c0_77, %c0_78, %c0_79, %c0_80] : memref<1x1x8x128xf32, #tpu.memory_space<vmem>>, vector<1x1x8x128xf32>
    %91 = vector.shape_cast %90 : vector<1x1x8x128xf32> to vector<8x128xf32>
    %92 = vector.shape_cast %89 : vector<8x128xf32> to vector<1x1x8x128xf32>
    tpu.vector_store %arg10[%c0_77, %c0_78, %c0_79, %c0_80], %92 {strides = array<i32>} : memref<1x1x8x128xf32, #tpu.memory_space<vmem>>, vector<1x1x8x128xf32>,
    return
  }
  func.func @transform_0(%arg0: i32, %arg1: i32) -> (i32, i32, i32, i32) {
    %c0_i32 = arith.constant 0 : i32
    %c0_i32_0 = arith.constant 0 : i32
    %c0_i32_1 = arith.constant 0 : i32
    return %arg0, %arg1, %c0_i32, %c0_i32_0 : i32, i32, i32, i32
  }
  func.func @transform_1(%arg0: i32, %arg1: i32) -> (i32, i32, i32, i32) {
    %c8_i32 = arith.constant 8 : i32
    %0 = arith.muli %arg1, %c8_i32 : i32
    %c1_i32 = arith.constant 1 : i32
    %1 = arith.subi %0, %c1_i32 : i32
    %c0_i32 = arith.constant 0 : i32
    %2 = arith.maxsi %1, %c0_i32 : i32
    %c0_i32_0 = arith.constant 0 : i32
    %c0_i32_1 = arith.constant 0 : i32
    %c0_i32_2 = arith.constant 0 : i32
    return %arg0, %2, %c0_i32_0, %c0_i32_1 : i32, i32, i32, i32
  }
  func.func @transform_2(%arg0: i32, %arg1: i32) -> (i32, i32, i32, i32) {
    %c1_i32 = arith.constant 1 : i32
    %0 = arith.addi %arg1, %c1_i32 : i32
    %c8_i32 = arith.constant 8 : i32
    %1 = arith.muli %0, %c8_i32 : i32
    %c15_i32 = arith.constant 15 : i32
    %2 = arith.minsi %1, %c15_i32 : i32
    %c0_i32 = arith.constant 0 : i32
    %c0_i32_0 = arith.constant 0 : i32
    %c0_i32_1 = arith.constant 0 : i32
    return %arg0, %2, %c0_i32, %c0_i32_0 : i32, i32, i32, i32
  }
  func.func @transform_3(%arg0: i32, %arg1: i32) -> (i32, i32) {
    %c0_i32 = arith.constant 0 : i32
    %c0_i32_0 = arith.constant 0 : i32
    %c0_i32_1 = arith.constant 0 : i32
    return %c0_i32, %c0_i32_0 : i32, i32
  }
  func.func @transform_4(%arg0: i32, %arg1: i32) -> (i32, i32) {
    %c0_i32 = arith.constant 0 : i32
    %c0_i32_0 = arith.constant 0 : i32
    %c0_i32_1 = arith.constant 0 : i32
    return %c0_i32, %c0_i32_0 : i32, i32
  }
  func.func @transform_5(%arg0: i32, %arg1: i32) -> (i32, i32) {
    %c0_i32 = arith.constant 0 : i32
    %c0_i32_0 = arith.constant 0 : i32
    %c0_i32_1 = arith.constant 0 : i32
    return %c0_i32, %c0_i32_0 : i32, i32
  }
  func.func @transform_6(%arg0: i32, %arg1: i32) -> (i32, i32, i32, i32) {
    %c0_i32 = arith.constant 0 : i32
    %c0_i32_0 = arith.constant 0 : i32
    %c0_i32_1 = arith.constant 0 : i32
    return %arg0, %arg1, %c0_i32, %c0_i32_0 : i32, i32, i32, i32
  }
  func.func @transform_7(%arg0: i32, %arg1: i32) -> (i32, i32, i32, i32) {
    %c0_i32 = arith.constant 0 : i32
    %c0_i32_0 = arith.constant 0 : i32
    %c0_i32_1 = arith.constant 0 : i32
    return %arg0, %arg1, %c0_i32, %c0_i32_0 : i32, i32, i32, i32
  }
  func.func @transform_8(%arg0: i32, %arg1: i32) -> (i32, i32, i32, i32) {
    %c0_i32 = arith.constant 0 : i32
    %c0_i32_0 = arith.constant 0 : i32
    %c0_i32_1 = arith.constant 0 : i32
    return %arg0, %arg1, %c0_i32, %c0_i32_0 : i32, i32, i32, i32
  }
}

module attributes {stable_mosaic.version = 11 : i64} {
  func.func @_bn_relu_nchw_kernel(%arg0: i32, %arg1: i32, %arg2: memref<1x8x16x128xbf16, #tpu.memory_space<vmem>>, %arg3: memref<4x128xbf16, #tpu.memory_space<vmem>>, %arg4: memref<4x1xf32, #tpu.memory_space<vmem>>, %arg5: memref<4x1xf32, #tpu.memory_space<vmem>>, %arg6: memref<1x4x128xf32, #tpu.memory_space<vmem>>) attributes {dimension_semantics = [#tpu.dimension_semantics<parallel>, #tpu.dimension_semantics<parallel>], iteration_bounds = array<i64: 2, 2>, scalar_prefetch = 0 : i64, scratch_operands = 0 : i64, tpu.core_type = #tpu.core_type<tc>, window_params = [{transform_indices = @transform_0, window_bounds = array<i64: 1, 8, 16, 128>}, {pipeline_mode = #tpu.pipeline_mode<synchronous>, transform_indices = @transform_1, window_bounds = array<i64: 4, 128>}, {pipeline_mode = #tpu.pipeline_mode<synchronous>, transform_indices = @transform_2, window_bounds = array<i64: 4, 1>}, {pipeline_mode = #tpu.pipeline_mode<synchronous>, transform_indices = @transform_3, window_bounds = array<i64: 4, 1>}, {transform_indices = @transform_4, window_bounds = array<i64: 1, 4, 128>}]} {
    %c0 = arith.constant 0 : index
    %c0_0 = arith.constant 0 : index
    %c0_1 = arith.constant 0 : index
    %c0_2 = arith.constant 0 : index
    %0 = vector.load %arg2[%c0, %c0_0, %c0_1, %c0_2] : memref<1x8x16x128xbf16, #tpu.memory_space<vmem>>, vector<1x8x16x128xbf16>
    %1 = vector.shape_cast %0 : vector<1x8x16x128xbf16> to vector<8x16x128xbf16>
    %2 = vector.shape_cast %1 : vector<8x16x128xbf16> to vector<128x128xbf16>
    %c0_3 = arith.constant 0 : index
    %c0_4 = arith.constant 0 : index
    %3 = vector.load %arg3[%c0_3, %c0_4] : memref<4x128xbf16, #tpu.memory_space<vmem>>, vector<4x128xbf16>
    %cst = arith.constant dense<0.000000e+00> : vector<4x128xf32>
    %4 = tpu.matmul %3, %2, %cst {dimension_numbers = #tpu.dot_dimension_numbers<[1], [1], [0], [0], [0, 0, 1, 0], [], []>} : vector<4x128xbf16>, vector<128x128xbf16>, vector<4x128xf32> -> vector<4x128xf32>
    %c0_5 = arith.constant 0 : index
    %c0_6 = arith.constant 0 : index
    %5 = vector.load %arg4[%c0_5, %c0_6] : memref<4x1xf32, #tpu.memory_space<vmem>>, vector<4x1xf32>
    %6 = vector.broadcast %5 : vector<4x1xf32> to vector<4x128xf32>
    %7 = arith.mulf %4, %6 : vector<4x128xf32>
    %c0_7 = arith.constant 0 : index
    %c0_8 = arith.constant 0 : index
    %8 = vector.load %arg5[%c0_7, %c0_8] : memref<4x1xf32, #tpu.memory_space<vmem>>, vector<4x1xf32>
    %9 = vector.broadcast %8 : vector<4x1xf32> to vector<4x128xf32>
    %10 = arith.addf %7, %9 : vector<4x128xf32>
    %cst_9 = arith.constant 0.000000e+00 : f32
    %11 = vector.broadcast %cst_9 : f32 to vector<4x128xf32>
    %12 = arith.maximumf %10, %11 : vector<4x128xf32>
    %c0_10 = arith.constant 0 : index
    %c0_11 = arith.constant 0 : index
    %c0_12 = arith.constant 0 : index
    %13 = vector.load %arg6[%c0_10, %c0_11, %c0_12] : memref<1x4x128xf32, #tpu.memory_space<vmem>>, vector<1x4x128xf32>
    %14 = vector.shape_cast %13 : vector<1x4x128xf32> to vector<4x128xf32>
    %15 = vector.shape_cast %12 : vector<4x128xf32> to vector<1x4x128xf32>
    tpu.vector_store %arg6[%c0_10, %c0_11, %c0_12], %15 {strides = array<i32>} : memref<1x4x128xf32, #tpu.memory_space<vmem>>, vector<1x4x128xf32>,
    return
  }
  func.func @transform_0(%arg0: i32, %arg1: i32) -> (i32, i32, i32, i32) {
    %c0_i32 = arith.constant 0 : i32
    %c0_i32_0 = arith.constant 0 : i32
    %c0_i32_1 = arith.constant 0 : i32
    return %arg0, %arg1, %c0_i32, %c0_i32_0 : i32, i32, i32, i32
  }
  func.func @transform_1(%arg0: i32, %arg1: i32) -> (i32, i32) {
    %c0_i32 = arith.constant 0 : i32
    %c0_i32_0 = arith.constant 0 : i32
    %c0_i32_1 = arith.constant 0 : i32
    return %c0_i32, %c0_i32_0 : i32, i32
  }
  func.func @transform_2(%arg0: i32, %arg1: i32) -> (i32, i32) {
    %c0_i32 = arith.constant 0 : i32
    %c0_i32_0 = arith.constant 0 : i32
    %c0_i32_1 = arith.constant 0 : i32
    return %c0_i32, %c0_i32_0 : i32, i32
  }
  func.func @transform_3(%arg0: i32, %arg1: i32) -> (i32, i32) {
    %c0_i32 = arith.constant 0 : i32
    %c0_i32_0 = arith.constant 0 : i32
    %c0_i32_1 = arith.constant 0 : i32
    return %c0_i32, %c0_i32_0 : i32, i32
  }
  func.func @transform_4(%arg0: i32, %arg1: i32) -> (i32, i32, i32) {
    %c0_i32 = arith.constant 0 : i32
    %c0_i32_0 = arith.constant 0 : i32
    return %arg0, %c0_i32, %arg1 : i32, i32, i32
  }
}

</mosaic_0001>

<bundles_post_ra>
// kernel: up_forward.4
= control target key start
LH: loop header
LB: loop body
LE: loop exit
PB: predicated region body
PF: predicated region fallthrough
CT: control target
= control target key end

     0   :  { %s844_s12 = smov 0   ;;  %s846_s13 = smov 0   ;;  %s991_s0 = inlined_call_operand.vmem [shape: bf16[2,8,8,128], index: 0, kind: input, shape index: {}]   ;;  %s992_s1 = inlined_call_operand.vmem [shape: bf16[2,128,256], index: 1, kind: input, shape index: {}]   ;;  %s993_s2 = inlined_call_operand.vmem [shape: f32[1,256], index: 2, kind: input, shape index: {}]   ;;  %s994_s3 = inlined_call_operand.vmem [shape: bf16[2,8,2,8,256], index: 3, kind: output, shape index: {}]  }
   0x1   :  { %s848_s14 = smov 0   ;;  %s850_s15 = smov 0  }
   0x2   :  { %s852_s16 = smov 0   ;;  %s854_s17 = smov 0  }
   0x3   :  { %s856_s18 = smov 0   ;;  %s858_s19 = smov 0  }
   0x4   :  { %s860_s20 = smov 0  }
   0x5 LB: > { %s25_s21 = sadd.s32 1, %s809_s17  ;;  %s28_s22 = sadd.s32 1, %s813_s18  ;;  %s821_s20 = sphi %s860_s20, %s13_s20   ;;  %s817_s19 = sphi %s858_s19, %s1003_s19   ;;  %s813_s18 = sphi %s856_s18, %s1002_s18   ;;  %s809_s17 = sphi %s854_s17, %s1001_s17   ;;  %s805_s16 = sphi %s852_s16, %s1000_s16   ;;  %s801_s15 = sphi %s850_s15, %s999_s15   ;;  %s797_s14 = sphi %s848_s14, %s998_s14   ;;  %s793_s13 = sphi %s846_s13, %s997_s13   ;;  %s789_s12 = sphi %s844_s12, %s996_s12  }
   0x6   : > { %p26_p0 = scmp.ge.s32.totalorder %s25_s21, 2  ;;  %s589_s23 = sadd.s32 4294967295, %s821_s20  }
   0x7   : > { %s32_s24 = sadd.s32 1, %s817_s19  ;;  %p128_p1 = scmp.ne.s32.totalorder %s793_s13, %s789_s12 }
   0x8   : > { %s1005_s21 = smov (%p26_p0, %s25_s21), 0  ;;  %s1007_s22 = smov (!%p26_p0, %s28_s22), %s813_s18 }
   0x9   : > { %p30_p2 = scmp.ge.s32.totalorder %s1007_s22, 2  ;;  %p129_p3 = scmp.eq.s32.totalorder %s589_s23, 7 }
   0xa   : > { %p593_p4 = scmp.ge.s32.totalorder %s821_s20, 1  ;;  %p177_p5 = scmp.lt.s32.totalorder %s821_s20, 9 }
   0xb   : > { %s1009_s22 = smov (%p30_p2, %s1007_s22), 0  ;;  %s1011_s24 = smov (!%p30_p2, %s32_s24), %s817_s19 }
   0xc   : > { %p903_p6 = por %p129_p3, %p128_p1  ;;  %p34_p7 = scmp.ge.s32.totalorder %s1011_s24, 2 }
   0xd   : > { %p178_p8 = pnand %p593_p4, %p177_p5  ;;  %s112_s26 = ssub.s32 %s813_s18, %s1009_s22 }
   0xe   : > { %s1013_s24 = smov (%p34_p7, %s1011_s24), 0  ;;  %s114_s27 = ssub.s32 %s809_s17, %s1005_s21  ;;  %v823_v0 = vmov (!%p178_p8), 0   ;;  %v248_v19 = vlaneseq (!%p178_p8)  ;;  %v246_v22 = vld [vmem:[%s993_s2] sm:$0x3] (!%p178_p8) }
   0xf   : > { %s111_s28 = ssub.s32 %s817_s19, %s1013_s24  ;;  %s118_s4 = sadd.s32 1, %s793_s13  ;;  %382 = vmatprep.mubr.bf16.mxu0 (!%p178_p8), %v823_v0  ;;  %392 = vmatprep.mubr.bf16.mxu1 (!%p178_p8), %v823_v0 }
  0x10   : > { %s113_s29 = sor.u32 %s112_s26, %s111_s28  ;;  %181 = sbr.rel (%p178_p8) target bundleno = 288 (0x120), region = 32  ;;  %v249_v20 = vshrl.u32 (!%p178_p8), %v248_v19, 7 }
  0x11   : > { %s115_s30 = sor.u32 %s114_s27, %s113_s29  ;;  %p219_p10 = scmp.lt.s32.totalorder (!%p178_p8), %s797_s14, 1 }
  0x12   : > { %p116_p9 = scmp.eq.s32.totalorder %s115_s30, 0  ;;  %s595_s6 = sshll.u32 (!%p178_p8), %s801_s15, 2  ;;  %v250_v21 = vsub.s32 (!%p178_p8), 0, %v249_v20  ;;  %v254_v23 = vsub.s32 (!%p178_p8), 1, %v249_v20 }
  0x13   : > { %p210_p11 = scmp.lt.s32.totalorder (!%p178_p8), %s805_s16, 1  ;;  %p212_p12 = scmp.lt.s32.totalorder (!%p178_p8), %s595_s6, 7 }
  0x14   : > { %s917_s5 = scalar_select %p116_p9, %s793_s13, %s118_s4  }
  0x15   : > { %v251_v24 = vrot.slane (!%p178_p8), %v246_v22, %v250_v21  ;;  %v255_v25 = vrot.slane (!%p178_p8), %v246_v22, %v254_v23 }
  0x17   : > { %s220_s7 = scalar_select %p219_p10, %s797_s14, 1 }
  0x18   : > { %s211_s8 = scalar_select %p210_p11, %s805_s16, 1 }
  0x19   : > { %s630_s9 = sshll.u32 %s220_s7, 7  ;;  %s1015_s6 = smov (!%p212_p12, %s595_s6), 7 }
  0x1a   : > { %s927_s23 = scalar_lea.vmem %s992_s1, %s630_s9  ;;  %s596_s26 = sshll.u32 %s211_s8, 3 }
  0x1b   : > { %v725_v1 = vld [vmem:[%s927_s23 + $0x4] ss:$8 sps:$4 sm:$0xff]   ;;  %v727_v2 = vld [vmem:[%s927_s23] ss:$8 sps:$4 sm:$0xff]   ;;  %v728_v3 = vld [vmem:[%s927_s23 + $0x14] ss:$8 sps:$4 sm:$0xff]   ;;  %s215_s27 = sadd.s32 %s596_s26, %s1015_s6 }
  0x1c   : > { %350 = vmatprep.subr.bf16.mxu0 %v725_v1  ;;  %636 = vmatprep.subr.bf16.mxu1 %v725_v1  ;;  %v730_v4 = vld [vmem:[%s927_s23 + $0x10] ss:$8 sps:$4 sm:$0xff]   ;;  %v731_v5 = vld [vmem:[%s927_s23 + $0x24] ss:$8 sps:$4 sm:$0xff]   ;;  %s597_s28 = sshll.u32 %s215_s27, 2  ;;  %s206_s8 = sand.u32 1, %s789_s12  }
  0x1d   : > { %351 = vmatpush1.bf16.msra.mxu0 %v727_v2  ;;  %644 = vmatpush1.bf16.msra.mxu1 %v727_v2  ;;  %v733_v6 = vld [vmem:[%s927_s23 + $0x20] ss:$8 sps:$4 sm:$0xff]   ;;  %v734_v7 = vld [vmem:[%s927_s23 + $0x34] ss:$8 sps:$4 sm:$0xff]   ;;  %s939_s4 = scalar_lea.vmem %s991_s0, %s597_s28  ;;  %v736_v8 = vld [vmem:[%s927_s23 + $0x30] ss:$8 sps:$4 sm:$0xff]  }
  0x1e   : > { %352 = vmatprep.subr.bf16.mxu0 %v728_v3  ;;  %637 = vmatprep.subr.bf16.mxu1 %v728_v3  ;;  %v737_v9 = vld [vmem:[%s927_s23 + $0x44] ss:$8 sps:$4 sm:$0xff]   ;;  %v739_v10 = vld [vmem:[%s927_s23 + $0x40] ss:$8 sps:$4 sm:$0xff]   ;;  %v740_v11 = vld [vmem:[%s927_s23 + $0x54] ss:$8 sps:$4 sm:$0xff]  }
  0x1f   : > { %v742_v12 = vld [vmem:[%s927_s23 + $0x50] ss:$8 sps:$4 sm:$0xff]   ;;  %v743_v13 = vld [vmem:[%s927_s23 + $0x64] ss:$8 sps:$4 sm:$0xff]   ;;  %v745_v14 = vld [vmem:[%s927_s23 + $0x60] ss:$8 sps:$4 sm:$0xff]  }
  0x20   : > { %v746_v15 = vld [vmem:[%s927_s23 + $0x74] ss:$8 sps:$4 sm:$0xff]   ;;  %v748_v16 = vld [vmem:[%s927_s23 + $0x70] ss:$8 sps:$4 sm:$0xff]   ;;  %v749_v17 = vld [vmem:[%s939_s4] sm:$0xff]   ;;  %s594_s9 = sshll.u32 %s206_s8, 5 }
  0x21   : > { %353 = vmatpush1.bf16.msra.mxu0 %v730_v4  ;;  %645 = vmatpush1.bf16.msra.mxu1 %v730_v4  ;;  %v750_v18 = vld [vmem:[%s939_s4 + $0x8] sm:$0xff]   ;;  %s208_s12 = scalar_lea.vmem [#allocation2], %s594_s9  ;;  %s624_s10 = sshll.u32 (%p903_p6), %s797_s14, 1 }
  0x22   : > { %354 = vmatprep.subr.bf16.mxu0 %v731_v5  ;;  %638 = vmatprep.subr.bf16.mxu1 %v731_v5  ;;  %s635_s11 = sshll.u32 (%p903_p6), %s801_s15, 4  ;;  %s626_s26 = sshll.u32 (%p903_p6), %s805_s16, 5 }
  0x23   : > { %s449_s23 = sadd.s32 (%p903_p6), %s635_s11, %s624_s10 }
  0x24   : > { %s451_s27 = sadd.s32 (%p903_p6), %s626_s26, %s449_s23 }
  0x25   : > { %355 = vmatpush1.bf16.msra.mxu0 %v733_v6  ;;  %646 = vmatpush1.bf16.msra.mxu1 %v733_v6  ;;  %s627_s28 = sshll.u32 (%p903_p6), %s451_s27, 2 }
  0x26   : > { %356 = vmatprep.subr.bf16.mxu0 %v734_v7  ;;  %639 = vmatprep.subr.bf16.mxu1 %v734_v7  ;;  %s453_s4 = scalar_lea.vmem (%p903_p6), %s994_s3, %s627_s28 }
  0x29   : > { %357 = vmatpush1.bf16.msra.mxu0 %v736_v8  ;;  %647 = vmatpush1.bf16.msra.mxu1 %v736_v8 }
  0x2a   : > { %358 = vmatprep.subr.bf16.mxu0 %v737_v9  ;;  %640 = vmatprep.subr.bf16.mxu1 %v737_v9 }
  0x2d   : > { %359 = vmatpush1.bf16.msra.mxu0 %v739_v10  ;;  %648 = vmatpush1.bf16.msra.mxu1 %v739_v10 }
  0x2e   : > { %360 = vmatprep.subr.bf16.mxu0 %v740_v11  ;;  %641 = vmatprep.subr.bf16.mxu1 %v740_v11 }
  0x31   : > { %361 = vmatpush1.bf16.msra.mxu0 %v742_v12  ;;  %649 = vmatpush1.bf16.msra.mxu1 %v742_v12 }
  0x32   : > { %362 = vmatprep.subr.bf16.mxu0 %v743_v13  ;;  %642 = vmatprep.subr.bf16.mxu1 %v743_v13 }
  0x35   : > { %363 = vmatpush1.bf16.msra.mxu0 %v745_v14  ;;  %650 = vmatpush1.bf16.msra.mxu1 %v745_v14 }
  0x36   : > { %364 = vmatprep.subr.bf16.mxu0 %v746_v15  ;;  %643 = vmatprep.subr.bf16.mxu1 %v746_v15 }
  0x39   : > { %365 = vmatpush1.bf16.msra.mxu0 %v748_v16  ;;  %651 = vmatpush1.bf16.msra.mxu1 %v748_v16 }
  0x3c   : > { %383 = vmatmul.mubr.bf16.vlgmr.msra.gmra.mrb[0].mxu0 %v749_v17  ;;  %393 = vmatmul.mubr.bf16.vlgmr.msra.gmra.mrb[0].mxu1 %v750_v18 }
 0x10f   : > { %v384_v26 = vpop.f32.mrb[0].mxu0  ;;  %v394_v27 = vpop.f32.mrb[0].mxu1 }
 0x110   : > { %v385_v28 = vadd.f32 %v384_v26, %v251_v24  ;;  %v395_v29 = vadd.f32 %v394_v27, %v251_v24  ;;  %v386_v30 = vpop.f32.mrb[1].mxu0  ;;  %v396_v31 = vpop.f32.mrb[1].mxu1 }
 0x111   : > { %v387_v32 = vadd.f32 %v386_v30, %v255_v25  ;;  %v397_v33 = vadd.f32 %v396_v31, %v255_v25  ;;  %v388_v34 = vpop.f32.mrb[2].mxu0  ;;  %v398_v35 = vpop.f32.mrb[2].mxu1  ;;  %445 = sbr.rel (!%p903_p6) target bundleno = 288 (0x120), region = 36 }
 0x112   : > { %v389_v36 = vadd.f32 %v388_v34, %v251_v24  ;;  %v399_v37 = vadd.f32 %v398_v35, %v251_v24  ;;  %v390_v38 = vpop.f32.mrb[3].mxu0  ;;  %v400_v39 = vpop.f32.mrb[3].mxu1 }
 0x113   : > { %v631_v40 = vpack.c.bf16 %v387_v32, %v385_v28  ;;  %v633_v41 = vpack.c.bf16 %v397_v33, %v395_v29  ;;  %v391_v42 = vadd.f32 %v390_v38, %v255_v25  ;;  %v401_v43 = vadd.f32 %v400_v39, %v255_v25 }
 0x115   : > { %435 = vst [vmem:[%s208_s12] sm:$0xff] %v631_v40  ;;  %437 = vst [vmem:[%s208_s12 + $0x10] sm:$0xff] %v633_v41  ;;  %v632_v44 = vpack.c.bf16 %v391_v42, %v389_v36  ;;  %v634_v45 = vpack.c.bf16 %v401_v43, %v399_v37 }
 0x117   : > { %436 = vst [vmem:[%s208_s12 + $0x8] sm:$0xff] %v632_v44  ;;  %438 = vst [vmem:[%s208_s12 + $0x18] sm:$0xff] %v634_v45 }
 0x11c   : > { %v487_v46 = vld [vmem:[%s208_s12] sm:$0xff]  ;;  %v491_v48 = vld [vmem:[%s208_s12 + $0x10] sm:$0xff] }
 0x11d   : > { %488 = vst [vmem:[%s453_s4] sm:$0xff] %v487_v46  ;;  %492 = vst [vmem:[%s453_s4 + $0x20] sm:$0xff] %v491_v48 }
 0x11e   : > { %v489_v47 = vld [vmem:[%s208_s12 + $0x8] sm:$0xff]  ;;  %v493_v49 = vld [vmem:[%s208_s12 + $0x18] sm:$0xff] }
 0x11f   : > { %490 = vst [vmem:[%s453_s4 + $0x10] sm:$0xff] %v489_v47  ;;  %494 = vst [vmem:[%s453_s4 + $0x30] sm:$0xff] %v493_v49 }
 0x120 PF: > { %s13_s20 = sadd.s32 1, %s821_s20   ;;  %s996_s12 = smov %s793_s13 }
 0x121   : > { %p10_p13 = scmp.ge.s32.totalorder %s13_s20, 10   ;;  %s997_s13 = smov %s917_s5 }
 0x122   : > { %s998_s14 = smov %s809_s17  ;;  %s999_s15 = smov %s813_s18 }
 0x123   : > { %s1000_s16 = smov %s817_s19  ;;  %s1001_s17 = smov %s1005_s21 }
 0x124   : > { %s1002_s18 = smov %s1009_s22  ;;  %s1003_s19 = smov %s1013_s24 }
 0x125   :  { %12 = sbr.rel (!%p10_p13) target bundleno = 5 (0x5), region = 103 }

// kernel: up_forward.7
= control target key start
LH: loop header
LB: loop body
LE: loop exit
PB: predicated region body
PF: predicated region fallthrough
CT: control target
= control target key end

     0   :  { %s618_s15 = smov 0   ;;  %s620_s16 = smov 0   ;;  %s687_s0 = inlined_call_operand.vmem [shape: bf16[2,16,16,128], index: 0, kind: input, shape index: {}]   ;;  %s688_s1 = inlined_call_operand.vmem [shape: bf16[4,128], index: 1, kind: input, shape index: {}]   ;;  %s689_s2 = inlined_call_operand.vmem [shape: f32[4,1], index: 2, kind: input, shape index: {}]   ;;  %s690_s3 = inlined_call_operand.vmem [shape: f32[4,1], index: 3, kind: input, shape index: {}]   ;;  %s691_s4 = inlined_call_operand.vmem [shape: f32[2,4,256], index: 4, kind: output, shape index: {}]  }
   0x1   :  { %s622_s17 = smov 0   ;;  %s624_s18 = smov 0  }
   0x2   :  { %s626_s19 = smov 0  }
   0x3 LB: > { %s23_s20 = sadd.s32 1, %s580_s17  ;;  %s26_s21 = sadd.s32 1, %s584_s18  ;;  %s588_s19 = sphi %s626_s19, %s14_s19   ;;  %s584_s18 = sphi %s624_s18, %s695_s18   ;;  %s580_s17 = sphi %s622_s17, %s694_s17   ;;  %s576_s16 = sphi %s620_s16, %s693_s16   ;;  %s572_s15 = sphi %s618_s15, %s692_s15  }
   0x4   : > { %p24_p0 = scmp.ge.s32.totalorder %s23_s20, 2  ;;  %p452_p1 = scmp.ge.s32.totalorder %s588_s19, 1 }
   0x5   : > { %p184_p2 = scmp.lt.s32.totalorder %s588_s19, 5 }
   0x6   : > { %s697_s20 = smov (%p24_p0, %s23_s20), 0  ;;  %s699_s21 = smov (!%p24_p0, %s26_s21), %s584_s18 }
   0x7   : > { %p185_p3 = pnand %p452_p1, %p184_p2  ;;  %p28_p4 = scmp.ge.s32.totalorder %s699_s21, 2 }
   0x8   : > { %s453_s22 = sshll.u32 (!%p185_p3), %s572_s15, 3  ;;  %p219_p5 = scmp.lt.s32.totalorder (!%p185_p3), %s576_s16, 1  ;;  %v590_v0 = vmov (!%p185_p3), 0.0   ;;  %vm591_vm0 = vmmov (!%p185_p3), 0   ;;  %v343_v1 = vld [vmem:[%s689_s2] sm:$0xf] (!%p185_p3) }
   0x9   : > { %s701_s21 = smov (%p28_p4, %s699_s21), 0  ;;  %188 = sbr.rel (%p185_p3) target bundleno = 304 (0x130), region = 36 }
   0xa   : > { %478 = vmatprep.subr.bf16.mxu0 (!%p185_p3), %v590_v0  ;;  %p221_p6 = scmp.lt.s32.totalorder (!%p185_p3), %s453_s22, 15  ;;  %494 = vmatprep.mubr.msk.bf16.mxu0 (!%p185_p3), %vm591_vm0, %v590_v0  ;;  %v592_v2 = vmov (!%p185_p3), 0   ;;  %v350_v3 = vld [vmem:[%s690_s3] sm:$0xf] (!%p185_p3)  ;;  %p231_p7 = scmp.lt.s32.totalorder (!%p185_p3), %s572_s15, 1 }
   0xb   : > { %541 = vset.pattern.permute.xlu0 (!%p185_p3), %v592_v2  ;;  %v254_v12 = vld [vmem:[%s688_s1] sm:$0x3] (!%p185_p3) }
   0xc   : > { %346 = vperm.xlu0 (!%p185_p3), %541, %v343_v1  }
  0x10   : > { %s703_s16 = smov (!%p219_p5, %s576_s16), 1  ;;  %s705_s22 = smov (!%p221_p6, %s453_s22), 15  ;;  %353 = vperm.xlu0 %541, %v350_v3  }
  0x11   : > { %s455_s25 = sshll.u32 %s703_s16, 5  ;;  %s454_s28 = sshll.u32 %s705_s22, 1 }
  0x12   : > { %s225_s29 = sadd.s32 %s455_s25, %s454_s28  ;;  %s707_s15 = smov (!%p231_p7, %s572_s15), 1 }
  0x13   : > { %s456_s30 = sshll.u32 %s225_s29, 2  ;;  %s457_s10 = sshll.u32 %s703_s16, 1 }
  0x14   : > { %s227_s7 = scalar_lea.vmem %s687_s0, %s456_s30  ;;  %s234_s11 = sadd.s32 %s457_s10, %s707_s15 }
  0x15   : > { %v542_v4 = vld [vmem:[%s227_s7] sm:$0xff]   ;;  %v543_v5 = vld [vmem:[%s227_s7 + $0x8] sm:$0xff]   ;;  %v544_v6 = vld [vmem:[%s227_s7 + $0x10] sm:$0xff]   ;;  %s458_s12 = sshll.u32 %s234_s11, 2 }
  0x16   : > { %479 = vmatpush3.bf16.xpose.msra.mxu0 %v542_v4  ;;  %v545_v7 = vld [vmem:[%s227_s7 + $0x18] sm:$0xff]   ;;  %v546_v8 = vld [vmem:[%s227_s7 + $0x20] sm:$0xff]   ;;  %v547_v9 = vld [vmem:[%s227_s7 + $0x28] sm:$0xff]   ;;  %s236_s22 = scalar_lea.vmem %s691_s4, %s458_s12 }
  0x17   : > { %480 = vmatprep.subr.bf16.mxu0 %v590_v0  ;;  %v548_v10 = vld [vmem:[%s227_s7 + $0x30] sm:$0xff]   ;;  %v549_v11 = vld [vmem:[%s227_s7 + $0x38] sm:$0xff]  }
  0x1e   : > { %481 = vmatpush3.bf16.xpose.msra.mxu0 %v543_v5 }
  0x1f   : > { %482 = vmatprep.subr.bf16.mxu0 %v590_v0 }
  0x26   : > { %483 = vmatpush3.bf16.xpose.msra.mxu0 %v544_v6 }
  0x27   : > { %484 = vmatprep.subr.bf16.mxu0 %v590_v0 }
  0x2e   : > { %485 = vmatpush3.bf16.xpose.msra.mxu0 %v545_v7 }
  0x2f   : > { %486 = vmatprep.subr.bf16.mxu0 %v590_v0 }
  0x36   : > { %487 = vmatpush3.bf16.xpose.msra.mxu0 %v546_v8 }
  0x37   : > { %488 = vmatprep.subr.bf16.mxu0 %v590_v0 }
  0x3e   : > { %489 = vmatpush3.bf16.xpose.msra.mxu0 %v547_v9 }
  0x3f   : > { %490 = vmatprep.subr.bf16.mxu0 %v590_v0 }
  0x46   : > { %491 = vmatpush3.bf16.xpose.msra.mxu0 %v548_v10 }
  0x47   : > { %492 = vmatprep.subr.bf16.mxu0 %v590_v0 }
  0x4e   : > { %493 = vmatpush3.bf16.xpose.msra.mxu0 %v549_v11 }
  0x55   : > { %495 = vmatmul.mubr.bf16.vlgmr.msra.gmra.mrb[0].mxu0 %v254_v12 }
  0x8b   : > { %v347_v13 = vpop.permute.xlu0 %346 }
  0x8f   : > { %v354_v17 = vpop.permute.xlu0 %353 }
 0x128   : > { %v337_v14 = vpop.f32.mrb[0].mxu0 }
 0x129   : > { %v349_v15 = vmul.f32 %v347_v13, %v337_v14  ;;  %v496_v16 = vpop.f32.mrb[1].mxu0 }
 0x12a   : > { %v340_v18 = vpop.f32.mrb[2].mxu0 }
 0x12b   : > { %v356_v19 = vadd.f32 %v354_v17, %v349_v15  ;;  %v497_v20 = vpop.f32.mrb[3].mxu0 }
 0x12d   : > { %v357_v21 = vmax.f32 %v356_v19, 0.0 }
 0x12f   : > { %358 = vst [vmem:[%s236_s22] sm:$0xf] %v357_v21 }
 0x130 PF: > { %s14_s19 = sadd.s32 1, %s588_s19   ;;  %s692_s15 = smov %s580_s17 }
 0x131   : > { %p11_p8 = scmp.ge.s32.totalorder %s14_s19, 6   ;;  %s693_s16 = smov %s584_s18 }
 0x132   : > { %s694_s17 = smov %s697_s20  ;;  %s695_s18 = smov %s701_s21 }
 0x133   :  { %13 = sbr.rel (!%p11_p8) target bundleno = 3 (0x3), region = 66 }

// kernel: up_forward.6
= control target key start
LH: loop header
LB: loop body
LE: loop exit
PB: predicated region body
PF: predicated region fallthrough
CT: control target
= control target key end

     0   :  { %s4252_s27 = smov 0   ;;  %s4254_s28 = smov 0   ;;  %s5013_s0 = inlined_call_operand.vmem [shape: bf16[2,16,16,128], index: 0, kind: input, shape index: {}, may-alias: {0,1,2}]   ;;  %s5014_s1 = inlined_call_operand.vmem [shape: bf16[2,16,16,128], index: 1, kind: input, shape index: {}, may-alias: {0,1,2}]   ;;  %s5015_s2 = inlined_call_operand.vmem [shape: bf16[2,16,16,128], index: 2, kind: input, shape index: {}, may-alias: {0,1,2}]   ;;  %s5016_s3 = inlined_call_operand.vmem [shape: f32[1,128], index: 3, kind: input, shape index: {}]   ;;  %s5017_s4 = inlined_call_operand.vmem [shape: f32[1,128], index: 4, kind: input, shape index: {}]   ;;  %s5018_s5 = inlined_call_operand.vmem [shape: bf16[1152,128], index: 5, kind: input, shape index: {}]   ;;  %s5019_s6 = inlined_call_operand.vmem [shape: bf16[2,16,16,128], index: 6, kind: output, shape index: {0}]   ;;  %s5020_s7 = inlined_call_operand.vmem [shape: f32[2,2,8,128], index: 7, kind: output, shape index: {1}]   ;;  %s5021_s8 = inlined_call_operand.vmem [shape: f32[2,2,8,128], index: 8, kind: output, shape index: {2}]  }
   0x1   :  { %s4256_s29 = smov 0   ;;  %s4258_s30 = smov 0  }
   0x2   :  { %s4260_s9 = smov 0  }
   0x3 LB: > { %s28_s10 = sadd.s32 1, %s4197_s29  ;;  %s31_s11 = sadd.s32 1, %s4201_s30  ;;  %s4205_s9 = sphi %s4260_s9, %s19_s9   ;;  %s4201_s30 = sphi %s4258_s30, %s5032_s30   ;;  %s4197_s29 = sphi %s4256_s29, %s5031_s29   ;;  %s4193_s28 = sphi %s4254_s28, %s5030_s28   ;;  %s4189_s27 = sphi %s4252_s27, %s5029_s27  }
   0x4   : > { %p29_p0 = scmp.ge.s32.totalorder %s28_s10, 2  ;;  %p3493_p1 = scmp.ge.s32.totalorder %s4205_s9, 1 }
   0x5   : > { %p357_p2 = scmp.lt.s32.totalorder %s4205_s9, 5 }
   0x6   : > { %s5034_s10 = smov (%p29_p0, %s28_s10), 0  ;;  %s5036_s11 = smov (!%p29_p0, %s31_s11), %s4201_s30 }
   0x7   : > { %p358_p3 = pnand %p3493_p1, %p357_p2  ;;  %p33_p4 = scmp.ge.s32.totalorder %s5036_s11, 2 }
   0x8   : > { %v4093_v0 = vld [vmem:[%s5018_s5 + $0x40] sm:$0xff] (!%p358_p3)   ;;  %v4097_v4 = vld [vmem:[%s5018_s5 + $0x48] sm:$0xff] (!%p358_p3)   ;;  %s4302_s22 = sshll.u32 (!%p358_p3), %s4189_s27, 3  ;;  %v4101_v8 = vld [vmem:[%s5018_s5 + $0x50] sm:$0xff] (!%p358_p3)   ;;  %p444_p6 = scmp.lt.s32.totalorder (!%p358_p3), %s4193_s28, 1  ;;  %vm518_vm0 = vcmask (!%p358_p3), 1043459  }
   0x9   : > { %s5038_s11 = smov (%p33_p4, %s5036_s11), 0  ;;  %361 = sbr.rel (%p358_p3) target bundleno = 468 (0x1d4), region = 44 }
   0xa   : > { %v4094_v1 = vld [vmem:[%s5018_s5] sm:$0xff] (!%p358_p3)   ;;  %3733 = vmatprep.subr.bf16.mxu0 (!%p358_p3), %v4093_v0  ;;  %v4098_v5 = vld [vmem:[%s5018_s5 + $0x8] sm:$0xff] (!%p358_p3)   ;;  %s3499_s14 = sadd.s32 (!%p358_p3), 4294967295, %s4302_s22  ;;  %v4102_v9 = vld [vmem:[%s5018_s5 + $0x10] sm:$0xff] (!%p358_p3)   ;;  %p446_p8 = scmp.lt.s32.totalorder (!%p358_p3), %s4302_s22, 15  ;;  %vm551_vm1 = vcmask (!%p358_p3), 1044484  }
   0xb   : > { %v4095_v2 = vld [vmem:[%s5018_s5 + $0xc0] sm:$0xff] (!%p358_p3)   ;;  %3734 = vmatpush3.bf16.msra.mxu0 (!%p358_p3), %v4094_v1  ;;  %v4099_v6 = vld [vmem:[%s5018_s5 + $0xc8] sm:$0xff] (!%p358_p3)   ;;  %p456_p5 = scmp.gt.s32.totalorder (!%p358_p3), %s3499_s14, 0  ;;  %v4103_v10 = vld [vmem:[%s5018_s5 + $0xd0] sm:$0xff] (!%p358_p3)   ;;  %p3500_p7 = scmp.lt.s32.totalorder (!%p358_p3), %s3499_s14, 15  ;;  %vm948_vm7 = vcmask (!%p358_p3), 1043456  }
   0xc   : > { %v4096_v3 = vld [vmem:[%s5018_s5 + $0x80] sm:$0xff] (!%p358_p3)   ;;  %3797 = vmatprep.subr.bf16.mxu1 (!%p358_p3), %v4095_v2  ;;  %3735 = vmatprep.subr.bf16.mxu0 (!%p358_p3), %v4097_v4  ;;  %v4100_v7 = vld [vmem:[%s5018_s5 + $0x88] sm:$0xff] (!%p358_p3)   ;;  %v4104_v11 = vld [vmem:[%s5018_s5 + $0x90] sm:$0xff] (!%p358_p3)   ;;  %p709_p9 = scmp.gt.s32.totalorder (!%p358_p3), %s4189_s27, 0  ;;  %vm519_vm2 = vsmask.f32 (!%p358_p3), 7950 }
   0xd   : > { %3798 = vmatpush3.bf16.msra.mxu1 (!%p358_p3), %v4096_v3  ;;  %v4105_v12 = vld [vmem:[%s5018_s5 + $0x58] sm:$0xff] (!%p358_p3)   ;;  %v4109_v16 = vld [vmem:[%s5018_s5 + $0x60] sm:$0xff] (!%p358_p3)   ;;  %v4113_v20 = vld [vmem:[%s5018_s5 + $0x68] sm:$0xff] (!%p358_p3)   ;;  %vm552_vm4 = vsmask.f32 (!%p358_p3), 4352  ;;  %s3622_s13 = sadd.s32 (!%p358_p3), 8, %s4302_s22 }
   0xe   : > { %3799 = vmatprep.subr.bf16.mxu1 (!%p358_p3), %v4099_v6  ;;  %v4106_v13 = vld [vmem:[%s5018_s5 + $0x18] sm:$0xff] (!%p358_p3)   ;;  %v4110_v17 = vld [vmem:[%s5018_s5 + $0x20] sm:$0xff] (!%p358_p3)   ;;  %v4114_v21 = vld [vmem:[%s5018_s5 + $0x28] sm:$0xff] (!%p358_p3)   ;;  %vm1005_vm8 = vsmask.f32 (!%p358_p3), 3328  ;;  %p4740_p10 = scmp.lt.s32.totalorder (!%p358_p3), %s3622_s13, 15 }
   0xf   : > { %3736 = vmatpush3.bf16.msra.mxu0 (!%p358_p3), %v4098_v5  ;;  %v4107_v14 = vld [vmem:[%s5018_s5 + $0xd8] sm:$0xff] (!%p358_p3)   ;;  %v4111_v18 = vld [vmem:[%s5018_s5 + $0xe0] sm:$0xff] (!%p358_p3)   ;;  %v4115_v22 = vld [vmem:[%s5018_s5 + $0xe8] sm:$0xff] (!%p358_p3)   ;;  %p501_p11 = scmp.lt.s32.totalorder (!%p358_p3), %s4189_s27, 1 }
  0x10   : > { %3737 = vmatprep.subr.bf16.mxu0 %v4101_v8  ;;  %s457_s26 = scalar_select %p456_p5, %s3499_s14, 0  ;;  %v4108_v15 = vld [vmem:[%s5018_s5 + $0x98] sm:$0xff]   ;;  %v4112_v19 = vld [vmem:[%s5018_s5 + $0xa0] sm:$0xff]   ;;  %v4116_v23 = vld [vmem:[%s5018_s5 + $0xa8] sm:$0xff]  }
  0x11   : > { %3800 = vmatpush3.bf16.msra.mxu1 %v4100_v7  ;;  %s5040_s28 = smov (!%p444_p6, %s4193_s28), 1  ;;  %v4117_v24 = vld [vmem:[%s5018_s5 + $0x70] sm:$0xff]   ;;  %v4121_v28 = vld [vmem:[%s5018_s5 + $0x78] sm:$0xff]   ;;  %v4417_v32 = vld [vmem:[%s5016_s3] ss:$0 sm:$0xff]  ;;  %s5044_s13 = smov (!%p4740_p10, %s3622_s13), 15 }
  0x12   : > { %3801 = vmatprep.subr.bf16.mxu1 %v4103_v10  ;;  %s5042_s26 = smov (!%p3500_p7, %s457_s26), 15  ;;  %s4360_s16 = sshll.u32 %s5040_s28, 5  ;;  %v4118_v25 = vld [vmem:[%s5018_s5 + $0x30] sm:$0xff]   ;;  %v4122_v29 = vld [vmem:[%s5018_s5 + $0x38] sm:$0xff]   ;;  %v4422_v33 = vld [vmem:[%s5017_s4] ss:$0 sm:$0xff] }
  0x13   : > { %3738 = vmatpush3.bf16.msra.mxu0 %v4102_v9  ;;  %s447_s12 = scalar_select %p446_p8, %s4302_s22, 15  ;;  %v4119_v26 = vld [vmem:[%s5018_s5 + $0xf0] sm:$0xff]   ;;  %v4123_v30 = vld [vmem:[%s5018_s5 + $0xf8] sm:$0xff]   ;;  %vm4426_vm3 = vmand %vm518_vm0, %vm519_vm2 }
  0x14   : > { %3739 = vmatprep.subr.bf16.mxu0 %v4105_v12  ;;  %s3505_s18 = sshll.u32 %s5042_s26, 1  ;;  %v4120_v27 = vld [vmem:[%s5018_s5 + $0xb0] sm:$0xff]   ;;  %v4124_v31 = vld [vmem:[%s5018_s5 + $0xb8] sm:$0xff]   ;;  %v4125_v44 = vld [vmem:[%s5018_s5 + $0x140] sm:$0xff]   ;;  %s5046_s13 = smov (!%p4740_p10, %s5044_s13), 15 }
  0x15   : > { %3802 = vmatpush3.bf16.msra.mxu1 %v4104_v11  ;;  %s3495_s24 = sshll.u32 %s447_s12, 1  ;;  %s464_s15 = sadd.s32 %s3505_s18, %s4360_s16  ;;  %v524_v37 = vld [vmem:[#allocation2 + $0x10] sm:$0x8]  ;;  %v521_v45 = vld [vmem:[#allocation2] sm:$0x8]  ;;  %vm4442_vm5 = vmand %vm551_vm1, %vm552_vm4 }
  0x16   : > { %3803 = vmatprep.subr.bf16.mxu1 %v4107_v14  ;;  %s4382_s20 = sadd.s32 %s4360_s16, %s3495_s24  ;;  %s3507_s18 = sshll.u32 %s464_s15, 2  ;;  %v525_v43 = vsel %vm4426_vm3, 0, %v524_v37  ;;  %v522_v48 = vsel %vm4426_vm3, 0, %v521_v45  ;;  %v554_v50 = vld [vmem:[#allocation2 + $0x8] sm:$0x10]  ;;  %v4130_v11 = vld [vmem:[%s5018_s5 + $0x1c0] sm:$0xff]  }
  0x17   : > { %3740 = vmatpush3.bf16.msra.mxu0 %v4106_v13  ;;  %s3497_s24 = sshll.u32 %s4382_s20, 2  ;;  %s466_s15 = scalar_lea.vmem %s5014_s1, %s3507_s18  ;;  %526 = vst [vmem:[#allocation2 + $0x10] sm:$0x8] %v525_v43  ;;  %523 = vst [vmem:[#allocation2] sm:$0x8] %v522_v48  ;;  %v555_v53 = vsel %vm4442_vm5, 0, %v554_v50 }
  0x18   : > { %3741 = vmatprep.subr.bf16.mxu0 %v4109_v16  ;;  %s4412_s17 = scalar_lea.vmem %s5013_s0, %s3497_s24  ;;  %v3672_v34 = vld [vmem:[%s466_s15] sm:$0xff]   ;;  %556 = vst [vmem:[#allocation2 + $0x8] sm:$0x10] %v555_v53  ;;  %v557_v62 = vld [vmem:[#allocation2 + $0x18] sm:$0x10]  ;;  %s4794_s15 = sshll.u32 %s5046_s13, 1 }
  0x19   : > { %3804 = vmatpush3.bf16.msra.mxu1 %v4108_v15  ;;  %v3673_v35 = vunpack.c.l.bf16 %v3672_v34  ;;  %v3674_v36 = vunpack.c.h.bf16 %v3672_v34  ;;  %s719_s23 = scalar_select %p709_p9, 1, 0  ;;  %v3640_v39 = vld [vmem:[%s4412_s17] sm:$0xff]   ;;  %v3719_v57 = vld [vmem:[%s4412_s17 + $0x8] sm:$0xff]   ;;  %v558_v1 = vsel %vm4442_vm5, 0, %v557_v62  ;;  %v3720_v6 = vld [vmem:[%s4412_s17 + $0x10] sm:$0xff]  }
  0x1a   : > { %3805 = vmatprep.subr.bf16.mxu1 %v4111_v18  ;;  %v3641_v46 = vunpack.c.l.bf16 %v3640_v39  ;;  %v3642_v47 = vunpack.c.h.bf16 %v3640_v39  ;;  %v527_v56 = vld [vmem:[#allocation2 + $0x20] sm:$0x8]  ;;  %v3645_v60 = vunpack.c.l.bf16 %v3719_v57  ;;  %v3646_v61 = vunpack.c.h.bf16 %v3719_v57  ;;  %559 = vst [vmem:[#allocation2 + $0x18] sm:$0x10] %v558_v1  ;;  %v530_v5 = vld [vmem:[#allocation2 + $0x30] sm:$0x8]  ;;  %s481_s13 = sadd.s32 %s4794_s15, %s4360_s16  ;;  %s4969_s22 = scalar_lea.vmem %s5019_s6, %s3497_s24 }
  0x1b   : > { %3742 = vmatpush3.bf16.msra.mxu0 %v4110_v17  ;;  %v714_v40 = vmul.f32 %v3673_v35, %v4417_v32  ;;  %v715_v41 = vmul.f32 %v3674_v36, %v4417_v32  ;;  %v720_v42 = vstv %s719_s23  ;;  %v528_v59 = vsel %vm4426_vm3, 0, %v527_v56  ;;  %v560_v15 = vld [vmem:[#allocation2 + $0x28] sm:$0x10]  ;;  %s4817_s16 = sshll.u32 %s481_s13, 2  ;;  %s5048_s27 = smov (!%p501_p11, %s4189_s27), 1 }
  0x1c   : > { %3743 = vmatprep.subr.bf16.mxu0 %v4113_v20  ;;  %vm721_vm6 = vcmp.eq.s32.totalorder %v720_v42, 1  ;;  %v622_v54 = vmul.f32 %v3641_v46, %v4417_v32  ;;  %v623_v55 = vmul.f32 %v3642_v47, %v4417_v32  ;;  %529 = vst [vmem:[#allocation2 + $0x20] sm:$0x8] %v528_v59  ;;  %v624_v3 = vmul.f32 %v3645_v60, %v4417_v32  ;;  %s483_s18 = scalar_lea.vmem %s5015_s2, %s4817_s16  ;;  %s3519_s20 = sshll.u32 %s5040_s28, 1 }
  0x1d   : > { %3806 = vmatpush3.bf16.msra.mxu1 %v4112_v19  ;;  %v716_v51 = vadd.f32 %v4422_v33, %v714_v40  ;;  %v717_v52 = vadd.f32 %v4422_v33, %v715_v41  ;;  %v625_v4 = vmul.f32 %v3646_v61, %v4417_v32  ;;  %v531_v9 = vsel %vm4426_vm3, 0, %v530_v5  ;;  %s4839_s19 = scalar_select %p501_p11, 1, 0 }
  0x1e   : > { %3807 = vmatprep.subr.bf16.mxu1 %v4115_v22  ;;  %v644_v63 = vadd.f32 %v4422_v33, %v622_v54  ;;  %v645_v0 = vadd.f32 %v4422_v33, %v623_v55  ;;  %v3649_v10 = vunpack.c.l.bf16 %v3720_v6  ;;  %v646_v12 = vadd.f32 %v4422_v33, %v624_v3  ;;  %532 = vst [vmem:[#allocation2 + $0x30] sm:$0x8] %v531_v9  ;;  %v533_v22 = vld [vmem:[#allocation2 + $0x40] sm:$0x8]  ;;  %s504_s24 = sadd.s32 %s3519_s20, %s5048_s27 }
  0x1f   : > { %3744 = vmatpush3.bf16.msra.mxu0 %v4114_v21  ;;  %v718_v58 = vpack.c.bf16 %v717_v52, %v716_v51  ;;  %v647_v13 = vadd.f32 %v4422_v33, %v625_v4  ;;  %v3650_v14 = vunpack.c.h.bf16 %v3720_v6  ;;  %v561_v18 = vsel %vm4442_vm5, 0, %v560_v15  ;;  %s3520_s23 = sshll.u32 %s504_s24, 3 }
  0x20   : > { %3745 = vmatprep.subr.bf16.mxu0 %v4117_v24  ;;  %v660_v8 = vpack.c.bf16 %v645_v0, %v644_v63  ;;  %v626_v17 = vmul.f32 %v3649_v10, %v4417_v32  ;;  %562 = vst [vmem:[#allocation2 + $0x28] sm:$0x10] %v561_v18  ;;  %s506_s14 = scalar_lea.vmem %s5020_s7, %s3520_s23  ;;  %s514_s16 = scalar_lea.vmem %s5021_s8, %s3520_s23 }
  0x21   : > { %3808 = vmatpush3.bf16.msra.mxu1 %v4116_v23  ;;  %v722_v2 = vsel %vm721_vm6, %v718_v58, 0  ;;  %v661_v19 = vpack.c.bf16 %v647_v13, %v646_v12  ;;  %v627_v20 = vmul.f32 %v3650_v14, %v4417_v32  ;;  %v3721_v23 = vld [vmem:[%s4412_s17 + $0x18] sm:$0xff]   ;;  %v4126_v12 = vld [vmem:[%s5018_s5 + $0x100] sm:$0xff]  }
  0x22   : > { %3809 = vmatprep.subr.bf16.mxu1 %v4119_v26  ;;  %v724_v7 = vrot.slane %v722_v2, 4  ;;  %v676_v16 = vrot.slane %v660_v8, 4  ;;  %v4474_v21 = vadd.f32 %v4422_v33, %v626_v17  ;;  %v534_v26 = vsel %vm4426_vm3, 0, %v533_v22 }
  0x23   : > { %3746 = vmatpush3.bf16.msra.mxu0 %v4118_v25  ;;  %v677_v24 = vrot.slane %v661_v19, 4  ;;  %v4478_v25 = vadd.f32 %v4422_v33, %v627_v20  ;;  %535 = vst [vmem:[#allocation2 + $0x40] sm:$0x8] %v534_v26  ;;  %v4127_v19 = vld [vmem:[%s5018_s5 + $0x148] sm:$0xff]  }
  0x24   : > { %3747 = vmatprep.subr.bf16.mxu0 %v4121_v28  ;;  %726 = vst [vmem:[#allocation2 + $0x8] ss:$-4 sps:$4 sm:$0xff] %v724_v7   ;;  %693 = vst [vmem:[#allocation2 + $0x18] ss:$-4 sps:$4 sm:$0xff] %v676_v16   ;;  %v3654_v28 = vunpack.c.h.bf16 %v3721_v23 }
  0x25   : > { %3810 = vmatpush3.bf16.msra.mxu1 %v4120_v27  ;;  %v3653_v27 = vunpack.c.l.bf16 %v3721_v23  ;;  %695 = vst [vmem:[#allocation2 + $0x28] ss:$-4 sps:$4 sm:$0xff] %v677_v24   ;;  %v662_v39 = vpack.c.bf16 %v4478_v25, %v4474_v21  ;;  %v4142_v21 = vld [vmem:[%s5018_s5 + $0x1d8] sm:$0xff]  }
  0x26   : > { %3811 = vmatprep.subr.bf16.mxu1 %v4123_v30  ;;  %v563_v30 = vld [vmem:[#allocation2 + $0x38] sm:$0x10] }
  0x27   : > { %3748 = vmatpush3.bf16.msra.mxu0 %v4122_v29  ;;  %v628_v29 = vmul.f32 %v3653_v27, %v4417_v32  ;;  %v564_v34 = vsel %vm4442_vm5, 0, %v563_v30  ;;  %v4128_v27 = vld [vmem:[%s5018_s5 + $0x108] sm:$0xff]  }
  0x28   : > { %3861 = vmatprep.subr.bf16.mxu0 %v4125_v44  ;;  %565 = vst [vmem:[#allocation2 + $0x38] sm:$0x10] %v564_v34 }
  0x29   : > { %3812 = vmatpush3.bf16.msra.mxu1 %v4124_v31  ;;  %v629_v31 = vmul.f32 %v3654_v28, %v4417_v32  ;;  %v4489_v50 = vadd.f32 %v4422_v33, %v628_v29 }
  0x2a   : > { %3925 = vmatprep.subr.bf16.mxu1 %v4130_v11 }
  0x2b   : > { %v916_v35 = vld [vmem:[#allocation2] sm:$0xf0]  ;;  %v917_v36 = vld [vmem:[#allocation2 + $0x8] sm:$0xf]  ;;  %v1158_v45 = vld [vmem:[#allocation2 + $0x10] sm:$0xf8]  ;;  %v4492_v51 = vadd.f32 %v4422_v33, %v629_v31 }
  0x2c   : > { %v748_v37 = vld [vmem:[#allocation2] sm:$0xf8]  ;;  %v949_v40 = vrot.slane %v916_v35, 4  ;;  %v950_v41 = vrot.slane %v917_v36, 4  ;;  %v749_v42 = vld [vmem:[#allocation2 + $0x8] sm:$0xf] }
  0x2d   : > { %v765_v43 = vshrl.u32 %v748_v37, 16  ;;  %v768_v44 = vshll.u32 %v748_v37, 16  ;;  %v1159_v46 = vld [vmem:[#allocation2 + $0x18] sm:$0xf]  ;;  %v773_v47 = vshrl.u32 %v749_v42, 16  ;;  %v776_v48 = vshll.u32 %v749_v42, 16 }
  0x2e   : > { %v951_v52 = vsel %vm948_vm7, %v949_v40, %v950_v41  ;;  %v1175_v53 = vshrl.u32 %v1158_v45, 16  ;;  %v1178_v54 = vshll.u32 %v1158_v45, 16  ;;  %v1183_v55 = vshrl.u32 %v1159_v46, 16  ;;  %v989_v56 = vld [vmem:[#allocation2] sm:$0xf0]  ;;  %v4129_v35 = vld [vmem:[%s5018_s5 + $0x150] sm:$0xff]  }
  0x2f   : > { %2655 = vmatprep.mubr.bf16.mxu0 %v951_v52  ;;  %v1186_v57 = vshll.u32 %v1159_v46, 16  ;;  %v767_v58 = vrot.slane %v765_v43, 3  ;;  %v770_v59 = vrot.slane %v768_v44, 4  ;;  %v775_v60 = vrot.slane %v773_v47, 3  ;;  %v990_v61 = vld [vmem:[#allocation2 + $0x8] sm:$0x1f] }
  0x30   : > { %v1177_v62 = vrot.slane %v1175_v53, 3  ;;  %v1180_v63 = vrot.slane %v1178_v54, 4  ;;  %v1185_v0 = vrot.slane %v1183_v55, 3  ;;  %v778_v1 = vrot.slane %v776_v48, 4  ;;  %v918_v2 = vld [vmem:[#allocation2 + $0x10] sm:$0xf0] }
  0x31   : > { %v1188_v3 = vrot.slane %v1186_v57, 4  ;;  %v771_v4 = vor.u32 %v770_v59, %v767_v58  ;;  %v1007_v5 = vshrl.u32 %v989_v56, 16  ;;  %v1010_v6 = vshll.u32 %v989_v56, 16  ;;  %v919_v7 = vld [vmem:[#allocation2 + $0x18] sm:$0xf]  ;;  %v4132_v36 = vld [vmem:[%s5018_s5 + $0x180] sm:$0xff]  }
  0x32   : > { %v1181_v8 = vor.u32 %v1180_v63, %v1177_v62  ;;  %v779_v9 = vor.u32 %v778_v1, %v775_v60  ;;  %v1015_v10 = vshrl.u32 %v990_v61, 16  ;;  %v1018_v11 = vshll.u32 %v990_v61, 16  ;;  %v1160_v13 = vld [vmem:[#allocation2 + $0x20] sm:$0xf8]  ;;  %v1161_v18 = vld [vmem:[#allocation2 + $0x28] sm:$0xf] }
  0x33   : > { %v1189_v14 = vor.u32 %v1188_v3, %v1185_v0  ;;  %v1009_v15 = vrot.slane %v1007_v5, 4  ;;  %v1012_v16 = vrot.slane %v1010_v6, 5  ;;  %v952_v17 = vrot.slane %v918_v2, 4  ;;  %v750_v26 = vld [vmem:[#allocation2 + $0x10] sm:$0xf8]  ;;  %v4134_v37 = vld [vmem:[%s5018_s5 + $0x1c8] sm:$0xff]  }
  0x34   : > { %v780_v20 = vsel %vm552_vm4, %v771_v4, %v779_v9  ;;  %v1017_v22 = vrot.slane %v1015_v10, 4  ;;  %v1020_v23 = vrot.slane %v1018_v11, 5  ;;  %v953_v24 = vrot.slane %v919_v7, 4  ;;  %v751_v34 = vld [vmem:[#allocation2 + $0x18] sm:$0xf]  ;;  %v4131_v59 = vld [vmem:[%s5018_s5 + $0x110] sm:$0xff]  }
  0x35   : > { %v1190_v28 = vsel %vm552_vm4, %v1181_v8, %v1189_v14  ;;  %2656 = vmatmul.mubr.bf16.vlgmr.msra.gmra.mrb[0].mxu0 %v780_v20  ;;  %v1013_v29 = vor.u32 %v1012_v16, %v1009_v15  ;;  %v1192_v30 = vshrl.u32 %v1160_v13, 16  ;;  %v1195_v31 = vshll.u32 %v1160_v13, 16  ;;  %v991_v44 = vld [vmem:[#allocation2 + $0x10] sm:$0xf0]  ;;  %v992_v45 = vld [vmem:[#allocation2 + $0x18] sm:$0x1f] }
  0x36   : > { %2752 = vmatprep.mubr.bf16.mxu1 %v1190_v28  ;;  %v1021_v40 = vor.u32 %v1020_v23, %v1017_v22  ;;  %3862 = vmatpush3.bf16.msra.mxu0 %v4126_v12  ;;  %v954_v41 = vsel %vm948_vm7, %v952_v17, %v953_v24  ;;  %v1200_v42 = vshrl.u32 %v1161_v18, 16  ;;  %v1203_v43 = vshll.u32 %v1161_v18, 16  ;;  %v920_v53 = vld [vmem:[#allocation2 + $0x20] sm:$0xf0]  ;;  %v921_v58 = vld [vmem:[#allocation2 + $0x28] sm:$0xf] }
  0x37   : > { %2663 = vmatprep.mubr.bf16.mxu0 %v954_v41  ;;  %v1194_v46 = vrot.slane %v1192_v30, 3  ;;  %v1197_v47 = vrot.slane %v1195_v31, 4  ;;  %3863 = vmatprep.subr.bf16.mxu0 %v4127_v19  ;;  %v782_v48 = vshrl.u32 %v750_v26, 16  ;;  %v785_v52 = vshll.u32 %v750_v26, 16  ;;  %v752_v0 = vld [vmem:[#allocation2 + $0x20] sm:$0xf8] }
  0x38   : > { %v1022_v54 = vsel %vm1005_vm8, %v1013_v29, %v1021_v40  ;;  %v1202_v55 = vrot.slane %v1200_v42, 3  ;;  %v1205_v56 = vrot.slane %v1203_v43, 4  ;;  %v790_v57 = vshrl.u32 %v751_v34, 16  ;;  %v4133_v1 = vld [vmem:[%s5018_s5 + $0x158] sm:$0xff]   ;;  %v753_v6 = vld [vmem:[#allocation2 + $0x28] sm:$0xf] }
  0x39   : > { %2753 = vmatmul.mubr.bf16.vlgmr.msra.gmra.mrb[0].mxu1 %v1022_v54  ;;  %v1198_v60 = vor.u32 %v1197_v47, %v1194_v46  ;;  %v784_v61 = vrot.slane %v782_v48, 3  ;;  %v787_v62 = vrot.slane %v785_v52, 4  ;;  %v793_v63 = vshll.u32 %v751_v34, 16  ;;  %v4136_v7 = vld [vmem:[%s5018_s5 + $0x188] sm:$0xff]   ;;  %v993_v12 = vld [vmem:[#allocation2 + $0x20] sm:$0xf0] }
  0x3a   : > { %v1206_v2 = vor.u32 %v1205_v56, %v1202_v55  ;;  %v792_v3 = vrot.slane %v790_v57, 3  ;;  %v1024_v4 = vshrl.u32 %v991_v44, 16  ;;  %v1027_v5 = vshll.u32 %v991_v44, 16  ;;  %3864 = vmatpush3.bf16.msra.mxu0 %v4128_v27  ;;  %3926 = vmatpush3.bf16.msra.mxu1 %v4132_v36  ;;  %v4138_v13 = vld [vmem:[%s5018_s5 + $0x1d0] sm:$0xff]   ;;  %v994_v18 = vld [vmem:[#allocation2 + $0x28] sm:$0x1f] }
  0x3b   : > { %v788_v8 = vor.u32 %v787_v62, %v784_v61  ;;  %v795_v9 = vrot.slane %v793_v63, 4  ;;  %v1032_v10 = vshrl.u32 %v992_v45, 16  ;;  %v1035_v11 = vshll.u32 %v992_v45, 16  ;;  %3865 = vmatprep.subr.bf16.mxu0 %v4129_v35  ;;  %3927 = vmatprep.subr.bf16.mxu1 %v4134_v37  ;;  %v4135_v19 = vld [vmem:[%s5018_s5 + $0x118] sm:$0xff]   ;;  %v4137_v26 = vld [vmem:[%s5018_s5 + $0x160] sm:$0xff]   ;;  %v4140_v34 = vld [vmem:[%s5018_s5 + $0x190] sm:$0xff]  }
  0x3c   : > { %v1207_v14 = vsel %vm552_vm4, %v1198_v60, %v1206_v2  ;;  %v1026_v15 = vrot.slane %v1024_v4, 4  ;;  %v1029_v16 = vrot.slane %v1027_v5, 5  ;;  %v955_v17 = vrot.slane %v920_v53, 4  ;;  %v536_v31 = vld [vmem:[#allocation2 + $0x50] sm:$0x8]  ;;  %v3722_v41 = vld [vmem:[%s4412_s17 + $0x20] sm:$0xff]  }
  0x3d   : > { %2760 = vmatprep.mubr.bf16.mxu1 %v1207_v14  ;;  %v796_v20 = vor.u32 %v795_v9, %v792_v3  ;;  %v1034_v22 = vrot.slane %v1032_v10, 4  ;;  %v1037_v23 = vrot.slane %v1035_v11, 5  ;;  %v956_v24 = vrot.slane %v921_v58, 4  ;;  %v566_v44 = vld [vmem:[#allocation2 + $0x48] sm:$0x10]  ;;  %v4139_v45 = vld [vmem:[%s5018_s5 + $0x120] sm:$0xff]  }
  0x3e   : > { %v1030_v27 = vor.u32 %v1029_v16, %v1026_v15  ;;  %v678_v28 = vrot.slane %v662_v39, 4  ;;  %v799_v29 = vshrl.u32 %v752_v0, 16  ;;  %v802_v30 = vshll.u32 %v752_v0, 16  ;;  %3866 = vmatpush3.bf16.msra.mxu0 %v4131_v59  ;;  %3928 = vmatpush3.bf16.msra.mxu1 %v4136_v7  ;;  %v4141_v53 = vld [vmem:[%s5018_s5 + $0x168] sm:$0xff]   ;;  %v4144_v59 = vld [vmem:[%s5018_s5 + $0x198] sm:$0xff]   ;;  %v4566_v0 = vld [vmem:[%s4412_s17 + $0x30] sm:$0xff]  }
  0x3f   : > { %v797_v35 = vsel %vm552_vm4, %v788_v8, %v796_v20  ;;  %v1038_v36 = vor.u32 %v1037_v23, %v1034_v22  ;;  %v957_v37 = vsel %vm948_vm7, %v955_v17, %v956_v24  ;;  %v807_v40 = vshrl.u32 %v753_v6, 16  ;;  %3867 = vmatprep.subr.bf16.mxu0 %v4133_v1  ;;  %3929 = vmatprep.subr.bf16.mxu1 %v4138_v13  ;;  %v4556_v58 = vld [vmem:[%s4412_s17 + $0x28] sm:$0xff]   ;;  %v539_v5 = vld [vmem:[#allocation2 + $0x60] sm:$0x8]  ;;  %v4145_v10 = vld [vmem:[%s5018_s5 + $0x170] sm:$0xff]  }
  0x40   : > { %2664 = vmatmul.mubr.bf16.gmra.mrb[4].mxu0 %v797_v35  ;;  %697 = vst [vmem:[#allocation2 + $0x38] ss:$-4 sps:$4 sm:$0xff] %v678_v28   ;;  %v801_v25 = vrot.slane %v799_v29, 3  ;;  %v804_v39 = vrot.slane %v802_v30, 4  ;;  %v810_v42 = vshll.u32 %v753_v6, 16  ;;  %v1041_v43 = vshrl.u32 %v993_v12, 16 }
  0x41   : > { %v1039_v46 = vsel %vm1005_vm8, %v1030_v27, %v1038_v36  ;;  %2671 = vmatprep.mubr.bf16.mxu0 %v957_v37  ;;  %v809_v47 = vrot.slane %v807_v40, 3  ;;  %v1044_v48 = vshll.u32 %v993_v12, 16  ;;  %v1049_v52 = vshrl.u32 %v994_v18, 16  ;;  %v4143_v6 = vld [vmem:[%s5018_s5 + $0x128] sm:$0xff]   ;;  %v4148_v11 = vld [vmem:[%s5018_s5 + $0x1a0] sm:$0xff]  }
  0x42   : > { %2761 = vmatmul.mubr.bf16.gmra.mrb[4].mxu1 %v1039_v46  ;;  %v805_v54 = vor.u32 %v804_v39, %v801_v25  ;;  %v812_v55 = vrot.slane %v810_v42, 4  ;;  %v1043_v56 = vrot.slane %v1041_v43, 4  ;;  %v1052_v57 = vshll.u32 %v994_v18, 16  ;;  %3868 = vmatpush3.bf16.msra.mxu0 %v4135_v19  ;;  %v4149_v16 = vld [vmem:[%s5018_s5 + $0x1e8] sm:$0xff]  }
  0x43   : > { %v1046_v60 = vrot.slane %v1044_v48, 5  ;;  %v1051_v61 = vrot.slane %v1049_v52, 4  ;;  %v663_v62 = vpack.c.bf16 %v4492_v51, %v4489_v50  ;;  %v537_v63 = vsel %vm4426_vm3, 0, %v536_v31  ;;  %3869 = vmatprep.subr.bf16.mxu0 %v4137_v26  ;;  %3930 = vmatpush3.bf16.msra.mxu1 %v4140_v34  ;;  %v4146_v50 = vld [vmem:[%s5018_s5 + $0x1e0] sm:$0xff]   ;;  %v4147_v31 = vld [vmem:[%s5018_s5 + $0x130] sm:$0xff]   ;;  %v4150_v48 = vld [vmem:[%s5018_s5 + $0x1a8] sm:$0xff]  }
  0x44   : > { %v813_v1 = vor.u32 %v812_v55, %v809_v47  ;;  %v1054_v2 = vrot.slane %v1052_v57, 5  ;;  %538 = vst [vmem:[#allocation2 + $0x50] sm:$0x8] %v537_v63  ;;  %v3657_v3 = vunpack.c.l.bf16 %v3722_v41  ;;  %v3658_v4 = vunpack.c.h.bf16 %v3722_v41  ;;  %3931 = vmatprep.subr.bf16.mxu1 %v4142_v21 }
  0x45   : > { %v1047_v51 = vor.u32 %v1046_v60, %v1043_v56  ;;  %v679_v7 = vrot.slane %v663_v62, 4  ;;  %v567_v8 = vsel %vm4442_vm5, 0, %v566_v44  ;;  %v540_v9 = vsel %vm4426_vm3, 0, %v539_v5 }
  0x46   : > { %v814_v12 = vsel %vm552_vm4, %v805_v54, %v813_v1  ;;  %v1055_v13 = vor.u32 %v1054_v2, %v1051_v61  ;;  %v630_v14 = vmul.f32 %v3657_v3, %v4417_v32  ;;  %v631_v15 = vmul.f32 %v3658_v4, %v4417_v32  ;;  %568 = vst [vmem:[#allocation2 + $0x48] sm:$0x10] %v567_v8 }
  0x47   : > { %3870 = vmatpush3.bf16.msra.mxu0 %v4139_v45  ;;  %541 = vst [vmem:[#allocation2 + $0x60] sm:$0x8] %v540_v9  ;;  %v1162_v17 = vld [vmem:[#allocation2 + $0x30] sm:$0xf8]  ;;  %v1163_v18 = vld [vmem:[#allocation2 + $0x38] sm:$0xf]  ;;  %v3661_v20 = vunpack.c.l.bf16 %v4556_v58  ;;  %v3662_v22 = vunpack.c.h.bf16 %v4556_v58  ;;  %3932 = vmatpush3.bf16.msra.mxu1 %v4144_v59  ;;  %v3665_v23 = vunpack.c.l.bf16 %v4566_v0  ;;  %v3666_v24 = vunpack.c.h.bf16 %v4566_v0 }
  0x48   : > { %v922_v19 = vld [vmem:[#allocation2 + $0x30] sm:$0xf0]  ;;  %699 = vst [vmem:[#allocation2 + $0x48] ss:$-4 sps:$4 sm:$0xff] %v679_v7   ;;  %3871 = vmatprep.subr.bf16.mxu0 %v4141_v53  ;;  %v1209_v26 = vshrl.u32 %v1162_v17, 16  ;;  %v1212_v27 = vshll.u32 %v1162_v17, 16  ;;  %2672 = vmatmul.mubr.bf16.gmra.mrb[8].mxu0 %v814_v12  ;;  %v1056_v34 = vsel %vm1005_vm8, %v1047_v51, %v1055_v13  ;;  %v4599_v41 = vadd.f32 %v4422_v33, %v630_v14 }
  0x49   : > { %v1217_v28 = vshrl.u32 %v1163_v18, 16  ;;  %v1220_v29 = vshll.u32 %v1163_v18, 16  ;;  %v923_v30 = vld [vmem:[#allocation2 + $0x38] sm:$0xf]  ;;  %3933 = vmatprep.subr.bf16.mxu1 %v4146_v50  ;;  %v958_v35 = vrot.slane %v922_v19, 4  ;;  %v653_v4 = vadd.f32 %v4422_v33, %v631_v15  ;;  %v4153_v58 = vld [vmem:[%s5018_s5 + $0x1f0] sm:$0xff]  }
  0x4a   : > { %v959_v36 = vrot.slane %v923_v30, 4  ;;  %v754_v37 = vld [vmem:[#allocation2 + $0x30] sm:$0xf8]  ;;  %v755_v40 = vld [vmem:[#allocation2 + $0x38] sm:$0xf]  ;;  %v1211_v21 = vrot.slane %v1209_v26, 3 }
  0x4b   : > { %v1214_v25 = vrot.slane %v1212_v27, 4  ;;  %v1219_v39 = vrot.slane %v1217_v28, 3  ;;  %v1222_v42 = vrot.slane %v1220_v29, 4  ;;  %v995_v43 = vld [vmem:[#allocation2 + $0x30] sm:$0xf0]  ;;  %3872 = vmatpush3.bf16.msra.mxu0 %v4143_v6  ;;  %v816_v45 = vshrl.u32 %v754_v37, 16  ;;  %3934 = vmatpush3.bf16.msra.mxu1 %v4148_v11 }
  0x4c   : > { %v960_v44 = vsel %vm948_vm7, %v958_v35, %v959_v36  ;;  %v819_v46 = vshll.u32 %v754_v37, 16  ;;  %v824_v47 = vshrl.u32 %v755_v40, 16  ;;  %3873 = vmatprep.subr.bf16.mxu0 %v4145_v10  ;;  %v827_v54 = vshll.u32 %v755_v40, 16  ;;  %v996_v55 = vld [vmem:[#allocation2 + $0x38] sm:$0x1f]  ;;  %3935 = vmatprep.subr.bf16.mxu1 %v4149_v16 }
  0x4d   : > { %v1215_v52 = vor.u32 %v1214_v25, %v1211_v21  ;;  %v1223_v53 = vor.u32 %v1222_v42, %v1219_v39  ;;  %2679 = vmatprep.mubr.bf16.mxu0 %v960_v44  ;;  %v1058_v56 = vshrl.u32 %v995_v43, 16  ;;  %v818_v57 = vrot.slane %v816_v45, 3  ;;  %v569_v45 = vld [vmem:[#allocation2 + $0x58] sm:$0x10] }
  0x4e   : > { %v821_v59 = vrot.slane %v819_v46, 4  ;;  %v826_v60 = vrot.slane %v824_v47, 3  ;;  %v1061_v61 = vshll.u32 %v995_v43, 16  ;;  %v829_v2 = vrot.slane %v827_v54, 4 }
  0x4f   : > { %v1224_v62 = vsel %vm552_vm4, %v1215_v52, %v1223_v53  ;;  %v1164_v63 = vld [vmem:[#allocation2 + $0x40] sm:$0xf8]  ;;  %v1165_v1 = vld [vmem:[#allocation2 + $0x48] sm:$0xf]  ;;  %v1060_v3 = vrot.slane %v1058_v56, 4  ;;  %3874 = vmatpush3.bf16.msra.mxu0 %v4147_v31  ;;  %3936 = vmatpush3.bf16.msra.mxu1 %v4150_v48  ;;  %v1066_v10 = vshrl.u32 %v996_v55, 16  ;;  %v664_v37 = vpack.c.bf16 %v653_v4, %v4599_v41 }
  0x50   : > { %2768 = vmatprep.mubr.bf16.mxu1 %v1224_v62  ;;  %v1226_v5 = vshrl.u32 %v1164_v63, 16  ;;  %v1229_v6 = vshll.u32 %v1164_v63, 16  ;;  %v1234_v50 = vshrl.u32 %v1165_v1, 16  ;;  %v1237_v51 = vshll.u32 %v1165_v1, 16  ;;  %v924_v11 = vld [vmem:[#allocation2 + $0x40] sm:$0xf0]  ;;  %3937 = vmatprep.subr.bf16.mxu1 %v4153_v58 }
  0x51   : > { %2769 = vmatmul.mubr.bf16.gmra.mrb[8].mxu1 %v1056_v34  ;;  %v822_v7 = vor.u32 %v821_v59, %v818_v57  ;;  %v830_v8 = vor.u32 %v829_v2, %v826_v60  ;;  %v1063_v9 = vrot.slane %v1061_v61, 5  ;;  %v925_v12 = vld [vmem:[#allocation2 + $0x48] sm:$0xf]  ;;  %v756_v18 = vld [vmem:[#allocation2 + $0x40] sm:$0xf8]  ;;  %v1068_v26 = vrot.slane %v1066_v10, 4 }
  0x52   : > { %v1228_v13 = vrot.slane %v1226_v5, 3  ;;  %v1231_v14 = vrot.slane %v1229_v6, 4  ;;  %v1236_v16 = vrot.slane %v1234_v50, 3  ;;  %v1239_v17 = vrot.slane %v1237_v51, 4  ;;  %v757_v28 = vld [vmem:[#allocation2 + $0x48] sm:$0xf] }
  0x53   : > { %v831_v15 = vsel %vm552_vm4, %v822_v7, %v830_v8  ;;  %v1064_v19 = vor.u32 %v1063_v9, %v1060_v3  ;;  %v1069_v27 = vshll.u32 %v996_v55, 16  ;;  %v997_v29 = vld [vmem:[#allocation2 + $0x40] sm:$0xf0]  ;;  %v961_v34 = vrot.slane %v924_v11, 4  ;;  %v998_v25 = vld [vmem:[#allocation2 + $0x48] sm:$0x1f] }
  0x54   : > { %v1232_v30 = vor.u32 %v1231_v14, %v1228_v13  ;;  %v1240_v31 = vor.u32 %v1239_v17, %v1236_v16  ;;  %2680 = vmatmul.mubr.bf16.gmra.mrb[12].mxu0 %v831_v15  ;;  %v962_v35 = vrot.slane %v925_v12, 4  ;;  %v833_v40 = vshrl.u32 %v756_v18, 16  ;;  %v542_v53 = vld [vmem:[#allocation2 + $0x70] sm:$0x8]  ;;  %v4151_v41 = vld [vmem:[%s5018_s5 + $0x178] sm:$0xff]  }
  0x55   : > { %v1071_v36 = vrot.slane %v1069_v27, 5  ;;  %v836_v21 = vshll.u32 %v756_v18, 16  ;;  %v841_v43 = vshrl.u32 %v757_v28, 16  ;;  %v844_v44 = vshll.u32 %v757_v28, 16  ;;  %v572_v63 = vld [vmem:[#allocation2 + $0x68] sm:$0x10]  ;;  %3875 = vmatprep.subr.bf16.mxu0 %v4151_v41 }
  0x56   : > { %v1241_v39 = vsel %vm552_vm4, %v1232_v30, %v1240_v31  ;;  %v963_v42 = vsel %vm948_vm7, %v961_v34, %v962_v35  ;;  %v680_v47 = vrot.slane %v664_v37, 4  ;;  %v835_v48 = vrot.slane %v833_v40, 3  ;;  %v4616_v1 = vld [vmem:[%s4412_s17 + $0x38] sm:$0xff]   ;;  %v545_v16 = vld [vmem:[#allocation2 + $0x80] sm:$0x8] }
  0x57   : > { %2776 = vmatprep.mubr.bf16.mxu1 %v1241_v39  ;;  %v1072_v46 = vor.u32 %v1071_v36, %v1068_v26  ;;  %2687 = vmatprep.mubr.bf16.mxu0 %v963_v42  ;;  %v838_v52 = vrot.slane %v836_v21, 4  ;;  %v843_v54 = vrot.slane %v841_v43, 3  ;;  %v846_v55 = vrot.slane %v844_v44, 4  ;;  %v4152_v8 = vld [vmem:[%s5018_s5 + $0x138] sm:$0xff]   ;;  %v4154_v42 = vld [vmem:[%s5018_s5 + $0x1b0] sm:$0xff]  }
  0x58   : > { %v1075_v56 = vshrl.u32 %v997_v29, 16  ;;  %v1078_v57 = vshll.u32 %v997_v29, 16  ;;  %701 = vst [vmem:[#allocation2 + $0x58] ss:$-4 sps:$4 sm:$0xff] %v680_v47   ;;  %v1083_v61 = vshrl.u32 %v998_v25, 16  ;;  %v1086_v62 = vshll.u32 %v998_v25, 16  ;;  %3876 = vmatpush3.bf16.msra.mxu0 %v4152_v8  ;;  %3938 = vmatpush3.bf16.msra.mxu1 %v4154_v42 }
  0x59   : > { %v1073_v59 = vsel %vm1005_vm8, %v1064_v19, %v1072_v46  ;;  %v839_v60 = vor.u32 %v838_v52, %v835_v48  ;;  %v847_v2 = vor.u32 %v846_v55, %v843_v54  ;;  %v632_v5 = vmul.f32 %v3661_v20, %v4417_v32  ;;  %v4155_v54 = vld [vmem:[%s5018_s5 + $0x1f8] sm:$0xff]  }
  0x5a   : > { %2777 = vmatmul.mubr.bf16.gmra.mrb[12].mxu1 %v1073_v59  ;;  %v1077_v3 = vrot.slane %v1075_v56, 4  ;;  %v1080_v4 = vrot.slane %v1078_v57, 5  ;;  %v1085_v6 = vrot.slane %v1083_v61, 4  ;;  %v1088_v50 = vrot.slane %v1086_v62, 5  ;;  %v575_v61 = vld [vmem:[#allocation2 + $0x78] sm:$0x10]  ;;  %3939 = vmatprep.subr.bf16.mxu1 %v4155_v54 }
  0x5b   : > { %v633_v51 = vmul.f32 %v3662_v22, %v4417_v32  ;;  %v570_v7 = vsel %vm4442_vm5, 0, %v569_v45  ;;  %v848_v9 = vsel %vm552_vm4, %v839_v60, %v847_v2  ;;  %v654_v11 = vadd.f32 %v4422_v33, %v632_v5 }
  0x5c   : > { %v1081_v10 = vor.u32 %v1080_v4, %v1077_v3  ;;  %571 = vst [vmem:[#allocation2 + $0x58] sm:$0x10] %v570_v7  ;;  %v543_v20 = vsel %vm4426_vm3, 0, %v542_v53  ;;  %2688 = vmatmul.mubr.bf16.gmra.mrb[16].mxu0 %v848_v9  ;;  %v1089_v22 = vor.u32 %v1088_v50, %v1085_v6  ;;  %v634_v13 = vmul.f32 %v3665_v23, %v4417_v32  ;;  %v4666_v6 = vld [vmem:[%s5016_s3] ss:$0 sm:$0xff] }
  0x5d   : > { %v655_v12 = vadd.f32 %v4422_v33, %v633_v51  ;;  %544 = vst [vmem:[#allocation2 + $0x70] sm:$0x8] %v543_v20  ;;  %v635_v14 = vmul.f32 %v3666_v24, %v4417_v32  ;;  %v573_v17 = vsel %vm4442_vm5, 0, %v572_v63  ;;  %v546_v18 = vsel %vm4426_vm3, 0, %v545_v16  ;;  %v4156_v51 = vld [vmem:[%s5018_s5 + $0x1b8] sm:$0xff]  }
  0x5e   : > { %v3669_v15 = vunpack.c.l.bf16 %v4616_v1  ;;  %v656_v26 = vadd.f32 %v4422_v33, %v634_v13  ;;  %574 = vst [vmem:[#allocation2 + $0x68] sm:$0x10] %v573_v17  ;;  %547 = vst [vmem:[#allocation2 + $0x80] sm:$0x8] %v546_v18  ;;  %v1090_v27 = vsel %vm1005_vm8, %v1081_v10, %v1089_v22  ;;  %v3670_v29 = vunpack.c.h.bf16 %v4616_v1  ;;  %3940 = vmatpush3.bf16.msra.mxu1 %v4156_v51 }
  0x5f   : > { %v665_v19 = vpack.c.bf16 %v655_v12, %v654_v11  ;;  %v657_v23 = vadd.f32 %v4422_v33, %v635_v14  ;;  %v1166_v0 = vld [vmem:[#allocation2 + $0x50] sm:$0xf8]  ;;  %v1167_v24 = vld [vmem:[#allocation2 + $0x58] sm:$0xf]  ;;  %v4675_v11 = vld [vmem:[%s5018_s5 + $0x200] sm:$0xff]   ;;  %v576_v13 = vsel %vm4442_vm5, 0, %v575_v61 }
  0x60   : > { %v926_v28 = vld [vmem:[#allocation2 + $0x50] sm:$0xf0]  ;;  %v4653_v30 = vmul.f32 %v3669_v15, %v4417_v32  ;;  %v1243_v31 = vshrl.u32 %v1166_v0, 16  ;;  %v1246_v34 = vshll.u32 %v1166_v0, 16  ;;  %v1251_v35 = vshrl.u32 %v1167_v24, 16  ;;  %4005 = vmatprep.subr.bf16.mxu0 %v4675_v11  ;;  %4037 = vmatprep.subr.bf16.mxu1 %v4675_v11 }
  0x61   : > { %v1254_v36 = vshll.u32 %v1167_v24, 16  ;;  %v927_v37 = vld [vmem:[#allocation2 + $0x58] sm:$0xf]  ;;  %v964_v40 = vrot.slane %v926_v28, 4  ;;  %v681_v33 = vrot.slane %v665_v19, 4  ;;  %v666_v39 = vpack.c.bf16 %v657_v23, %v656_v26 }
  0x62   : > { %v965_v21 = vrot.slane %v927_v37, 4  ;;  %v758_v25 = vld [vmem:[#allocation2 + $0x50] sm:$0xf8]  ;;  %v1245_v43 = vrot.slane %v1243_v31, 3  ;;  %v1248_v44 = vrot.slane %v1246_v34, 4  ;;  %v1253_v45 = vrot.slane %v1251_v35, 3 }
  0x63   : > { %v1256_v46 = vrot.slane %v1254_v36, 4  ;;  %v759_v32 = vld [vmem:[#allocation2 + $0x58] sm:$0xf]  ;;  %703 = vst [vmem:[#allocation2 + $0x68] ss:$-4 sps:$4 sm:$0xff] %v681_v33   ;;  %v850_v48 = vshrl.u32 %v758_v25, 16  ;;  %v637_v50 = vmul.f32 %v4666_v6, %v3670_v29 }
  0x64   : > { %v966_v47 = vsel %vm948_vm7, %v964_v40, %v965_v21  ;;  %v853_v52 = vshll.u32 %v758_v25, 16  ;;  %v858_v53 = vshrl.u32 %v759_v32, 16  ;;  %v999_v41 = vld [vmem:[#allocation2 + $0x50] sm:$0xf0]  ;;  %v1249_v55 = vor.u32 %v1248_v44, %v1245_v43  ;;  %v1000_v59 = vld [vmem:[#allocation2 + $0x58] sm:$0x1f] }
  0x65   : > { %v1257_v56 = vor.u32 %v1256_v46, %v1253_v45  ;;  %2695 = vmatprep.mubr.bf16.mxu0 %v966_v47  ;;  %v861_v57 = vshll.u32 %v759_v32, 16  ;;  %v1092_v60 = vshrl.u32 %v999_v41, 16  ;;  %v852_v62 = vrot.slane %v850_v48, 3  ;;  %v4684_v15 = vld [vmem:[%s5017_s4] ss:$0 sm:$0xff] }
  0x66   : > { %v855_v63 = vrot.slane %v853_v52, 4  ;;  %v860_v1 = vrot.slane %v858_v53, 3  ;;  %v1095_v2 = vshll.u32 %v999_v41, 16  ;;  %v1100_v5 = vshrl.u32 %v1000_v59, 16  ;;  %577 = vst [vmem:[#allocation2 + $0x78] sm:$0x10] %v576_v13 }
  0x67   : > { %v1258_v3 = vsel %vm552_vm4, %v1249_v55, %v1257_v56  ;;  %v863_v4 = vrot.slane %v861_v57, 4  ;;  %v1094_v8 = vrot.slane %v1092_v60, 4  ;;  %v1103_v9 = vshll.u32 %v1000_v59, 16 }
  0x68   : > { %2784 = vmatprep.mubr.bf16.mxu1 %v1258_v3  ;;  %v856_v7 = vor.u32 %v855_v63, %v852_v62  ;;  %v682_v10 = vrot.slane %v666_v39, 4  ;;  %v1097_v58 = vrot.slane %v1095_v2, 5  ;;  %v1102_v22 = vrot.slane %v1100_v5, 4 }
  0x69   : > { %2785 = vmatmul.mubr.bf16.gmra.mrb[16].mxu1 %v1090_v27  ;;  %v864_v20 = vor.u32 %v863_v4, %v860_v1  ;;  %v1105_v12 = vrot.slane %v1103_v9, 5  ;;  %v4688_v19 = vadd.f32 %v4684_v15, %v4653_v30  ;;  %v4691_v26 = vadd.f32 %v4684_v15, %v637_v50 }
  0x6a   : > { %705 = vst [vmem:[#allocation2 + $0x78] ss:$-4 sps:$4 sm:$0xff] %v682_v10   ;;  %v1168_v14 = vld [vmem:[#allocation2 + $0x60] sm:$0xf8]  ;;  %v1169_v16 = vld [vmem:[#allocation2 + $0x68] sm:$0xf]  ;;  %v1098_v29 = vor.u32 %v1097_v58, %v1094_v8 }
  0x6b   : > { %v865_v17 = vsel %vm552_vm4, %v856_v7, %v864_v20  ;;  %v928_v18 = vld [vmem:[#allocation2 + $0x60] sm:$0xf0]  ;;  %v1260_v23 = vshrl.u32 %v1168_v14, 16  ;;  %v1263_v0 = vshll.u32 %v1168_v14, 16  ;;  %v1268_v24 = vshrl.u32 %v1169_v16, 16 }
  0x6c   : > { %v1271_v27 = vshll.u32 %v1169_v16, 16  ;;  %2696 = vmatmul.mubr.bf16.gmra.mrb[20].mxu0 %v865_v17  ;;  %v929_v28 = vld [vmem:[#allocation2 + $0x68] sm:$0xf]  ;;  %v1106_v31 = vor.u32 %v1105_v12, %v1102_v22  ;;  %v967_v34 = vrot.slane %v928_v18, 4  ;;  %v760_v36 = vld [vmem:[#allocation2 + $0x60] sm:$0xf8]  ;;  %v667_v54 = vpack.c.bf16 %v4691_v26, %v4688_v19 }
  0x6d   : > { %v968_v35 = vrot.slane %v929_v28, 4  ;;  %v761_v37 = vld [vmem:[#allocation2 + $0x68] sm:$0xf]  ;;  %v1262_v30 = vrot.slane %v1260_v23, 3  ;;  %v1265_v40 = vrot.slane %v1263_v0, 4  ;;  %v1270_v21 = vrot.slane %v1268_v24, 3 }
  0x6e   : > { %v1273_v33 = vrot.slane %v1271_v27, 4  ;;  %v867_v39 = vshrl.u32 %v760_v36, 16  ;;  %v870_v42 = vshll.u32 %v760_v36, 16  ;;  %v875_v45 = vshrl.u32 %v761_v37, 16  ;;  %v1001_v32 = vld [vmem:[#allocation2 + $0x60] sm:$0xf0] }
  0x6f   : > { %v969_v25 = vsel %vm948_vm7, %v967_v34, %v968_v35  ;;  %v1266_v43 = vor.u32 %v1265_v40, %v1262_v30  ;;  %v878_v46 = vshll.u32 %v761_v37, 16  ;;  %v1107_v47 = vsel %vm1005_vm8, %v1098_v29, %v1106_v31  ;;  %v1002_v60 = vld [vmem:[#allocation2 + $0x68] sm:$0x1f] }
  0x70   : > { %v1274_v44 = vor.u32 %v1273_v33, %v1270_v21  ;;  %2703 = vmatprep.mubr.bf16.mxu0 %v969_v25  ;;  %v869_v53 = vrot.slane %v867_v39, 3  ;;  %v872_v41 = vrot.slane %v870_v42, 4  ;;  %v877_v63 = vrot.slane %v875_v45, 3  ;;  %v1398_v21 = vld [vmem:[#allocation2 + $0x10] sm:$0xf0] }
  0x71   : > { %v1170_v48 = vld [vmem:[#allocation2 + $0x70] sm:$0xf8]  ;;  %v1171_v52 = vld [vmem:[#allocation2 + $0x78] sm:$0xf]  ;;  %v880_v1 = vrot.slane %v878_v46, 4  ;;  %v1109_v50 = vshrl.u32 %v1001_v32, 16 }
  0x72   : > { %v1275_v55 = vsel %vm552_vm4, %v1266_v43, %v1274_v44  ;;  %v1277_v56 = vshrl.u32 %v1170_v48, 16  ;;  %v1280_v57 = vshll.u32 %v1170_v48, 16  ;;  %v1285_v59 = vshrl.u32 %v1171_v52, 16  ;;  %v930_v2 = vld [vmem:[#allocation2 + $0x70] sm:$0xf0] }
  0x73   : > { %2792 = vmatprep.mubr.bf16.mxu1 %v1275_v55  ;;  %v1288_v61 = vshll.u32 %v1171_v52, 16  ;;  %v873_v62 = vor.u32 %v872_v41, %v869_v53  ;;  %v931_v51 = vld [vmem:[#allocation2 + $0x78] sm:$0xf]  ;;  %v881_v8 = vor.u32 %v880_v1, %v877_v63  ;;  %v1112_v9 = vshll.u32 %v1001_v32, 16  ;;  %v762_v20 = vld [vmem:[#allocation2 + $0x70] sm:$0xf8] }
  0x74   : > { %2793 = vmatmul.mubr.bf16.gmra.mrb[20].mxu1 %v1107_v47  ;;  %v1279_v3 = vrot.slane %v1277_v56, 3  ;;  %v1282_v4 = vrot.slane %v1280_v57, 4  ;;  %v1287_v5 = vrot.slane %v1285_v59, 3  ;;  %v1117_v10 = vshrl.u32 %v1002_v60, 16  ;;  %v763_v14 = vld [vmem:[#allocation2 + $0x78] sm:$0xf] }
  0x75   : > { %v1290_v7 = vrot.slane %v1288_v61, 4  ;;  %v1111_v22 = vrot.slane %v1109_v50, 4  ;;  %v1120_v12 = vshll.u32 %v1002_v60, 16  ;;  %v970_v13 = vrot.slane %v930_v2, 4  ;;  %v1003_v26 = vld [vmem:[#allocation2 + $0x70] sm:$0xf0] }
  0x76   : > { %v1283_v58 = vor.u32 %v1282_v4, %v1279_v3  ;;  %v882_v17 = vsel %vm552_vm4, %v873_v62, %v881_v8  ;;  %v1114_v18 = vrot.slane %v1112_v9, 5  ;;  %v1119_v19 = vrot.slane %v1117_v10, 4  ;;  %v1004_v35 = vld [vmem:[#allocation2 + $0x78] sm:$0x1f]  ;;  %v1735_v41 = vld [vmem:[#allocation2 + $0x20] sm:$0xf0] }
  0x77   : > { %v1291_v16 = vor.u32 %v1290_v7, %v1287_v5  ;;  %2704 = vmatmul.mubr.bf16.gmra.mrb[24].mxu0 %v882_v17  ;;  %v1122_v23 = vrot.slane %v1120_v12, 5  ;;  %v971_v0 = vrot.slane %v931_v51, 4  ;;  %v683_v24 = vrot.slane %v667_v54, 4  ;;  %v1399_v32 = vld [vmem:[#allocation2 + $0x18] sm:$0x1f] }
  0x78   : > { %v884_v27 = vshrl.u32 %v762_v20, 16  ;;  %v1115_v29 = vor.u32 %v1114_v18, %v1111_v22  ;;  %v887_v31 = vshll.u32 %v762_v20, 16  ;;  %v892_v34 = vshrl.u32 %v763_v14, 16  ;;  %v1736_v63 = vld [vmem:[#allocation2 + $0x28] sm:$0xf] }
  0x79   : > { %v1292_v28 = vsel %vm552_vm4, %v1283_v58, %v1291_v16  ;;  %v1123_v36 = vor.u32 %v1122_v23, %v1119_v19  ;;  %v972_v37 = vsel %vm948_vm7, %v970_v13, %v971_v0  ;;  %707 = vst [vmem:[#allocation2 + $0x88] ss:$-4 sps:$4 sm:$0xff] %v683_v24   ;;  %v895_v40 = vshll.u32 %v763_v14, 16  ;;  %v1326_v5 = vld [vmem:[#allocation2 + $0x10] sm:$0xf0] }
  0x7a   : > { %2800 = vmatprep.mubr.bf16.mxu1 %v1292_v28  ;;  %v886_v30 = vrot.slane %v884_v27, 3  ;;  %2711 = vmatprep.mubr.bf16.mxu0 %v972_v37  ;;  %v889_v33 = vrot.slane %v887_v31, 4  ;;  %v894_v25 = vrot.slane %v892_v34, 3  ;;  %v1126_v39 = vshrl.u32 %v1003_v26, 16  ;;  %v1327_v22 = vld [vmem:[#allocation2 + $0x18] sm:$0xf] }
  0x7b   : > { %v1129_v42 = vshll.u32 %v1003_v26, 16  ;;  %v1124_v43 = vsel %vm1005_vm8, %v1115_v29, %v1123_v36  ;;  %v897_v44 = vrot.slane %v895_v40, 4  ;;  %v1134_v45 = vshrl.u32 %v1004_v35, 16  ;;  %v1567_v17 = vld [vmem:[#allocation2 + $0x20] sm:$0xf8] }
  0x7c   : > { %v1137_v46 = vshll.u32 %v1004_v35, 16  ;;  %2801 = vmatmul.mubr.bf16.gmra.mrb[24].mxu1 %v1124_v43  ;;  %v890_v47 = vor.u32 %v889_v33, %v886_v30  ;;  %v1128_v48 = vrot.slane %v1126_v39, 4  ;;  %v1415_v53 = vshrl.u32 %v1398_v21, 16  ;;  %v1568_v18 = vld [vmem:[#allocation2 + $0x28] sm:$0xf] }
  0x7d   : > { %v1131_v52 = vrot.slane %v1129_v42, 5  ;;  %v898_v54 = vor.u32 %v897_v44, %v894_v25  ;;  %v1136_v55 = vrot.slane %v1134_v45, 4  ;;  %v1418_v57 = vshll.u32 %v1398_v21, 16  ;;  %v1400_v24 = vld [vmem:[#allocation2 + $0x20] sm:$0xf0]  ;;  %v4711_v44 = vld [vmem:[%s5018_s5 + $0x208] sm:$0xff]  }
  0x7e   : > { %v1139_v56 = vrot.slane %v1137_v46, 5  ;;  %v1417_v60 = vrot.slane %v1415_v53, 4  ;;  %v1423_v61 = vshrl.u32 %v1399_v32, 16  ;;  %v1426_v62 = vshll.u32 %v1399_v32, 16  ;;  %v1401_v34 = vld [vmem:[#allocation2 + $0x28] sm:$0x1f] }
  0x7f   : > { %v1132_v59 = vor.u32 %v1131_v52, %v1128_v48  ;;  %v899_v1 = vsel %vm552_vm4, %v890_v47, %v898_v54  ;;  %v1420_v3 = vrot.slane %v1418_v57, 5  ;;  %v1767_v4 = vrot.slane %v1735_v41, 4  ;;  %v1737_v35 = vld [vmem:[#allocation2 + $0x30] sm:$0xf0]  ;;  %v1738_v21 = vld [vmem:[#allocation2 + $0x38] sm:$0xf] }
  0x80   : > { %v1140_v2 = vor.u32 %v1139_v56, %v1136_v55  ;;  %v1172_v50 = vld [vmem:[#allocation2 + $0x80] sm:$0xf8]  ;;  %v1173_v51 = vld [vmem:[#allocation2 + $0x88] sm:$0xf]  ;;  %2712 = vmatmul.mubr.bf16.gmra.mrb[28].mxu0 %v899_v1  ;;  %v1425_v7 = vrot.slane %v1423_v61, 4  ;;  %v1428_v8 = vrot.slane %v1426_v62, 5 }
  0x81   : > { %v1294_v9 = vshrl.u32 %v1172_v50, 16  ;;  %v1297_v10 = vshll.u32 %v1172_v50, 16  ;;  %v1302_v20 = vshrl.u32 %v1173_v51, 16  ;;  %v1305_v58 = vshll.u32 %v1173_v51, 16  ;;  %v1328_v33 = vld [vmem:[#allocation2 + $0x20] sm:$0xf0] }
  0x82   : > { %v1141_v12 = vsel %vm1005_vm8, %v1132_v59, %v1140_v2  ;;  %v1421_v13 = vor.u32 %v1420_v3, %v1417_v60  ;;  %v1429_v14 = vor.u32 %v1428_v8, %v1425_v7  ;;  %v1768_v16 = vrot.slane %v1736_v63, 4  ;;  %v1329_v45 = vld [vmem:[#allocation2 + $0x28] sm:$0xf]  ;;  %v1569_v55 = vld [vmem:[#allocation2 + $0x30] sm:$0xf8] }
  0x83   : > { %v1296_v19 = vrot.slane %v1294_v9, 3  ;;  %v1299_v26 = vrot.slane %v1297_v10, 4  ;;  %v1304_v23 = vrot.slane %v1302_v20, 3  ;;  %v1307_v0 = vrot.slane %v1305_v58, 4  ;;  %v1570_v61 = vld [vmem:[#allocation2 + $0x38] sm:$0xf] }
  0x84   : > { %v1430_v27 = vsel %vm1005_vm8, %v1421_v13, %v1429_v14  ;;  %v1769_v28 = vsel %vm948_vm7, %v1767_v4, %v1768_v16  ;;  %v1358_v29 = vrot.slane %v1326_v5, 4  ;;  %v1359_v31 = vrot.slane %v1327_v22, 4  ;;  %v1402_v3 = vld [vmem:[#allocation2 + $0x30] sm:$0xf0]  ;;  %v1403_v8 = vld [vmem:[#allocation2 + $0x38] sm:$0x1f] }
  0x85   : > { %v1300_v36 = vor.u32 %v1299_v26, %v1296_v19  ;;  %v1308_v37 = vor.u32 %v1307_v0, %v1304_v23  ;;  %2849 = vmatprep.mubr.bf16.mxu0 %v1430_v27  ;;  %v1584_v30 = vshrl.u32 %v1567_v17, 16  ;;  %v1587_v40 = vshll.u32 %v1567_v17, 16  ;;  %v4719_v4 = vld [vmem:[%s5018_s5 + $0x210] sm:$0xff]   ;;  %v1739_v22 = vld [vmem:[#allocation2 + $0x40] sm:$0xf0] }
  0x86   : > { %v1360_v25 = vsel %vm948_vm7, %v1358_v29, %v1359_v31  ;;  %v1592_v39 = vshrl.u32 %v1568_v18, 16  ;;  %v1595_v42 = vshll.u32 %v1568_v18, 16  ;;  %v1432_v43 = vshrl.u32 %v1400_v24, 16  ;;  %v1330_v18 = vld [vmem:[#allocation2 + $0x30] sm:$0xf0] }
  0x87   : > { %v1309_v46 = vsel %vm552_vm4, %v1300_v36, %v1308_v37  ;;  %v1586_v32 = vrot.slane %v1584_v30, 3  ;;  %v1589_v47 = vrot.slane %v1587_v40, 4  ;;  %v1435_v48 = vshll.u32 %v1400_v24, 16  ;;  %v1331_v19 = vld [vmem:[#allocation2 + $0x38] sm:$0xf] }
  0x88   : > { %2808 = vmatprep.mubr.bf16.mxu1 %v1309_v46  ;;  %2850 = vmatmul.mubr.bf16.vlgmr.msra.gmra.mrb[32].mxu0 %v1360_v25  ;;  %v1594_v52 = vrot.slane %v1592_v39, 3  ;;  %v1597_v53 = vrot.slane %v1595_v42, 4  ;;  %v1434_v41 = vrot.slane %v1432_v43, 4  ;;  %v1440_v54 = vshrl.u32 %v1401_v34, 16  ;;  %v1571_v26 = vld [vmem:[#allocation2 + $0x40] sm:$0xf8] }
  0x89   : > { %2809 = vmatmul.mubr.bf16.gmra.mrb[28].mxu1 %v1141_v12  ;;  %v1590_v56 = vor.u32 %v1589_v47, %v1586_v32  ;;  %4006 = vmatpush3.bf16.msra.mxu0 %v4675_v11  ;;  %v1437_v57 = vrot.slane %v1435_v48, 5  ;;  %v1443_v59 = vshll.u32 %v1401_v34, 16  ;;  %v1770_v60 = vrot.slane %v1737_v35, 4  ;;  %v1740_v12 = vld [vmem:[#allocation2 + $0x48] sm:$0xf] }
  0x8a   : > { %2946 = vmatprep.mubr.bf16.mxu1 %v1769_v28  ;;  %v1598_v62 = vor.u32 %v1597_v53, %v1594_v52  ;;  %v1442_v63 = vrot.slane %v1440_v54, 4  ;;  %v1771_v1 = vrot.slane %v1738_v21, 4  ;;  %4007 = vmatprep.subr.bf16.mxu0 %v4711_v44  ;;  %v1361_v2 = vrot.slane %v1328_v33, 4  ;;  %v1572_v40 = vld [vmem:[#allocation2 + $0x48] sm:$0xf]  ;;  %v4731_v21 = vld [vmem:[%s5018_s5 + $0x218] sm:$0xff]  }
  0x8b   : > { %v1438_v5 = vor.u32 %v1437_v57, %v1434_v41  ;;  %v1445_v50 = vrot.slane %v1443_v59, 5  ;;  %v1362_v51 = vrot.slane %v1329_v45, 4  ;;  %v1601_v7 = vshrl.u32 %v1569_v55, 16  ;;  %v1404_v43 = vld [vmem:[#allocation2 + $0x40] sm:$0xf0] }
  0x8c   : > { %v1599_v9 = vsel %vm552_vm4, %v1590_v56, %v1598_v62  ;;  %v1772_v10 = vsel %vm948_vm7, %v1770_v60, %v1771_v1  ;;  %v1604_v20 = vshll.u32 %v1569_v55, 16  ;;  %v1609_v58 = vshrl.u32 %v1570_v61, 16  ;;  %v1405_v48 = vld [vmem:[#allocation2 + $0x48] sm:$0x1f]  ;;  %v1741_v55 = vld [vmem:[#allocation2 + $0x50] sm:$0xf0] }
  0x8d   : > { %v1446_v13 = vor.u32 %v1445_v50, %v1442_v63  ;;  %v1363_v14 = vsel %vm948_vm7, %v1361_v2, %v1362_v51  ;;  %v1603_v16 = vrot.slane %v1601_v7, 3  ;;  %v1612_v17 = vshll.u32 %v1570_v61, 16  ;;  %4008 = vmatpush3.bf16.msra.mxu0 %v4711_v44  ;;  %v1742_v56 = vld [vmem:[#allocation2 + $0x58] sm:$0xf]  ;;  %v4746_v61 = vld [vmem:[#allocation2 + $0x40] sm:$0xf0] }
  0x8e   : > { %v1606_v23 = vrot.slane %v1604_v20, 4  ;;  %v1611_v0 = vrot.slane %v1609_v58, 3  ;;  %v1449_v24 = vshrl.u32 %v1402_v3, 16  ;;  %v1452_v27 = vshll.u32 %v1402_v3, 16  ;;  %4009 = vmatprep.subr.bf16.mxu0 %v4719_v4  ;;  %v4751_v62 = vld [vmem:[%s5018_s5 + $0x220] sm:$0xff]  }
  0x8f   : > { %v1447_v28 = vsel %vm1005_vm8, %v1438_v5, %v1446_v13  ;;  %v1614_v29 = vrot.slane %v1612_v17, 4  ;;  %v1457_v31 = vshrl.u32 %v1403_v8, 16  ;;  %v1460_v34 = vshll.u32 %v1403_v8, 16  ;;  %v1333_v5 = vld [vmem:[#allocation2 + $0x48] sm:$0xf] }
  0x90   : > { %2857 = vmatprep.mubr.bf16.mxu0 %v1447_v28  ;;  %v1607_v35 = vor.u32 %v1606_v23, %v1603_v16  ;;  %v1451_v36 = vrot.slane %v1449_v24, 4  ;;  %v1454_v37 = vrot.slane %v1452_v27, 5  ;;  %v1773_v30 = vrot.slane %v1739_v22, 4  ;;  %v1573_v50 = vld [vmem:[#allocation2 + $0x50] sm:$0xf8] }
  0x91   : > { %2947 = vmatmul.mubr.bf16.vlgmr.msra.gmra.mrb[32].mxu1 %v1599_v9  ;;  %2858 = vmatmul.mubr.bf16.gmra.mrb[36].mxu0 %v1363_v14  ;;  %v1615_v33 = vor.u32 %v1614_v29, %v1611_v0  ;;  %v1459_v25 = vrot.slane %v1457_v31, 4  ;;  %v1462_v39 = vrot.slane %v1460_v34, 5  ;;  %v1774_v42 = vrot.slane %v1740_v12, 4  ;;  %v1406_v23 = vld [vmem:[#allocation2 + $0x50] sm:$0xf0] }
  0x92   : > { %2954 = vmatprep.mubr.bf16.mxu1 %v1772_v10  ;;  %v1455_v45 = vor.u32 %v1454_v37, %v1451_v36  ;;  %v1364_v46 = vrot.slane %v1330_v18, 4  ;;  %v1365_v32 = vrot.slane %v1331_v19, 4  ;;  %v1618_v47 = vshrl.u32 %v1571_v26, 16  ;;  %4045 = vmatpush3.bf16.msra.mxu1 %v4675_v11  ;;  %v1574_v10 = vld [vmem:[#allocation2 + $0x58] sm:$0xf] }
  0x93   : > { %v1616_v52 = vsel %vm552_vm4, %v1607_v35, %v1615_v33  ;;  %v1463_v53 = vor.u32 %v1462_v39, %v1459_v25  ;;  %v1775_v41 = vsel %vm948_vm7, %v1773_v30, %v1774_v42  ;;  %v1621_v54 = vshll.u32 %v1571_v26, 16  ;;  %4010 = vmatpush3.bf16.msra.mxu0 %v4719_v4  ;;  %4038 = vmatprep.subr.bf16.mxu1 %v4711_v44  ;;  %v1407_v29 = vld [vmem:[#allocation2 + $0x58] sm:$0x1f]  ;;  %v4771_v31 = vld [vmem:[#allocation2 + $0x60] sm:$0xf0] }
  0x94   : > { %v1366_v11 = vsel %vm948_vm7, %v1364_v46, %v1365_v32  ;;  %v1620_v57 = vrot.slane %v1618_v47, 3  ;;  %v1626_v59 = vshrl.u32 %v1572_v40, 16  ;;  %v1629_v60 = vshll.u32 %v1572_v40, 16  ;;  %4011 = vmatprep.subr.bf16.mxu0 %v4731_v21  ;;  %v1334_v30 = vld [vmem:[#allocation2 + $0x50] sm:$0xf0] }
  0x95   : > { %v1464_v63 = vsel %vm1005_vm8, %v1455_v45, %v1463_v53  ;;  %v1623_v1 = vrot.slane %v1621_v54, 4  ;;  %v1466_v2 = vshrl.u32 %v1404_v43, 16  ;;  %v1469_v3 = vshll.u32 %v1404_v43, 16  ;;  %v4781_v42 = vld [vmem:[#allocation2 + $0x68] sm:$0xf]  ;;  %v4787_v43 = vld [vmem:[%s5018_s5 + $0x230] sm:$0xff]  }
  0x96   : > { %2865 = vmatprep.mubr.bf16.mxu0 %v1464_v63  ;;  %v1628_v51 = vrot.slane %v1626_v59, 3  ;;  %v1631_v7 = vrot.slane %v1629_v60, 4  ;;  %v1474_v8 = vshrl.u32 %v1405_v48, 16  ;;  %v1477_v9 = vshll.u32 %v1405_v48, 16  ;;  %4046 = vmatpush3.bf16.msra.mxu1 %v4711_v44  ;;  %v4767_v44 = vld [vmem:[%s5018_s5 + $0x228] sm:$0xff]  }
  0x97   : > { %v1624_v20 = vor.u32 %v1623_v1, %v1620_v57  ;;  %v1468_v58 = vrot.slane %v1466_v2, 4  ;;  %v1471_v22 = vrot.slane %v1469_v3, 5  ;;  %v1776_v12 = vrot.slane %v1741_v55, 4  ;;  %4012 = vmatpush3.bf16.msra.mxu0 %v4731_v21  ;;  %4039 = vmatprep.subr.bf16.mxu1 %v4719_v4  ;;  %v1575_v48 = vld [vmem:[#allocation2 + $0x60] sm:$0xf8] }
  0x98   : > { %v1632_v13 = vor.u32 %v1631_v7, %v1628_v51  ;;  %v1476_v14 = vrot.slane %v1474_v8, 4  ;;  %v1479_v16 = vrot.slane %v1477_v9, 5  ;;  %v1777_v17 = vrot.slane %v1742_v56, 4  ;;  %4013 = vmatprep.subr.bf16.mxu0 %v4751_v62  ;;  %v1576_v55 = vld [vmem:[#allocation2 + $0x68] sm:$0xf] }
  0x99   : > { %2955 = vmatmul.mubr.bf16.gmra.mrb[36].mxu1 %v1616_v52  ;;  %2866 = vmatmul.mubr.bf16.gmra.mrb[40].mxu0 %v1366_v11  ;;  %v1472_v18 = vor.u32 %v1471_v22, %v1468_v58  ;;  %v1367_v19 = vrot.slane %v4746_v61, 4  ;;  %v1635_v26 = vshrl.u32 %v1573_v50, 16  ;;  %v1368_v27 = vrot.slane %v1333_v5, 4  ;;  %v1408_v56 = vld [vmem:[#allocation2 + $0x60] sm:$0xf0] }
  0x9a   : > { %2962 = vmatprep.mubr.bf16.mxu1 %v1775_v41  ;;  %v1633_v0 = vsel %vm552_vm4, %v1624_v20, %v1632_v13  ;;  %v1480_v24 = vor.u32 %v1479_v16, %v1476_v14  ;;  %v1638_v28 = vshll.u32 %v1573_v50, 16  ;;  %4047 = vmatpush3.bf16.msra.mxu1 %v4719_v4  ;;  %v1778_v34 = vsel %vm948_vm7, %v1776_v12, %v1777_v17  ;;  %v1335_v4 = vld [vmem:[#allocation2 + $0x58] sm:$0xf]  ;;  %v1409_v61 = vld [vmem:[#allocation2 + $0x68] sm:$0x1f] }
  0x9b   : > { %v1637_v35 = vrot.slane %v1635_v26, 3  ;;  %v1643_v36 = vshrl.u32 %v1574_v10, 16  ;;  %v1646_v37 = vshll.u32 %v1574_v10, 16  ;;  %4014 = vmatpush3.bf16.msra.mxu0 %v4751_v62  ;;  %4040 = vmatprep.subr.bf16.mxu1 %v4731_v21  ;;  %v1483_v25 = vshrl.u32 %v1406_v23, 16  ;;  %v1745_v5 = vld [vmem:[#allocation2 + $0x70] sm:$0xf0] }
  0x9c   : > { %v1481_v40 = vsel %vm1005_vm8, %v1472_v18, %v1480_v24  ;;  %v1640_v33 = vrot.slane %v1638_v28, 4  ;;  %v1486_v39 = vshll.u32 %v1406_v23, 16  ;;  %4015 = vmatprep.subr.bf16.mxu0 %v4767_v44  ;;  %v1491_v32 = vshrl.u32 %v1407_v29, 16  ;;  %v1746_v9 = vld [vmem:[#allocation2 + $0x78] sm:$0xf] }
  0x9d   : > { %2873 = vmatprep.mubr.bf16.mxu0 %v1481_v40  ;;  %v1645_v45 = vrot.slane %v1643_v36, 3  ;;  %v1648_v46 = vrot.slane %v1646_v37, 4  ;;  %v1494_v47 = vshll.u32 %v1407_v29, 16  ;;  %v1369_v52 = vsel %vm948_vm7, %v1367_v19, %v1368_v27  ;;  %v4805_v12 = vld [vmem:[#allocation2 + $0x60] sm:$0xf0] }
  0x9e   : > { %v1641_v53 = vor.u32 %v1640_v33, %v1637_v35  ;;  %v1485_v41 = vrot.slane %v1483_v25, 4  ;;  %v1488_v54 = vrot.slane %v1486_v39, 5  ;;  %4048 = vmatpush3.bf16.msra.mxu1 %v4731_v21  ;;  %v1493_v57 = vrot.slane %v1491_v32, 4  ;;  %v4800_v21 = vld [vmem:[%s5018_s5 + $0x238] sm:$0xff]   ;;  %v4809_v18 = vld [vmem:[#allocation2 + $0x68] sm:$0xf] }
  0x9f   : > { %v1649_v11 = vor.u32 %v1648_v46, %v1645_v45  ;;  %v1496_v59 = vrot.slane %v1494_v47, 5  ;;  %v1779_v60 = vrot.slane %v4771_v31, 4  ;;  %4016 = vmatpush3.bf16.msra.mxu0 %v4767_v44  ;;  %4041 = vmatprep.subr.bf16.mxu1 %v4751_v62  ;;  %v1370_v1 = vrot.slane %v1334_v30, 4  ;;  %v1577_v24 = vld [vmem:[#allocation2 + $0x70] sm:$0xf8] }
  0xa0   : > { %v1489_v63 = vor.u32 %v1488_v54, %v1485_v41  ;;  %v1371_v2 = vrot.slane %v1335_v4, 4  ;;  %v1652_v3 = vshrl.u32 %v1575_v48, 16  ;;  %4017 = vmatprep.subr.bf16.mxu0 %v4787_v43  ;;  %v1780_v7 = vrot.slane %v4781_v42, 4  ;;  %v1578_v31 = vld [vmem:[#allocation2 + $0x78] sm:$0xf] }
  0xa1   : > { %2963 = vmatmul.mubr.bf16.gmra.mrb[40].mxu1 %v1633_v0  ;;  %2874 = vmatmul.mubr.bf16.gmra.mrb[44].mxu0 %v1369_v52  ;;  %v1650_v50 = vsel %vm552_vm4, %v1641_v53, %v1649_v11  ;;  %v1497_v51 = vor.u32 %v1496_v59, %v1493_v57  ;;  %v1655_v8 = vshll.u32 %v1575_v48, 16  ;;  %v1660_v58 = vshrl.u32 %v1576_v55, 16  ;;  %v1410_v30 = vld [vmem:[#allocation2 + $0x70] sm:$0xf0]  ;;  %v1411_v42 = vld [vmem:[#allocation2 + $0x78] sm:$0x1f] }
  0xa2   : > { %2970 = vmatprep.mubr.bf16.mxu1 %v1778_v34  ;;  %v1372_v10 = vsel %vm948_vm7, %v1370_v1, %v1371_v2  ;;  %v1654_v20 = vrot.slane %v1652_v3, 3  ;;  %v1663_v22 = vshll.u32 %v1576_v55, 16  ;;  %4049 = vmatpush3.bf16.msra.mxu1 %v4751_v62  ;;  %v1500_v16 = vshrl.u32 %v1408_v56, 16  ;;  %v1747_v4 = vld [vmem:[#allocation2 + $0x80] sm:$0xf0] }
  0xa3   : > { %v1498_v13 = vsel %vm1005_vm8, %v1489_v63, %v1497_v51  ;;  %v1657_v14 = vrot.slane %v1655_v8, 4  ;;  %v1503_v17 = vshll.u32 %v1408_v56, 16  ;;  %4018 = vmatpush3.bf16.msra.mxu0 %v4787_v43  ;;  %4042 = vmatprep.subr.bf16.mxu1 %v4767_v44  ;;  %v1662_v19 = vrot.slane %v1660_v58, 3  ;;  %v1748_v47 = vld [vmem:[#allocation2 + $0x88] sm:$0xf] }
  0xa4   : > { %2881 = vmatprep.mubr.bf16.mxu0 %v1498_v13  ;;  %v1665_v26 = vrot.slane %v1663_v22, 4  ;;  %v1508_v23 = vshrl.u32 %v1409_v61, 16  ;;  %v1511_v0 = vshll.u32 %v1409_v61, 16  ;;  %4019 = vmatprep.subr.bf16.mxu0 %v4800_v21  ;;  %v1502_v27 = vrot.slane %v1500_v16, 4  ;;  %v1338_v57 = vld [vmem:[#allocation2 + $0x70] sm:$0xf0] }
  0xa5   : > { %v1658_v62 = vor.u32 %v1657_v14, %v1654_v20  ;;  %v1505_v28 = vrot.slane %v1503_v17, 5  ;;  %v1782_v29 = vrot.slane %v1745_v5, 4  ;;  %v1783_v37 = vrot.slane %v1746_v9, 4  ;;  %v1339_v1 = vld [vmem:[#allocation2 + $0x78] sm:$0xf]  ;;  %v3676_v14 = vld [vmem:[%s483_s18] sm:$0xff]  }
  0xa6   : > { %v1666_v34 = vor.u32 %v1665_v26, %v1662_v19  ;;  %v1510_v35 = vrot.slane %v1508_v23, 4  ;;  %v1513_v36 = vrot.slane %v1511_v0, 5  ;;  %4050 = vmatpush3.bf16.msra.mxu1 %v4767_v44  ;;  %v1781_v40 = vsel %vm948_vm7, %v1779_v60, %v1780_v7  ;;  %v1579_v51 = vld [vmem:[#allocation2 + $0x80] sm:$0xf8]  ;;  %v578_v13 = vld [vmem:[#allocation2 + $0x88] sm:$0x10] }
  0xa7   : > { %v1506_v33 = vor.u32 %v1505_v28, %v1502_v27  ;;  %v1373_v25 = vrot.slane %v4805_v12, 4  ;;  %v1669_v39 = vshrl.u32 %v1577_v24, 16  ;;  %4043 = vmatprep.subr.bf16.mxu1 %v4787_v43  ;;  %4020 = vmatpush3.bf16.msra.mxu0 %v4800_v21  ;;  %v1374_v44 = vrot.slane %v4809_v18, 4  ;;  %v1412_v26 = vld [vmem:[#allocation2 + $0x80] sm:$0xf0] }
  0xa8   : > { %v1667_v45 = vsel %vm552_vm4, %v1658_v62, %v1666_v34  ;;  %v1514_v46 = vor.u32 %v1513_v36, %v1510_v35  ;;  %v1672_v32 = vshll.u32 %v1577_v24, 16  ;;  %v1784_v48 = vsel %vm948_vm7, %v1782_v29, %v1783_v37  ;;  %v1340_v37 = vld [vmem:[#allocation2 + $0x80] sm:$0xf0] }
  0xa9   : > { %2971 = vmatmul.mubr.bf16.gmra.mrb[44].mxu1 %v1650_v50  ;;  %2882 = vmatmul.mubr.bf16.gmra.mrb[48].mxu0 %v1372_v10  ;;  %v1671_v52 = vrot.slane %v1669_v39, 3  ;;  %v1677_v53 = vshrl.u32 %v1578_v31, 16  ;;  %v1680_v41 = vshll.u32 %v1578_v31, 16  ;;  %v1517_v56 = vshrl.u32 %v1410_v30, 16  ;;  %v1580_v10 = vld [vmem:[#allocation2 + $0x88] sm:$0xf] }
  0xaa   : > { %2978 = vmatprep.mubr.bf16.mxu1 %v1781_v40  ;;  %v1515_v54 = vsel %vm1005_vm8, %v1506_v33, %v1514_v46  ;;  %v1674_v55 = vrot.slane %v1672_v32, 4  ;;  %v1520_v11 = vshll.u32 %v1410_v30, 16  ;;  %4051 = vmatpush3.bf16.msra.mxu1 %v4787_v43  ;;  %v1525_v61 = vshrl.u32 %v1411_v42, 16  ;;  %v1341_v39 = vld [vmem:[#allocation2 + $0x88] sm:$0xf] }
  0xab   : > { %2889 = vmatprep.mubr.bf16.mxu0 %v1515_v54  ;;  %v1679_v59 = vrot.slane %v1677_v53, 3  ;;  %v1682_v60 = vrot.slane %v1680_v41, 4  ;;  %v1528_v63 = vshll.u32 %v1411_v42, 16  ;;  %4044 = vmatprep.subr.bf16.mxu1 %v4800_v21  ;;  %v1519_v3 = vrot.slane %v1517_v56, 4  ;;  %v548_v42 = vld [vmem:[#allocation2 + $0x90] sm:$0x8] }
  0xac   : > { %v1675_v2 = vor.u32 %v1674_v55, %v1671_v52  ;;  %v1522_v5 = vrot.slane %v1520_v11, 5  ;;  %v1785_v50 = vrot.slane %v1747_v4, 4  ;;  %v1527_v8 = vrot.slane %v1525_v61, 4  ;;  %v1807_v32 = vld [vmem:[#allocation2 + $0x20] sm:$0xf0] }
  0xad   : > { %v1683_v7 = vor.u32 %v1682_v60, %v1679_v59  ;;  %v1530_v43 = vrot.slane %v1528_v63, 5  ;;  %v1786_v9 = vrot.slane %v1748_v47, 4  ;;  %v1375_v20 = vsel %vm948_vm7, %v1373_v25, %v1374_v44  ;;  %v1808_v47 = vld [vmem:[#allocation2 + $0x28] sm:$0x1f]  ;;  %v1815_v54 = vld [vmem:[#allocation2 + $0x60] sm:$0xf0] }
  0xae   : > { %v1523_v58 = vor.u32 %v1522_v5, %v1519_v3  ;;  %v1376_v22 = vrot.slane %v1338_v57, 4  ;;  %v1686_v12 = vshrl.u32 %v1579_v51, 16  ;;  %4052 = vmatpush3.bf16.msra.mxu1 %v4800_v21  ;;  %v1377_v18 = vrot.slane %v1339_v1, 4  ;;  %v1816_v59 = vld [vmem:[#allocation2 + $0x68] sm:$0x1f] }
  0xaf   : > { %v1684_v16 = vsel %vm552_vm4, %v1675_v2, %v1683_v7  ;;  %v1531_v17 = vor.u32 %v1530_v43, %v1527_v8  ;;  %v1689_v19 = vshll.u32 %v1579_v51, 16  ;;  %v1787_v23 = vsel %vm948_vm7, %v1785_v50, %v1786_v9 }
  0xb0   : > { %v1688_v0 = vrot.slane %v1686_v12, 3  ;;  %v1694_v24 = vshrl.u32 %v1580_v10, 16  ;;  %v1697_v62 = vshll.u32 %v1580_v10, 16  ;;  %v579_v28 = vsel %vm4442_vm5, 0, %v578_v13 }
  0xb1   : > { %2979 = vmatmul.mubr.bf16.gmra.mrb[48].mxu1 %v1667_v45  ;;  %2890 = vmatmul.mubr.bf16.gmra.mrb[52].mxu0 %v1375_v20  ;;  %v1532_v27 = vsel %vm1005_vm8, %v1523_v58, %v1531_v17  ;;  %v1691_v21 = vrot.slane %v1689_v19, 4  ;;  %v1534_v29 = vshrl.u32 %v1412_v26, 16  ;;  %580 = vst [vmem:[#allocation2 + $0x88] sm:$0x10] %v579_v28  ;;  %v1537_v35 = vshll.u32 %v1412_v26, 16 }
  0xb2   : > { %2986 = vmatprep.mubr.bf16.mxu1 %v1784_v48  ;;  %2897 = vmatprep.mubr.bf16.mxu0 %v1532_v27  ;;  %v1696_v31 = vrot.slane %v1694_v24, 3  ;;  %v1699_v34 = vrot.slane %v1697_v62, 4  ;;  %v3677_v36 = vunpack.c.l.bf16 %v3676_v14  ;;  %v3678_v33 = vunpack.c.h.bf16 %v3676_v14  ;;  %v1810_v14 = vld [vmem:[#allocation2 + $0x38] sm:$0x1f]  ;;  %v1817_v26 = vld [vmem:[#allocation2 + $0x70] sm:$0xf0] }
  0xb3   : > { %v1692_v30 = vor.u32 %v1691_v21, %v1688_v0  ;;  %v4845_v40 = vrot.slane %v1534_v29, 4  ;;  %v739_v25 = vstv %s4839_s19  ;;  %v1378_v4 = vsel %vm948_vm7, %v1376_v22, %v1377_v18 }
  0xb4   : > { %v1700_v45 = vor.u32 %v1699_v34, %v1696_v31  ;;  %v4849_v46 = vrot.slane %v1537_v35, 5  ;;  %v733_v44 = vmul.f32 %v4666_v6, %v3677_v36  ;;  %v734_v48 = vmul.f32 %v4666_v6, %v3678_v33  ;;  %v1818_v31 = vld [vmem:[#allocation2 + $0x78] sm:$0x1f] }
  0xb5   : > { %vm4853_vm9 = vcmp.eq.s32.totalorder %v739_v25, 1  ;;  %v1379_v53 = vrot.slane %v1340_v37, 4  ;;  %v549_v41 = vsel %vm4426_vm3, 0, %v548_v42  ;;  %v1380_v11 = vrot.slane %v1341_v39, 4 }
  0xb6   : > { %v1701_v55 = vsel %vm552_vm4, %v1692_v30, %v1700_v45  ;;  %v735_v56 = vadd.f32 %v4684_v15, %v733_v44  ;;  %550 = vst [vmem:[#allocation2 + $0x90] sm:$0x8] %v549_v41  ;;  %v1824_v57 = vshrl.u32 %v1807_v32, 16  ;;  %v1540_v6 = vor.u32 %v4849_v46, %v4845_v40  ;;  %v1811_v30 = vld [vmem:[#allocation2 + $0x40] sm:$0xf0] }
  0xb7   : > { %v736_v60 = vadd.f32 %v4684_v15, %v734_v48  ;;  %v1827_v61 = vshll.u32 %v1807_v32, 16  ;;  %v1832_v63 = vshrl.u32 %v1808_v47, 16  ;;  %v1835_v2 = vshll.u32 %v1808_v47, 16  ;;  %v1809_v15 = vld [vmem:[#allocation2 + $0x30] sm:$0xf0] }
  0xb8   : > { %v1826_v1 = vrot.slane %v1824_v57, 4  ;;  %v1892_v38 = vshrl.u32 %v1815_v54, 16  ;;  %v1895_v3 = vshll.u32 %v1815_v54, 16  ;;  %v1413_v5 = vld [vmem:[#allocation2 + $0x88] sm:$0x1f]  ;;  %v1900_v8 = vshrl.u32 %v1816_v59, 16 }
  0xb9   : > { %2987 = vmatmul.mubr.bf16.gmra.mrb[52].mxu1 %v1684_v16  ;;  %2898 = vmatmul.mubr.bf16.gmra.mrb[56].mxu0 %v1378_v4  ;;  %v737_v50 = vpack.c.bf16 %v736_v60, %v735_v56  ;;  %v1829_v51 = vrot.slane %v1827_v61, 5  ;;  %v1834_v7 = vrot.slane %v1832_v63, 4  ;;  %v1542_v43 = vshrl.u32 %v1413_v5, 16  ;;  %v1812_v46 = vld [vmem:[#allocation2 + $0x48] sm:$0x1f] }
  0xba   : > { %2994 = vmatprep.mubr.bf16.mxu1 %v1787_v23  ;;  %v1545_v9 = vshll.u32 %v1413_v5, 16  ;;  %v1381_v10 = vsel %vm948_vm7, %v1379_v53, %v1380_v11  ;;  %v1837_v20 = vrot.slane %v1835_v2, 5  ;;  %v1894_v12 = vrot.slane %v1892_v38, 4  ;;  %v1819_v60 = vld [vmem:[#allocation2 + $0x80] sm:$0xf0] }
  0xbb   : > { %v741_v58 = vsel %vm4853_vm9, %v737_v50, 0  ;;  %v1830_v22 = vor.u32 %v1829_v51, %v1826_v1  ;;  %v1897_v13 = vrot.slane %v1895_v3, 5  ;;  %v1544_v16 = vrot.slane %v1542_v43, 4 }
  0xbc   : > { %v1547_v17 = vrot.slane %v1545_v9, 5  ;;  %v743_v18 = vrot.slane %v741_v58, 4  ;;  %v1838_v19 = vor.u32 %v1837_v20, %v1834_v7  ;;  %v1902_v0 = vrot.slane %v1900_v8, 4  ;;  %v1820_v7 = vld [vmem:[#allocation2 + $0x88] sm:$0x1f] }
  0xbd   : > { %v1903_v23 = vshll.u32 %v1816_v59, 16  ;;  %v1841_v24 = vshrl.u32 %v1809_v15, 16  ;;  %v1844_v62 = vshll.u32 %v1809_v15, 16  ;;  %v1849_v28 = vshrl.u32 %v1810_v14, 16  ;;  %v1813_v20 = vld [vmem:[#allocation2 + $0x50] sm:$0xf0] }
  0xbe   : > { %v1548_v27 = vor.u32 %v1547_v17, %v1544_v16  ;;  %746 = vst [vmem:[#allocation2 + $0x98] ss:$-4 sps:$4 sm:$0xff] %v743_v18   ;;  %v1839_v21 = vsel %vm1005_vm8, %v1830_v22, %v1838_v19  ;;  %v1852_v29 = vshll.u32 %v1810_v14, 16  ;;  %v1909_v37 = vshrl.u32 %v1817_v26, 16 }
  0xbf   : > { %v1905_v34 = vrot.slane %v1903_v23, 5  ;;  %v1843_v35 = vrot.slane %v1841_v24, 4  ;;  %v1846_v36 = vrot.slane %v1844_v62, 5  ;;  %v1851_v33 = vrot.slane %v1849_v28, 4  ;;  %v581_v28 = vld [vmem:[#allocation2 + $0x98] sm:$0x10] }
  0xc0   : > { %v1549_v40 = vsel %vm1005_vm8, %v1540_v6, %v1548_v27  ;;  %v1854_v25 = vrot.slane %v1852_v29, 5  ;;  %v1912_v39 = vshll.u32 %v1817_v26, 16  ;;  %v1898_v42 = vor.u32 %v1897_v13, %v1894_v12 }
  0xc1   : > { %2995 = vmatmul.mubr.bf16.gmra.mrb[56].mxu1 %v1701_v55  ;;  %2905 = vmatprep.mubr.bf16.mxu0 %v1549_v40  ;;  %v1906_v4 = vor.u32 %v1905_v34, %v1902_v0  ;;  %v1917_v45 = vshrl.u32 %v1818_v31, 16  ;;  %v1847_v44 = vor.u32 %v1846_v36, %v1843_v35  ;;  %v1858_v32 = vshrl.u32 %v1811_v30, 16  ;;  %v1814_v0 = vld [vmem:[#allocation2 + $0x58] sm:$0x1f] }
  0xc2   : > { %2906 = vmatmul.mubr.bf16.gmra.mrb[60].mxu0 %v1381_v10  ;;  %v1855_v47 = vor.u32 %v1854_v25, %v1851_v33  ;;  %v4869_v48 = vrot.slane %v1909_v37, 4  ;;  %v4871_v52 = vrot.slane %v1912_v39, 5  ;;  %v1861_v53 = vshll.u32 %v1811_v30, 16 }
  0xc3   : > { %4021 = vmatprep.mubr.bf16.mxu0 %v1839_v21  ;;  %v4873_v41 = vrot.slane %v1917_v45, 4  ;;  %v1920_v54 = vshll.u32 %v1818_v31, 16  ;;  %v1860_v56 = vrot.slane %v1858_v32, 4  ;;  %v1866_v55 = vshrl.u32 %v1812_v46, 16 }
  0xc4   : > { %v1907_v6 = vsel %vm1005_vm8, %v1898_v42, %v1906_v4  ;;  %v1856_v50 = vsel %vm1005_vm8, %v1847_v44, %v1855_v47  ;;  %v1863_v51 = vrot.slane %v1861_v53, 5  ;;  %v1869_v14 = vshll.u32 %v1812_v46, 16 }
  0xc5   : > { %v1749_v11 = vld [vmem:[#allocation2 + $0x90] sm:$0xf0]  ;;  %v1750_v57 = vld [vmem:[#allocation2 + $0x98] sm:$0xf]  ;;  %v1922_v10 = vrot.slane %v1920_v54, 5  ;;  %v1868_v12 = vrot.slane %v1866_v55, 4  ;;  %v1915_v40 = vor.u32 %v4871_v52, %v4869_v48 }
  0xc6   : > { %v1581_v59 = vld [vmem:[#allocation2 + $0x90] sm:$0xf8]  ;;  %v1788_v61 = vrot.slane %v1749_v11, 4  ;;  %v1789_v63 = vrot.slane %v1750_v57, 4  ;;  %v1582_v1 = vld [vmem:[#allocation2 + $0x98] sm:$0xf]  ;;  %v1864_v22 = vor.u32 %v1863_v51, %v1860_v56 }
  0xc7   : > { %v1703_v2 = vshrl.u32 %v1581_v59, 16  ;;  %v1706_v38 = vshll.u32 %v1581_v59, 16  ;;  %v1711_v3 = vshrl.u32 %v1582_v1, 16  ;;  %v1714_v5 = vshll.u32 %v1582_v1, 16  ;;  %v1821_v42 = vld [vmem:[#allocation2 + $0x90] sm:$0xf0] }
  0xc8   : > { %v1790_v8 = vsel %vm948_vm7, %v1788_v61, %v1789_v63  ;;  %v1926_v16 = vshrl.u32 %v1819_v60, 16  ;;  %v1929_v17 = vshll.u32 %v1819_v60, 16  ;;  %v1934_v19 = vshrl.u32 %v1820_v7, 16 }
  0xc9   : > { %v1705_v43 = vrot.slane %v1703_v2, 3  ;;  %v1708_v9 = vrot.slane %v1706_v38, 4  ;;  %3002 = vmatprep.mubr.bf16.mxu1 %v1790_v8  ;;  %v1713_v15 = vrot.slane %v1711_v3, 3  ;;  %v1716_v58 = vrot.slane %v1714_v5, 4 }
  0xca   : > { %4022 = vmatmul.mubr.bf16.vlgmr.msra.gmra.mrb[64].mxu0 %v1856_v50  ;;  %v1937_v26 = vshll.u32 %v1820_v7, 16  ;;  %v1875_v23 = vshrl.u32 %v1813_v20, 16  ;;  %v1871_v24 = vrot.slane %v1869_v14, 5  ;;  %v1928_v62 = vrot.slane %v1926_v16, 4 }
  0xcb   : > { %v1709_v13 = vor.u32 %v1708_v9, %v1705_v43  ;;  %v1717_v18 = vor.u32 %v1716_v58, %v1713_v15  ;;  %v1931_v27 = vrot.slane %v1929_v17, 5  ;;  %v1878_v21 = vshll.u32 %v1813_v20, 16 }
  0xcc   : > { %v1936_v31 = vrot.slane %v1934_v19, 4  ;;  %v1939_v34 = vrot.slane %v1937_v26, 5  ;;  %v1877_v35 = vrot.slane %v1875_v23, 4  ;;  %v1872_v36 = vor.u32 %v1871_v24, %v1868_v12 }
  0xcd   : > { %v1718_v29 = vsel %vm552_vm4, %v1709_v13, %v1717_v18  ;;  %v1880_v37 = vrot.slane %v1878_v21, 5  ;;  %v1883_v30 = vshrl.u32 %v1814_v0, 16  ;;  %v1923_v33 = vor.u32 %v1922_v10, %v4873_v41 }
  0xce   : > { %3003 = vmatmul.mubr.bf16.gmra.mrb[60].mxu1 %v1718_v29  ;;  %v1886_v25 = vshll.u32 %v1814_v0, 16  ;;  %v582_v39 = vsel %vm4442_vm5, 0, %v581_v28  ;;  %v1873_v4 = vsel %vm1005_vm8, %v1864_v22, %v1872_v36  ;;  %v1932_v45 = vor.u32 %v1931_v27, %v1928_v62 }
  0xcf   : > { %4029 = vmatprep.mubr.bf16.mxu1 %v1907_v6  ;;  %v1940_v46 = vor.u32 %v1939_v34, %v1936_v31  ;;  %v1885_v44 = vrot.slane %v1883_v30, 4  ;;  %583 = vst [vmem:[#allocation2 + $0x98] sm:$0x10] %v582_v39  ;;  %4025 = vmatprep.mubr.bf16.mxu0 %v1873_v4  ;;  %v1881_v32 = vor.u32 %v1880_v37, %v1877_v35  ;;  %v1943_v53 = vshrl.u32 %v1821_v42, 16 }
  0xd0   : > { %v1888_v47 = vrot.slane %v1886_v25, 5  ;;  %v1946_v54 = vshll.u32 %v1821_v42, 16  ;;  %v1924_v48 = vsel %vm1005_vm8, %v1915_v40, %v1923_v33 }
  0xd1   : > { %v1941_v41 = vsel %vm1005_vm8, %v1932_v45, %v1940_v46  ;;  %v1945_v56 = vrot.slane %v1943_v53, 4 }
  0xd2   : > { %v1889_v52 = vor.u32 %v1888_v47, %v1885_v44  ;;  %v1948_v55 = vrot.slane %v1946_v54, 5 }
  0xd4   : > { %v1890_v49 = vsel %vm1005_vm8, %v1881_v32, %v1889_v52  ;;  %v1949_v6 = vor.u32 %v1948_v55, %v1945_v56 }
  0xd5   : > { %4026 = vmatmul.mubr.bf16.gmra.mrb[68].mxu0 %v1890_v49 }
  0xd6   : > { %4030 = vmatmul.mubr.bf16.vlgmr.msra.gmra.mrb[64].mxu1 %v1924_v48  ;;  %v1822_v11 = vld [vmem:[#allocation2 + $0x98] sm:$0x1f] }
  0xd7   : > { %4033 = vmatprep.mubr.bf16.mxu1 %v1941_v41  ;;  %v1951_v57 = vshrl.u32 %v1822_v11, 16  ;;  %v1954_v59 = vshll.u32 %v1822_v11, 16 }
  0xd9   : > { %v1953_v60 = vrot.slane %v1951_v57, 4  ;;  %v1956_v61 = vrot.slane %v1954_v59, 5 }
  0xdb   : > { %v1957_v63 = vor.u32 %v1956_v61, %v1953_v60 }
  0xdd   : > { %v1958_v1 = vsel %vm1005_vm8, %v1949_v6, %v1957_v63 }
  0xde   : > { %4034 = vmatmul.mubr.bf16.gmra.mrb[68].mxu1 %v1958_v1 }
 0x108   : > { %v3749_v2 = vpop.f32.mrb[0].mxu0 }
 0x109   : > { %v3750_v38 = vpop.f32.mrb[1].mxu0 }
 0x10a   : > { %v3751_v3 = vadd.f32 %v3750_v38, %v3749_v2  ;;  %v3752_v5 = vpop.f32.mrb[2].mxu0 }
 0x10b   : > { %v3753_v50 = vpop.f32.mrb[3].mxu0 }
 0x10c   : > { %v3813_v51 = vpop.f32.mrb[0].mxu1  ;;  %v3754_v7 = vadd.f32 %v3753_v50, %v3752_v5 }
 0x10d   : > { %v3814_v8 = vpop.f32.mrb[1].mxu1 }
 0x10e   : > { %v3815_v43 = vadd.f32 %v3814_v8, %v3813_v51  ;;  %v3816_v9 = vpop.f32.mrb[2].mxu1 }
 0x10f   : > { %v3817_v10 = vpop.f32.mrb[3].mxu1 }
 0x110   : > { %v4889_v20 = vadd.f32 %v3815_v43, %v3751_v3  ;;  %v3818_v15 = vadd.f32 %v3817_v10, %v3816_v9 }
 0x112   : > { %v4891_v58 = vadd.f32 %v3818_v15, %v3754_v7 }
 0x113   : > { %v3755_v22 = vpop.f32.mrb[4].mxu0 }
 0x114   : > { %v3756_v12 = vpop.f32.mrb[5].mxu0 }
 0x115   : > { %v3819_v13 = vpop.f32.mrb[4].mxu1  ;;  %v3757_v14 = vadd.f32 %v3756_v12, %v3755_v22  ;;  %v3758_v16 = vpop.f32.mrb[6].mxu0 }
 0x116   : > { %v3820_v17 = vpop.f32.mrb[5].mxu1  ;;  %v3759_v18 = vpop.f32.mrb[7].mxu0 }
 0x117   : > { %v3821_v19 = vadd.f32 %v3820_v17, %v3819_v13  ;;  %v3822_v26 = vpop.f32.mrb[6].mxu1  ;;  %v3760_v0 = vadd.f32 %v3759_v18, %v3758_v16 }
 0x118   : > { %v3823_v23 = vpop.f32.mrb[7].mxu1 }
 0x119   : > { %v4893_v24 = vadd.f32 %v3821_v19, %v3757_v14  ;;  %v3824_v62 = vadd.f32 %v3823_v23, %v3822_v26 }
 0x11b   : > { %v4895_v27 = vadd.f32 %v3824_v62, %v3760_v0  ;;  %v3761_v21 = vpop.f32.mrb[8].mxu0 }
 0x11c   : > { %v3762_v28 = vpop.f32.mrb[9].mxu0 }
 0x11d   : > { %v3763_v29 = vadd.f32 %v3762_v28, %v3761_v21  ;;  %v3764_v31 = vpop.f32.mrb[10].mxu0 }
 0x11e   : > { %v3765_v34 = vpop.f32.mrb[11].mxu0 }
 0x11f   : > { %v3766_v35 = vadd.f32 %v3765_v34, %v3764_v31 }
 0x124   : > { %v3825_v36 = vpop.f32.mrb[8].mxu1 }
 0x125   : > { %v3826_v37 = vpop.f32.mrb[9].mxu1 }
 0x126   : > { %v3827_v30 = vadd.f32 %v3826_v37, %v3825_v36  ;;  %v3828_v40 = vpop.f32.mrb[10].mxu1 }
 0x127   : > { %v3829_v33 = vpop.f32.mrb[11].mxu1  ;;  %v3767_v25 = vpop.f32.mrb[12].mxu0 }
 0x128   : > { %v4897_v39 = vadd.f32 %v3827_v30, %v3763_v29  ;;  %v3830_v42 = vadd.f32 %v3829_v33, %v3828_v40  ;;  %v3768_v4 = vpop.f32.mrb[13].mxu0 }
 0x129   : > { %v3769_v45 = vadd.f32 %v3768_v4, %v3767_v25  ;;  %v3770_v46 = vpop.f32.mrb[14].mxu0 }
 0x12a   : > { %v4899_v44 = vadd.f32 %v3830_v42, %v3766_v35  ;;  %v3771_v32 = vpop.f32.mrb[15].mxu0 }
 0x12b   : > { %v3772_v47 = vadd.f32 %v3771_v32, %v3770_v46 }
 0x12d   : > { %v3831_v53 = vpop.f32.mrb[12].mxu1 }
 0x12e   : > { %v3832_v54 = vpop.f32.mrb[13].mxu1 }
 0x12f   : > { %v3833_v48 = vadd.f32 %v3832_v54, %v3831_v53  ;;  %v3834_v52 = vpop.f32.mrb[14].mxu1  ;;  %v3773_v49 = vpop.f32.mrb[16].mxu0 }
 0x130   : > { %v3835_v41 = vpop.f32.mrb[15].mxu1  ;;  %v3774_v11 = vpop.f32.mrb[17].mxu0 }
 0x131   : > { %v4901_v56 = vadd.f32 %v3833_v48, %v3769_v45  ;;  %v3836_v55 = vadd.f32 %v3835_v41, %v3834_v52  ;;  %v3775_v57 = vadd.f32 %v3774_v11, %v3773_v49  ;;  %v3776_v59 = vpop.f32.mrb[18].mxu0 }
 0x132   : > { %v3777_v60 = vpop.f32.mrb[19].mxu0 }
 0x133   : > { %v4903_v6 = vadd.f32 %v3836_v55, %v3772_v47  ;;  %v3778_v61 = vadd.f32 %v3777_v60, %v3776_v59 }
 0x13c   : > { %v3837_v63 = vpop.f32.mrb[16].mxu1 }
 0x13d   : > { %v3838_v1 = vpop.f32.mrb[17].mxu1 }
 0x13e   : > { %v3839_v2 = vadd.f32 %v3838_v1, %v3837_v63  ;;  %v3840_v38 = vpop.f32.mrb[18].mxu1 }
 0x13f   : > { %v3841_v3 = vpop.f32.mrb[19].mxu1  ;;  %v3779_v5 = vpop.f32.mrb[20].mxu0 }
 0x140   : > { %v4905_v50 = vadd.f32 %v3839_v2, %v3775_v57  ;;  %v3842_v51 = vadd.f32 %v3841_v3, %v3840_v38  ;;  %v3780_v7 = vpop.f32.mrb[21].mxu0 }
 0x141   : > { %v3781_v8 = vadd.f32 %v3780_v7, %v3779_v5  ;;  %v3782_v43 = vpop.f32.mrb[22].mxu0 }
 0x142   : > { %v4907_v9 = vadd.f32 %v3842_v51, %v3778_v61  ;;  %v3783_v10 = vpop.f32.mrb[23].mxu0 }
 0x143   : > { %v3784_v15 = vadd.f32 %v3783_v10, %v3782_v43 }
 0x147   : > { %v3843_v22 = vpop.f32.mrb[20].mxu1 }
 0x148   : > { %v3844_v12 = vpop.f32.mrb[21].mxu1 }
 0x149   : > { %v3845_v13 = vadd.f32 %v3844_v12, %v3843_v22  ;;  %v3846_v14 = vpop.f32.mrb[22].mxu1 }
 0x14a   : > { %v3847_v16 = vpop.f32.mrb[23].mxu1  ;;  %v3785_v19 = vpop.f32.mrb[24].mxu0 }
 0x14b   : > { %v4909_v17 = vadd.f32 %v3845_v13, %v3781_v8  ;;  %v3848_v18 = vadd.f32 %v3847_v16, %v3846_v14  ;;  %v3786_v26 = vpop.f32.mrb[25].mxu0 }
 0x14c   : > { %v3787_v23 = vadd.f32 %v3786_v26, %v3785_v19  ;;  %v3788_v62 = vpop.f32.mrb[26].mxu0 }
 0x14d   : > { %v4911_v0 = vadd.f32 %v3848_v18, %v3784_v15  ;;  %v3789_v21 = vpop.f32.mrb[27].mxu0 }
 0x14e   : > { %v3790_v28 = vadd.f32 %v3789_v21, %v3788_v62 }
 0x14f   : > { %v3849_v29 = vpop.f32.mrb[24].mxu1 }
 0x150   : > { %v3850_v31 = vpop.f32.mrb[25].mxu1 }
 0x151   : > { %v3851_v34 = vadd.f32 %v3850_v31, %v3849_v29  ;;  %v3852_v35 = vpop.f32.mrb[26].mxu1 }
 0x152   : > { %v3853_v36 = vpop.f32.mrb[27].mxu1 }
 0x153   : > { %v4913_v37 = vadd.f32 %v3851_v34, %v3787_v23  ;;  %v3854_v30 = vadd.f32 %v3853_v36, %v3852_v35  ;;  %v3791_v40 = vpop.f32.mrb[28].mxu0 }
 0x154   : > { %v3792_v33 = vpop.f32.mrb[29].mxu0 }
 0x155   : > { %v4915_v25 = vadd.f32 %v3854_v30, %v3790_v28  ;;  %v3793_v42 = vadd.f32 %v3792_v33, %v3791_v40  ;;  %v3794_v4 = vpop.f32.mrb[30].mxu0 }
 0x156   : > { %v3795_v45 = vpop.f32.mrb[31].mxu0 }
 0x157   : > { %v3796_v46 = vadd.f32 %v3795_v45, %v3794_v4 }
 0x15b   : > { %v3877_v32 = vpop.f32.mrb[32].mxu0 }
 0x15c   : > { %v3855_v47 = vpop.f32.mrb[28].mxu1  ;;  %v3878_v53 = vpop.f32.mrb[33].mxu0 }
 0x15d   : > { %v3856_v54 = vpop.f32.mrb[29].mxu1  ;;  %v3879_v48 = vadd.f32 %v3878_v53, %v3877_v32  ;;  %v3880_v52 = vpop.f32.mrb[34].mxu0 }
 0x15e   : > { %v3857_v41 = vadd.f32 %v3856_v54, %v3855_v47  ;;  %v3858_v49 = vpop.f32.mrb[30].mxu1  ;;  %v3881_v55 = vpop.f32.mrb[35].mxu0 }
 0x15f   : > { %v3859_v11 = vpop.f32.mrb[31].mxu1  ;;  %v2852_v57 = vadd.f32 %v3879_v48, %v4889_v20  ;;  %v3882_v59 = vadd.f32 %v3881_v55, %v3880_v52 }
 0x160   : > { %v4918_v60 = vadd.f32 %v3857_v41, %v3793_v42  ;;  %v3860_v61 = vadd.f32 %v3859_v11, %v3858_v49 }
 0x161   : > { %v2855_v63 = vadd.f32 %v3882_v59, %v4891_v58 }
 0x162   : > { %v4921_v1 = vadd.f32 %v3860_v61, %v3796_v46 }
 0x164   : > { %v3941_v2 = vpop.f32.mrb[32].mxu1  ;;  %v3883_v38 = vpop.f32.mrb[36].mxu0 }
 0x165   : > { %v3942_v3 = vpop.f32.mrb[33].mxu1  ;;  %v3884_v5 = vpop.f32.mrb[37].mxu0 }
 0x166   : > { %v3943_v51 = vadd.f32 %v3942_v3, %v3941_v2  ;;  %v3944_v7 = vpop.f32.mrb[34].mxu1  ;;  %v3885_v8 = vadd.f32 %v3884_v5, %v3883_v38  ;;  %v3886_v43 = vpop.f32.mrb[38].mxu0 }
 0x167   : > { %v3945_v10 = vpop.f32.mrb[35].mxu1  ;;  %v3887_v15 = vpop.f32.mrb[39].mxu0 }
 0x168   : > { %v3946_v22 = vadd.f32 %v3945_v10, %v3944_v7  ;;  %v2860_v20 = vadd.f32 %v3885_v8, %v4893_v24  ;;  %v3888_v12 = vadd.f32 %v3887_v15, %v3886_v43  ;;  %v4924_v13 = vadd.f32 %v3943_v51, %v2852_v57 }
 0x16a   : > { %v2863_v58 = vadd.f32 %v3888_v12, %v4895_v27  ;;  %v4927_v14 = vadd.f32 %v3946_v22, %v2855_v63 }
 0x16c   : > { %v3947_v16 = vpop.f32.mrb[36].mxu1  ;;  %v3889_v18 = vpop.f32.mrb[40].mxu0 }
 0x16d   : > { %v3948_v19 = vpop.f32.mrb[37].mxu1  ;;  %v3890_v26 = vpop.f32.mrb[41].mxu0 }
 0x16e   : > { %v3949_v23 = vadd.f32 %v3948_v19, %v3947_v16  ;;  %v3950_v62 = vpop.f32.mrb[38].mxu1  ;;  %v3891_v21 = vadd.f32 %v3890_v26, %v3889_v18  ;;  %v3892_v28 = vpop.f32.mrb[42].mxu0 }
 0x16f   : > { %v3951_v29 = vpop.f32.mrb[39].mxu1  ;;  %v3893_v31 = vpop.f32.mrb[43].mxu0 }
 0x170   : > { %v3952_v34 = vadd.f32 %v3951_v29, %v3950_v62  ;;  %v2868_v24 = vadd.f32 %v3891_v21, %v4897_v39  ;;  %v3894_v35 = vadd.f32 %v3893_v31, %v3892_v28  ;;  %v4930_v36 = vadd.f32 %v3949_v23, %v2860_v20 }
 0x172   : > { %v2871_v27 = vadd.f32 %v3894_v35, %v4899_v44  ;;  %v4933_v30 = vadd.f32 %v3952_v34, %v2863_v58 }
 0x174   : > { %v3953_v40 = vpop.f32.mrb[40].mxu1  ;;  %v3895_v33 = vpop.f32.mrb[44].mxu0 }
 0x175   : > { %v3954_v42 = vpop.f32.mrb[41].mxu1  ;;  %v3896_v4 = vpop.f32.mrb[45].mxu0 }
 0x176   : > { %v3955_v45 = vadd.f32 %v3954_v42, %v3953_v40  ;;  %v3956_v46 = vpop.f32.mrb[42].mxu1  ;;  %v3897_v32 = vadd.f32 %v3896_v4, %v3895_v33  ;;  %v3898_v47 = vpop.f32.mrb[46].mxu0 }
 0x177   : > { %v3957_v53 = vpop.f32.mrb[43].mxu1  ;;  %v3899_v54 = vpop.f32.mrb[47].mxu0 }
 0x178   : > { %v3958_v48 = vadd.f32 %v3957_v53, %v3956_v46  ;;  %v2876_v39 = vadd.f32 %v3897_v32, %v4901_v56  ;;  %v3900_v52 = vadd.f32 %v3899_v54, %v3898_v47  ;;  %v4936_v41 = vadd.f32 %v3955_v45, %v2868_v24 }
 0x17a   : > { %v2879_v44 = vadd.f32 %v3900_v52, %v4903_v6  ;;  %v4939_v49 = vadd.f32 %v3958_v48, %v2871_v27 }
 0x17c   : > { %v3959_v55 = vpop.f32.mrb[44].mxu1  ;;  %v3901_v11 = vpop.f32.mrb[48].mxu0 }
 0x17d   : > { %v3960_v57 = vpop.f32.mrb[45].mxu1  ;;  %v3902_v59 = vpop.f32.mrb[49].mxu0 }
 0x17e   : > { %v3961_v61 = vadd.f32 %v3960_v57, %v3959_v55  ;;  %v3962_v63 = vpop.f32.mrb[46].mxu1  ;;  %v3903_v2 = vadd.f32 %v3902_v59, %v3901_v11  ;;  %v3904_v38 = vpop.f32.mrb[50].mxu0 }
 0x17f   : > { %v3963_v3 = vpop.f32.mrb[47].mxu1  ;;  %v3905_v5 = vpop.f32.mrb[51].mxu0 }
 0x180   : > { %v3964_v51 = vadd.f32 %v3963_v3, %v3962_v63  ;;  %v2884_v56 = vadd.f32 %v3903_v2, %v4905_v50  ;;  %v3906_v7 = vadd.f32 %v3905_v5, %v3904_v38  ;;  %v4942_v8 = vadd.f32 %v3961_v61, %v2876_v39 }
 0x182   : > { %v2887_v6 = vadd.f32 %v3906_v7, %v4907_v9  ;;  %v4945_v43 = vadd.f32 %v3964_v51, %v2879_v44 }
 0x184   : > { %v3965_v10 = vpop.f32.mrb[48].mxu1  ;;  %v3907_v15 = vpop.f32.mrb[52].mxu0 }
 0x185   : > { %v3966_v22 = vpop.f32.mrb[49].mxu1  ;;  %v3908_v20 = vpop.f32.mrb[53].mxu0 }
 0x186   : > { %v3967_v12 = vadd.f32 %v3966_v22, %v3965_v10  ;;  %v3968_v58 = vpop.f32.mrb[50].mxu1  ;;  %v3909_v16 = vadd.f32 %v3908_v20, %v3907_v15  ;;  %v3910_v18 = vpop.f32.mrb[54].mxu0 }
 0x187   : > { %v3969_v19 = vpop.f32.mrb[51].mxu1  ;;  %v3911_v26 = vpop.f32.mrb[55].mxu0 }
 0x188   : > { %v3970_v23 = vadd.f32 %v3969_v19, %v3968_v58  ;;  %v2892_v50 = vadd.f32 %v3909_v16, %v4909_v17  ;;  %v3912_v62 = vadd.f32 %v3911_v26, %v3910_v18  ;;  %v4948_v21 = vadd.f32 %v3967_v12, %v2884_v56 }
 0x18a   : > { %v2895_v9 = vadd.f32 %v3912_v62, %v4911_v0  ;;  %v4951_v28 = vadd.f32 %v3970_v23, %v2887_v6 }
 0x18c   : > { %v3971_v29 = vpop.f32.mrb[52].mxu1  ;;  %v3913_v31 = vpop.f32.mrb[56].mxu0 }
 0x18d   : > { %v3972_v34 = vpop.f32.mrb[53].mxu1  ;;  %v3914_v24 = vpop.f32.mrb[57].mxu0 }
 0x18e   : > { %v3973_v35 = vadd.f32 %v3972_v34, %v3971_v29  ;;  %v3974_v27 = vpop.f32.mrb[54].mxu1  ;;  %v3915_v40 = vadd.f32 %v3914_v24, %v3913_v31  ;;  %v3916_v33 = vpop.f32.mrb[58].mxu0 }
 0x18f   : > { %v3975_v42 = vpop.f32.mrb[55].mxu1  ;;  %v3917_v4 = vpop.f32.mrb[59].mxu0 }
 0x190   : > { %v3976_v45 = vadd.f32 %v3975_v42, %v3974_v27  ;;  %v2900_v17 = vadd.f32 %v3915_v40, %v4913_v37  ;;  %v3918_v46 = vadd.f32 %v3917_v4, %v3916_v33  ;;  %v2989_v32 = vadd.f32 %v3973_v35, %v2892_v50 }
 0x192   : > { %v2903_v47 = vadd.f32 %v3918_v46, %v4915_v25  ;;  %v2992_v0 = vadd.f32 %v3976_v45, %v2895_v9 }
 0x194   : > { %v3977_v53 = vpop.f32.mrb[56].mxu1 }
 0x195   : > { %v3978_v54 = vpop.f32.mrb[57].mxu1  ;;  %v3919_v48 = vpop.f32.mrb[60].mxu0 }
 0x196   : > { %v3979_v39 = vadd.f32 %v3978_v54, %v3977_v53  ;;  %v3980_v52 = vpop.f32.mrb[58].mxu1  ;;  %v3920_v44 = vpop.f32.mrb[61].mxu0 }
 0x197   : > { %v3981_v55 = vpop.f32.mrb[59].mxu1  ;;  %v3921_v11 = vadd.f32 %v3920_v44, %v3919_v48  ;;  %v3922_v57 = vpop.f32.mrb[62].mxu0 }
 0x198   : > { %v3982_v59 = vadd.f32 %v3981_v55, %v3980_v52  ;;  %v3923_v61 = vpop.f32.mrb[63].mxu0  ;;  %v4955_v63 = vadd.f32 %v3979_v39, %v2900_v17 }
 0x199   : > { %v2908_v37 = vadd.f32 %v3921_v11, %v4918_v60  ;;  %v3924_v2 = vadd.f32 %v3923_v61, %v3922_v57 }
 0x19a   : > { %v4958_v38 = vadd.f32 %v3982_v59, %v2903_v47 }
 0x19b   : > { %v2911_v25 = vadd.f32 %v3924_v2, %v4921_v1 }
 0x19d   : > { %v4023_v3 = vpop.f32.mrb[64].mxu0 }
 0x19e   : > { %v3054_v5 = vadd.f32 %v4023_v3, %v4930_v36  ;;  %v3045_v51 = vpop.f32.mrb[65].mxu0 }
 0x19f   : > { %v3046_v56 = vadd.f32 %v3045_v51, %v4924_v13  ;;  %v4024_v7 = vpop.f32.mrb[66].mxu0 }
 0x1a0   : > { %v3057_v6 = vadd.f32 %v4024_v7, %v4933_v30  ;;  %v3048_v10 = vpop.f32.mrb[67].mxu0  ;;  %v3212_v18 = vmul.f32 %v3054_v5, %v3054_v5 }
 0x1a1   : > { %v3983_v15 = vpop.f32.mrb[60].mxu1  ;;  %v3049_v60 = vadd.f32 %v3048_v10, %v4927_v14  ;;  %v3210_v36 = vmul.f32 %v3046_v56, %v3046_v56 }
 0x1a2   : > { %v3984_v1 = vpop.f32.mrb[61].mxu1  ;;  %v3687_v22 = vpack.c.bf16 %v3057_v6, %v3054_v5  ;;  %v3213_v62 = vmul.f32 %v3057_v6, %v3057_v6 }
 0x1a3   : > { %v3985_v20 = vadd.f32 %v3984_v1, %v3983_v15  ;;  %v3986_v13 = vpop.f32.mrb[62].mxu1  ;;  %v3682_v12 = vpack.c.bf16 %v3049_v60, %v3046_v56  ;;  %v3188_v58 = vadd.f32 %v3049_v60, %v3046_v56  ;;  %v3211_v30 = vmul.f32 %v3049_v60, %v3049_v60 }
 0x1a4   : > { %v3987_v16 = vpop.f32.mrb[63].mxu1  ;;  %3726 = vst [vmem:[%s4969_s22 + $0x8] sm:$0xff] %v3687_v22  }
 0x1a5   : > { %v3988_v19 = vadd.f32 %v3987_v16, %v3986_v13  ;;  %3683 = vst [vmem:[%s4969_s22] sm:$0xff] %v3682_v12   ;;  %v3189_v26 = vadd.f32 %v3188_v58, %v3054_v5  ;;  %v3226_v23 = vadd.f32 %v3211_v30, %v3210_v36  ;;  %v3005_v50 = vadd.f32 %v3985_v20, %v2908_v37 }
 0x1a7   : > { %v3227_v9 = vadd.f32 %v3226_v23, %v3212_v18  ;;  %v3190_v29 = vadd.f32 %v3189_v26, %v3057_v6  ;;  %v3008_v14 = vadd.f32 %v3988_v19, %v2911_v25 }
 0x1a8   : > { %v4027_v34 = vpop.f32.mrb[68].mxu0 }
 0x1a9   : > { %v4031_v31 = vpop.f32.mrb[64].mxu1  ;;  %v3228_v24 = vadd.f32 %v3227_v9, %v3213_v62  ;;  %v3070_v40 = vadd.f32 %v4027_v34, %v4942_v8  ;;  %v3061_v33 = vpop.f32.mrb[69].mxu0 }
 0x1aa   : > { %v3086_v35 = vadd.f32 %v4031_v31, %v2989_v32  ;;  %v3077_v27 = vpop.f32.mrb[65].mxu1  ;;  %v3062_v45 = vadd.f32 %v3061_v33, %v4936_v41  ;;  %v4028_v17 = vpop.f32.mrb[70].mxu0 }
 0x1ab   : > { %v3078_v42 = vadd.f32 %v3077_v27, %v4948_v21  ;;  %v4032_v4 = vpop.f32.mrb[66].mxu1  ;;  %v3073_v53 = vadd.f32 %v4028_v17, %v4945_v43  ;;  %v3064_v54 = vpop.f32.mrb[71].mxu0  ;;  %v3216_v43 = vmul.f32 %v3070_v40, %v3070_v40 }
 0x1ac   : > { %v3089_v46 = vadd.f32 %v4032_v4, %v2992_v0  ;;  %v3080_v47 = vpop.f32.mrb[67].mxu1  ;;  %v3191_v48 = vadd.f32 %v3190_v29, %v3062_v45  ;;  %v3214_v39 = vmul.f32 %v3062_v45, %v3062_v45  ;;  %v3065_v55 = vadd.f32 %v3064_v54, %v4939_v49 }
 0x1ad   : > { %v3081_v32 = vadd.f32 %v3080_v47, %v4951_v28  ;;  %v3697_v52 = vpack.c.bf16 %v3073_v53, %v3070_v40  ;;  %v3217_v3 = vmul.f32 %v3073_v53, %v3073_v53  ;;  %v3218_v6 = vmul.f32 %v3078_v42, %v3078_v42 }
 0x1ae   : > { %v3707_v8 = vpack.c.bf16 %v3089_v46, %v3086_v35  ;;  %v3229_v44 = vadd.f32 %v3228_v24, %v3214_v39  ;;  %v3692_v41 = vpack.c.bf16 %v3065_v55, %v3062_v45  ;;  %v3192_v0 = vadd.f32 %v3191_v48, %v3065_v55 }
 0x1af   : > { %v3702_v21 = vpack.c.bf16 %v3081_v32, %v3078_v42  ;;  %3728 = vst [vmem:[%s4969_s22 + $0x18] sm:$0xff] %v3697_v52   ;;  %v3215_v11 = vmul.f32 %v3065_v55, %v3065_v55  ;;  %v3219_v36 = vmul.f32 %v3081_v32, %v3081_v32  ;;  %v3221_v58 = vmul.f32 %v3089_v46, %v3089_v46 }
 0x1b0   : > { %3730 = vst [vmem:[%s4969_s22 + $0x28] sm:$0xff] %v3707_v8   ;;  %3727 = vst [vmem:[%s4969_s22 + $0x10] sm:$0xff] %v3692_v41   ;;  %v3193_v28 = vadd.f32 %v3192_v0, %v3070_v40 }
 0x1b1   : > { %3729 = vst [vmem:[%s4969_s22 + $0x20] sm:$0xff] %v3702_v21   ;;  %v4035_v57 = vpop.f32.mrb[68].mxu1  ;;  %v3230_v37 = vadd.f32 %v3229_v44, %v3215_v11 }
 0x1b2   : > { %v3102_v59 = vadd.f32 %v4035_v57, %v3005_v50  ;;  %v3093_v61 = vpop.f32.mrb[69].mxu1  ;;  %v3194_v5 = vadd.f32 %v3193_v28, %v3073_v53 }
 0x1b3   : > { %v3094_v2 = vadd.f32 %v3093_v61, %v4955_v63  ;;  %v4036_v25 = vpop.f32.mrb[70].mxu1  ;;  %v3231_v51 = vadd.f32 %v3230_v37, %v3216_v43  ;;  %v3220_v63 = vmul.f32 %v3086_v35, %v3086_v35 }
 0x1b4   : > { %v3105_v49 = vadd.f32 %v4036_v25, %v3008_v14  ;;  %v3096_v56 = vpop.f32.mrb[71].mxu1  ;;  %v3195_v15 = vadd.f32 %v3194_v5, %v3078_v42  ;;  %v3224_v62 = vmul.f32 %v3102_v59, %v3102_v59 }
 0x1b5   : > { %v3097_v7 = vadd.f32 %v3096_v56, %v4958_v38  ;;  %v3232_v60 = vadd.f32 %v3231_v51, %v3217_v3  ;;  %v3222_v38 = vmul.f32 %v3094_v2, %v3094_v2 }
 0x1b6   : > { %v3717_v10 = vpack.c.bf16 %v3105_v49, %v3102_v59  ;;  %v3196_v20 = vadd.f32 %v3195_v15, %v3081_v32  ;;  %v3225_v14 = vmul.f32 %v3105_v49, %v3105_v49 }
 0x1b7   : > { %v3712_v1 = vpack.c.bf16 %v3097_v7, %v3094_v2  ;;  %v3233_v22 = vadd.f32 %v3232_v60, %v3218_v6  ;;  %v3223_v23 = vmul.f32 %v3097_v7, %v3097_v7 }
 0x1b8   : > { %3732 = vst [vmem:[%s4969_s22 + $0x38] sm:$0xff] %v3717_v10   ;;  %v3197_v13 = vadd.f32 %v3196_v20, %v3086_v35 }
 0x1b9   : > { %3731 = vst [vmem:[%s4969_s22 + $0x30] sm:$0xff] %v3712_v1   ;;  %v3234_v12 = vadd.f32 %v3233_v22, %v3219_v36 }
 0x1ba   : > { %v3198_v30 = vadd.f32 %v3197_v13, %v3089_v46 }
 0x1bb   : > { %v3235_v16 = vadd.f32 %v3234_v12, %v3220_v63 }
 0x1bc   : > { %v3199_v18 = vadd.f32 %v3198_v30, %v3094_v2 }
 0x1bd   : > { %v3236_v19 = vadd.f32 %v3235_v16, %v3221_v58 }
 0x1be   : > { %v3200_v26 = vadd.f32 %v3199_v18, %v3097_v7 }
 0x1bf   : > { %v3237_v50 = vadd.f32 %v3236_v19, %v3222_v38 }
 0x1c0   : > { %v3201_v9 = vadd.f32 %v3200_v26, %v3102_v59 }
 0x1c1   : > { %v3238_v29 = vadd.f32 %v3237_v50, %v3223_v23 }
 0x1c2   : > { %v3202_v31 = vadd.f32 %v3201_v9, %v3105_v49 }
 0x1c3   : > { %v3239_v34 = vadd.f32 %v3238_v29, %v3224_v62 }
 0x1c4   : > { %v3203_v24 = vrot.slane %v3202_v31, 4 }
 0x1c5   : > { %v3240_v35 = vadd.f32 %v3239_v34, %v3225_v14 }
 0x1c6   : > { %v3204_v27 = vadd.f32 %v3203_v24, %v3202_v31 }
 0x1c7   : > { %v3241_v40 = vrot.slane %v3240_v35, 4 }
 0x1c8   : > { %v3205_v33 = vrot.slane %v3204_v27, 2 }
 0x1c9   : > { %v3242_v42 = vadd.f32 %v3241_v40, %v3240_v35 }
 0x1ca   : > { %v3206_v4 = vadd.f32 %v3205_v33, %v3204_v27 }
 0x1cb   : > { %v3243_v45 = vrot.slane %v3242_v42, 2 }
 0x1cc   : > { %v3207_v17 = vrot.slane %v3206_v4, 1 }
 0x1cd   : > { %v3244_v46 = vadd.f32 %v3243_v45, %v3242_v42 }
 0x1ce   : > { %v3208_v47 = vadd.f32 %v3207_v17, %v3206_v4 }
 0x1cf   : > { %v3245_v53 = vrot.slane %v3244_v46, 1 }
 0x1d0   : > { %3209 = vst [vmem:[%s506_s14] sm:$0xff] %v3208_v47 }
 0x1d1   : > { %v3246_v54 = vadd.f32 %v3245_v53, %v3244_v46 }
 0x1d3   : > { %3247 = vst [vmem:[%s514_s16] sm:$0xff] %v3246_v54 }
 0x1d4 PF: > { %s19_s9 = sadd.s32 1, %s4205_s9   ;;  %s5029_s27 = smov %s4197_s29 }
 0x1d5   : > { %p16_p12 = scmp.ge.s32.totalorder %s19_s9, 6   ;;  %s5030_s28 = smov %s4201_s30 }
 0x1d6   : > { %s5031_s29 = smov %s5034_s10  ;;  %s5032_s30 = smov %s5038_s11 }
 0x1d7   :  { %18 = sbr.rel (!%p16_p12) target bundleno = 3 (0x3), region = 107 }

// kernel: up_forward.5
= control target key start
LH: loop header
LB: loop body
LE: loop exit
PB: predicated region body
PF: predicated region fallthrough
CT: control target
= control target key end

     0   :  { %s7394_s30 = smov 0   ;;  %s7396_s10 = smov 0   ;;  %s8737_s0 = inlined_call_operand.vmem [shape: bf16[2,16,16,128], index: 0, kind: input, shape index: {}, may-alias: {0,1,2}]   ;;  %s8738_s1 = inlined_call_operand.vmem [shape: bf16[2,16,16,128], index: 1, kind: input, shape index: {}, may-alias: {0,1,2}]   ;;  %s8739_s2 = inlined_call_operand.vmem [shape: bf16[2,16,16,128], index: 2, kind: input, shape index: {}, may-alias: {0,1,2}]   ;;  %s8740_s3 = inlined_call_operand.vmem [shape: bf16[2,16,16,128], index: 3, kind: input, shape index: {}, may-alias: {3,4,5}]   ;;  %s8741_s4 = inlined_call_operand.vmem [shape: bf16[2,16,16,128], index: 4, kind: input, shape index: {}, may-alias: {3,4,5}]   ;;  %s8742_s5 = inlined_call_operand.vmem [shape: bf16[2,16,16,128], index: 5, kind: input, shape index: {}, may-alias: {3,4,5}]   ;;  %s8743_s6 = inlined_call_operand.vmem [shape: bf16[2304,128], index: 6, kind: input, shape index: {}]   ;;  %s8744_s7 = inlined_call_operand.vmem [shape: bf16[2,16,16,128], index: 7, kind: output, shape index: {0}]   ;;  %s8745_s8 = inlined_call_operand.vmem [shape: f32[2,2,8,128], index: 8, kind: output, shape index: {1}]   ;;  %s8746_s9 = inlined_call_operand.vmem [shape: f32[2,2,8,128], index: 9, kind: output, shape index: {2}]  }
   0x1   :  { %s7398_s11 = smov 0   ;;  %s7400_s12 = smov 0  }
   0x2   :  { %s7402_s13 = smov 0  }
   0x3 LB: > { %s29_s14 = sadd.s32 1, %s7334_s11  ;;  %s32_s15 = sadd.s32 1, %s7338_s12  ;;  %s7342_s13 = sphi %s7402_s13, %s20_s13   ;;  %s7338_s12 = sphi %s7400_s12, %s8765_s12   ;;  %s7334_s11 = sphi %s7398_s11, %s8764_s11   ;;  %s7330_s10 = sphi %s7396_s10, %s8763_s10   ;;  %s7326_s30 = sphi %s7394_s30, %s8762_s30  }
   0x4   : > { %p30_p0 = scmp.ge.s32.totalorder %s29_s14, 2  ;;  %p6164_p1 = scmp.ge.s32.totalorder %s7342_s13, 1 }
   0x5   : > { %p464_p2 = scmp.lt.s32.totalorder %s7342_s13, 5 }
   0x6   : > { %s8767_s14 = smov (%p30_p0, %s29_s14), 0  ;;  %s8769_s15 = smov (!%p30_p0, %s32_s15), %s7338_s12 }
   0x7   : > { %p465_p3 = pnand %p6164_p1, %p464_p2  ;;  %p34_p4 = scmp.ge.s32.totalorder %s8769_s15, 2 }
   0x9   : > { %s8771_s15 = smov (%p34_p4, %s8769_s15), 0  ;;  %468 = sbr.rel (%p465_p3) target bundleno = 638 (0x27e), region = 48 }
  0x10   : > { %v7128_v0 = vld [vmem:[%s8743_s6 + $0x40] sm:$0xff]   ;;  %s7430_s18 = sshll.u32 %s7326_s30, 3  ;;  %p589_p5 = scmp.lt.s32.totalorder %s7330_s10, 1  ;;  %v7130_v2 = vld [vmem:[%s8743_s6 + $0x48] sm:$0xff]   ;;  %v7132_v4 = vld [vmem:[%s8743_s6 + $0x50] sm:$0xff]   ;;  %vm706_vm0 = vcmask 1043459  }
  0x11   : > { %v7129_v1 = vld [vmem:[%s8743_s6] sm:$0xff]   ;;  %6496 = vmatprep.subr.bf16.mxu0 %v7128_v0  ;;  %7072 = vmatprep.subr.bf16.mxu1 %v7128_v0  ;;  %p591_p6 = scmp.lt.s32.totalorder %s7430_s18, 15  ;;  %v7131_v3 = vld [vmem:[%s8743_s6 + $0x8] sm:$0xff]   ;;  %v7133_v5 = vld [vmem:[%s8743_s6 + $0x10] sm:$0xff]   ;;  %s6170_s20 = sadd.s32 4294967295, %s7430_s18  ;;  %vm769_vm5 = vcmask 1044484  }
  0x12   : > { %6497 = vmatpush3.bf16.msra.mxu0 %v7129_v1  ;;  %7080 = vmatpush3.bf16.msra.mxu1 %v7129_v1  ;;  %s8773_s10 = smov (!%p589_p5, %s7330_s10), 1  ;;  %v7134_v6 = vld [vmem:[%s8743_s6 + $0x58] sm:$0xff]   ;;  %p601_p7 = scmp.gt.s32.totalorder %s6170_s20, 0  ;;  %v7136_v8 = vld [vmem:[%s8743_s6 + $0x60] sm:$0xff]   ;;  %v7138_v10 = vld [vmem:[%s8743_s6 + $0x68] sm:$0xff]   ;;  %vm1490_vm6 = vcmask 1043456  }
  0x13   : > { %6498 = vmatprep.subr.bf16.mxu0 %v7130_v2  ;;  %7073 = vmatprep.subr.bf16.mxu1 %v7130_v2  ;;  %s592_s27 = scalar_select %p591_p6, %s7430_s18, 15  ;;  %v7135_v7 = vld [vmem:[%s8743_s6 + $0x18] sm:$0xff]   ;;  %v7137_v9 = vld [vmem:[%s8743_s6 + $0x20] sm:$0xff]   ;;  %vm707_vm1 = vsmask.f32 7950  ;;  %v7139_v12 = vld [vmem:[%s8743_s6 + $0x28] sm:$0xff]  }
  0x14   : > { %s7449_s29 = sshll.u32 %s8773_s10, 5  ;;  %p6171_p8 = scmp.lt.s32.totalorder %s6170_s20, 15  ;;  %v712_v11 = vld [vmem:[#allocation2 + $0x8] sm:$0x8]  ;;  %vm7484_vm2 = vmand %vm706_vm0, %vm707_vm1  ;;  %v7140_v15 = vld [vmem:[%s8743_s6 + $0x70] sm:$0xff]  }
  0x15   : > { %s6166_s28 = sshll.u32 %s592_s27, 1  ;;  %s8775_s20 = smov (!%p601_p7, %s6170_s20), 0  ;;  %v736_v14 = vld [vmem:[#allocation2 + $0x88] sm:$0x8]  ;;  %v713_v16 = vsel %vm7484_vm2, 0, %v712_v11  ;;  %v7141_v24 = vld [vmem:[%s8743_s6 + $0x30] sm:$0xff]  }
  0x16   : > { %6499 = vmatpush3.bf16.msra.mxu0 %v7131_v3  ;;  %7081 = vmatpush3.bf16.msra.mxu1 %v7131_v3  ;;  %s595_s19 = sadd.s32 %s7449_s29, %s6166_s28  ;;  %s8777_s20 = smov (!%p6171_p8, %s8775_s20), 15  ;;  %v737_v17 = vsel %vm7484_vm2, 0, %v736_v14  ;;  %714 = vst [vmem:[#allocation2 + $0x8] sm:$0x8] %v713_v16  ;;  %v709_v22 = vld [vmem:[#allocation2] sm:$0x8] }
  0x17   : > { %6500 = vmatprep.subr.bf16.mxu0 %v7132_v4  ;;  %7074 = vmatprep.subr.bf16.mxu1 %v7132_v4  ;;  %s7459_s23 = sshll.u32 %s595_s19, 2  ;;  %s6176_s22 = sshll.u32 %s8777_s20, 1  ;;  %738 = vst [vmem:[#allocation2 + $0x88] sm:$0x8] %v737_v17  ;;  %v710_v26 = vsel %vm7484_vm2, 0, %v709_v22  ;;  %v7142_v29 = vld [vmem:[%s8743_s6 + $0x78] sm:$0xff]  }
  0x18   : > { %s7474_s21 = scalar_lea.vmem %s8740_s3, %s7459_s23  ;;  %p1025_p9 = scmp.gt.s32.totalorder %s7326_s30, 0  ;;  %v733_v28 = vld [vmem:[#allocation2 + $0x80] sm:$0x8]  ;;  %711 = vst [vmem:[#allocation2] sm:$0x8] %v710_v26  ;;  %v7143_v41 = vld [vmem:[%s8743_s6 + $0x38] sm:$0xff]  }
  0x19   : > { %s609_s26 = sadd.s32 %s6176_s22, %s7449_s29  ;;  %v7144_v18 = vld [vmem:[%s7474_s21 + $0x18] ss:$0 sps:$4 sm:$0xff]   ;;  %s7508_s19 = scalar_lea.vmem %s8737_s0, %s7459_s23  ;;  %v7145_v21 = vld [vmem:[%s7474_s21 + $0x1c] ss:$0 sps:$4 sm:$0xff]   ;;  %v734_v30 = vsel %vm7484_vm2, 0, %v733_v28  ;;  %v7148_v45 = vld [vmem:[%s8743_s6 + $0xc0] sm:$0xff]  }
  0x1a   : > { %6501 = vmatpush3.bf16.msra.mxu0 %v7133_v5  ;;  %7082 = vmatpush3.bf16.msra.mxu1 %v7133_v5  ;;  %s6178_s16 = sshll.u32 %s609_s26, 2  ;;  %1015 = vst [vmem:[#allocation2 + $0x88] sm:$0xf0] %v7144_v18  ;;  %1016 = vst [vmem:[#allocation2 + $0x98] sm:$0xf] %v7145_v21  ;;  %v7149_v46 = vld [vmem:[%s8743_s6 + $0x140] sm:$0xff]  }
  0x1b   : > { %6502 = vmatprep.subr.bf16.mxu0 %v7134_v6  ;;  %7075 = vmatprep.subr.bf16.mxu1 %v7134_v6  ;;  %s656_s24 = scalar_lea.vmem %s8741_s4, %s6178_s16  ;;  %s611_s27 = scalar_lea.vmem %s8738_s1, %s6178_s16  ;;  %735 = vst [vmem:[#allocation2 + $0x80] sm:$0x8] %v734_v30  ;;  %v7146_v35 = vld [vmem:[%s7508_s19 + $0x18] ss:$0 sps:$4 sm:$0xff]   ;;  %v7147_v39 = vld [vmem:[%s7508_s19 + $0x1c] ss:$0 sps:$4 sm:$0xff]  }
  0x1c   : > { %s1028_s28 = scalar_select %p1025_p9, 1, 0  ;;  %v1033_v19 = vld [vmem:[%s656_s24] sm:$0xf]  ;;  %v1034_v20 = vld [vmem:[%s656_s24 + $0x4] sm:$0xf] }
  0x1d   : > { %v1026_v23 = vld [vmem:[%s611_s27] sm:$0xf]  ;;  %v1027_v27 = vld [vmem:[%s611_s27 + $0x4] sm:$0xf]  ;;  %919 = vst [vmem:[#allocation2 + $0x80] sm:$0xf0] %v7146_v35 }
  0x1e   : > { %6503 = vmatpush3.bf16.msra.mxu0 %v7135_v7  ;;  %7083 = vmatpush3.bf16.msra.mxu1 %v7135_v7  ;;  %v1029_v25 = vstv %s1028_s28  ;;  %920 = vst [vmem:[#allocation2 + $0x90] sm:$0xf] %v7147_v39  ;;  %vm770_vm4 = vsmask.f32 4352  ;;  %v718_v18 = vld [vmem:[#allocation2 + $0x28] sm:$0x8]  ;;  %s8689_s28 = scalar_lea.vmem %s8744_s7, %s7459_s23 }
  0x1f   : > { %6504 = vmatprep.subr.bf16.mxu0 %v7136_v8  ;;  %7076 = vmatprep.subr.bf16.mxu1 %v7136_v8  ;;  %vm1030_vm3 = vcmp.eq.s32.totalorder %v1029_v25, 1  ;;  %v719_v26 = vsel %vm7484_vm2, 0, %v718_v18  ;;  %v7152_v35 = vld [vmem:[%s8743_s6 + $0xc8] sm:$0xff]   ;;  %vm7686_vm7 = vmand %vm769_vm5, %vm770_vm4  ;;  %vm1603_vm8 = vsmask.f32 3328  ;;  %s6428_s22 = sadd.s32 8, %s7430_s18 }
  0x20   : > { %v1035_v31 = vsel %vm1030_vm3, %v1033_v19, 0  ;;  %v1036_v32 = vsel %vm1030_vm3, %v1034_v20, 0  ;;  %v1031_v33 = vsel %vm1030_vm3, %v1026_v23, 0  ;;  %v1032_v34 = vsel %vm1030_vm3, %v1027_v27, 0  ;;  %v7156_v27 = vld [vmem:[%s7474_s21] ss:$0 sps:$4 sm:$0xff]  }
  0x21   : > { %v6249_v36 = vcombine.low %v1035_v31, %v1035_v31  ;;  %v6250_v37 = vcombine.low %v1036_v32, %v1036_v32  ;;  %v6247_v38 = vcombine.low %v1031_v33, %v1031_v33  ;;  %v6248_v40 = vcombine.low %v1032_v34, %v1032_v34  ;;  %v1107_v42 = vld [vmem:[#allocation2 + $0x88] sm:$0xf8]  ;;  %v1109_v47 = vld [vmem:[#allocation2 + $0x98] sm:$0xf]  ;;  %v7150_v31 = vld [vmem:[%s8743_s6 + $0x80] sm:$0xff]   ;;  %p8154_p10 = scmp.lt.s32.totalorder %s6428_s22, 15 }
  0x22   : > { %6505 = vmatpush3.bf16.msra.mxu0 %v7137_v9  ;;  %7084 = vmatpush3.bf16.msra.mxu1 %v7137_v9  ;;  %v1276_v43 = vshrl.u32 %v1107_v42, 16  ;;  %v1279_v44 = vshll.u32 %v1107_v42, 16  ;;  %v1284_v50 = vshrl.u32 %v1109_v47, 16  ;;  %v1287_v51 = vshll.u32 %v1109_v47, 16  ;;  %v7151_v32 = vld [vmem:[%s8743_s6 + $0x100] sm:$0xff]   ;;  %v7153_v39 = vld [vmem:[%s8743_s6 + $0x148] sm:$0xff]  }
  0x23   : > { %6506 = vmatprep.subr.bf16.mxu0 %v7138_v10  ;;  %7077 = vmatprep.subr.bf16.mxu1 %v7138_v10  ;;  %1067 = vst [vmem:[#allocation2 + $0x8] sm:$0xf0] %v6249_v36  ;;  %1068 = vst [vmem:[#allocation2 + $0x18] sm:$0xf] %v6250_v37  ;;  %v7157_v33 = vld [vmem:[%s7474_s21 + $0x4] ss:$0 sps:$4 sm:$0xff]  }
  0x24   : > { %1057 = vst [vmem:[#allocation2] sm:$0xf0] %v6247_v38  ;;  %1058 = vst [vmem:[#allocation2 + $0x10] sm:$0xf] %v6248_v40  ;;  %v1278_v48 = vrot.slane %v1276_v43, 3  ;;  %v1281_v49 = vrot.slane %v1279_v44, 4 }
  0x25   : > { %v1286_v52 = vrot.slane %v1284_v50, 3  ;;  %v1289_v53 = vrot.slane %v1287_v51, 4  ;;  %v1106_v58 = vld [vmem:[#allocation2 + $0x80] sm:$0xf8]  ;;  %v1108_v4 = vld [vmem:[#allocation2 + $0x90] sm:$0xf] }
  0x26   : > { %6507 = vmatpush3.bf16.msra.mxu0 %v7139_v12  ;;  %7085 = vmatpush3.bf16.msra.mxu1 %v7139_v12  ;;  %v1282_v56 = vor.u32 %v1281_v49, %v1278_v48  ;;  %v1259_v17 = vshrl.u32 %v1106_v58, 16  ;;  %v1262_v20 = vshll.u32 %v1106_v58, 16  ;;  %v1267_v21 = vshrl.u32 %v1108_v4, 16  ;;  %720 = vst [vmem:[#allocation2 + $0x28] sm:$0x8] %v719_v26  ;;  %v7155_v47 = vld [vmem:[%s8743_s6 + $0x108] sm:$0xff]  }
  0x27   : > { %6508 = vmatprep.subr.bf16.mxu0 %v7140_v15  ;;  %7078 = vmatprep.subr.bf16.mxu1 %v7140_v15  ;;  %v1290_v0 = vor.u32 %v1289_v53, %v1286_v52  ;;  %v1270_v22 = vshll.u32 %v1108_v4, 16  ;;  %1009 = vst [vmem:[#allocation2 + $0x28] sm:$0xf0] %v7156_v27  ;;  %v742_v36 = vld [vmem:[#allocation2 + $0xa8] sm:$0x8]  ;;  %v7164_v52 = vld [vmem:[%s8743_s6 + $0xd0] sm:$0xff]  }
  0x28   : > { %v1261_v25 = vrot.slane %v1259_v17, 3  ;;  %v1264_v28 = vrot.slane %v1262_v20, 4  ;;  %1010 = vst [vmem:[#allocation2 + $0x38] sm:$0xf] %v7157_v33  ;;  %v743_v40 = vsel %vm7484_vm2, 0, %v742_v36  ;;  %s8779_s22 = smov (!%p8154_p10, %s6428_s22), 15 }
  0x29   : > { %v1291_v9 = vsel %vm770_vm4, %v1282_v56, %v1290_v0  ;;  %v1272_v30 = vrot.slane %v1270_v22, 4  ;;  %v7159_v42 = vld [vmem:[%s7474_s21 + $0x24] ss:$0 sps:$4 sm:$0xff]   ;;  %744 = vst [vmem:[#allocation2 + $0xa8] sm:$0x8] %v743_v40  ;;  %v7165_v56 = vld [vmem:[%s8743_s6 + $0x150] sm:$0xff]  }
  0x2a   : > { %6509 = vmatpush3.bf16.msra.mxu0 %v7141_v24  ;;  %7086 = vmatpush3.bf16.msra.mxu1 %v7141_v24  ;;  %v1091_v54 = vld [vmem:[#allocation2 + $0x8] sm:$0xf8]  ;;  %v1093_v55 = vld [vmem:[#allocation2 + $0x18] sm:$0xf]  ;;  %v1265_v37 = vor.u32 %v1264_v28, %v1261_v25  ;;  %v715_v44 = vld [vmem:[#allocation2 + $0x20] sm:$0x8] }
  0x2b   : > { %6510 = vmatprep.subr.bf16.mxu0 %v7142_v29  ;;  %7079 = vmatprep.subr.bf16.mxu1 %v7142_v29  ;;  %v1090_v57 = vld [vmem:[#allocation2] sm:$0xf8]  ;;  %v1140_v59 = vshrl.u32 %v1091_v54, 16  ;;  %v1143_v60 = vshll.u32 %v1091_v54, 16  ;;  %v1148_v61 = vshrl.u32 %v1093_v55, 16  ;;  %v1151_v62 = vshll.u32 %v1093_v55, 16 }
  0x2c   : > { %v1092_v63 = vld [vmem:[#allocation2 + $0x10] sm:$0xf]  ;;  %v1123_v1 = vshrl.u32 %v1090_v57, 16  ;;  %v1126_v2 = vshll.u32 %v1090_v57, 16  ;;  %4901 = vmatprep.mubr.bf16.mxu1 %v1291_v9  ;;  %v1269_v29 = vrot.slane %v1267_v21, 3  ;;  %v716_v48 = vsel %vm7484_vm2, 0, %v715_v44 }
  0x2d   : > { %v1131_v3 = vshrl.u32 %v1092_v63, 16  ;;  %v1142_v5 = vrot.slane %v1140_v59, 3  ;;  %v1145_v6 = vrot.slane %v1143_v60, 4  ;;  %v1150_v7 = vrot.slane %v1148_v61, 3  ;;  %1018 = vst [vmem:[#allocation2 + $0xb8] sm:$0xf] %v7159_v42 }
  0x2e   : > { %6511 = vmatpush3.bf16.msra.mxu0 %v7143_v41  ;;  %7087 = vmatpush3.bf16.msra.mxu1 %v7143_v41  ;;  %v1153_v8 = vrot.slane %v1151_v62, 4  ;;  %v1125_v10 = vrot.slane %v1123_v1, 3  ;;  %v1128_v11 = vrot.slane %v1126_v2, 4  ;;  %v1134_v16 = vshll.u32 %v1092_v63, 16  ;;  %v7158_v41 = vld [vmem:[%s7474_s21 + $0x20] ss:$0 sps:$4 sm:$0xff]  }
  0x2f   : > { %6560 = vmatprep.subr.bf16.mxu1 %v7148_v45  ;;  %6624 = vmatprep.subr.bf16.mxu0 %v7149_v46  ;;  %v1133_v12 = vrot.slane %v1131_v3, 3  ;;  %v1146_v14 = vor.u32 %v1145_v6, %v1142_v5  ;;  %v1273_v38 = vor.u32 %v1272_v30, %v1269_v29  ;;  %v7154_v46 = vld [vmem:[%s8743_s6 + $0x88] sm:$0xff]   ;;  %1017 = vst [vmem:[#allocation2 + $0xa8] sm:$0xf0] %v7158_v41  ;;  %v7160_v49 = vld [vmem:[%s7508_s19] ss:$0 sps:$4 sm:$0xff]  }
  0x30   : > { %v1154_v15 = vor.u32 %v1153_v8, %v1150_v7  ;;  %v1129_v19 = vor.u32 %v1128_v11, %v1125_v10  ;;  %v1136_v24 = vrot.slane %v1134_v16, 4  ;;  %v7161_v50 = vld [vmem:[%s7508_s19 + $0x4] ss:$0 sps:$4 sm:$0xff]   ;;  %717 = vst [vmem:[#allocation2 + $0x20] sm:$0x8] %v716_v48  ;;  %v7167_v57 = vld [vmem:[%s8743_s6 + $0x110] sm:$0xff]  }
  0x31   : > { %v1274_v45 = vsel %vm770_vm4, %v1265_v37, %v1273_v38  ;;  %v739_v51 = vld [vmem:[#allocation2 + $0xa0] sm:$0x8]  ;;  %913 = vst [vmem:[#allocation2 + $0x20] sm:$0xf0] %v7160_v49  ;;  %914 = vst [vmem:[#allocation2 + $0x30] sm:$0xf] %v7161_v50 }
  0x32   : > { %v1155_v23 = vsel %vm770_vm4, %v1146_v14, %v1154_v15  ;;  %v1137_v34 = vor.u32 %v1136_v24, %v1133_v12  ;;  %4902 = vmatmul.mubr.bf16.vlgmr.msra.gmra.mrb[0].mxu1 %v1274_v45  ;;  %v740_v53 = vsel %vm7484_vm2, 0, %v739_v51  ;;  %v7162_v54 = vld [vmem:[%s7508_s19 + $0x20] ss:$0 sps:$4 sm:$0xff]   ;;  %v7163_v55 = vld [vmem:[%s7508_s19 + $0x24] ss:$0 sps:$4 sm:$0xff]   ;;  %v7166_v59 = vld [vmem:[%s8743_s6 + $0x90] sm:$0xff]  }
  0x33   : > { %4869 = vmatprep.mubr.bf16.mxu0 %v1155_v23  ;;  %6561 = vmatpush3.bf16.msra.mxu1 %v7150_v31  ;;  %741 = vst [vmem:[#allocation2 + $0xa0] sm:$0x8] %v740_v53  ;;  %v1095_v58 = vld [vmem:[#allocation2 + $0x28] sm:$0xf8]  ;;  %921 = vst [vmem:[#allocation2 + $0xa0] sm:$0xf0] %v7162_v54 }
  0x34   : > { %v1138_v43 = vsel %vm770_vm4, %v1129_v19, %v1137_v34  ;;  %6562 = vmatprep.subr.bf16.mxu1 %v7152_v35  ;;  %922 = vst [vmem:[#allocation2 + $0xb0] sm:$0xf] %v7163_v55  ;;  %v7169_v60 = vld [vmem:[%s8743_s6 + $0x158] sm:$0xff]   ;;  %v1174_v62 = vshrl.u32 %v1095_v58, 16  ;;  %v1177_v63 = vshll.u32 %v1095_v58, 16  ;;  %v7180_v23 = vld [vmem:[%s8743_s6 + $0xe0] sm:$0xff]  }
  0x35   : > { %4870 = vmatmul.mubr.bf16.vlgmr.msra.gmra.mrb[0].mxu0 %v1138_v43  ;;  %v1097_v61 = vld [vmem:[#allocation2 + $0x38] sm:$0xf]  ;;  %v7181_v38 = vld [vmem:[%s8743_s6 + $0x160] sm:$0xff]   ;;  %v7173_v58 = vld [vmem:[%s7474_s21 + $0xc] ss:$0 sps:$4 sm:$0xff]   ;;  %s8781_s22 = smov (!%p8154_p10, %s8779_s22), 15 }
  0x36   : > { %6625 = vmatpush3.bf16.msra.mxu0 %v7151_v32  ;;  %v7168_v0 = vld [vmem:[%s8743_s6 + $0xd8] sm:$0xff]   ;;  %v1182_v1 = vshrl.u32 %v1097_v61, 16  ;;  %v1185_v2 = vshll.u32 %v1097_v61, 16  ;;  %v1176_v3 = vrot.slane %v1174_v62, 3  ;;  %v1179_v4 = vrot.slane %v1177_v63, 4  ;;  %v7183_v51 = vld [vmem:[%s8743_s6 + $0x120] sm:$0xff]  }
  0x37   : > { %6626 = vmatprep.subr.bf16.mxu0 %v7153_v39  ;;  %6563 = vmatpush3.bf16.msra.mxu1 %v7154_v46  ;;  %v1111_v5 = vld [vmem:[#allocation2 + $0xa8] sm:$0xf8]  ;;  %v1113_v6 = vld [vmem:[#allocation2 + $0xb8] sm:$0xf]  ;;  %v7182_v46 = vld [vmem:[%s8743_s6 + $0xa0] sm:$0xff]   ;;  %s6183_s18 = sshll.u32 %s8781_s22, 1 }
  0x38   : > { %6564 = vmatprep.subr.bf16.mxu1 %v7164_v52  ;;  %v7171_v7 = vld [vmem:[%s8743_s6 + $0x118] sm:$0xff]   ;;  %v1184_v8 = vrot.slane %v1182_v1, 3  ;;  %v1187_v9 = vrot.slane %v1185_v2, 4  ;;  %v1310_v10 = vshrl.u32 %v1111_v5, 16  ;;  %v1313_v11 = vshll.u32 %v1111_v5, 16  ;;  %v7185_v1 = vld [vmem:[%s8743_s6 + $0x168] sm:$0xff]   ;;  %s626_s25 = sadd.s32 %s6183_s18, %s7449_s29 }
  0x39   : > { %v7170_v12 = vld [vmem:[%s8743_s6 + $0x98] sm:$0xff]   ;;  %v1180_v14 = vor.u32 %v1179_v4, %v1176_v3  ;;  %v1318_v15 = vshrl.u32 %v1113_v6, 16  ;;  %v1321_v16 = vshll.u32 %v1113_v6, 16  ;;  %v1094_v17 = vld [vmem:[#allocation2 + $0x20] sm:$0xf8]  ;;  %v7186_v6 = vld [vmem:[%s8743_s6 + $0xa8] sm:$0xff]  }
  0x3a   : > { %6627 = vmatpush3.bf16.msra.mxu0 %v7155_v47  ;;  %v1096_v18 = vld [vmem:[#allocation2 + $0x30] sm:$0xf]  ;;  %v1188_v19 = vor.u32 %v1187_v9, %v1184_v8  ;;  %v1312_v20 = vrot.slane %v1310_v10, 3  ;;  %v1315_v21 = vrot.slane %v1313_v11, 4  ;;  %v1157_v22 = vshrl.u32 %v1094_v17, 16  ;;  %v7187_v11 = vld [vmem:[%s8743_s6 + $0x128] sm:$0xff]  }
  0x3b   : > { %6628 = vmatprep.subr.bf16.mxu0 %v7165_v56  ;;  %6565 = vmatpush3.bf16.msra.mxu1 %v7166_v59  ;;  %v1320_v24 = vrot.slane %v1318_v15, 3  ;;  %v1323_v25 = vrot.slane %v1321_v16, 4  ;;  %v1160_v26 = vshll.u32 %v1094_v17, 16  ;;  %v1165_v27 = vshrl.u32 %v1096_v18, 16  ;;  %v1110_v28 = vld [vmem:[#allocation2 + $0xa0] sm:$0xf8] }
  0x3c   : > { %6566 = vmatprep.subr.bf16.mxu1 %v7168_v0  ;;  %v1189_v29 = vsel %vm770_vm4, %v1180_v14, %v1188_v19  ;;  %v1316_v30 = vor.u32 %v1315_v21, %v1312_v20  ;;  %v1159_v31 = vrot.slane %v1157_v22, 3  ;;  %v1168_v32 = vshll.u32 %v1096_v18, 16  ;;  %v1112_v33 = vld [vmem:[#allocation2 + $0xb0] sm:$0xf]  ;;  %v724_v52 = vld [vmem:[#allocation2 + $0x48] sm:$0x8] }
  0x3d   : > { %4877 = vmatprep.mubr.bf16.mxu0 %v1189_v29  ;;  %v1324_v34 = vor.u32 %v1323_v25, %v1320_v24  ;;  %v1162_v35 = vrot.slane %v1160_v26, 4  ;;  %v1167_v36 = vrot.slane %v1165_v27, 3  ;;  %v1293_v37 = vshrl.u32 %v1110_v28, 16  ;;  %v7184_v59 = vld [vmem:[%s8743_s6 + $0xe8] sm:$0xff]   ;;  %1012 = vst [vmem:[#allocation2 + $0x58] sm:$0xf] %v7173_v58 }
  0x3e   : > { %6629 = vmatpush3.bf16.msra.mxu0 %v7167_v57  ;;  %v1170_v39 = vrot.slane %v1168_v32, 4  ;;  %v1296_v40 = vshll.u32 %v1110_v28, 16  ;;  %v1301_v41 = vshrl.u32 %v1112_v33, 16  ;;  %v1304_v42 = vshll.u32 %v1112_v33, 16  ;;  %v7172_v57 = vld [vmem:[%s7474_s21 + $0x8] ss:$0 sps:$4 sm:$0xff]  }
  0x3f   : > { %6630 = vmatprep.subr.bf16.mxu0 %v7169_v60  ;;  %6567 = vmatpush3.bf16.msra.mxu1 %v7170_v12  ;;  %v1325_v43 = vsel %vm770_vm4, %v1316_v30, %v1324_v34  ;;  %v1163_v44 = vor.u32 %v1162_v35, %v1159_v31  ;;  %v1295_v45 = vrot.slane %v1293_v37, 3  ;;  %v725_v56 = vsel %vm7484_vm2, 0, %v724_v52  ;;  %v748_v60 = vld [vmem:[#allocation2 + $0xc8] sm:$0x8]  ;;  %1011 = vst [vmem:[#allocation2 + $0x48] sm:$0xf0] %v7172_v57 }
  0x40   : > { %6568 = vmatprep.subr.bf16.mxu1 %v7180_v23  ;;  %4909 = vmatprep.mubr.bf16.mxu1 %v1325_v43  ;;  %v1171_v47 = vor.u32 %v1170_v39, %v1167_v36  ;;  %v1298_v48 = vrot.slane %v1296_v40, 4  ;;  %v1303_v49 = vrot.slane %v1301_v41, 3  ;;  %v1306_v50 = vrot.slane %v1304_v42, 4  ;;  %726 = vst [vmem:[#allocation2 + $0x48] sm:$0x8] %v725_v56  ;;  %p691_p11 = scmp.lt.s32.totalorder %s7326_s30, 1 }
  0x41   : > { %v749_v62 = vsel %vm7484_vm2, 0, %v748_v60  ;;  %v7174_v63 = vld [vmem:[%s7474_s21 + $0x28] ss:$0 sps:$4 sm:$0xff]   ;;  %v7175_v0 = vld [vmem:[%s7474_s21 + $0x2c] ss:$0 sps:$4 sm:$0xff]   ;;  %s6211_s23 = sshll.u32 %s8773_s10, 1 }
  0x42   : > { %6631 = vmatpush3.bf16.msra.mxu0 %v7171_v7  ;;  %v1172_v53 = vsel %vm770_vm4, %v1163_v44, %v1171_v47  ;;  %v1299_v54 = vor.u32 %v1298_v48, %v1295_v45  ;;  %v1307_v55 = vor.u32 %v1306_v50, %v1303_v49  ;;  %750 = vst [vmem:[#allocation2 + $0xc8] sm:$0x8] %v749_v62  ;;  %v721_v2 = vld [vmem:[#allocation2 + $0x40] sm:$0x8]  ;;  %1019 = vst [vmem:[#allocation2 + $0xc8] sm:$0xf0] %v7174_v63 }
  0x43   : > { %6632 = vmatprep.subr.bf16.mxu0 %v7181_v38  ;;  %6569 = vmatpush3.bf16.msra.mxu1 %v7182_v46  ;;  %1020 = vst [vmem:[#allocation2 + $0xd8] sm:$0xf] %v7175_v0  ;;  %v722_v3 = vsel %vm7484_vm2, 0, %v721_v2  ;;  %v7176_v4 = vld [vmem:[%s7508_s19 + $0x8] ss:$0 sps:$4 sm:$0xff]   ;;  %v7196_v45 = vld [vmem:[%s8743_s6 + $0xf0] sm:$0xff]  }
  0x44   : > { %4878 = vmatmul.mubr.bf16.gmra.mrb[4].mxu0 %v1172_v53  ;;  %v1308_v61 = vsel %vm770_vm4, %v1299_v54, %v1307_v55  ;;  %6570 = vmatprep.subr.bf16.mxu1 %v7184_v59  ;;  %v7177_v5 = vld [vmem:[%s7508_s19 + $0xc] ss:$0 sps:$4 sm:$0xff]   ;;  %723 = vst [vmem:[#allocation2 + $0x40] sm:$0x8] %v722_v3  ;;  %v745_v7 = vld [vmem:[#allocation2 + $0xc0] sm:$0x8] }
  0x45   : > { %4910 = vmatmul.mubr.bf16.gmra.mrb[4].mxu1 %v1308_v61  ;;  %915 = vst [vmem:[#allocation2 + $0x40] sm:$0xf0] %v7176_v4  ;;  %916 = vst [vmem:[#allocation2 + $0x50] sm:$0xf] %v7177_v5  ;;  %v746_v8 = vsel %vm7484_vm2, 0, %v745_v7  ;;  %v7197_v54 = vld [vmem:[%s8743_s6 + $0x170] sm:$0xff]  }
  0x46   : > { %6633 = vmatpush3.bf16.msra.mxu0 %v7183_v51  ;;  %v7178_v9 = vld [vmem:[%s7508_s19 + $0x28] ss:$0 sps:$4 sm:$0xff]   ;;  %v7179_v10 = vld [vmem:[%s7508_s19 + $0x2c] ss:$0 sps:$4 sm:$0xff]   ;;  %747 = vst [vmem:[#allocation2 + $0xc0] sm:$0x8] %v746_v8 }
  0x47   : > { %6634 = vmatprep.subr.bf16.mxu0 %v7185_v1  ;;  %6571 = vmatpush3.bf16.msra.mxu1 %v7186_v6  ;;  %923 = vst [vmem:[#allocation2 + $0xc0] sm:$0xf0] %v7178_v9  ;;  %924 = vst [vmem:[#allocation2 + $0xd0] sm:$0xf] %v7179_v10  ;;  %v1099_v12 = vld [vmem:[#allocation2 + $0x48] sm:$0xf8] }
  0x48   : > { %v1101_v14 = vld [vmem:[#allocation2 + $0x58] sm:$0xf]  ;;  %v1208_v15 = vshrl.u32 %v1099_v12, 16  ;;  %v1211_v16 = vshll.u32 %v1099_v12, 16  ;;  %6572 = vmatprep.subr.bf16.mxu1 %v7196_v45  ;;  %v7198_v59 = vld [vmem:[%s8743_s6 + $0xb0] sm:$0xff]   ;;  %s8783_s30 = smov (!%p691_p11, %s7326_s30), 1 }
  0x49   : > { %v1216_v17 = vshrl.u32 %v1101_v14, 16  ;;  %v1219_v18 = vshll.u32 %v1101_v14, 16  ;;  %v1115_v19 = vld [vmem:[#allocation2 + $0xc8] sm:$0xf8]  ;;  %v7188_v3 = vld [vmem:[%s7474_s21 + $0x10] ss:$0 sps:$4 sm:$0xff]   ;;  %s694_s20 = sadd.s32 %s6211_s23, %s8783_s30 }
  0x4a   : > { %6635 = vmatpush3.bf16.msra.mxu0 %v7187_v11  ;;  %v1117_v20 = vld [vmem:[#allocation2 + $0xd8] sm:$0xf]  ;;  %v1210_v21 = vrot.slane %v1208_v15, 3  ;;  %v1213_v22 = vrot.slane %v1211_v16, 4  ;;  %v1344_v25 = vshrl.u32 %v1115_v19, 16  ;;  %v1347_v26 = vshll.u32 %v1115_v19, 16 }
  0x4b   : > { %v1218_v23 = vrot.slane %v1216_v17, 3  ;;  %v1221_v24 = vrot.slane %v1219_v18, 4  ;;  %v1352_v27 = vshrl.u32 %v1117_v20, 16  ;;  %v1355_v28 = vshll.u32 %v1117_v20, 16  ;;  %v730_v62 = vld [vmem:[#allocation2 + $0x68] sm:$0x8]  ;;  %6636 = vmatprep.subr.bf16.mxu0 %v7197_v54  ;;  %6573 = vmatpush3.bf16.msra.mxu1 %v7198_v59 }
  0x4c   : > { %v1098_v29 = vld [vmem:[#allocation2 + $0x40] sm:$0xf8]  ;;  %v1214_v30 = vor.u32 %v1213_v22, %v1210_v21  ;;  %v1100_v32 = vld [vmem:[#allocation2 + $0x50] sm:$0xf]  ;;  %v1346_v35 = vrot.slane %v1344_v25, 3  ;;  %v1349_v36 = vrot.slane %v1347_v26, 4 }
  0x4d   : > { %v1222_v31 = vor.u32 %v1221_v24, %v1218_v23  ;;  %v1191_v33 = vshrl.u32 %v1098_v29, 16  ;;  %v1194_v34 = vshll.u32 %v1098_v29, 16  ;;  %v1354_v37 = vrot.slane %v1352_v27, 3  ;;  %v7189_v4 = vld [vmem:[%s7474_s21 + $0x14] ss:$0 sps:$4 sm:$0xff]   ;;  %v7200_v16 = vld [vmem:[%s8743_s6 + $0xf8] sm:$0xff]  }
  0x4e   : > { %v1357_v38 = vrot.slane %v1355_v28, 4  ;;  %v1114_v39 = vld [vmem:[#allocation2 + $0xc0] sm:$0xf8]  ;;  %v1199_v43 = vshrl.u32 %v1100_v32, 16  ;;  %v1116_v44 = vld [vmem:[#allocation2 + $0xd0] sm:$0xf]  ;;  %v1350_v46 = vor.u32 %v1349_v36, %v1346_v35  ;;  %6574 = vmatprep.subr.bf16.mxu1 %v7200_v16 }
  0x4f   : > { %v1223_v40 = vsel %vm770_vm4, %v1214_v30, %v1222_v31  ;;  %v1193_v41 = vrot.slane %v1191_v33, 3  ;;  %v1196_v42 = vrot.slane %v1194_v34, 4  ;;  %v1202_v48 = vshll.u32 %v1100_v32, 16  ;;  %v754_v5 = vld [vmem:[#allocation2 + $0xe8] sm:$0x8]  ;;  %v7199_v9 = vld [vmem:[%s8743_s6 + $0x130] sm:$0xff]  }
  0x50   : > { %4885 = vmatprep.mubr.bf16.mxu0 %v1223_v40  ;;  %v1358_v47 = vor.u32 %v1357_v38, %v1354_v37  ;;  %v1327_v49 = vshrl.u32 %v1114_v39, 16  ;;  %v1201_v51 = vrot.slane %v1199_v43, 3  ;;  %v1330_v52 = vshll.u32 %v1114_v39, 16  ;;  %1013 = vst [vmem:[#allocation2 + $0x68] sm:$0xf0] %v7188_v3  ;;  %6637 = vmatpush3.bf16.msra.mxu0 %v7199_v9  ;;  %v7201_v21 = vld [vmem:[%s8743_s6 + $0x178] sm:$0xff]  }
  0x51   : > { %v1197_v50 = vor.u32 %v1196_v42, %v1193_v41  ;;  %v1335_v53 = vshrl.u32 %v1116_v44, 16  ;;  %v1204_v56 = vrot.slane %v1202_v48, 4  ;;  %v1338_v58 = vshll.u32 %v1116_v44, 16  ;;  %1014 = vst [vmem:[#allocation2 + $0x78] sm:$0xf] %v7189_v4  ;;  %6638 = vmatprep.subr.bf16.mxu0 %v7201_v21  ;;  %v7206_v21 = vld [vmem:[%s8743_s6 + $0x240] sm:$0xff]  }
  0x52   : > { %v1359_v55 = vsel %vm770_vm4, %v1350_v46, %v1358_v47  ;;  %v1329_v57 = vrot.slane %v1327_v49, 3  ;;  %v1332_v60 = vrot.slane %v1330_v52, 4  ;;  %v731_v1 = vsel %vm7484_vm2, 0, %v730_v62  ;;  %v7190_v10 = vld [vmem:[%s7474_s21 + $0x30] ss:$0 sps:$4 sm:$0xff]   ;;  %s6212_s17 = sshll.u32 %s694_s20, 3 }
  0x53   : > { %4917 = vmatprep.mubr.bf16.mxu1 %v1359_v55  ;;  %v1337_v61 = vrot.slane %v1335_v53, 3  ;;  %v1205_v63 = vor.u32 %v1204_v56, %v1201_v51  ;;  %v1340_v0 = vrot.slane %v1338_v58, 4  ;;  %732 = vst [vmem:[#allocation2 + $0x68] sm:$0x8] %v731_v1  ;;  %v755_v8 = vsel %vm7484_vm2, 0, %v754_v5  ;;  %v7202_v56 = vld [vmem:[%s8743_s6 + $0xb8] sm:$0xff]   ;;  %s696_s24 = scalar_lea.vmem %s8745_s8, %s6212_s17 }
  0x54   : > { %v1333_v2 = vor.u32 %v1332_v60, %v1329_v57  ;;  %756 = vst [vmem:[#allocation2 + $0xe8] sm:$0x8] %v755_v8  ;;  %v7191_v11 = vld [vmem:[%s7474_s21 + $0x34] ss:$0 sps:$4 sm:$0xff]   ;;  %v727_v12 = vld [vmem:[#allocation2 + $0x60] sm:$0x8]  ;;  %6575 = vmatpush3.bf16.msra.mxu1 %v7202_v56 }
  0x55   : > { %v1206_v6 = vsel %vm770_vm4, %v1197_v50, %v1205_v63  ;;  %v1341_v7 = vor.u32 %v1340_v0, %v1337_v61  ;;  %v728_v15 = vsel %vm7484_vm2, 0, %v727_v12  ;;  %1021 = vst [vmem:[#allocation2 + $0xe8] sm:$0xf0] %v7190_v10  ;;  %1022 = vst [vmem:[#allocation2 + $0xf8] sm:$0xf] %v7191_v11  ;;  %v7203_v1 = vld [vmem:[%s8743_s6 + $0x138] sm:$0xff]  }
  0x56   : > { %4886 = vmatmul.mubr.bf16.gmra.mrb[8].mxu0 %v1206_v6  ;;  %729 = vst [vmem:[#allocation2 + $0x60] sm:$0x8] %v728_v15  ;;  %v7192_v17 = vld [vmem:[%s7508_s19 + $0x10] ss:$0 sps:$4 sm:$0xff]   ;;  %v7193_v18 = vld [vmem:[%s7508_s19 + $0x14] ss:$0 sps:$4 sm:$0xff]  }
  0x57   : > { %v1342_v14 = vsel %vm770_vm4, %v1333_v2, %v1341_v7  ;;  %v751_v19 = vld [vmem:[#allocation2 + $0xe0] sm:$0x8]  ;;  %917 = vst [vmem:[#allocation2 + $0x60] sm:$0xf0] %v7192_v17  ;;  %918 = vst [vmem:[#allocation2 + $0x70] sm:$0xf] %v7193_v18  ;;  %6639 = vmatpush3.bf16.msra.mxu0 %v7203_v1 }
  0x58   : > { %4918 = vmatmul.mubr.bf16.gmra.mrb[8].mxu1 %v1342_v14  ;;  %v752_v20 = vsel %vm7484_vm2, 0, %v751_v19  ;;  %v7194_v22 = vld [vmem:[%s7508_s19 + $0x30] ss:$0 sps:$4 sm:$0xff]   ;;  %v7195_v23 = vld [vmem:[%s7508_s19 + $0x34] ss:$0 sps:$4 sm:$0xff]   ;;  %v7204_v7 = vld [vmem:[%s8743_s6 + $0x1c0] sm:$0xff]   ;;  %6752 = vmatprep.subr.bf16.mxu0 %v7206_v21 }
  0x59   : > { %753 = vst [vmem:[#allocation2 + $0xe0] sm:$0x8] %v752_v20  ;;  %925 = vst [vmem:[#allocation2 + $0xe0] sm:$0xf0] %v7194_v22  ;;  %v1105_v25 = vld [vmem:[#allocation2 + $0x78] sm:$0xf]  ;;  %6688 = vmatprep.subr.bf16.mxu1 %v7204_v7 }
  0x5a   : > { %926 = vst [vmem:[#allocation2 + $0xf0] sm:$0xf] %v7195_v23  ;;  %v1103_v24 = vld [vmem:[#allocation2 + $0x68] sm:$0xf8]  ;;  %v1250_v28 = vshrl.u32 %v1105_v25, 16  ;;  %v1253_v29 = vshll.u32 %v1105_v25, 16 }
  0x5b   : > { %v1242_v26 = vshrl.u32 %v1103_v24, 16  ;;  %v1245_v27 = vshll.u32 %v1103_v24, 16  ;;  %v1427_v10 = vld [vmem:[#allocation2 + $0x8] sm:$0xf0]  ;;  %v1429_v11 = vld [vmem:[#allocation2 + $0x18] sm:$0xf] }
  0x5c   : > { %v1119_v30 = vld [vmem:[#allocation2 + $0xe8] sm:$0xf8]  ;;  %v1121_v31 = vld [vmem:[#allocation2 + $0xf8] sm:$0xf]  ;;  %v1252_v34 = vrot.slane %v1250_v28, 3  ;;  %v1255_v35 = vrot.slane %v1253_v29, 4 }
  0x5d   : > { %v1244_v32 = vrot.slane %v1242_v26, 3  ;;  %v1247_v33 = vrot.slane %v1245_v27, 4  ;;  %v1378_v36 = vshrl.u32 %v1119_v30, 16  ;;  %v1381_v37 = vshll.u32 %v1119_v30, 16  ;;  %v775_v17 = vld [vmem:[#allocation2 + $0x18] sm:$0x10] }
  0x5e   : > { %v1386_v38 = vshrl.u32 %v1121_v31, 16  ;;  %v1389_v39 = vshll.u32 %v1121_v31, 16  ;;  %v1102_v40 = vld [vmem:[#allocation2 + $0x60] sm:$0xf8]  ;;  %v1256_v42 = vor.u32 %v1255_v35, %v1252_v34  ;;  %v1104_v43 = vld [vmem:[#allocation2 + $0x70] sm:$0xf] }
  0x5f   : > { %v1248_v41 = vor.u32 %v1247_v33, %v1244_v32  ;;  %v1225_v44 = vshrl.u32 %v1102_v40, 16  ;;  %v1228_v45 = vshll.u32 %v1102_v40, 16  ;;  %v1380_v46 = vrot.slane %v1378_v36, 3  ;;  %v1572_v20 = vld [vmem:[#allocation2 + $0x8] sm:$0xf0] }
  0x60   : > { %v1383_v47 = vrot.slane %v1381_v37, 4  ;;  %v1388_v48 = vrot.slane %v1386_v38, 3  ;;  %v1391_v49 = vrot.slane %v1389_v39, 4  ;;  %v1118_v50 = vld [vmem:[#allocation2 + $0xe0] sm:$0xf8]  ;;  %v1233_v54 = vshrl.u32 %v1104_v43, 16 }
  0x61   : > { %v1257_v51 = vsel %vm770_vm4, %v1248_v41, %v1256_v42  ;;  %v1227_v52 = vrot.slane %v1225_v44, 3  ;;  %v1230_v53 = vrot.slane %v1228_v45, 4  ;;  %v1120_v55 = vld [vmem:[#allocation2 + $0xf0] sm:$0xf]  ;;  %v1236_v59 = vshll.u32 %v1104_v43, 16  ;;  %v7205_v39 = vld [vmem:[%s8743_s6 + $0x180] sm:$0xff]  }
  0x62   : > { %4893 = vmatprep.mubr.bf16.mxu0 %v1257_v51  ;;  %v1384_v57 = vor.u32 %v1383_v47, %v1380_v46  ;;  %v1392_v58 = vor.u32 %v1391_v49, %v1388_v48  ;;  %v1361_v60 = vshrl.u32 %v1118_v50, 16  ;;  %v1235_v62 = vrot.slane %v1233_v54, 3  ;;  %v1426_v25 = vld [vmem:[#allocation2] sm:$0xf0]  ;;  %v1428_v26 = vld [vmem:[#allocation2 + $0x10] sm:$0xf] }
  0x63   : > { %v1231_v61 = vor.u32 %v1230_v53, %v1227_v52  ;;  %v1364_v63 = vshll.u32 %v1118_v50, 16  ;;  %v1369_v0 = vshrl.u32 %v1120_v55, 16  ;;  %v1238_v3 = vrot.slane %v1236_v59, 4  ;;  %v772_v29 = vld [vmem:[#allocation2 + $0x10] sm:$0x10]  ;;  %v7208_v47 = vld [vmem:[%s8743_s6 + $0x1c8] sm:$0xff]  }
  0x64   : > { %v1393_v2 = vsel %vm770_vm4, %v1384_v57, %v1392_v58  ;;  %v1363_v4 = vrot.slane %v1361_v60, 3  ;;  %v1372_v5 = vshll.u32 %v1120_v55, 16  ;;  %v1494_v15 = vrot.slane %v1427_v10, 4  ;;  %v1571_v32 = vld [vmem:[#allocation2] sm:$0xf0] }
  0x65   : > { %4925 = vmatprep.mubr.bf16.mxu1 %v1393_v2  ;;  %v1366_v8 = vrot.slane %v1364_v63, 4  ;;  %v1371_v9 = vrot.slane %v1369_v0, 3  ;;  %v1239_v12 = vor.u32 %v1238_v3, %v1235_v62  ;;  %v1495_v16 = vrot.slane %v1429_v11, 4  ;;  %v1431_v40 = vld [vmem:[#allocation2 + $0x28] sm:$0xf0] }
  0x66   : > { %v1374_v14 = vrot.slane %v1372_v5, 4  ;;  %v776_v19 = vsel %vm7686_vm7, 0, %v775_v17  ;;  %v1622_v24 = vshrl.u32 %v1572_v20, 16  ;;  %v1625_v28 = vshll.u32 %v1572_v20, 16  ;;  %v1433_v41 = vld [vmem:[#allocation2 + $0x38] sm:$0xf] }
  0x67   : > { %v1367_v18 = vor.u32 %v1366_v8, %v1363_v4  ;;  %v1240_v22 = vsel %vm770_vm4, %v1231_v61, %v1239_v12  ;;  %777 = vst [vmem:[#allocation2 + $0x18] sm:$0x10] %v776_v19  ;;  %v1496_v27 = vsel %vm1490_vm6, %v1494_v15, %v1495_v16  ;;  %v773_v31 = vsel %vm7686_vm7, 0, %v772_v29  ;;  %v781_v46 = vld [vmem:[#allocation2 + $0x38] sm:$0x10]  ;;  %v7209_v63 = vld [vmem:[%s8743_s6 + $0x188] sm:$0xff]  }
  0x68   : > { %v1375_v23 = vor.u32 %v1374_v14, %v1371_v9  ;;  %4894 = vmatmul.mubr.bf16.gmra.mrb[12].mxu0 %v1240_v22  ;;  %v1624_v33 = vrot.slane %v1622_v24, 4  ;;  %v1491_v34 = vrot.slane %v1426_v25, 4  ;;  %v1492_v35 = vrot.slane %v1428_v26, 4  ;;  %774 = vst [vmem:[#allocation2 + $0x10] sm:$0x10] %v773_v31  ;;  %v7207_v14 = vld [vmem:[%s8743_s6 + $0x200] sm:$0xff]  }
  0x69   : > { %v1605_v36 = vshrl.u32 %v1571_v32, 16  ;;  %v1627_v37 = vrot.slane %v1625_v28, 5  ;;  %v1608_v38 = vshll.u32 %v1571_v32, 16  ;;  %v1500_v44 = vrot.slane %v1431_v40, 4  ;;  %v1576_v52 = vld [vmem:[#allocation2 + $0x28] sm:$0xf0] }
  0x6a   : > { %v1376_v30 = vsel %vm770_vm4, %v1367_v18, %v1375_v23  ;;  %v1493_v43 = vsel %vm1490_vm6, %v1491_v34, %v1492_v35  ;;  %v1501_v45 = vrot.slane %v1433_v41, 4  ;;  %v782_v51 = vsel %vm7686_vm7, 0, %v781_v46  ;;  %v1430_v56 = vld [vmem:[#allocation2 + $0x20] sm:$0xf0]  ;;  %v1432_v57 = vld [vmem:[#allocation2 + $0x30] sm:$0xf] }
  0x6b   : > { %4926 = vmatmul.mubr.bf16.gmra.mrb[12].mxu1 %v1376_v30  ;;  %v1607_v50 = vrot.slane %v1605_v36, 4  ;;  %v1610_v53 = vrot.slane %v1608_v38, 5  ;;  %783 = vst [vmem:[#allocation2 + $0x38] sm:$0x10] %v782_v51  ;;  %v1656_v55 = vshrl.u32 %v1576_v52, 16  ;;  %v1628_v58 = vor.u32 %v1627_v37, %v1624_v33  ;;  %v7212_v16 = vld [vmem:[%s8743_s6 + $0x1d0] sm:$0xff]  }
  0x6c   : > { %4966 = vmatprep.mubr.bf16.mxu1 %v1496_v27  ;;  %v1502_v54 = vsel %vm1490_vm6, %v1500_v44, %v1501_v45  ;;  %v1659_v62 = vshll.u32 %v1576_v52, 16  ;;  %v1497_v2 = vrot.slane %v1430_v56, 4  ;;  %v1498_v3 = vrot.slane %v1432_v57, 4  ;;  %v778_v4 = vld [vmem:[#allocation2 + $0x30] sm:$0x10]  ;;  %v7210_v20 = vld [vmem:[%s8743_s6 + $0x248] sm:$0xff]  }
  0x6d   : > { %v7716_v7 = vrot.slane %v1656_v55, 4  ;;  %v779_v8 = vsel %vm7686_vm7, 0, %v778_v4  ;;  %v1575_v9 = vld [vmem:[#allocation2 + $0x20] sm:$0xf0]  ;;  %v1611_v10 = vor.u32 %v1610_v53, %v1607_v50  ;;  %v7213_v22 = vld [vmem:[%s8743_s6 + $0x190] sm:$0xff]   ;;  %v7211_v30 = vld [vmem:[%s8743_s6 + $0x208] sm:$0xff]  }
  0x6e   : > { %v1574_v42 = vld [vmem:[#allocation2 + $0x18] sm:$0x1f]  ;;  %780 = vst [vmem:[#allocation2 + $0x30] sm:$0x10] %v779_v8  ;;  %v1639_v15 = vshrl.u32 %v1575_v9, 16  ;;  %v1661_v18 = vrot.slane %v1659_v62, 5  ;;  %v1499_v24 = vsel %vm1490_vm6, %v1497_v2, %v1498_v3 }
  0x6f   : > { %v1630_v48 = vshrl.u32 %v1574_v42, 16  ;;  %v1633_v49 = vshll.u32 %v1574_v42, 16  ;;  %v1573_v61 = vld [vmem:[#allocation2 + $0x10] sm:$0x1f]  ;;  %v1642_v19 = vshll.u32 %v1575_v9, 16  ;;  %v7216_v37 = vld [vmem:[%s8743_s6 + $0x1d8] sm:$0xff]  }
  0x70   : > { %v1613_v0 = vshrl.u32 %v1573_v61, 16  ;;  %v1616_v1 = vshll.u32 %v1573_v61, 16  ;;  %v7734_v25 = vrot.slane %v1639_v15, 4  ;;  %v1435_v31 = vld [vmem:[#allocation2 + $0x48] sm:$0xf0]  ;;  %v1662_v32 = vor.u32 %v1661_v18, %v7716_v7  ;;  %v7214_v36 = vld [vmem:[%s8743_s6 + $0x250] sm:$0xff]  }
  0x71   : > { %v1632_v59 = vrot.slane %v1630_v48, 4  ;;  %v1635_v60 = vrot.slane %v1633_v49, 5  ;;  %v1644_v26 = vrot.slane %v1642_v19, 5  ;;  %v1437_v33 = vld [vmem:[#allocation2 + $0x58] sm:$0xf]  ;;  %v1506_v34 = vrot.slane %v1435_v31, 4 }
  0x72   : > { %v1615_v11 = vrot.slane %v1613_v0, 4  ;;  %v1618_v12 = vrot.slane %v1616_v1, 5  ;;  %v1578_v23 = vld [vmem:[#allocation2 + $0x38] sm:$0x1f]  ;;  %v1507_v40 = vrot.slane %v1437_v33, 4 }
  0x73   : > { %4967 = vmatmul.mubr.bf16.vlgmr.msra.gmra.mrb[16].mxu1 %v1493_v43  ;;  %v1636_v5 = vor.u32 %v1635_v60, %v1632_v59  ;;  %v1664_v28 = vshrl.u32 %v1578_v23, 16  ;;  %v1667_v29 = vshll.u32 %v1578_v23, 16  ;;  %v787_v35 = vld [vmem:[#allocation2 + $0x58] sm:$0x10]  ;;  %v1580_v42 = vld [vmem:[#allocation2 + $0x48] sm:$0xf0]  ;;  %v1645_v44 = vor.u32 %v1644_v26, %v7734_v25 }
  0x74   : > { %6689 = vmatpush3.bf16.msra.mxu1 %v7205_v39  ;;  %4974 = vmatprep.mubr.bf16.mxu1 %v1502_v54  ;;  %v1619_v21 = vor.u32 %v1618_v12, %v1615_v11  ;;  %v788_v41 = vsel %vm7686_vm7, 0, %v787_v35  ;;  %v1690_v45 = vshrl.u32 %v1580_v42, 16  ;;  %v1693_v46 = vshll.u32 %v1580_v42, 16  ;;  %v1436_v52 = vld [vmem:[#allocation2 + $0x50] sm:$0xf]  ;;  %v7217_v0 = vld [vmem:[%s8743_s6 + $0x198] sm:$0xff]  }
  0x75   : > { %6690 = vmatprep.subr.bf16.mxu1 %v7208_v47  ;;  %v1637_v17 = vsel %vm1603_vm8, %v1628_v58, %v1636_v5  ;;  %v1666_v38 = vrot.slane %v1664_v28, 4  ;;  %v1669_v39 = vrot.slane %v1667_v29, 5  ;;  %v1577_v43 = vld [vmem:[#allocation2 + $0x30] sm:$0x1f]  ;;  %789 = vst [vmem:[#allocation2 + $0x58] sm:$0x10] %v788_v41  ;;  %v1508_v51 = vsel %vm1490_vm6, %v1506_v34, %v1507_v40 }
  0x76   : > { %5063 = vmatprep.mubr.bf16.mxu0 %v1637_v17  ;;  %v1620_v27 = vsel %vm1603_vm8, %v1611_v10, %v1619_v21  ;;  %v1434_v47 = vld [vmem:[#allocation2 + $0x40] sm:$0xf0]  ;;  %v1647_v49 = vshrl.u32 %v1577_v43, 16  ;;  %v1650_v50 = vshll.u32 %v1577_v43, 16  ;;  %v784_v53 = vld [vmem:[#allocation2 + $0x50] sm:$0x10] }
  0x77   : > { %5064 = vmatmul.mubr.bf16.vlgmr.msra.gmra.mrb[16].mxu0 %v1620_v27  ;;  %v1670_v48 = vor.u32 %v1669_v39, %v1666_v38  ;;  %v7215_v54 = vld [vmem:[%s8743_s6 + $0x210] sm:$0xff]   ;;  %v7754_v55 = vrot.slane %v1690_v45, 4  ;;  %v7756_v56 = vrot.slane %v1693_v46, 5  ;;  %v1503_v57 = vrot.slane %v1434_v47, 4  ;;  %v1579_v59 = vld [vmem:[#allocation2 + $0x40] sm:$0xf0] }
  0x78   : > { %6691 = vmatpush3.bf16.msra.mxu1 %v7209_v63  ;;  %6753 = vmatpush3.bf16.msra.mxu0 %v7207_v14  ;;  %v1504_v58 = vrot.slane %v1436_v52, 4  ;;  %v1649_v61 = vrot.slane %v1647_v49, 4  ;;  %v1652_v62 = vrot.slane %v1650_v50, 5  ;;  %v785_v63 = vsel %vm7686_vm7, 0, %v784_v53  ;;  %v1439_v10 = vld [vmem:[#allocation2 + $0x68] sm:$0xf0] }
  0x79   : > { %6692 = vmatprep.subr.bf16.mxu1 %v7212_v16  ;;  %6754 = vmatprep.subr.bf16.mxu0 %v7210_v20  ;;  %v1671_v60 = vsel %vm1603_vm8, %v1662_v32, %v1670_v48  ;;  %786 = vst [vmem:[#allocation2 + $0x50] sm:$0x10] %v785_v63  ;;  %v1673_v2 = vshrl.u32 %v1579_v59, 16  ;;  %v1676_v3 = vshll.u32 %v1579_v59, 16  ;;  %v1441_v11 = vld [vmem:[#allocation2 + $0x78] sm:$0xf]  ;;  %v1696_v18 = vor.u32 %v7756_v56, %v7754_v55 }
  0x7a   : > { %5071 = vmatprep.mubr.bf16.mxu0 %v1671_v60  ;;  %v1505_v1 = vsel %vm1490_vm6, %v1503_v57, %v1504_v58  ;;  %v1653_v4 = vor.u32 %v1652_v62, %v1649_v61  ;;  %v1512_v15 = vrot.slane %v1439_v10, 4  ;;  %v793_v16 = vld [vmem:[#allocation2 + $0x78] sm:$0x10]  ;;  %v1513_v19 = vrot.slane %v1441_v11, 4  ;;  %v1584_v21 = vld [vmem:[#allocation2 + $0x68] sm:$0xf0] }
  0x7b   : > { %4975 = vmatmul.mubr.bf16.gmra.mrb[20].mxu1 %v1499_v24  ;;  %v7765_v5 = vrot.slane %v1673_v2, 4  ;;  %v7767_v7 = vrot.slane %v1676_v3, 5  ;;  %v7218_v17 = vld [vmem:[%s8743_s6 + $0x258] sm:$0xff]   ;;  %v794_v20 = vsel %vm7686_vm7, 0, %v793_v16  ;;  %v1724_v25 = vshrl.u32 %v1584_v21, 16  ;;  %v7221_v49 = vld [vmem:[%s8743_s6 + $0x1a0] sm:$0xff]  }
  0x7c   : > { %6693 = vmatpush3.bf16.msra.mxu1 %v7213_v22  ;;  %4982 = vmatprep.mubr.bf16.mxu1 %v1508_v51  ;;  %v1654_v8 = vsel %vm1603_vm8, %v1645_v44, %v1653_v4  ;;  %v1582_v9 = vld [vmem:[#allocation2 + $0x58] sm:$0x1f]  ;;  %v1438_v22 = vld [vmem:[#allocation2 + $0x60] sm:$0xf0]  ;;  %795 = vst [vmem:[#allocation2 + $0x78] sm:$0x10] %v794_v20 }
  0x7d   : > { %6694 = vmatprep.subr.bf16.mxu1 %v7216_v37  ;;  %6755 = vmatpush3.bf16.msra.mxu0 %v7211_v30  ;;  %v1698_v12 = vshrl.u32 %v1582_v9, 16  ;;  %v1701_v14 = vshll.u32 %v1582_v9, 16  ;;  %v1727_v26 = vshll.u32 %v1584_v21, 16  ;;  %v1440_v27 = vld [vmem:[#allocation2 + $0x70] sm:$0xf]  ;;  %v1679_v29 = vor.u32 %v7767_v7, %v7765_v5  ;;  %v7219_v39 = vld [vmem:[%s8743_s6 + $0x218] sm:$0xff]  }
  0x7e   : > { %6756 = vmatprep.subr.bf16.mxu0 %v7214_v36  ;;  %v1514_v30 = vsel %vm1490_vm6, %v1512_v15, %v1513_v19  ;;  %v1509_v31 = vrot.slane %v1438_v22, 4  ;;  %v1510_v32 = vrot.slane %v1440_v27, 4  ;;  %v790_v33 = vld [vmem:[#allocation2 + $0x70] sm:$0x10]  ;;  %v7780_v37 = vrot.slane %v1724_v25, 4  ;;  %v7220_v44 = vld [vmem:[%s8743_s6 + $0x1e0] sm:$0xff]  }
  0x7f   : > { %5072 = vmatmul.mubr.bf16.gmra.mrb[20].mxu0 %v1654_v8  ;;  %v1700_v23 = vrot.slane %v1698_v12, 4  ;;  %v1703_v24 = vrot.slane %v1701_v14, 5  ;;  %v1583_v38 = vld [vmem:[#allocation2 + $0x60] sm:$0xf0]  ;;  %v1729_v40 = vrot.slane %v1727_v26, 5  ;;  %v791_v42 = vsel %vm7686_vm7, 0, %v790_v33 }
  0x80   : > { %6695 = vmatpush3.bf16.msra.mxu1 %v7217_v0  ;;  %v1581_v28 = vld [vmem:[#allocation2 + $0x50] sm:$0x1f]  ;;  %v1511_v41 = vsel %vm1490_vm6, %v1509_v31, %v1510_v32  ;;  %v1707_v43 = vshrl.u32 %v1583_v38, 16  ;;  %792 = vst [vmem:[#allocation2 + $0x70] sm:$0x10] %v791_v42  ;;  %v1710_v48 = vshll.u32 %v1583_v38, 16 }
  0x81   : > { %6757 = vmatpush3.bf16.msra.mxu0 %v7215_v54  ;;  %v1704_v34 = vor.u32 %v1703_v24, %v1700_v23  ;;  %v1681_v35 = vshrl.u32 %v1581_v28, 16  ;;  %v1684_v36 = vshll.u32 %v1581_v28, 16  ;;  %v7222_v51 = vld [vmem:[%s8743_s6 + $0x260] sm:$0xff]   ;;  %6696 = vmatprep.subr.bf16.mxu1 %v7220_v44  ;;  %v1443_v59 = vld [vmem:[#allocation2 + $0x88] sm:$0xf0]  ;;  %v1730_v61 = vor.u32 %v1729_v40, %v7780_v37  ;;  %v7229_v38 = vld [vmem:[%s8743_s6 + $0x1b0] sm:$0xff]  }
  0x82   : > { %6758 = vmatprep.subr.bf16.mxu0 %v7218_v17  ;;  %v7795_v50 = vrot.slane %v1707_v43, 4  ;;  %v7800_v53 = vrot.slane %v1710_v48, 5  ;;  %v7223_v54 = vld [vmem:[%s8743_s6 + $0x220] sm:$0xff]   ;;  %v1445_v60 = vld [vmem:[#allocation2 + $0x98] sm:$0xf]  ;;  %v1518_v62 = vrot.slane %v1443_v59, 4 }
  0x83   : > { %4983 = vmatmul.mubr.bf16.gmra.mrb[24].mxu1 %v1505_v1  ;;  %v1705_v45 = vsel %vm1603_vm8, %v1696_v18, %v1704_v34  ;;  %v1683_v46 = vrot.slane %v1681_v35, 4  ;;  %v1686_v47 = vrot.slane %v1684_v36, 5  ;;  %v1586_v55 = vld [vmem:[#allocation2 + $0x78] sm:$0x1f]  ;;  %v1519_v63 = vrot.slane %v1445_v60, 4  ;;  %v7224_v19 = vld [vmem:[%s8743_s6 + $0x1e8] sm:$0xff]  }
  0x84   : > { %4990 = vmatprep.mubr.bf16.mxu1 %v1514_v30  ;;  %5079 = vmatprep.mubr.bf16.mxu0 %v1705_v45  ;;  %v1732_v57 = vshrl.u32 %v1586_v55, 16  ;;  %v1735_v58 = vshll.u32 %v1586_v55, 16  ;;  %v799_v0 = vld [vmem:[#allocation2 + $0x98] sm:$0x10]  ;;  %v1588_v1 = vld [vmem:[#allocation2 + $0x88] sm:$0xf0]  ;;  %v1713_v20 = vor.u32 %v7800_v53, %v7795_v50 }
  0x85   : > { %6759 = vmatpush3.bf16.msra.mxu0 %v7219_v39  ;;  %v1687_v52 = vor.u32 %v1686_v47, %v1683_v46  ;;  %6697 = vmatpush3.bf16.msra.mxu1 %v7221_v49  ;;  %v800_v4 = vsel %vm7686_vm7, 0, %v799_v0  ;;  %v1758_v5 = vshrl.u32 %v1588_v1, 16  ;;  %v1442_v7 = vld [vmem:[#allocation2 + $0x80] sm:$0xf0]  ;;  %v1520_v9 = vsel %vm1490_vm6, %v1518_v62, %v1519_v63  ;;  %v1444_v11 = vld [vmem:[#allocation2 + $0x90] sm:$0xf] }
  0x86   : > { %6760 = vmatprep.subr.bf16.mxu0 %v7222_v51  ;;  %v1734_v2 = vrot.slane %v1732_v57, 4  ;;  %v1737_v3 = vrot.slane %v1735_v58, 5  ;;  %801 = vst [vmem:[#allocation2 + $0x98] sm:$0x10] %v800_v4  ;;  %v1761_v10 = vshll.u32 %v1588_v1, 16  ;;  %v1515_v12 = vrot.slane %v1442_v7, 4  ;;  %6698 = vmatprep.subr.bf16.mxu1 %v7224_v19 }
  0x87   : > { %v1688_v56 = vsel %vm1603_vm8, %v1679_v29, %v1687_v52  ;;  %v1585_v8 = vld [vmem:[#allocation2 + $0x70] sm:$0x1f]  ;;  %v7810_v17 = vrot.slane %v1758_v5, 4  ;;  %v1516_v22 = vrot.slane %v1444_v11, 4  ;;  %v1587_v24 = vld [vmem:[#allocation2 + $0x80] sm:$0xf0] }
  0x88   : > { %5080 = vmatmul.mubr.bf16.gmra.mrb[24].mxu0 %v1688_v56  ;;  %v1738_v14 = vor.u32 %v1737_v3, %v1734_v2  ;;  %v1715_v15 = vshrl.u32 %v1585_v8, 16  ;;  %v1718_v16 = vshll.u32 %v1585_v8, 16  ;;  %v796_v18 = vld [vmem:[#allocation2 + $0x90] sm:$0x10]  ;;  %v7817_v21 = vrot.slane %v1761_v10, 5  ;;  %v7225_v25 = vld [vmem:[%s8743_s6 + $0x1a8] sm:$0xff]  }
  0x89   : > { %6761 = vmatpush3.bf16.msra.mxu0 %v7223_v54  ;;  %v797_v23 = vsel %vm7686_vm7, 0, %v796_v18  ;;  %v1741_v29 = vshrl.u32 %v1587_v24, 16  ;;  %v7226_v30 = vld [vmem:[%s8743_s6 + $0x268] sm:$0xff]   ;;  %v1517_v31 = vsel %vm1490_vm6, %v1515_v12, %v1516_v22  ;;  %v1744_v32 = vshll.u32 %v1587_v24, 16  ;;  %6699 = vmatpush3.bf16.msra.mxu1 %v7225_v25  ;;  %v7228_v36 = vld [vmem:[%s8743_s6 + $0x1f0] sm:$0xff]   ;;  %v7232_v62 = vld [vmem:[%s8743_s6 + $0x1f8] sm:$0xff]  }
  0x8a   : > { %v1739_v26 = vsel %vm1603_vm8, %v1730_v61, %v1738_v14  ;;  %v1717_v27 = vrot.slane %v1715_v15, 4  ;;  %v1720_v28 = vrot.slane %v1718_v16, 5  ;;  %798 = vst [vmem:[#allocation2 + $0x90] sm:$0x10] %v797_v23  ;;  %v7227_v33 = vld [vmem:[%s8743_s6 + $0x228] sm:$0xff]   ;;  %6762 = vmatprep.subr.bf16.mxu0 %v7226_v30  ;;  %6700 = vmatprep.subr.bf16.mxu1 %v7228_v36  ;;  %v7230_v46 = vld [vmem:[%s8743_s6 + $0x270] sm:$0xff]   ;;  %v1764_v47 = vor.u32 %v7817_v21, %v7810_v17 }
  0x8b   : > { %4991 = vmatmul.mubr.bf16.gmra.mrb[28].mxu1 %v1511_v41  ;;  %5087 = vmatprep.mubr.bf16.mxu0 %v1739_v26  ;;  %v7832_v35 = vrot.slane %v1741_v29, 4  ;;  %v1746_v37 = vrot.slane %v1744_v32, 5  ;;  %v1447_v41 = vld [vmem:[#allocation2 + $0xa8] sm:$0xf0]  ;;  %v1449_v44 = vld [vmem:[#allocation2 + $0xb8] sm:$0xf] }
  0x8c   : > { %4998 = vmatprep.mubr.bf16.mxu1 %v1520_v9  ;;  %v1721_v34 = vor.u32 %v1720_v28, %v1717_v27  ;;  %v1524_v45 = vrot.slane %v1447_v41, 4  ;;  %v1525_v48 = vrot.slane %v1449_v44, 4  ;;  %v805_v49 = vld [vmem:[#allocation2 + $0xb8] sm:$0x10]  ;;  %v1592_v50 = vld [vmem:[#allocation2 + $0xa8] sm:$0xf0] }
  0x8d   : > { %6763 = vmatpush3.bf16.msra.mxu0 %v7227_v33  ;;  %v1590_v40 = vld [vmem:[#allocation2 + $0x98] sm:$0x1f]  ;;  %6701 = vmatpush3.bf16.msra.mxu1 %v7229_v38  ;;  %v7231_v51 = vld [vmem:[%s8743_s6 + $0x230] sm:$0xff]   ;;  %v806_v55 = vsel %vm7686_vm7, 0, %v805_v49  ;;  %v1792_v56 = vshrl.u32 %v1592_v50, 16  ;;  %v1795_v60 = vshll.u32 %v1592_v50, 16  ;;  %v1747_v0 = vor.u32 %v1746_v37, %v7832_v35 }
  0x8e   : > { %v1722_v39 = vsel %vm1603_vm8, %v1713_v20, %v1721_v34  ;;  %v1766_v42 = vshrl.u32 %v1590_v40, 16  ;;  %v1769_v43 = vshll.u32 %v1590_v40, 16  ;;  %6764 = vmatprep.subr.bf16.mxu0 %v7230_v46  ;;  %v1526_v59 = vsel %vm1490_vm6, %v1524_v45, %v1525_v48  ;;  %807 = vst [vmem:[#allocation2 + $0xb8] sm:$0x10] %v806_v55  ;;  %v1446_v61 = vld [vmem:[#allocation2 + $0xa0] sm:$0xf0]  ;;  %6702 = vmatprep.subr.bf16.mxu1 %v7232_v62 }
  0x8f   : > { %v7856_v1 = vrot.slane %v1792_v56, 4  ;;  %v1448_v2 = vld [vmem:[#allocation2 + $0xb0] sm:$0xf]  ;;  %v1521_v3 = vrot.slane %v1446_v61, 4  ;;  %v802_v4 = vld [vmem:[#allocation2 + $0xb0] sm:$0x10] }
  0x90   : > { %5088 = vmatmul.mubr.bf16.gmra.mrb[28].mxu0 %v1722_v39  ;;  %v1768_v52 = vrot.slane %v1766_v42, 4  ;;  %v1771_v53 = vrot.slane %v1769_v43, 5  ;;  %v1797_v8 = vrot.slane %v1795_v60, 5  ;;  %v1522_v9 = vrot.slane %v1448_v2, 4  ;;  %v1591_v10 = vld [vmem:[#allocation2 + $0xa0] sm:$0xf0] }
  0x91   : > { %v1589_v54 = vld [vmem:[#allocation2 + $0x90] sm:$0x1f]  ;;  %6765 = vmatpush3.bf16.msra.mxu0 %v7231_v51  ;;  %v803_v12 = vsel %vm7686_vm7, 0, %v802_v4  ;;  %v1775_v14 = vshrl.u32 %v1591_v10, 16  ;;  %v1778_v15 = vshll.u32 %v1591_v10, 16  ;;  %v7233_v16 = vld [vmem:[%s8743_s6 + $0x1b8] sm:$0xff]  }
  0x92   : > { %v1749_v57 = vshrl.u32 %v1589_v54, 16  ;;  %v1752_v58 = vshll.u32 %v1589_v54, 16  ;;  %v1772_v63 = vor.u32 %v1771_v53, %v1768_v52  ;;  %v1523_v18 = vsel %vm1490_vm6, %v1521_v3, %v1522_v9  ;;  %804 = vst [vmem:[#allocation2 + $0xb0] sm:$0x10] %v803_v12  ;;  %v1451_v22 = vld [vmem:[#allocation2 + $0xc8] sm:$0xf0]  ;;  %6703 = vmatpush3.bf16.msra.mxu1 %v7233_v16 }
  0x93   : > { %4999 = vmatmul.mubr.bf16.gmra.mrb[32].mxu1 %v1517_v31  ;;  %v1777_v19 = vrot.slane %v1775_v14, 4  ;;  %v1780_v20 = vrot.slane %v1778_v15, 5  ;;  %v1453_v24 = vld [vmem:[#allocation2 + $0xd8] sm:$0xf]  ;;  %v1530_v25 = vrot.slane %v1451_v22, 4  ;;  %v1798_v32 = vor.u32 %v1797_v8, %v7856_v1  ;;  %v7236_v36 = vld [vmem:[%s8743_s6 + $0x2c0] sm:$0xff]  }
  0x94   : > { %5006 = vmatprep.mubr.bf16.mxu1 %v1526_v59  ;;  %v1751_v5 = vrot.slane %v1749_v57, 4  ;;  %v1754_v7 = vrot.slane %v1752_v58, 5  ;;  %v1773_v11 = vsel %vm1603_vm8, %v1764_v47, %v1772_v63  ;;  %v7234_v26 = vld [vmem:[%s8743_s6 + $0x278] sm:$0xff]   ;;  %v1531_v29 = vrot.slane %v1453_v24, 4  ;;  %v1596_v34 = vld [vmem:[#allocation2 + $0xc8] sm:$0xf0]  ;;  %6816 = vmatprep.subr.bf16.mxu1 %v7236_v36 }
  0x95   : > { %5095 = vmatprep.mubr.bf16.mxu0 %v1773_v11  ;;  %v1594_v23 = vld [vmem:[#allocation2 + $0xb8] sm:$0x1f]  ;;  %v1450_v35 = vld [vmem:[#allocation2 + $0xc0] sm:$0xf0]  ;;  %6766 = vmatprep.subr.bf16.mxu0 %v7234_v26  ;;  %v1826_v40 = vshrl.u32 %v1596_v34, 16  ;;  %v1829_v43 = vshll.u32 %v1596_v34, 16  ;;  %v1781_v51 = vor.u32 %v1780_v20, %v1777_v19 }
  0x96   : > { %v1755_v17 = vor.u32 %v1754_v7, %v1751_v5  ;;  %v1800_v27 = vshrl.u32 %v1594_v23, 16  ;;  %v1803_v28 = vshll.u32 %v1594_v23, 16  ;;  %v811_v30 = vld [vmem:[#allocation2 + $0xd8] sm:$0x10]  ;;  %v1532_v39 = vsel %vm1490_vm6, %v1530_v25, %v1531_v29  ;;  %v1452_v41 = vld [vmem:[#allocation2 + $0xd0] sm:$0xf] }
  0x97   : > { %v7235_v31 = vld [vmem:[%s8743_s6 + $0x238] sm:$0xff]   ;;  %v812_v33 = vsel %vm7686_vm7, 0, %v811_v30  ;;  %v1527_v44 = vrot.slane %v1450_v35, 4  ;;  %v1528_v45 = vrot.slane %v1452_v41, 4  ;;  %v7238_v46 = vld [vmem:[%s8743_s6 + $0x340] sm:$0xff]   ;;  %v1828_v52 = vrot.slane %v1826_v40, 4 }
  0x98   : > { %v1756_v21 = vsel %vm1603_vm8, %v1747_v0, %v1755_v17  ;;  %v1802_v37 = vrot.slane %v1800_v27, 4  ;;  %v1805_v38 = vrot.slane %v1803_v28, 5  ;;  %813 = vst [vmem:[#allocation2 + $0xd8] sm:$0x10] %v812_v33  ;;  %6767 = vmatpush3.bf16.msra.mxu0 %v7235_v31  ;;  %v808_v50 = vld [vmem:[#allocation2 + $0xd0] sm:$0x10] }
  0x99   : > { %5096 = vmatmul.mubr.bf16.gmra.mrb[32].mxu0 %v1756_v21  ;;  %v1593_v42 = vld [vmem:[#allocation2 + $0xb0] sm:$0x1f]  ;;  %v1529_v53 = vsel %vm1490_vm6, %v1527_v44, %v1528_v45  ;;  %v809_v54 = vsel %vm7686_vm7, 0, %v808_v50  ;;  %v1595_v55 = vld [vmem:[#allocation2 + $0xc0] sm:$0xf0]  ;;  %6880 = vmatprep.subr.bf16.mxu0 %v7238_v46  ;;  %v1831_v60 = vrot.slane %v1829_v43, 5 }
  0x9a   : > { %v1806_v47 = vor.u32 %v1805_v38, %v1802_v37  ;;  %v1783_v48 = vshrl.u32 %v1593_v42, 16  ;;  %v1786_v49 = vshll.u32 %v1593_v42, 16  ;;  %810 = vst [vmem:[#allocation2 + $0xd0] sm:$0x10] %v809_v54  ;;  %v1809_v59 = vshrl.u32 %v1595_v55, 16 }
  0x9b   : > { %5007 = vmatmul.mubr.bf16.gmra.mrb[36].mxu1 %v1523_v18  ;;  %v1812_v61 = vshll.u32 %v1595_v55, 16  ;;  %v1455_v5 = vld [vmem:[#allocation2 + $0xe8] sm:$0xf0]  ;;  %v1832_v7 = vor.u32 %v1831_v60, %v1828_v52  ;;  %v1457_v8 = vld [vmem:[#allocation2 + $0xf8] sm:$0xf] }
  0x9c   : > { %5014 = vmatprep.mubr.bf16.mxu1 %v1532_v39  ;;  %v1807_v56 = vsel %vm1603_vm8, %v1798_v32, %v1806_v47  ;;  %v1785_v57 = vrot.slane %v1783_v48, 4  ;;  %v1788_v58 = vrot.slane %v1786_v49, 5  ;;  %v1811_v0 = vrot.slane %v1809_v59, 4  ;;  %v817_v10 = vld [vmem:[#allocation2 + $0xf8] sm:$0x10] }
  0x9d   : > { %5103 = vmatprep.mubr.bf16.mxu0 %v1807_v56  ;;  %v1814_v1 = vrot.slane %v1812_v61, 5  ;;  %v1536_v9 = vrot.slane %v1455_v5, 4  ;;  %v1537_v14 = vrot.slane %v1457_v8, 4  ;;  %v818_v15 = vsel %vm7686_vm7, 0, %v817_v10  ;;  %v1600_v16 = vld [vmem:[#allocation2 + $0xe8] sm:$0xf0] }
  0x9e   : > { %v1789_v62 = vor.u32 %v1788_v58, %v1785_v57  ;;  %819 = vst [vmem:[#allocation2 + $0xf8] sm:$0x10] %v818_v15  ;;  %v1860_v19 = vshrl.u32 %v1600_v16, 16  ;;  %v1863_v20 = vshll.u32 %v1600_v16, 16  ;;  %v1454_v21 = vld [vmem:[#allocation2 + $0xe0] sm:$0xf0] }
  0x9f   : > { %v1598_v63 = vld [vmem:[#allocation2 + $0xd8] sm:$0x1f]  ;;  %v1815_v18 = vor.u32 %v1814_v1, %v1811_v0  ;;  %v1538_v25 = vsel %vm1490_vm6, %v1536_v9, %v1537_v14  ;;  %v1456_v26 = vld [vmem:[#allocation2 + $0xf0] sm:$0xf]  ;;  %v814_v27 = vld [vmem:[#allocation2 + $0xf0] sm:$0x10] }
  0xa0   : > { %v1790_v2 = vsel %vm1603_vm8, %v1781_v51, %v1789_v62  ;;  %v1834_v3 = vshrl.u32 %v1598_v63, 16  ;;  %v1837_v4 = vshll.u32 %v1598_v63, 16  ;;  %v1862_v28 = vrot.slane %v1860_v19, 4  ;;  %v1599_v32 = vld [vmem:[#allocation2 + $0xe0] sm:$0xf0] }
  0xa1   : > { %5104 = vmatmul.mubr.bf16.gmra.mrb[36].mxu0 %v1790_v2  ;;  %v1597_v17 = vld [vmem:[#allocation2 + $0xd0] sm:$0x1f]  ;;  %v1865_v29 = vrot.slane %v1863_v20, 5  ;;  %v1533_v30 = vrot.slane %v1454_v21, 4  ;;  %v1534_v31 = vrot.slane %v1456_v26, 4  ;;  %v815_v36 = vsel %vm7686_vm7, 0, %v814_v27 }
  0xa2   : > { %v1836_v11 = vrot.slane %v1834_v3, 4  ;;  %v1839_v12 = vrot.slane %v1837_v4, 5  ;;  %v1817_v23 = vshrl.u32 %v1597_v17, 16  ;;  %v1820_v24 = vshll.u32 %v1597_v17, 16  ;;  %816 = vst [vmem:[#allocation2 + $0xf0] sm:$0x10] %v815_v36 }
  0xa3   : > { %5015 = vmatmul.mubr.bf16.gmra.mrb[40].mxu1 %v1529_v53  ;;  %v1535_v37 = vsel %vm1490_vm6, %v1533_v30, %v1534_v31  ;;  %v1843_v38 = vshrl.u32 %v1599_v32, 16  ;;  %v1846_v39 = vshll.u32 %v1599_v32, 16  ;;  %v1866_v44 = vor.u32 %v1865_v29, %v1862_v28  ;;  %v1909_v45 = vld [vmem:[#allocation2 + $0x28] sm:$0xf8]  ;;  %v1911_v46 = vld [vmem:[#allocation2 + $0x38] sm:$0xf] }
  0xa4   : > { %v1840_v22 = vor.u32 %v1839_v12, %v1836_v11  ;;  %5022 = vmatprep.mubr.bf16.mxu1 %v1538_v25  ;;  %v1819_v34 = vrot.slane %v1817_v23, 4  ;;  %v1822_v35 = vrot.slane %v1820_v24, 5  ;;  %v1958_v50 = vshrl.u32 %v1909_v45, 16  ;;  %v2245_v51 = vld [vmem:[#allocation2 + $0x28] sm:$0xf0]  ;;  %v7237_v30 = vld [vmem:[%s8743_s6 + $0x280] sm:$0xff]  }
  0xa5   : > { %v1845_v41 = vrot.slane %v1843_v38, 4  ;;  %v1602_v43 = vld [vmem:[#allocation2 + $0xf8] sm:$0x1f]  ;;  %v1848_v49 = vrot.slane %v1846_v39, 5  ;;  %v1961_v52 = vshll.u32 %v1909_v45, 16  ;;  %v1966_v53 = vshrl.u32 %v1911_v46, 16 }
  0xa6   : > { %v1841_v33 = vsel %vm1603_vm8, %v1832_v7, %v1840_v22  ;;  %v1823_v40 = vor.u32 %v1822_v35, %v1819_v34  ;;  %v1868_v47 = vshrl.u32 %v1602_v43, 16  ;;  %v1871_v48 = vshll.u32 %v1602_v43, 16  ;;  %v2247_v55 = vld [vmem:[#allocation2 + $0x38] sm:$0xf]  ;;  %v1908_v61 = vld [vmem:[#allocation2 + $0x20] sm:$0xf8] }
  0xa7   : > { %5111 = vmatprep.mubr.bf16.mxu0 %v1841_v33  ;;  %v1969_v54 = vshll.u32 %v1911_v46, 16  ;;  %v2311_v56 = vrot.slane %v2245_v51, 4  ;;  %v1960_v59 = vrot.slane %v1958_v50, 3  ;;  %v2312_v60 = vrot.slane %v2247_v55, 4  ;;  %v1910_v8 = vld [vmem:[#allocation2 + $0x30] sm:$0xf] }
  0xa8   : > { %v1824_v42 = vsel %vm1603_vm8, %v1815_v18, %v1823_v40  ;;  %v1870_v57 = vrot.slane %v1868_v47, 4  ;;  %v1873_v58 = vrot.slane %v1871_v48, 5  ;;  %v1963_v63 = vrot.slane %v1961_v52, 4  ;;  %v2244_v9 = vld [vmem:[#allocation2 + $0x20] sm:$0xf0]  ;;  %v7240_v39 = vld [vmem:[%s8743_s6 + $0x2c8] sm:$0xff]  }
  0xa9   : > { %5112 = vmatmul.mubr.bf16.gmra.mrb[40].mxu0 %v1824_v42  ;;  %v1601_v62 = vld [vmem:[#allocation2 + $0xf0] sm:$0x1f]  ;;  %v1968_v0 = vrot.slane %v1966_v53, 3  ;;  %v1971_v1 = vrot.slane %v1969_v54, 4  ;;  %v1941_v2 = vshrl.u32 %v1908_v61, 16  ;;  %v1849_v4 = vor.u32 %v1848_v49, %v1845_v41  ;;  %v7239_v49 = vld [vmem:[%s8743_s6 + $0x300] sm:$0xff]  }
  0xaa   : > { %v1874_v3 = vor.u32 %v1873_v58, %v1870_v57  ;;  %v1851_v5 = vshrl.u32 %v1601_v62, 16  ;;  %v1854_v7 = vshll.u32 %v1601_v62, 16  ;;  %v1964_v10 = vor.u32 %v1963_v63, %v1960_v59  ;;  %v2246_v15 = vld [vmem:[#allocation2 + $0x30] sm:$0xf]  ;;  %v1913_v32 = vld [vmem:[#allocation2 + $0x48] sm:$0xf8] }
  0xab   : > { %5023 = vmatmul.mubr.bf16.gmra.mrb[44].mxu1 %v1535_v37  ;;  %v1972_v11 = vor.u32 %v1971_v1, %v1968_v0  ;;  %v1943_v12 = vrot.slane %v1941_v2, 3  ;;  %v1944_v14 = vshll.u32 %v1908_v61, 16  ;;  %v1949_v19 = vshrl.u32 %v1910_v8, 16  ;;  %v1915_v33 = vld [vmem:[#allocation2 + $0x58] sm:$0xf]  ;;  %v7242_v61 = vld [vmem:[%s8743_s6 + $0x348] sm:$0xff]  }
  0xac   : > { %v1875_v16 = vsel %vm1603_vm8, %v1866_v44, %v1874_v3  ;;  %v1853_v17 = vrot.slane %v1851_v5, 4  ;;  %v1856_v18 = vrot.slane %v1854_v7, 5  ;;  %v1952_v22 = vshll.u32 %v1910_v8, 16  ;;  %v2249_v38 = vld [vmem:[#allocation2 + $0x48] sm:$0xf0]  ;;  %v7244_v7 = vld [vmem:[%s8743_s6 + $0x2d0] sm:$0xff]  }
  0xad   : > { %5119 = vmatprep.mubr.bf16.mxu0 %v1875_v16  ;;  %v1973_v20 = vsel %vm770_vm4, %v1964_v10, %v1972_v11  ;;  %v1946_v21 = vrot.slane %v1944_v14, 4  ;;  %v1951_v24 = vrot.slane %v1949_v19, 3  ;;  %v2308_v25 = vrot.slane %v2244_v9, 4  ;;  %v2251_v41 = vld [vmem:[#allocation2 + $0x58] sm:$0xf]  ;;  %v7243_v10 = vld [vmem:[%s8743_s6 + $0x308] sm:$0xff]  }
  0xae   : > { %v1857_v23 = vor.u32 %v1856_v18, %v1853_v17  ;;  %5160 = vmatprep.mubr.bf16.mxu1 %v1973_v20  ;;  %v2313_v26 = vsel %vm1490_vm6, %v2311_v56, %v2312_v60  ;;  %v1954_v28 = vrot.slane %v1952_v22, 4  ;;  %v2309_v29 = vrot.slane %v2246_v15, 4  ;;  %v1912_v43 = vld [vmem:[#allocation2 + $0x40] sm:$0xf8]  ;;  %v1914_v48 = vld [vmem:[#allocation2 + $0x50] sm:$0xf] }
  0xaf   : > { %v1947_v27 = vor.u32 %v1946_v21, %v1943_v12  ;;  %v1992_v35 = vshrl.u32 %v1913_v32, 16  ;;  %v1995_v36 = vshll.u32 %v1913_v32, 16  ;;  %v2000_v37 = vshrl.u32 %v1915_v33, 16  ;;  %v2248_v54 = vld [vmem:[#allocation2 + $0x40] sm:$0xf0]  ;;  %v7241_v60 = vld [vmem:[%s8743_s6 + $0x288] sm:$0xff]  }
  0xb0   : > { %v1858_v31 = vsel %vm1603_vm8, %v1849_v4, %v1857_v23  ;;  %v1955_v34 = vor.u32 %v1954_v28, %v1951_v24  ;;  %v2003_v40 = vshll.u32 %v1915_v33, 16  ;;  %v2317_v42 = vrot.slane %v2249_v38, 4  ;;  %v2250_v58 = vld [vmem:[#allocation2 + $0x50] sm:$0xf]  ;;  %v1917_v12 = vld [vmem:[#allocation2 + $0x68] sm:$0xf8] }
  0xb1   : > { %5120 = vmatmul.mubr.bf16.gmra.mrb[44].mxu0 %v1858_v31  ;;  %v1994_v45 = vrot.slane %v1992_v35, 3  ;;  %v1997_v46 = vrot.slane %v1995_v36, 4  ;;  %v2002_v47 = vrot.slane %v2000_v37, 3  ;;  %v2318_v51 = vrot.slane %v2251_v41, 4  ;;  %v7245_v14 = vld [vmem:[%s8743_s6 + $0x290] sm:$0xff]   ;;  %v7249_v36 = vld [vmem:[%s8743_s6 + $0x298] sm:$0xff]  }
  0xb2   : > { %5257 = vmatprep.mubr.bf16.mxu0 %v2313_v26  ;;  %v1956_v44 = vsel %vm770_vm4, %v1947_v27, %v1955_v34  ;;  %v2005_v50 = vrot.slane %v2003_v40, 4  ;;  %v1975_v52 = vshrl.u32 %v1912_v43, 16  ;;  %v1978_v53 = vshll.u32 %v1912_v43, 16  ;;  %v1919_v15 = vld [vmem:[#allocation2 + $0x78] sm:$0xf]  ;;  %v7246_v24 = vld [vmem:[%s8743_s6 + $0x350] sm:$0xff]  }
  0xb3   : > { %5161 = vmatmul.mubr.bf16.vlgmr.msra.gmra.mrb[48].mxu1 %v1956_v44  ;;  %v1998_v55 = vor.u32 %v1997_v46, %v1994_v45  ;;  %v1983_v56 = vshrl.u32 %v1914_v48, 16  ;;  %v1986_v57 = vshll.u32 %v1914_v48, 16  ;;  %v2314_v59 = vrot.slane %v2248_v54, 4  ;;  %v2253_v18 = vld [vmem:[#allocation2 + $0x68] sm:$0xf0]  ;;  %v7247_v35 = vld [vmem:[%s8743_s6 + $0x310] sm:$0xff]  }
  0xb4   : > { %6817 = vmatpush3.bf16.msra.mxu1 %v7237_v30  ;;  %v2310_v62 = vsel %vm1490_vm6, %v2308_v25, %v2309_v29  ;;  %v2006_v63 = vor.u32 %v2005_v50, %v2002_v47  ;;  %v1977_v0 = vrot.slane %v1975_v52, 3  ;;  %v1980_v1 = vrot.slane %v1978_v53, 4  ;;  %v2255_v22 = vld [vmem:[#allocation2 + $0x78] sm:$0xf]  ;;  %v1916_v28 = vld [vmem:[#allocation2 + $0x60] sm:$0xf8] }
  0xb5   : > { %6818 = vmatprep.subr.bf16.mxu1 %v7240_v39  ;;  %v2319_v2 = vsel %vm1490_vm6, %v2317_v42, %v2318_v51  ;;  %v1985_v3 = vrot.slane %v1983_v56, 3  ;;  %v1988_v4 = vrot.slane %v1986_v57, 4  ;;  %v2315_v5 = vrot.slane %v2250_v58, 4  ;;  %v7248_v29 = vld [vmem:[%s8743_s6 + $0x2d8] sm:$0xff]   ;;  %v1918_v32 = vld [vmem:[#allocation2 + $0x70] sm:$0xf] }
  0xb6   : > { %v2007_v8 = vsel %vm770_vm4, %v1998_v55, %v2006_v63  ;;  %v1981_v9 = vor.u32 %v1980_v1, %v1977_v0  ;;  %v2026_v16 = vshrl.u32 %v1917_v12, 16  ;;  %v2029_v17 = vshll.u32 %v1917_v12, 16  ;;  %v2252_v41 = vld [vmem:[#allocation2 + $0x60] sm:$0xf0]  ;;  %v2254_v42 = vld [vmem:[#allocation2 + $0x70] sm:$0xf] }
  0xb7   : > { %5168 = vmatprep.mubr.bf16.mxu1 %v2007_v8  ;;  %v1989_v11 = vor.u32 %v1988_v4, %v1985_v3  ;;  %v2034_v20 = vshrl.u32 %v1919_v15, 16  ;;  %v2037_v21 = vshll.u32 %v1919_v15, 16  ;;  %v2323_v23 = vrot.slane %v2253_v18, 4  ;;  %v7250_v47 = vld [vmem:[%s8743_s6 + $0x358] sm:$0xff]   ;;  %v7252_v48 = vld [vmem:[%s8743_s6 + $0x2e0] sm:$0xff]   ;;  %v7256_v3 = vld [vmem:[%s8743_s6 + $0x2e8] sm:$0xff]  }
  0xb8   : > { %6819 = vmatpush3.bf16.msra.mxu1 %v7241_v60  ;;  %v2028_v25 = vrot.slane %v2026_v16, 3  ;;  %v2031_v26 = vrot.slane %v2029_v17, 4  ;;  %v2324_v27 = vrot.slane %v2255_v22, 4  ;;  %v2009_v33 = vshrl.u32 %v1916_v28, 16  ;;  %v7251_v55 = vld [vmem:[%s8743_s6 + $0x318] sm:$0xff]   ;;  %v7253_v56 = vld [vmem:[%s8743_s6 + $0x2a0] sm:$0xff]  }
  0xb9   : > { %5258 = vmatmul.mubr.bf16.vlgmr.msra.gmra.mrb[48].mxu0 %v2310_v62  ;;  %v1990_v19 = vsel %vm770_vm4, %v1981_v9, %v1989_v11  ;;  %6820 = vmatprep.subr.bf16.mxu1 %v7244_v7  ;;  %v2036_v30 = vrot.slane %v2034_v20, 3  ;;  %v2039_v31 = vrot.slane %v2037_v21, 4  ;;  %v2012_v34 = vshll.u32 %v1916_v28, 16  ;;  %v7254_v58 = vld [vmem:[%s8743_s6 + $0x360] sm:$0xff]   ;;  %v1923_v60 = vld [vmem:[#allocation2 + $0x98] sm:$0xf] }
  0xba   : > { %6881 = vmatpush3.bf16.msra.mxu0 %v7239_v49  ;;  %5265 = vmatprep.mubr.bf16.mxu0 %v2319_v2  ;;  %v2316_v37 = vsel %vm1490_vm6, %v2314_v59, %v2315_v5  ;;  %v2032_v38 = vor.u32 %v2031_v26, %v2028_v25  ;;  %v2017_v39 = vshrl.u32 %v1918_v32, 16  ;;  %v2020_v40 = vshll.u32 %v1918_v32, 16  ;;  %v1921_v59 = vld [vmem:[#allocation2 + $0x88] sm:$0xf8]  ;;  %v2259_v2 = vld [vmem:[#allocation2 + $0x98] sm:$0xf] }
  0xbb   : > { %6882 = vmatprep.subr.bf16.mxu0 %v7242_v61  ;;  %5169 = vmatmul.mubr.bf16.gmra.mrb[52].mxu1 %v1990_v19  ;;  %v2040_v43 = vor.u32 %v2039_v31, %v2036_v30  ;;  %v2325_v44 = vsel %vm1490_vm6, %v2323_v23, %v2324_v27  ;;  %v2011_v45 = vrot.slane %v2009_v33, 3  ;;  %v2014_v46 = vrot.slane %v2012_v34, 4  ;;  %v2257_v61 = vld [vmem:[#allocation2 + $0x88] sm:$0xf0]  ;;  %v1920_v9 = vld [vmem:[#allocation2 + $0x80] sm:$0xf8] }
  0xbc   : > { %6821 = vmatpush3.bf16.msra.mxu1 %v7245_v14  ;;  %v2019_v49 = vrot.slane %v2017_v39, 3  ;;  %v2022_v50 = vrot.slane %v2020_v40, 4  ;;  %v2320_v51 = vrot.slane %v2252_v41, 4  ;;  %v2321_v52 = vrot.slane %v2254_v42, 4  ;;  %v1922_v15 = vld [vmem:[#allocation2 + $0x90] sm:$0xf] }
  0xbd   : > { %6822 = vmatprep.subr.bf16.mxu1 %v7248_v29  ;;  %v2041_v53 = vsel %vm770_vm4, %v2032_v38, %v2040_v43  ;;  %v2015_v54 = vor.u32 %v2014_v46, %v2011_v45  ;;  %v2060_v63 = vshrl.u32 %v1921_v59, 16  ;;  %v2063_v0 = vshll.u32 %v1921_v59, 16  ;;  %v2256_v21 = vld [vmem:[#allocation2 + $0x80] sm:$0xf0]  ;;  %v7257_v22 = vld [vmem:[%s8743_s6 + $0x2a8] sm:$0xff]   ;;  %v7260_v34 = vld [vmem:[%s8743_s6 + $0x2f0] sm:$0xff]  }
  0xbe   : > { %6883 = vmatpush3.bf16.msra.mxu0 %v7243_v10  ;;  %5176 = vmatprep.mubr.bf16.mxu1 %v2041_v53  ;;  %v2023_v57 = vor.u32 %v2022_v50, %v2019_v49  ;;  %v2068_v1 = vshrl.u32 %v1923_v60, 16  ;;  %v2322_v4 = vsel %vm1490_vm6, %v2320_v51, %v2321_v52  ;;  %v2071_v5 = vshll.u32 %v1923_v60, 16  ;;  %v7255_v10 = vld [vmem:[%s8743_s6 + $0x320] sm:$0xff]   ;;  %v2258_v26 = vld [vmem:[#allocation2 + $0x90] sm:$0xf]  ;;  %v7258_v28 = vld [vmem:[%s8743_s6 + $0x368] sm:$0xff]  }
  0xbf   : > { %6884 = vmatprep.subr.bf16.mxu0 %v7246_v24  ;;  %v2329_v7 = vrot.slane %v2257_v61, 4  ;;  %v2330_v8 = vrot.slane %v2259_v2, 4  ;;  %v2062_v11 = vrot.slane %v2060_v63, 3  ;;  %v2065_v12 = vrot.slane %v2063_v0, 4  ;;  %v7259_v33 = vld [vmem:[%s8743_s6 + $0x328] sm:$0xff]   ;;  %v7268_v53 = vld [vmem:[%s8743_s6 + $0x2f8] sm:$0xff]  }
  0xc0   : > { %6823 = vmatpush3.bf16.msra.mxu1 %v7249_v36  ;;  %v2024_v62 = vsel %vm770_vm4, %v2015_v54, %v2023_v57  ;;  %v2070_v14 = vrot.slane %v2068_v1, 3  ;;  %v2043_v16 = vshrl.u32 %v1920_v9, 16  ;;  %v2073_v17 = vrot.slane %v2071_v5, 4  ;;  %v7261_v36 = vld [vmem:[%s8743_s6 + $0x2b0] sm:$0xff]   ;;  %v1925_v41 = vld [vmem:[#allocation2 + $0xa8] sm:$0xf8] }
  0xc1   : > { %5266 = vmatmul.mubr.bf16.gmra.mrb[52].mxu0 %v2316_v37  ;;  %6824 = vmatprep.subr.bf16.mxu1 %v7252_v48  ;;  %v2331_v18 = vsel %vm1490_vm6, %v2329_v7, %v2330_v8  ;;  %v2046_v19 = vshll.u32 %v1920_v9, 16  ;;  %v2051_v20 = vshrl.u32 %v1922_v15, 16  ;;  %v2066_v23 = vor.u32 %v2065_v12, %v2062_v11  ;;  %v7262_v37 = vld [vmem:[%s8743_s6 + $0x370] sm:$0xff]   ;;  %v1927_v43 = vld [vmem:[#allocation2 + $0xb8] sm:$0xf] }
  0xc2   : > { %5273 = vmatprep.mubr.bf16.mxu0 %v2325_v44  ;;  %6885 = vmatpush3.bf16.msra.mxu0 %v7247_v35  ;;  %v2045_v24 = vrot.slane %v2043_v16, 3  ;;  %v2054_v25 = vshll.u32 %v1922_v15, 16  ;;  %v2326_v27 = vrot.slane %v2256_v21, 4  ;;  %v2074_v29 = vor.u32 %v2073_v17, %v2070_v14  ;;  %v2261_v46 = vld [vmem:[#allocation2 + $0xa8] sm:$0xf0]  ;;  %v7270_v11 = vld [vmem:[%s8743_s6 + $0x378] sm:$0xff]  }
  0xc3   : > { %6886 = vmatprep.subr.bf16.mxu0 %v7250_v47  ;;  %5177 = vmatmul.mubr.bf16.gmra.mrb[56].mxu1 %v2024_v62  ;;  %v2048_v30 = vrot.slane %v2046_v19, 4  ;;  %v2053_v31 = vrot.slane %v2051_v20, 3  ;;  %v2327_v32 = vrot.slane %v2258_v26, 4  ;;  %v2094_v44 = vshrl.u32 %v1925_v41, 16  ;;  %v7263_v47 = vld [vmem:[%s8743_s6 + $0x330] sm:$0xff]   ;;  %v7271_v16 = vld [vmem:[%s8743_s6 + $0x338] sm:$0xff]  }
  0xc4   : > { %6825 = vmatpush3.bf16.msra.mxu1 %v7253_v56  ;;  %v2056_v35 = vrot.slane %v2054_v25, 4  ;;  %v2075_v38 = vsel %vm770_vm4, %v2066_v23, %v2074_v29  ;;  %v2097_v45 = vshll.u32 %v1925_v41, 16  ;;  %v2102_v49 = vshrl.u32 %v1927_v43, 16  ;;  %v2263_v51 = vld [vmem:[#allocation2 + $0xb8] sm:$0xf]  ;;  %v7272_v29 = vld [vmem:[%s8743_s6 + $0x3c0] sm:$0xff]  }
  0xc5   : > { %6826 = vmatprep.subr.bf16.mxu1 %v7256_v3  ;;  %v2049_v39 = vor.u32 %v2048_v30, %v2045_v24  ;;  %5184 = vmatprep.mubr.bf16.mxu1 %v2075_v38  ;;  %v2328_v42 = vsel %vm1490_vm6, %v2326_v27, %v2327_v32  ;;  %v2105_v50 = vshll.u32 %v1927_v43, 16  ;;  %v2335_v52 = vrot.slane %v2261_v46, 4  ;;  %v1924_v57 = vld [vmem:[#allocation2 + $0xa0] sm:$0xf8]  ;;  %v1926_v61 = vld [vmem:[#allocation2 + $0xb0] sm:$0xf] }
  0xc6   : > { %6887 = vmatpush3.bf16.msra.mxu0 %v7251_v55  ;;  %v2057_v40 = vor.u32 %v2056_v35, %v2053_v31  ;;  %v2096_v54 = vrot.slane %v2094_v44, 3  ;;  %v2099_v55 = vrot.slane %v2097_v45, 4  ;;  %v2336_v56 = vrot.slane %v2263_v51, 4  ;;  %v2262_v5 = vld [vmem:[#allocation2 + $0xb0] sm:$0xf]  ;;  %v7274_v44 = vld [vmem:[%s8743_s6 + $0x440] sm:$0xff]  }
  0xc7   : > { %6888 = vmatprep.subr.bf16.mxu0 %v7254_v58  ;;  %v7269_v58 = vld [vmem:[%s8743_s6 + $0x2b8] sm:$0xff]   ;;  %v2104_v59 = vrot.slane %v2102_v49, 3  ;;  %v2107_v60 = vrot.slane %v2105_v50, 4  ;;  %v2077_v62 = vshrl.u32 %v1924_v57, 16  ;;  %v2080_v63 = vshll.u32 %v1924_v57, 16 }
  0xc8   : > { %6827 = vmatpush3.bf16.msra.mxu1 %v7257_v22  ;;  %v2058_v48 = vsel %vm770_vm4, %v2049_v39, %v2057_v40  ;;  %v2100_v0 = vor.u32 %v2099_v55, %v2096_v54  ;;  %v2337_v1 = vsel %vm1490_vm6, %v2335_v52, %v2336_v56  ;;  %v2085_v2 = vshrl.u32 %v1926_v61, 16  ;;  %v1929_v21 = vld [vmem:[#allocation2 + $0xc8] sm:$0xf8]  ;;  %v1931_v22 = vld [vmem:[#allocation2 + $0xd8] sm:$0xf] }
  0xc9   : > { %5274 = vmatmul.mubr.bf16.gmra.mrb[56].mxu0 %v2322_v4  ;;  %6828 = vmatprep.subr.bf16.mxu1 %v7260_v34  ;;  %v2088_v3 = vshll.u32 %v1926_v61, 16  ;;  %v2260_v4 = vld [vmem:[#allocation2 + $0xa0] sm:$0xf0]  ;;  %v2108_v7 = vor.u32 %v2107_v60, %v2104_v59  ;;  %v2079_v8 = vrot.slane %v2077_v62, 3  ;;  %v2082_v9 = vrot.slane %v2080_v63, 4 }
  0xca   : > { %5281 = vmatprep.mubr.bf16.mxu0 %v2331_v18  ;;  %6889 = vmatpush3.bf16.msra.mxu0 %v7255_v10  ;;  %v2332_v10 = vrot.slane %v2260_v4, 4  ;;  %v2087_v12 = vrot.slane %v2085_v2, 3  ;;  %v2333_v15 = vrot.slane %v2262_v5, 4  ;;  %v2265_v23 = vld [vmem:[#allocation2 + $0xc8] sm:$0xf0]  ;;  %v2128_v25 = vshrl.u32 %v1929_v21, 16 }
  0xcb   : > { %6890 = vmatprep.subr.bf16.mxu0 %v7258_v28  ;;  %5185 = vmatmul.mubr.bf16.gmra.mrb[60].mxu1 %v2058_v48  ;;  %v2090_v14 = vrot.slane %v2088_v3, 4  ;;  %v2109_v17 = vsel %vm770_vm4, %v2100_v0, %v2108_v7  ;;  %v2083_v18 = vor.u32 %v2082_v9, %v2079_v8  ;;  %v2131_v26 = vshll.u32 %v1929_v21, 16  ;;  %v2267_v28 = vld [vmem:[#allocation2 + $0xd8] sm:$0xf]  ;;  %v2264_v43 = vld [vmem:[#allocation2 + $0xc0] sm:$0xf0] }
  0xcc   : > { %6829 = vmatpush3.bf16.msra.mxu1 %v7261_v36  ;;  %5192 = vmatprep.mubr.bf16.mxu1 %v2109_v17  ;;  %v2334_v20 = vsel %vm1490_vm6, %v2332_v10, %v2333_v15  ;;  %v2136_v27 = vshrl.u32 %v1931_v22, 16  ;;  %v2139_v30 = vshll.u32 %v1931_v22, 16  ;;  %v2341_v31 = vrot.slane %v2265_v23, 4  ;;  %v2266_v48 = vld [vmem:[#allocation2 + $0xd0] sm:$0xf] }
  0xcd   : > { %6830 = vmatprep.subr.bf16.mxu1 %v7268_v53  ;;  %v2091_v19 = vor.u32 %v2090_v14, %v2087_v12  ;;  %v2342_v32 = vrot.slane %v2267_v28, 4  ;;  %v2130_v34 = vrot.slane %v2128_v25, 3  ;;  %v2133_v35 = vrot.slane %v2131_v26, 4  ;;  %v1933_v59 = vld [vmem:[#allocation2 + $0xe8] sm:$0xf8] }
  0xce   : > { %6891 = vmatpush3.bf16.msra.mxu0 %v7259_v33  ;;  %v1928_v33 = vld [vmem:[#allocation2 + $0xc0] sm:$0xf8]  ;;  %v2138_v36 = vrot.slane %v2136_v27, 3  ;;  %v2141_v39 = vrot.slane %v2139_v30, 4  ;;  %v2338_v49 = vrot.slane %v2264_v43, 4  ;;  %v2339_v53 = vrot.slane %v2266_v48, 4 }
  0xcf   : > { %6892 = vmatprep.subr.bf16.mxu0 %v7262_v37  ;;  %v2092_v24 = vsel %vm770_vm4, %v2083_v18, %v2091_v19  ;;  %v1930_v37 = vld [vmem:[#allocation2 + $0xd0] sm:$0xf]  ;;  %v2111_v38 = vshrl.u32 %v1928_v33, 16  ;;  %v2343_v40 = vsel %vm1490_vm6, %v2341_v31, %v2342_v32  ;;  %v2114_v41 = vshll.u32 %v1928_v33, 16  ;;  %v1935_v60 = vld [vmem:[#allocation2 + $0xf8] sm:$0xf] }
  0xd0   : > { %6831 = vmatpush3.bf16.msra.mxu1 %v7269_v58  ;;  %v2134_v45 = vor.u32 %v2133_v35, %v2130_v34  ;;  %v2142_v50 = vor.u32 %v2141_v39, %v2138_v36  ;;  %v2340_v57 = vsel %vm1490_vm6, %v2338_v49, %v2339_v53  ;;  %v2162_v61 = vshrl.u32 %v1933_v59, 16  ;;  %v2269_v63 = vld [vmem:[#allocation2 + $0xe8] sm:$0xf0]  ;;  %v2271_v3 = vld [vmem:[#allocation2 + $0xf8] sm:$0xf] }
  0xd1   : > { %5282 = vmatmul.mubr.bf16.gmra.mrb[60].mxu0 %v2328_v42  ;;  %6944 = vmatprep.subr.bf16.mxu1 %v7272_v29  ;;  %v2119_v42 = vshrl.u32 %v1930_v37, 16  ;;  %v2113_v46 = vrot.slane %v2111_v38, 3  ;;  %v2116_v51 = vrot.slane %v2114_v41, 4  ;;  %v2165_v62 = vshll.u32 %v1933_v59, 16  ;;  %v1932_v9 = vld [vmem:[#allocation2 + $0xe0] sm:$0xf8] }
  0xd2   : > { %5289 = vmatprep.mubr.bf16.mxu0 %v2337_v1  ;;  %6893 = vmatpush3.bf16.msra.mxu0 %v7263_v47  ;;  %v2122_v47 = vshll.u32 %v1930_v37, 16  ;;  %v2143_v55 = vsel %vm770_vm4, %v2134_v45, %v2142_v50  ;;  %v2170_v1 = vshrl.u32 %v1935_v60, 16  ;;  %v2173_v2 = vshll.u32 %v1935_v60, 16  ;;  %v1934_v12 = vld [vmem:[#allocation2 + $0xf0] sm:$0xf] }
  0xd3   : > { %6894 = vmatprep.subr.bf16.mxu0 %v7270_v11  ;;  %5193 = vmatmul.mubr.bf16.gmra.mrb[64].mxu1 %v2092_v24  ;;  %v2121_v52 = vrot.slane %v2119_v42, 3  ;;  %v2117_v56 = vor.u32 %v2116_v51, %v2113_v46  ;;  %v2347_v4 = vrot.slane %v2269_v63, 4  ;;  %v2164_v5 = vrot.slane %v2162_v61, 3  ;;  %v2270_v21 = vld [vmem:[#allocation2 + $0xf0] sm:$0xf] }
  0xd4   : > { %v2124_v54 = vrot.slane %v2122_v47, 4  ;;  %5200 = vmatprep.mubr.bf16.mxu1 %v2143_v55  ;;  %v2167_v7 = vrot.slane %v2165_v62, 4  ;;  %v2348_v8 = vrot.slane %v2271_v3, 4  ;;  %v2172_v10 = vrot.slane %v2170_v1, 3  ;;  %v760_v33 = vld [vmem:[#allocation2 + $0x108] sm:$0x8] }
  0xd5   : > { %v2175_v11 = vrot.slane %v2173_v2, 4  ;;  %v2145_v14 = vshrl.u32 %v1932_v9, 16  ;;  %v2148_v15 = vshll.u32 %v1932_v9, 16  ;;  %v2153_v18 = vshrl.u32 %v1934_v12, 16  ;;  %v7264_v36 = vld [vmem:[%s7474_s21 + $0x38] ss:$0 sps:$4 sm:$0xff]  }
  0xd6   : > { %6895 = vmatpush3.bf16.msra.mxu0 %v7271_v16  ;;  %v2125_v58 = vor.u32 %v2124_v54, %v2121_v52  ;;  %v2168_v16 = vor.u32 %v2167_v7, %v2164_v5  ;;  %v2349_v17 = vsel %vm1490_vm6, %v2347_v4, %v2348_v8  ;;  %v2156_v19 = vshll.u32 %v1934_v12, 16  ;;  %v7265_v37 = vld [vmem:[%s7474_s21 + $0x3c] ss:$0 sps:$4 sm:$0xff]   ;;  %v757_v38 = vld [vmem:[#allocation2 + $0x100] sm:$0x8]  ;;  %s8181_s21 = sshll.u32 %s626_s25, 2  ;;  %s704_s25 = scalar_lea.vmem %s8746_s9, %s6212_s17 }
  0xd7   : > { %7008 = vmatprep.subr.bf16.mxu0 %v7274_v44  ;;  %v2176_v22 = vor.u32 %v2175_v11, %v2172_v10  ;;  %v2147_v23 = vrot.slane %v2145_v14, 3  ;;  %v2150_v24 = vrot.slane %v2148_v15, 4  ;;  %v2155_v26 = vrot.slane %v2153_v18, 3  ;;  %1023 = vst [vmem:[#allocation2 + $0x108] sm:$0xf0] %v7264_v36  ;;  %s673_s22 = scalar_lea.vmem %s8742_s5, %s8181_s21 }
  0xd8   : > { %v2126_v0 = vsel %vm770_vm4, %v2117_v56, %v2125_v58  ;;  %v2158_v27 = vrot.slane %v2156_v19, 4  ;;  %v2345_v28 = vrot.slane %v2270_v21, 4  ;;  %v761_v35 = vsel %vm7484_vm2, 0, %v760_v33  ;;  %1024 = vst [vmem:[#allocation2 + $0x118] sm:$0xf] %v7265_v37 }
  0xd9   : > { %5290 = vmatmul.mubr.bf16.gmra.mrb[64].mxu0 %v2334_v20  ;;  %v2268_v20 = vld [vmem:[#allocation2 + $0xe0] sm:$0xf0]  ;;  %v2177_v29 = vsel %vm770_vm4, %v2168_v16, %v2176_v22  ;;  %v2151_v30 = vor.u32 %v2150_v24, %v2147_v23  ;;  %762 = vst [vmem:[#allocation2 + $0x108] sm:$0x8] %v761_v35  ;;  %v758_v39 = vsel %vm7484_vm2, 0, %v757_v38 }
  0xda   : > { %5297 = vmatprep.mubr.bf16.mxu0 %v2343_v40  ;;  %v2344_v25 = vrot.slane %v2268_v20, 4  ;;  %v2159_v31 = vor.u32 %v2158_v27, %v2155_v26  ;;  %v7266_v40 = vld [vmem:[%s7508_s19 + $0x38] ss:$0 sps:$4 sm:$0xff]   ;;  %v7267_v41 = vld [vmem:[%s7508_s19 + $0x3c] ss:$0 sps:$4 sm:$0xff]   ;;  %s8209_s19 = scalar_lea.vmem %s8739_s2, %s8181_s21 }
  0xdb   : > { %5201 = vmatmul.mubr.bf16.gmra.mrb[68].mxu1 %v2126_v0  ;;  %759 = vst [vmem:[#allocation2 + $0x100] sm:$0x8] %v758_v39  ;;  %927 = vst [vmem:[#allocation2 + $0x100] sm:$0xf0] %v7266_v40  ;;  %v2389_v42 = vld [vmem:[#allocation2 + $0x28] sm:$0xf0] }
  0xdc   : > { %5208 = vmatprep.mubr.bf16.mxu1 %v2177_v29  ;;  %v2346_v32 = vsel %vm1490_vm6, %v2344_v25, %v2345_v28  ;;  %v2160_v34 = vsel %vm770_vm4, %v2151_v30, %v2159_v31  ;;  %928 = vst [vmem:[#allocation2 + $0x110] sm:$0xf] %v7267_v41  ;;  %v2391_v43 = vld [vmem:[#allocation2 + $0x38] sm:$0x1f]  ;;  %v2438_v44 = vshrl.u32 %v2389_v42, 16  ;;  %v2441_v45 = vshll.u32 %v2389_v42, 16 }
  0xdd   : > { %v2726_v46 = vld [vmem:[#allocation2 + $0x48] sm:$0xf8]  ;;  %v2446_v47 = vshrl.u32 %v2391_v43, 16  ;;  %v2449_v48 = vshll.u32 %v2391_v43, 16  ;;  %v2728_v49 = vld [vmem:[#allocation2 + $0x58] sm:$0xf] }
  0xde   : > { %v2775_v50 = vshrl.u32 %v2726_v46, 16  ;;  %v2778_v51 = vshll.u32 %v2726_v46, 16  ;;  %v2440_v52 = vrot.slane %v2438_v44, 4  ;;  %v2443_v53 = vrot.slane %v2441_v45, 5  ;;  %v2273_v58 = vld [vmem:[#allocation2 + $0x108] sm:$0xf0] }
  0xdf   : > { %v2783_v54 = vshrl.u32 %v2728_v49, 16  ;;  %v2786_v55 = vshll.u32 %v2728_v49, 16  ;;  %v2275_v63 = vld [vmem:[#allocation2 + $0x118] sm:$0xf]  ;;  %v2353_v0 = vrot.slane %v2273_v58, 4  ;;  %v2448_v29 = vrot.slane %v2446_v47, 4 }
  0xe0   : > { %v1937_v56 = vld [vmem:[#allocation2 + $0x108] sm:$0xf8]  ;;  %v2354_v1 = vrot.slane %v2275_v63, 4  ;;  %v2444_v4 = vor.u32 %v2443_v53, %v2440_v52  ;;  %v2388_v21 = vld [vmem:[#allocation2 + $0x20] sm:$0xf0]  ;;  %v2451_v30 = vrot.slane %v2449_v48, 5 }
  0xe1   : > { %5298 = vmatmul.mubr.bf16.gmra.mrb[68].mxu0 %v2340_v57  ;;  %v1939_v57 = vld [vmem:[#allocation2 + $0x118] sm:$0xf]  ;;  %v2196_v59 = vshrl.u32 %v1937_v56, 16  ;;  %v2199_v60 = vshll.u32 %v1937_v56, 16  ;;  %v2390_v26 = vld [vmem:[#allocation2 + $0x30] sm:$0x1f] }
  0xe2   : > { %5305 = vmatprep.mubr.bf16.mxu0 %v2349_v17  ;;  %v2204_v61 = vshrl.u32 %v1939_v57, 16  ;;  %v2207_v62 = vshll.u32 %v1939_v57, 16  ;;  %v1936_v2 = vld [vmem:[#allocation2 + $0x100] sm:$0xf8]  ;;  %v2355_v11 = vsel %vm1490_vm6, %v2353_v0, %v2354_v1  ;;  %v2780_v35 = vrot.slane %v2778_v51, 4 }
  0xe3   : > { %5209 = vmatmul.mubr.bf16.gmra.mrb[72].mxu1 %v2160_v34  ;;  %v1938_v3 = vld [vmem:[#allocation2 + $0x110] sm:$0xf]  ;;  %v2198_v5 = vrot.slane %v2196_v59, 3  ;;  %v2201_v7 = vrot.slane %v2199_v60, 4  ;;  %v2272_v10 = vld [vmem:[#allocation2 + $0x100] sm:$0xf0]  ;;  %v2452_v38 = vor.u32 %v2451_v30, %v2448_v29 }
  0xe4   : > { %v2206_v8 = vrot.slane %v2204_v61, 3  ;;  %v2209_v9 = vrot.slane %v2207_v62, 4  ;;  %v2179_v12 = vshrl.u32 %v1936_v2, 16  ;;  %v2182_v14 = vshll.u32 %v1936_v2, 16  ;;  %v2274_v16 = vld [vmem:[#allocation2 + $0x110] sm:$0xf] }
  0xe5   : > { %v2187_v15 = vshrl.u32 %v1938_v3, 16  ;;  %v2202_v17 = vor.u32 %v2201_v7, %v2198_v5  ;;  %v2190_v19 = vshll.u32 %v1938_v3, 16  ;;  %v2350_v20 = vrot.slane %v2272_v10, 4  ;;  %v2725_v31 = vld [vmem:[#allocation2 + $0x40] sm:$0xf8]  ;;  %v7277_v30 = vld [vmem:[%s8743_s6 + $0x388] sm:$0xff]  }
  0xe6   : > { %v2210_v18 = vor.u32 %v2209_v9, %v2206_v8  ;;  %v2181_v22 = vrot.slane %v2179_v12, 3  ;;  %v2184_v23 = vrot.slane %v2182_v14, 4  ;;  %v2351_v25 = vrot.slane %v2274_v16, 4  ;;  %v2727_v36 = vld [vmem:[#allocation2 + $0x50] sm:$0xf]  ;;  %v7273_v3 = vld [vmem:[%s8743_s6 + $0x380] sm:$0xff]  }
  0xe7   : > { %v2189_v24 = vrot.slane %v2187_v15, 3  ;;  %v2192_v28 = vrot.slane %v2190_v19, 4  ;;  %v2777_v34 = vrot.slane %v2775_v50, 3  ;;  %v2785_v39 = vrot.slane %v2783_v54, 3  ;;  %v2393_v53 = vld [vmem:[#allocation2 + $0x48] sm:$0xf0] }
  0xe8   : > { %v2211_v27 = vsel %vm770_vm4, %v2202_v17, %v2210_v18  ;;  %v2352_v33 = vsel %vm1490_vm6, %v2350_v20, %v2351_v25  ;;  %v2788_v40 = vrot.slane %v2786_v55, 4  ;;  %v2421_v42 = vshrl.u32 %v2388_v21, 16  ;;  %v2395_v58 = vld [vmem:[#allocation2 + $0x58] sm:$0x1f]  ;;  %v2730_v63 = vld [vmem:[#allocation2 + $0x68] sm:$0xf8] }
  0xe9   : > { %5306 = vmatmul.mubr.bf16.gmra.mrb[72].mxu0 %v2346_v32  ;;  %5216 = vmatprep.mubr.bf16.mxu1 %v2211_v27  ;;  %v2185_v32 = vor.u32 %v2184_v23, %v2181_v22  ;;  %v2193_v37 = vor.u32 %v2192_v28, %v2189_v24  ;;  %v2781_v41 = vor.u32 %v2780_v35, %v2777_v34  ;;  %v2424_v43 = vshll.u32 %v2388_v21, 16  ;;  %v7275_v7 = vld [vmem:[%s8743_s6 + $0x400] sm:$0xff]   ;;  %v2394_v18 = vld [vmem:[#allocation2 + $0x50] sm:$0x1f]  ;;  %v7276_v24 = vld [vmem:[%s8743_s6 + $0x3c8] sm:$0xff]  }
  0xea   : > { %5313 = vmatprep.mubr.bf16.mxu0 %v2355_v11  ;;  %v2429_v44 = vshrl.u32 %v2390_v26, 16  ;;  %v2453_v46 = vsel %vm1603_vm8, %v2444_v4, %v2452_v38  ;;  %v2789_v47 = vor.u32 %v2788_v40, %v2785_v39  ;;  %v2432_v48 = vshll.u32 %v2390_v26, 16  ;;  %v2732_v11 = vld [vmem:[#allocation2 + $0x78] sm:$0xf]  ;;  %v2392_v17 = vld [vmem:[#allocation2 + $0x40] sm:$0xf0] }
  0xeb   : > { %v2194_v45 = vsel %vm770_vm4, %v2185_v32, %v2193_v37  ;;  %v2423_v49 = vrot.slane %v2421_v42, 4  ;;  %v2426_v50 = vrot.slane %v2424_v43, 5  ;;  %v2758_v52 = vshrl.u32 %v2725_v31, 16  ;;  %v2729_v23 = vld [vmem:[#allocation2 + $0x60] sm:$0xf8] }
  0xec   : > { %5217 = vmatmul.mubr.bf16.gmra.mrb[76].mxu1 %v2194_v45  ;;  %v2431_v51 = vrot.slane %v2429_v44, 4  ;;  %v2790_v54 = vsel %vm770_vm4, %v2781_v41, %v2789_v47  ;;  %v2434_v55 = vrot.slane %v2432_v48, 5  ;;  %v2761_v56 = vshll.u32 %v2725_v31, 16  ;;  %v2731_v29 = vld [vmem:[#allocation2 + $0x70] sm:$0xf]  ;;  %v7278_v31 = vld [vmem:[%s8743_s6 + $0x448] sm:$0xff]  }
  0xed   : > { %5354 = vmatprep.mubr.bf16.mxu1 %v2453_v46  ;;  %v2766_v57 = vshrl.u32 %v2727_v36, 16  ;;  %v2427_v59 = vor.u32 %v2426_v50, %v2423_v49  ;;  %v2760_v60 = vrot.slane %v2758_v52, 3  ;;  %v2769_v61 = vshll.u32 %v2727_v36, 16  ;;  %v7279_v36 = vld [vmem:[%s8743_s6 + $0x408] sm:$0xff]   ;;  %v7280_v41 = vld [vmem:[%s8743_s6 + $0x3d0] sm:$0xff]  }
  0xee   : > { %v2472_v62 = vshrl.u32 %v2393_v53, 16  ;;  %v2435_v0 = vor.u32 %v2434_v55, %v2431_v51  ;;  %v2763_v1 = vrot.slane %v2761_v56, 4  ;;  %v2475_v4 = vshll.u32 %v2393_v53, 16  ;;  %v7282_v50 = vld [vmem:[%s8743_s6 + $0x450] sm:$0xff]   ;;  %s1040_s26 = scalar_select %p691_p11, 1, 0 }
  0xef   : > { %v2768_v2 = vrot.slane %v2766_v57, 3  ;;  %v2771_v5 = vrot.slane %v2769_v61, 4  ;;  %v2480_v9 = vshrl.u32 %v2395_v58, 16  ;;  %v2483_v10 = vshll.u32 %v2395_v58, 16  ;;  %v7281_v55 = vld [vmem:[%s8743_s6 + $0x390] sm:$0xff]  }
  0xf0   : > { %v2474_v8 = vrot.slane %v2472_v62, 4  ;;  %v2436_v12 = vsel %vm1603_vm8, %v2427_v59, %v2435_v0  ;;  %v2764_v14 = vor.u32 %v2763_v1, %v2760_v60  ;;  %v2477_v15 = vrot.slane %v2475_v4, 5  ;;  %v2397_v59 = vld [vmem:[#allocation2 + $0x68] sm:$0xf0]  ;;  %v2399_v60 = vld [vmem:[#allocation2 + $0x78] sm:$0x1f] }
  0xf1   : > { %5314 = vmatmul.mubr.bf16.gmra.mrb[76].mxu0 %v2352_v33  ;;  %v2809_v16 = vshrl.u32 %v2730_v63, 16  ;;  %v2772_v19 = vor.u32 %v2771_v5, %v2768_v2  ;;  %v2482_v20 = vrot.slane %v2480_v9, 4  ;;  %v2485_v21 = vrot.slane %v2483_v10, 5  ;;  %v7283_v61 = vld [vmem:[%s8743_s6 + $0x410] sm:$0xff]   ;;  %v2734_v2 = vld [vmem:[#allocation2 + $0x88] sm:$0xf8] }
  0xf2   : > { %5451 = vmatprep.mubr.bf16.mxu0 %v2790_v54  ;;  %v2812_v22 = vshll.u32 %v2730_v63, 16  ;;  %v2478_v25 = vor.u32 %v2477_v15, %v2474_v8  ;;  %v2817_v27 = vshrl.u32 %v2732_v11, 16  ;;  %v2820_v28 = vshll.u32 %v2732_v11, 16  ;;  %v2736_v9 = vld [vmem:[#allocation2 + $0x98] sm:$0xf] }
  0xf3   : > { %v2811_v26 = vrot.slane %v2809_v16, 3  ;;  %v2773_v32 = vsel %vm770_vm4, %v2764_v14, %v2772_v19  ;;  %v2486_v33 = vor.u32 %v2485_v21, %v2482_v20  ;;  %v2455_v35 = vshrl.u32 %v2392_v17, 16  ;;  %v2396_v15 = vld [vmem:[#allocation2 + $0x60] sm:$0xf0]  ;;  %v2398_v16 = vld [vmem:[#allocation2 + $0x70] sm:$0x1f] }
  0xf4   : > { %5355 = vmatmul.mubr.bf16.vlgmr.msra.gmra.mrb[80].mxu1 %v2436_v12  ;;  %v2814_v34 = vrot.slane %v2812_v22, 4  ;;  %v2819_v37 = vrot.slane %v2817_v27, 3  ;;  %v2822_v38 = vrot.slane %v2820_v28, 4  ;;  %v2458_v39 = vshll.u32 %v2392_v17, 16  ;;  %v7285_v17 = vld [vmem:[%s8743_s6 + $0x398] sm:$0xff]  }
  0xf5   : > { %6945 = vmatpush3.bf16.msra.mxu1 %v7273_v3  ;;  %v2463_v40 = vshrl.u32 %v2394_v18, 16  ;;  %v2487_v42 = vsel %vm1603_vm8, %v2478_v25, %v2486_v33  ;;  %v2457_v44 = vrot.slane %v2455_v35, 4  ;;  %v2466_v45 = vshll.u32 %v2394_v18, 16  ;;  %v7284_v3 = vld [vmem:[%s8743_s6 + $0x3d8] sm:$0xff]   ;;  %v7288_v25 = vld [vmem:[%s8743_s6 + $0x3e0] sm:$0xff]  }
  0xf6   : > { %v2815_v43 = vor.u32 %v2814_v34, %v2811_v26  ;;  %6946 = vmatprep.subr.bf16.mxu1 %v7276_v24  ;;  %5362 = vmatprep.mubr.bf16.mxu1 %v2487_v42  ;;  %v2823_v46 = vor.u32 %v2822_v38, %v2819_v37  ;;  %v2460_v47 = vrot.slane %v2458_v39, 5  ;;  %v2792_v49 = vshrl.u32 %v2729_v23, 16  ;;  %v7286_v18 = vld [vmem:[%s8743_s6 + $0x458] sm:$0xff]  }
  0xf7   : > { %v2465_v48 = vrot.slane %v2463_v40, 4  ;;  %v2468_v51 = vrot.slane %v2466_v45, 5  ;;  %v2795_v52 = vshll.u32 %v2729_v23, 16  ;;  %v2800_v53 = vshrl.u32 %v2731_v29, 16  ;;  %v2733_v23 = vld [vmem:[#allocation2 + $0x80] sm:$0xf8] }
  0xf8   : > { %v2803_v54 = vshll.u32 %v2731_v29, 16  ;;  %v2824_v56 = vsel %vm770_vm4, %v2815_v43, %v2823_v46  ;;  %v2461_v57 = vor.u32 %v2460_v47, %v2457_v44  ;;  %v2794_v58 = vrot.slane %v2792_v49, 3  ;;  %v7287_v24 = vld [vmem:[%s8743_s6 + $0x418] sm:$0xff]   ;;  %v7289_v40 = vld [vmem:[%s8743_s6 + $0x3a0] sm:$0xff]   ;;  %v7292_v46 = vld [vmem:[%s8743_s6 + $0x3e8] sm:$0xff]  }
  0xf9   : > { %5452 = vmatmul.mubr.bf16.vlgmr.msra.gmra.mrb[80].mxu0 %v2773_v32  ;;  %6947 = vmatpush3.bf16.msra.mxu1 %v7277_v30  ;;  %v2469_v62 = vor.u32 %v2468_v51, %v2465_v48  ;;  %v2797_v63 = vrot.slane %v2795_v52, 4  ;;  %v2802_v0 = vrot.slane %v2800_v53, 3  ;;  %v2506_v4 = vshrl.u32 %v2397_v59, 16  ;;  %v2735_v30 = vld [vmem:[#allocation2 + $0x90] sm:$0xf]  ;;  %v7291_v45 = vld [vmem:[%s8743_s6 + $0x420] sm:$0xff]  }
  0xfa   : > { %7009 = vmatpush3.bf16.msra.mxu0 %v7275_v7  ;;  %5459 = vmatprep.mubr.bf16.mxu0 %v2824_v56  ;;  %v2805_v1 = vrot.slane %v2803_v54, 4  ;;  %v2509_v5 = vshll.u32 %v2397_v59, 16  ;;  %v2514_v7 = vshrl.u32 %v2399_v60, 16  ;;  %v2517_v8 = vshll.u32 %v2399_v60, 16  ;;  %v7294_v51 = vld [vmem:[%s8743_s6 + $0x468] sm:$0xff]  }
  0xfb   : > { %7010 = vmatprep.subr.bf16.mxu0 %v7278_v31  ;;  %6948 = vmatprep.subr.bf16.mxu1 %v7280_v41  ;;  %v2470_v10 = vsel %vm1603_vm8, %v2461_v57, %v2469_v62  ;;  %v2798_v11 = vor.u32 %v2797_v63, %v2794_v58  ;;  %v2843_v14 = vshrl.u32 %v2734_v2, 16  ;;  %v2508_v19 = vrot.slane %v2506_v4, 4  ;;  %v7290_v31 = vld [vmem:[%s8743_s6 + $0x460] sm:$0xff]   ;;  %v7296_v4 = vld [vmem:[%s8743_s6 + $0x3f0] sm:$0xff]  }
  0xfc   : > { %v2806_v12 = vor.u32 %v2805_v1, %v2802_v0  ;;  %5363 = vmatmul.mubr.bf16.gmra.mrb[84].mxu1 %v2470_v10  ;;  %v2511_v20 = vrot.slane %v2509_v5, 5  ;;  %v2516_v21 = vrot.slane %v2514_v7, 4  ;;  %v2519_v22 = vrot.slane %v2517_v8, 5  ;;  %v2738_v10 = vld [vmem:[#allocation2 + $0xa8] sm:$0xf8] }
  0xfd   : > { %v2845_v27 = vrot.slane %v2843_v14, 3  ;;  %v2846_v28 = vshll.u32 %v2734_v2, 16  ;;  %v2851_v29 = vshrl.u32 %v2736_v9, 16  ;;  %6949 = vmatpush3.bf16.msra.mxu1 %v7281_v55  ;;  %v2854_v34 = vshll.u32 %v2736_v9, 16  ;;  %v2401_v2 = vld [vmem:[#allocation2 + $0x88] sm:$0xf0] }
  0xfe   : > { %7011 = vmatpush3.bf16.msra.mxu0 %v7279_v36  ;;  %v2807_v26 = vsel %vm770_vm4, %v2798_v11, %v2806_v12  ;;  %v2512_v32 = vor.u32 %v2511_v20, %v2508_v19  ;;  %v2520_v33 = vor.u32 %v2519_v22, %v2516_v21  ;;  %v2489_v35 = vshrl.u32 %v2396_v15, 16  ;;  %6950 = vmatprep.subr.bf16.mxu1 %v7284_v3  ;;  %v2403_v3 = vld [vmem:[#allocation2 + $0x98] sm:$0x1f]  ;;  %v7295_v11 = vld [vmem:[%s8743_s6 + $0x428] sm:$0xff]  }
  0xff   : > { %7012 = vmatprep.subr.bf16.mxu0 %v7282_v50  ;;  %v2848_v36 = vrot.slane %v2846_v28, 4  ;;  %v2853_v37 = vrot.slane %v2851_v29, 3  ;;  %v2492_v38 = vshll.u32 %v2396_v15, 16  ;;  %v2497_v39 = vshrl.u32 %v2398_v16, 16 }
 0x100   : > { %v2521_v41 = vsel %vm1603_vm8, %v2512_v32, %v2520_v33  ;;  %v2856_v42 = vrot.slane %v2854_v34, 4  ;;  %v2491_v43 = vrot.slane %v2489_v35, 4  ;;  %v2500_v44 = vshll.u32 %v2398_v16, 16  ;;  %v2740_v16 = vld [vmem:[#allocation2 + $0xb8] sm:$0xf] }
 0x101   : > { %5460 = vmatmul.mubr.bf16.gmra.mrb[84].mxu0 %v2807_v26  ;;  %5370 = vmatprep.mubr.bf16.mxu1 %v2521_v41  ;;  %v2849_v47 = vor.u32 %v2848_v36, %v2845_v27  ;;  %v2494_v48 = vrot.slane %v2492_v38, 5  ;;  %v2499_v49 = vrot.slane %v2497_v39, 4  ;;  %v2826_v50 = vshrl.u32 %v2733_v23, 16  ;;  %v2739_v35 = vld [vmem:[#allocation2 + $0xb0] sm:$0xf] }
 0x102   : > { %7013 = vmatpush3.bf16.msra.mxu0 %v7283_v61  ;;  %6951 = vmatpush3.bf16.msra.mxu1 %v7285_v17  ;;  %v2857_v53 = vor.u32 %v2856_v42, %v2853_v37  ;;  %v2502_v54 = vrot.slane %v2500_v44, 5  ;;  %v2829_v55 = vshll.u32 %v2733_v23, 16  ;;  %v2834_v56 = vshrl.u32 %v2735_v30, 16  ;;  %v7293_v61 = vld [vmem:[%s8743_s6 + $0x3a8] sm:$0xff]   ;;  %v2402_v23 = vld [vmem:[#allocation2 + $0x90] sm:$0x1f] }
 0x103   : > { %7014 = vmatprep.subr.bf16.mxu0 %v7286_v18  ;;  %6952 = vmatprep.subr.bf16.mxu1 %v7288_v25  ;;  %v2495_v58 = vor.u32 %v2494_v48, %v2491_v43  ;;  %v2828_v59 = vrot.slane %v2826_v50, 3  ;;  %v2837_v60 = vshll.u32 %v2735_v30, 16  ;;  %v2540_v7 = vshrl.u32 %v2401_v2, 16  ;;  %v2400_v18 = vld [vmem:[#allocation2 + $0x80] sm:$0xf0]  ;;  %v7298_v25 = vld [vmem:[%s8743_s6 + $0x470] sm:$0xff]  }
 0x104   : > { %v2858_v62 = vsel %vm770_vm4, %v2849_v47, %v2857_v53  ;;  %v2503_v63 = vor.u32 %v2502_v54, %v2499_v49  ;;  %v2831_v0 = vrot.slane %v2829_v55, 4  ;;  %v2836_v1 = vrot.slane %v2834_v56, 3  ;;  %v2737_v30 = vld [vmem:[#allocation2 + $0xa0] sm:$0xf8]  ;;  %v7299_v36 = vld [vmem:[%s8743_s6 + $0x430] sm:$0xff]  }
 0x105   : > { %v8104_v57 = vpop.f32.mrb[0].mxu1  ;;  %5467 = vmatprep.mubr.bf16.mxu0 %v2858_v62  ;;  %v2839_v5 = vrot.slane %v2837_v60, 4  ;;  %v2543_v8 = vshll.u32 %v2401_v2, 16  ;;  %v2548_v9 = vshrl.u32 %v2403_v3, 16  ;;  %v2551_v15 = vshll.u32 %v2403_v3, 16 }
 0x106   : > { %7015 = vmatpush3.bf16.msra.mxu0 %v7287_v24  ;;  %6953 = vmatpush3.bf16.msra.mxu1 %v7289_v40  ;;  %v2504_v12 = vsel %vm1603_vm8, %v2495_v58, %v2503_v63  ;;  %v2832_v14 = vor.u32 %v2831_v0, %v2828_v59  ;;  %v2877_v17 = vshrl.u32 %v2738_v10, 16  ;;  %v2542_v20 = vrot.slane %v2540_v7, 4  ;;  %v7297_v24 = vld [vmem:[%s8743_s6 + $0x3b0] sm:$0xff]   ;;  %v8128_v55 = vpop.f32.mrb[1].mxu1  ;;  %v2407_v7 = vld [vmem:[#allocation2 + $0xb8] sm:$0x1f] }
 0x107   : > { %7016 = vmatprep.subr.bf16.mxu0 %v7290_v31  ;;  %6954 = vmatprep.subr.bf16.mxu1 %v7292_v46  ;;  %v2840_v19 = vor.u32 %v2839_v5, %v2836_v1  ;;  %v2545_v21 = vrot.slane %v2543_v8, 5  ;;  %v2550_v22 = vrot.slane %v2548_v9, 4  ;;  %v2553_v26 = vrot.slane %v2551_v15, 5  ;;  %v2405_v1 = vld [vmem:[#allocation2 + $0xa8] sm:$0xf0]  ;;  %v8136_v3 = vpop.f32.mrb[2].mxu1 }
 0x108   : > { %v8102_v52 = vpop.f32.mrb[0].mxu0  ;;  %5371 = vmatmul.mubr.bf16.gmra.mrb[88].mxu1 %v2504_v12  ;;  %v2879_v27 = vrot.slane %v2877_v17, 3  ;;  %v2880_v28 = vshll.u32 %v2738_v10, 16  ;;  %v2885_v29 = vshrl.u32 %v2740_v16, 16  ;;  %v2888_v33 = vshll.u32 %v2740_v16, 16 }
 0x109   : > { %v2841_v31 = vsel %vm770_vm4, %v2832_v14, %v2840_v19  ;;  %v2546_v32 = vor.u32 %v2545_v21, %v2542_v20  ;;  %v2523_v34 = vshrl.u32 %v2400_v18, 16  ;;  %v2554_v37 = vor.u32 %v2553_v26, %v2550_v22  ;;  %v6513_v41 = vpop.f32.mrb[1].mxu0  ;;  %v2742_v15 = vld [vmem:[#allocation2 + $0xc8] sm:$0xf8]  ;;  %v2744_v16 = vld [vmem:[#allocation2 + $0xd8] sm:$0xf] }
 0x10a   : > { %7017 = vmatpush3.bf16.msra.mxu0 %v7291_v45  ;;  %6955 = vmatpush3.bf16.msra.mxu1 %v7293_v61  ;;  %v2882_v38 = vrot.slane %v2880_v28, 4  ;;  %v2887_v39 = vrot.slane %v2885_v29, 3  ;;  %v2526_v40 = vshll.u32 %v2400_v18, 16  ;;  %v2890_v42 = vrot.slane %v2888_v33, 4  ;;  %v8130_v61 = vpop.f32.mrb[2].mxu0 }
 0x10b   : > { %7018 = vmatprep.subr.bf16.mxu0 %v7294_v51  ;;  %5468 = vmatmul.mubr.bf16.gmra.mrb[88].mxu0 %v2841_v31  ;;  %v2525_v43 = vrot.slane %v2523_v34, 4  ;;  %v2531_v44 = vshrl.u32 %v2402_v23, 16  ;;  %v2534_v45 = vshll.u32 %v2402_v23, 16  ;;  %v2555_v46 = vsel %vm1603_vm8, %v2546_v32, %v2554_v37  ;;  %v2404_v20 = vld [vmem:[#allocation2 + $0xa0] sm:$0xf0]  ;;  %v8139_v21 = vpop.f32.mrb[3].mxu0 }
 0x10c   : > { %6956 = vmatprep.subr.bf16.mxu1 %v7296_v4  ;;  %v2883_v47 = vor.u32 %v2882_v38, %v2879_v27  ;;  %v2528_v48 = vrot.slane %v2526_v40, 5  ;;  %v2860_v49 = vshrl.u32 %v2737_v30, 16  ;;  %5378 = vmatprep.mubr.bf16.mxu1 %v2555_v46  ;;  %v2891_v50 = vor.u32 %v2890_v42, %v2887_v39  ;;  %v2406_v26 = vld [vmem:[#allocation2 + $0xb0] sm:$0x1f]  ;;  %v2741_v31 = vld [vmem:[#allocation2 + $0xc0] sm:$0xf8] }
 0x10d   : > { %v2533_v51 = vrot.slane %v2531_v44, 4  ;;  %v2536_v53 = vrot.slane %v2534_v45, 5  ;;  %v2863_v54 = vshll.u32 %v2737_v30, 16  ;;  %v2868_v59 = vshrl.u32 %v2739_v35, 16  ;;  %v2743_v32 = vld [vmem:[#allocation2 + $0xd0] sm:$0xf] }
 0x10e   : > { %7019 = vmatpush3.bf16.msra.mxu0 %v7295_v11  ;;  %6957 = vmatpush3.bf16.msra.mxu1 %v7297_v24  ;;  %v2529_v56 = vor.u32 %v2528_v48, %v2525_v43  ;;  %v2862_v58 = vrot.slane %v2860_v49, 3  ;;  %v2871_v60 = vshll.u32 %v2739_v35, 16  ;;  %v2892_v62 = vsel %vm770_vm4, %v2883_v47, %v2891_v50  ;;  %v8142_v37 = vpop.f32.mrb[3].mxu1 }
 0x10f   : > { %7020 = vmatprep.subr.bf16.mxu0 %v7298_v25  ;;  %v2537_v63 = vor.u32 %v2536_v53, %v2533_v51  ;;  %v2865_v0 = vrot.slane %v2863_v54, 4  ;;  %v8134_v2 = vadd.f32 %v6513_v41, %v8102_v52  ;;  %5475 = vmatprep.mubr.bf16.mxu0 %v2892_v62  ;;  %v2870_v4 = vrot.slane %v2868_v59, 3 }
 0x110   : > { %v2873_v5 = vrot.slane %v2871_v60, 4  ;;  %v2574_v8 = vshrl.u32 %v2405_v1, 16  ;;  %v2577_v9 = vshll.u32 %v2405_v1, 16  ;;  %v2582_v12 = vshrl.u32 %v2407_v7, 16  ;;  %v2409_v60 = vld [vmem:[#allocation2 + $0xc8] sm:$0xf0] }
 0x111   : > { %v2538_v10 = vsel %vm1603_vm8, %v2529_v56, %v2537_v63  ;;  %v2866_v11 = vor.u32 %v2865_v0, %v2862_v58  ;;  %v2585_v14 = vshll.u32 %v2407_v7, 16  ;;  %v2911_v19 = vshrl.u32 %v2742_v15, 16 }
 0x112   : > { %7021 = vmatpush3.bf16.msra.mxu0 %v7299_v36  ;;  %5379 = vmatmul.mubr.bf16.gmra.mrb[92].mxu1 %v2538_v10  ;;  %v2874_v17 = vor.u32 %v2873_v5, %v2870_v4  ;;  %v2576_v18 = vrot.slane %v2574_v8, 4  ;;  %v2579_v52 = vrot.slane %v2577_v9, 5  ;;  %v2584_v22 = vrot.slane %v2582_v12, 4  ;;  %v2411_v4 = vld [vmem:[#allocation2 + $0xd8] sm:$0x1f] }
 0x113   : > { %v2587_v23 = vrot.slane %v2585_v14, 5  ;;  %v2914_v24 = vshll.u32 %v2742_v15, 16  ;;  %v2919_v25 = vshrl.u32 %v2744_v16, 16  ;;  %v2913_v29 = vrot.slane %v2911_v19, 3  ;;  %v2748_v14 = vld [vmem:[#allocation2 + $0xf8] sm:$0xf] }
 0x114   : > { %v2875_v27 = vsel %vm770_vm4, %v2866_v11, %v2874_v17  ;;  %v2580_v28 = vor.u32 %v2579_v52, %v2576_v18  ;;  %v2922_v30 = vshll.u32 %v2744_v16, 16  ;;  %v2557_v36 = vshrl.u32 %v2404_v20, 16  ;;  %v2746_v11 = vld [vmem:[#allocation2 + $0xe8] sm:$0xf8]  ;;  %v2408_v16 = vld [vmem:[#allocation2 + $0xc0] sm:$0xf0] }
 0x115   : > { %5476 = vmatmul.mubr.bf16.gmra.mrb[92].mxu0 %v2875_v27  ;;  %v2588_v33 = vor.u32 %v2587_v23, %v2584_v22  ;;  %v2916_v34 = vrot.slane %v2914_v24, 4  ;;  %v2921_v35 = vrot.slane %v2919_v25, 3  ;;  %v2560_v39 = vshll.u32 %v2404_v20, 16  ;;  %v2410_v20 = vld [vmem:[#allocation2 + $0xd0] sm:$0x1f] }
 0x116   : > { %v2924_v38 = vrot.slane %v2922_v30, 4  ;;  %v2565_v40 = vshrl.u32 %v2406_v26, 16  ;;  %v2568_v41 = vshll.u32 %v2406_v26, 16  ;;  %v2559_v44 = vrot.slane %v2557_v36, 4  ;;  %v2745_v26 = vld [vmem:[#allocation2 + $0xe0] sm:$0xf8] }
 0x117   : > { %v2589_v42 = vsel %vm1603_vm8, %v2580_v28, %v2588_v33  ;;  %v2917_v43 = vor.u32 %v2916_v34, %v2913_v29  ;;  %v2894_v45 = vshrl.u32 %v2741_v31, 16  ;;  %v2562_v47 = vrot.slane %v2560_v39, 5 }
 0x118   : > { %5386 = vmatprep.mubr.bf16.mxu1 %v2589_v42  ;;  %v2925_v46 = vor.u32 %v2924_v38, %v2921_v35  ;;  %v2567_v48 = vrot.slane %v2565_v40, 4  ;;  %v2570_v49 = vrot.slane %v2568_v41, 5  ;;  %v2897_v51 = vshll.u32 %v2741_v31, 16  ;;  %v2747_v31 = vld [vmem:[#allocation2 + $0xf0] sm:$0xf] }
 0x119   : > { %v2896_v50 = vrot.slane %v2894_v45, 3  ;;  %v2902_v53 = vshrl.u32 %v2743_v32, 16  ;;  %v2905_v54 = vshll.u32 %v2743_v32, 16  ;;  %v2563_v58 = vor.u32 %v2562_v47, %v2559_v44 }
 0x11a   : > { %v2926_v56 = vsel %vm770_vm4, %v2917_v43, %v2925_v46  ;;  %v2571_v59 = vor.u32 %v2570_v49, %v2567_v48  ;;  %v8149_v62 = vadd.f32 %v8128_v55, %v8104_v57  ;;  %v2899_v63 = vrot.slane %v2897_v51, 4 }
 0x11b   : > { %5483 = vmatprep.mubr.bf16.mxu0 %v2926_v56  ;;  %v2904_v0 = vrot.slane %v2902_v53, 3  ;;  %v2907_v1 = vrot.slane %v2905_v54, 4  ;;  %v2608_v5 = vshrl.u32 %v2409_v60, 16  ;;  %v2611_v8 = vshll.u32 %v2409_v60, 16  ;;  %v2413_v60 = vld [vmem:[#allocation2 + $0xe8] sm:$0xf0] }
 0x11c   : > { %v2572_v7 = vsel %vm1603_vm8, %v2563_v58, %v2571_v59  ;;  %v2616_v9 = vshrl.u32 %v2411_v4, 16  ;;  %v2619_v10 = vshll.u32 %v2411_v4, 16  ;;  %v2900_v57 = vor.u32 %v2899_v63, %v2896_v50  ;;  %v2415_v63 = vld [vmem:[#allocation2 + $0xf8] sm:$0x1f]  ;;  %v2750_v4 = vld [vmem:[#allocation2 + $0x108] sm:$0xf8] }
 0x11d   : > { %5387 = vmatmul.mubr.bf16.gmra.mrb[96].mxu1 %v2572_v7  ;;  %v2908_v55 = vor.u32 %v2907_v1, %v2904_v0  ;;  %v2610_v12 = vrot.slane %v2608_v5, 4  ;;  %v2945_v15 = vshrl.u32 %v2746_v11, 16  ;;  %v2613_v17 = vrot.slane %v2611_v8, 5 }
 0x11e   : > { %v2618_v18 = vrot.slane %v2616_v9, 4  ;;  %v2621_v52 = vrot.slane %v2619_v10, 5  ;;  %v2948_v19 = vshll.u32 %v2746_v11, 16  ;;  %v2953_v24 = vshrl.u32 %v2748_v14, 16  ;;  %v2752_v9 = vld [vmem:[#allocation2 + $0x118] sm:$0xf] }
 0x11f   : > { %v2909_v22 = vsel %vm770_vm4, %v2900_v57, %v2908_v55  ;;  %v2947_v23 = vrot.slane %v2945_v15, 3  ;;  %v2956_v25 = vshll.u32 %v2748_v14, 16  ;;  %v2614_v27 = vor.u32 %v2613_v17, %v2610_v12  ;;  %v2412_v10 = vld [vmem:[#allocation2 + $0xe0] sm:$0xf0]  ;;  %v2414_v14 = vld [vmem:[#allocation2 + $0xf0] sm:$0x1f] }
 0x120   : > { %5484 = vmatmul.mubr.bf16.gmra.mrb[96].mxu0 %v2909_v22  ;;  %v2622_v28 = vor.u32 %v2621_v52, %v2618_v18  ;;  %v2950_v29 = vrot.slane %v2948_v19, 4  ;;  %v2591_v30 = vshrl.u32 %v2408_v16, 16  ;;  %v2955_v32 = vrot.slane %v2953_v24, 3  ;;  %v2749_v17 = vld [vmem:[#allocation2 + $0x100] sm:$0xf8]  ;;  %v7300_v18 = vld [vmem:[%s8743_s6 + $0x3f8] sm:$0xff]  }
 0x121   : > { %v2958_v33 = vrot.slane %v2956_v25, 4  ;;  %v2594_v34 = vshll.u32 %v2408_v16, 16  ;;  %v2599_v35 = vshrl.u32 %v2410_v20, 16  ;;  %v2602_v40 = vshll.u32 %v2410_v20, 16  ;;  %v7301_v24 = vld [vmem:[%s8743_s6 + $0x3b8] sm:$0xff]   ;;  %6958 = vmatprep.subr.bf16.mxu1 %v7300_v18 }
 0x122   : > { %v2623_v36 = vsel %vm1603_vm8, %v2614_v27, %v2622_v28  ;;  %v2951_v38 = vor.u32 %v2950_v29, %v2947_v23  ;;  %v2593_v39 = vrot.slane %v2591_v30, 4  ;;  %v2928_v44 = vshrl.u32 %v2745_v26, 16  ;;  %v2751_v23 = vld [vmem:[#allocation2 + $0x110] sm:$0xf]  ;;  %6959 = vmatpush3.bf16.msra.mxu1 %v7301_v24  ;;  %v763_v18 = vld [vmem:[#allocation2 + $0x120] sm:$0x8] }
 0x123   : > { %5394 = vmatprep.mubr.bf16.mxu1 %v2623_v36  ;;  %v2959_v41 = vor.u32 %v2958_v33, %v2955_v32  ;;  %v2596_v42 = vrot.slane %v2594_v34, 5  ;;  %v2601_v43 = vrot.slane %v2599_v35, 4  ;;  %v2604_v45 = vrot.slane %v2602_v40, 5  ;;  %v7302_v33 = vld [vmem:[%s8743_s6 + $0x478] sm:$0xff]   ;;  %v1038_v24 = vld [vmem:[%s8209_s19] sm:$0xf] }
 0x124   : > { %v2931_v46 = vshll.u32 %v2745_v26, 16  ;;  %v2936_v47 = vshrl.u32 %v2747_v31, 16  ;;  %v2939_v48 = vshll.u32 %v2747_v31, 16  ;;  %v2930_v51 = vrot.slane %v2928_v44, 3  ;;  %7022 = vmatprep.subr.bf16.mxu0 %v7302_v33 }
 0x125   : > { %v2960_v49 = vsel %vm770_vm4, %v2951_v38, %v2959_v41  ;;  %v2597_v50 = vor.u32 %v2596_v42, %v2593_v39  ;;  %v8172_v53 = vadd.f32 %v8139_v21, %v8130_v61  ;;  %v2605_v54 = vor.u32 %v2604_v45, %v2601_v43  ;;  %v6518_v39 = vpop.f32.mrb[4].mxu0 }
 0x126   : > { %5491 = vmatprep.mubr.bf16.mxu0 %v2960_v49  ;;  %v2933_v56 = vrot.slane %v2931_v46, 4  ;;  %v2938_v58 = vrot.slane %v2936_v47, 3  ;;  %v2941_v59 = vrot.slane %v2939_v48, 4  ;;  %v2642_v0 = vshrl.u32 %v2413_v60, 16  ;;  %v6542_v48 = vpop.f32.mrb[4].mxu1 }
 0x127   : > { %v2645_v1 = vshll.u32 %v2413_v60, 16  ;;  %v8178_v5 = vadd.f32 %v8142_v37, %v8136_v3  ;;  %v2606_v61 = vsel %vm1603_vm8, %v2597_v50, %v2605_v54  ;;  %v2650_v8 = vshrl.u32 %v2415_v63, 16  ;;  %v7303_v54 = vld [vmem:[%s8743_s6 + $0x438] sm:$0xff]   ;;  %v2417_v60 = vld [vmem:[#allocation2 + $0x108] sm:$0xf0] }
 0x128   : > { %v2934_v21 = vor.u32 %v2933_v56, %v2930_v51  ;;  %v2942_v7 = vor.u32 %v2941_v59, %v2938_v58  ;;  %5395 = vmatmul.mubr.bf16.gmra.mrb[100].mxu1 %v2606_v61  ;;  %v2644_v11 = vrot.slane %v2642_v0, 4  ;;  %v2653_v55 = vshll.u32 %v2415_v63, 16  ;;  %v823_v59 = vld [vmem:[#allocation2 + $0x118] sm:$0x10]  ;;  %v766_v61 = vld [vmem:[#allocation2 + $0x128] sm:$0x8]  ;;  %7023 = vmatpush3.bf16.msra.mxu0 %v7303_v54 }
 0x129   : > { %v2647_v57 = vrot.slane %v2645_v1, 5  ;;  %v2979_v12 = vshrl.u32 %v2750_v4, 16  ;;  %v2652_v16 = vrot.slane %v2650_v8, 4  ;;  %v2982_v3 = vshll.u32 %v2750_v4, 16  ;;  %v3206_v54 = vld [vmem:[#allocation2 + $0x48] sm:$0xf0] }
 0x12a   : > { %v2943_v15 = vsel %vm770_vm4, %v2934_v21, %v2942_v7  ;;  %v2987_v37 = vshrl.u32 %v2752_v9, 16  ;;  %v2655_v19 = vrot.slane %v2653_v55, 5  ;;  %v2990_v22 = vshll.u32 %v2752_v9, 16  ;;  %v6519_v21 = vpop.f32.mrb[5].mxu0 }
 0x12b   : > { %5492 = vmatmul.mubr.bf16.gmra.mrb[100].mxu0 %v2943_v15  ;;  %v2648_v52 = vor.u32 %v2647_v57, %v2644_v11  ;;  %v2981_v20 = vrot.slane %v2979_v12, 3  ;;  %v2984_v25 = vrot.slane %v2982_v3, 4  ;;  %v2625_v27 = vshrl.u32 %v2412_v10, 16  ;;  %v1046_v12 = vld [vmem:[%s673_s22 + $0x4] sm:$0xf]  ;;  %v6543_v15 = vpop.f32.mrb[5].mxu1 }
 0x12c   : > { %v2989_v26 = vrot.slane %v2987_v37, 3  ;;  %v2628_v28 = vshll.u32 %v2412_v10, 16  ;;  %v2656_v29 = vor.u32 %v2655_v19, %v2652_v16  ;;  %v2992_v30 = vrot.slane %v2990_v22, 4  ;;  %v1045_v10 = vld [vmem:[%s673_s22] sm:$0xf] }
 0x12d   : > { %v2633_v31 = vshrl.u32 %v2414_v14, 16  ;;  %v2636_v32 = vshll.u32 %v2414_v14, 16  ;;  %v2985_v34 = vor.u32 %v2984_v25, %v2981_v20  ;;  %v2627_v35 = vrot.slane %v2625_v27, 4  ;;  %v820_v14 = vld [vmem:[#allocation2 + $0x110] sm:$0x10]  ;;  %v6521_v25 = vpop.f32.mrb[6].mxu0 }
 0x12e   : > { %v2630_v36 = vrot.slane %v2628_v28, 5  ;;  %v2962_v38 = vshrl.u32 %v2749_v17, 16  ;;  %v2657_v40 = vsel %vm1603_vm8, %v2648_v52, %v2656_v29  ;;  %v2993_v41 = vor.u32 %v2992_v30, %v2989_v26  ;;  %v1039_v29 = vld [vmem:[%s8209_s19 + $0x4] sm:$0xf]  ;;  %v6545_v30 = vpop.f32.mrb[6].mxu1 }
 0x12f   : > { %v2635_v42 = vrot.slane %v2633_v31, 4  ;;  %v2638_v43 = vrot.slane %v2636_v32, 5  ;;  %5402 = vmatprep.mubr.bf16.mxu1 %v2657_v40  ;;  %v2965_v46 = vshll.u32 %v2749_v17, 16  ;;  %v2970_v47 = vshrl.u32 %v2751_v23, 16  ;;  %v2416_v17 = vld [vmem:[#allocation2 + $0x100] sm:$0xf0] }
 0x130   : > { %v2631_v44 = vor.u32 %v2630_v36, %v2627_v35  ;;  %v2964_v45 = vrot.slane %v2962_v38, 3  ;;  %v2994_v49 = vsel %vm770_vm4, %v2985_v34, %v2993_v41  ;;  %v2973_v51 = vshll.u32 %v2751_v23, 16  ;;  %v3061_v20 = vld [vmem:[#allocation2 + $0x40] sm:$0xf0] }
 0x131   : > { %v2639_v50 = vor.u32 %v2638_v43, %v2635_v42  ;;  %5499 = vmatprep.mubr.bf16.mxu0 %v2994_v49  ;;  %v2967_v56 = vrot.slane %v2965_v46, 4  ;;  %v2972_v58 = vrot.slane %v2970_v47, 3  ;;  %v824_v1 = vsel %vm7686_vm7, 0, %v823_v59  ;;  %v6522_v43 = vpop.f32.mrb[7].mxu0  ;;  %v3064_v46 = vld [vmem:[#allocation2 + $0x58] sm:$0xf] }
 0x132   : > { %v2975_v0 = vrot.slane %v2973_v51, 4  ;;  %v2676_v4 = vshrl.u32 %v2417_v60, 16  ;;  %825 = vst [vmem:[#allocation2 + $0x118] sm:$0x10] %v824_v1  ;;  %v2679_v8 = vshll.u32 %v2417_v60, 16  ;;  %v767_v9 = vsel %vm7484_vm2, 0, %v766_v61 }
 0x133   : > { %v2640_v63 = vsel %vm1603_vm8, %v2631_v44, %v2639_v50  ;;  %v2968_v7 = vor.u32 %v2967_v56, %v2964_v45  ;;  %v8215_v11 = vadd.f32 %v6519_v21, %v6518_v39  ;;  %768 = vst [vmem:[#allocation2 + $0x128] sm:$0x8] %v767_v9  ;;  %v1041_v3 = vstv %s1040_s26  ;;  %v6546_v44 = vpop.f32.mrb[7].mxu1  ;;  %v3062_v45 = vld [vmem:[#allocation2 + $0x48] sm:$0xf0]  ;;  %v8252_v21 = vpop.f32.mrb[8].mxu0 }
 0x134   : > { %5403 = vmatmul.mubr.bf16.gmra.mrb[104].mxu1 %v2640_v63  ;;  %v2976_v57 = vor.u32 %v2975_v0, %v2972_v58  ;;  %v8217_v55 = vrot.slane %v2676_v4, 4  ;;  %v8219_v16 = vrot.slane %v2679_v8, 5  ;;  %v821_v37 = vsel %vm7686_vm7, 0, %v820_v14  ;;  %v3208_v63 = vld [vmem:[#allocation2 + $0x58] sm:$0x1f] }
 0x135   : > { %v8223_v52 = vadd.f32 %v6543_v15, %v6542_v48  ;;  %vm8226_vm9 = vcmp.eq.s32.totalorder %v1041_v3, 1  ;;  %822 = vst [vmem:[#allocation2 + $0x110] sm:$0x10] %v821_v37  ;;  %v2659_v22 = vshrl.u32 %v2416_v17, 16  ;;  %v2662_v23 = vshll.u32 %v2416_v17, 16 }
 0x136   : > { %v2977_v19 = vsel %vm770_vm4, %v2968_v7, %v2976_v57  ;;  %v1047_v26 = vsel %vm8226_vm9, %v1045_v10, 0  ;;  %v1048_v27 = vsel %vm8226_vm9, %v1046_v12, 0  ;;  %v764_v28 = vsel %vm7484_vm2, 0, %v763_v18  ;;  %v8256_v57 = vpop.f32.mrb[8].mxu1 }
 0x137   : > { %5500 = vmatmul.mubr.bf16.gmra.mrb[104].mxu0 %v2977_v19  ;;  %v6253_v31 = vcombine.low %v1047_v26, %v1047_v26  ;;  %v6254_v32 = vcombine.low %v1048_v27, %v1048_v27  ;;  %v8238_v33 = vrot.slane %v2659_v22, 4  ;;  %v8240_v34 = vrot.slane %v2662_v23, 5  ;;  %765 = vst [vmem:[#allocation2 + $0x120] sm:$0x8] %v764_v28  ;;  %v3063_v28 = vld [vmem:[#allocation2 + $0x50] sm:$0xf] }
 0x138   : > { %v1043_v35 = vsel %vm8226_vm9, %v1038_v24, 0  ;;  %v1044_v36 = vsel %vm8226_vm9, %v1039_v29, 0  ;;  %v2682_v42 = vor.u32 %v8219_v16, %v8217_v55  ;;  %v8248_v50 = vadd.f32 %v6522_v43, %v6521_v25 }
 0x139   : > { %v2419_v38 = vld [vmem:[#allocation2 + $0x118] sm:$0x1f]  ;;  %1088 = vst [vmem:[#allocation2 + $0x128] sm:$0xf0] %v6253_v31  ;;  %1089 = vst [vmem:[#allocation2 + $0x138] sm:$0xf] %v6254_v32  ;;  %v6251_v13 = vcombine.low %v1043_v35, %v1043_v35  ;;  %v6252_v39 = vcombine.low %v1044_v36, %v1044_v36  ;;  %v8250_v51 = vadd.f32 %v6546_v44, %v6545_v30 }
 0x13a   : > { %v2684_v40 = vshrl.u32 %v2419_v38, 16  ;;  %v2687_v41 = vshll.u32 %v2419_v38, 16  ;;  %v3128_v59 = vrot.slane %v3062_v45, 4  ;;  %v3129_v60 = vrot.slane %v3064_v46, 4  ;;  %v3207_v44 = vld [vmem:[#allocation2 + $0x50] sm:$0x1f] }
 0x13b   : > { %1078 = vst [vmem:[#allocation2 + $0x120] sm:$0xf0] %v6251_v13  ;;  %1079 = vst [vmem:[#allocation2 + $0x130] sm:$0xf] %v6252_v39  ;;  %v3255_v1 = vshrl.u32 %v3206_v54, 16  ;;  %v3258_v4 = vshll.u32 %v3206_v54, 16  ;;  %v2665_v7 = vor.u32 %v8240_v34, %v8238_v33 }
 0x13c   : > { %v2686_v47 = vrot.slane %v2684_v40, 4  ;;  %v2689_v48 = vrot.slane %v2687_v41, 5  ;;  %v2418_v49 = vld [vmem:[#allocation2 + $0x110] sm:$0x1f]  ;;  %v3263_v61 = vshrl.u32 %v3208_v63, 16  ;;  %v3266_v10 = vshll.u32 %v3208_v63, 16 }
 0x13d   : > { %v2667_v56 = vshrl.u32 %v2418_v49, 16  ;;  %v2670_v58 = vshll.u32 %v2418_v49, 16  ;;  %v3130_v15 = vsel %vm1490_vm6, %v3128_v59, %v3129_v60  ;;  %v3257_v16 = vrot.slane %v3255_v1, 4  ;;  %v3205_v33 = vld [vmem:[#allocation2 + $0x40] sm:$0xf0]  ;;  %v6525_v13 = vpop.f32.mrb[9].mxu0 }
 0x13e   : > { %v2690_v0 = vor.u32 %v2689_v48, %v2686_v47  ;;  %v3260_v3 = vrot.slane %v3258_v4, 5  ;;  %v3265_v26 = vrot.slane %v3263_v61, 4  ;;  %v3268_v27 = vrot.slane %v3266_v10, 5  ;;  %v6549_v39 = vpop.f32.mrb[9].mxu1  ;;  %v6527_v45 = vpop.f32.mrb[10].mxu0 }
 0x13f   : > { %v2669_v8 = vrot.slane %v2667_v56, 4  ;;  %v2672_v9 = vrot.slane %v2670_v58, 5  ;;  %v6551_v46 = vpop.f32.mrb[10].mxu1  ;;  %v3125_v54 = vrot.slane %v3061_v20, 4  ;;  %v6528_v56 = vpop.f32.mrb[11].mxu0 }
 0x140   : > { %v2691_v55 = vsel %vm1603_vm8, %v2682_v42, %v2690_v0  ;;  %v2754_v12 = vld [vmem:[#allocation2 + $0x128] sm:$0xf8]  ;;  %v2756_v14 = vld [vmem:[#allocation2 + $0x138] sm:$0xf]  ;;  %v3261_v25 = vor.u32 %v3260_v3, %v3257_v16  ;;  %v3269_v43 = vor.u32 %v3268_v27, %v3265_v26  ;;  %v6552_v58 = vpop.f32.mrb[11].mxu1  ;;  %v3126_v0 = vrot.slane %v3063_v28, 4 }
 0x141   : > { %5410 = vmatprep.mubr.bf16.mxu1 %v2691_v55  ;;  %v3013_v37 = vshrl.u32 %v2754_v12, 16  ;;  %v3016_v17 = vshll.u32 %v2754_v12, 16  ;;  %v3021_v18 = vshrl.u32 %v2756_v14, 16  ;;  %v3024_v19 = vshll.u32 %v2756_v14, 16  ;;  %v3066_v1 = vld [vmem:[#allocation2 + $0x68] sm:$0xf0] }
 0x142   : > { %v2673_v22 = vor.u32 %v2672_v9, %v2669_v8  ;;  %v2753_v23 = vld [vmem:[#allocation2 + $0x120] sm:$0xf8]  ;;  %v2755_v24 = vld [vmem:[#allocation2 + $0x130] sm:$0xf]  ;;  %v3270_v63 = vsel %vm1603_vm8, %v3261_v25, %v3269_v43  ;;  %v3068_v4 = vld [vmem:[#allocation2 + $0x78] sm:$0xf]  ;;  %v3127_v14 = vsel %vm1490_vm6, %v3125_v54, %v3126_v0  ;;  %v8265_v16 = vadd.f32 %v6525_v13, %v8252_v21 }
 0x143   : > { %v3015_v29 = vrot.slane %v3013_v37, 3  ;;  %v3018_v30 = vrot.slane %v3016_v17, 4  ;;  %v3023_v31 = vrot.slane %v3021_v18, 3  ;;  %v3026_v32 = vrot.slane %v3024_v19, 4  ;;  %v3210_v10 = vld [vmem:[#allocation2 + $0x68] sm:$0xf0] }
 0x144   : > { %v2674_v34 = vsel %vm1603_vm8, %v2665_v7, %v2673_v22  ;;  %v2996_v35 = vshrl.u32 %v2753_v23, 16  ;;  %v2999_v36 = vshll.u32 %v2753_v23, 16  ;;  %v3004_v38 = vshrl.u32 %v2755_v24, 16  ;;  %v6530_v55 = vpop.f32.mrb[12].mxu0  ;;  %v3212_v3 = vld [vmem:[#allocation2 + $0x78] sm:$0x1f] }
 0x145   : > { %v3019_v40 = vor.u32 %v3018_v30, %v3015_v29  ;;  %v3027_v41 = vor.u32 %v3026_v32, %v3023_v31  ;;  %5411 = vmatmul.mubr.bf16.gmra.mrb[108].mxu1 %v2674_v34  ;;  %v3007_v42 = vshll.u32 %v2755_v24, 16  ;;  %v3238_v7 = vshrl.u32 %v3205_v33, 16  ;;  %v3065_v37 = vld [vmem:[#allocation2 + $0x60] sm:$0xf0]  ;;  %v6554_v17 = vpop.f32.mrb[12].mxu1  ;;  %v6531_v24 = vpop.f32.mrb[13].mxu0 }
 0x146   : > { %v2998_v47 = vrot.slane %v2996_v35, 3  ;;  %v3001_v48 = vrot.slane %v2999_v36, 4  ;;  %v3006_v49 = vrot.slane %v3004_v38, 3  ;;  %5548 = vmatprep.mubr.bf16.mxu1 %v3130_v15  ;;  %v3241_v8 = vshll.u32 %v3205_v33, 16  ;;  %v3067_v23 = vld [vmem:[#allocation2 + $0x70] sm:$0xf] }
 0x147   : > { %v3028_v59 = vsel %vm770_vm4, %v3019_v40, %v3027_v41  ;;  %v3009_v60 = vrot.slane %v3007_v42, 4  ;;  %v3246_v9 = vshrl.u32 %v3207_v44, 16  ;;  %v3249_v15 = vshll.u32 %v3207_v44, 16  ;;  %v3209_v21 = vld [vmem:[#allocation2 + $0x60] sm:$0xf0]  ;;  %v6555_v29 = vpop.f32.mrb[13].mxu1 }
 0x148   : > { %5507 = vmatprep.mubr.bf16.mxu0 %v3028_v59  ;;  %v3002_v61 = vor.u32 %v3001_v48, %v2998_v47  ;;  %v3240_v18 = vrot.slane %v3238_v7, 4  ;;  %v3243_v19 = vrot.slane %v3241_v8, 5  ;;  %v8268_v22 = vadd.f32 %v6549_v39, %v8256_v57  ;;  %v6533_v30 = vpop.f32.mrb[14].mxu0  ;;  %v6557_v35 = vpop.f32.mrb[14].mxu1  ;;  %v3211_v40 = vld [vmem:[#allocation2 + $0x70] sm:$0x1f] }
 0x149   : > { %v3010_v12 = vor.u32 %v3009_v60, %v3006_v49  ;;  %v3248_v20 = vrot.slane %v3246_v9, 4  ;;  %v3251_v26 = vrot.slane %v3249_v15, 5  ;;  %v8271_v27 = vadd.f32 %v6528_v56, %v6527_v45  ;;  %v6534_v57 = vpop.f32.mrb[15].mxu0  ;;  %v6558_v41 = vpop.f32.mrb[15].mxu1  ;;  %v3070_v56 = vld [vmem:[#allocation2 + $0x88] sm:$0xf0] }
 0x14a   : > { %v8273_v28 = vadd.f32 %v6552_v58, %v6551_v46  ;;  %v3244_v31 = vor.u32 %v3243_v19, %v3240_v18  ;;  %v3134_v32 = vrot.slane %v3066_v1, 4  ;;  %v3135_v33 = vrot.slane %v3068_v4, 4  ;;  %v8276_v46 = vpop.f32.mrb[16].mxu1  ;;  %v8279_v58 = vpop.f32.mrb[16].mxu0  ;;  %v3072_v1 = vld [vmem:[#allocation2 + $0x98] sm:$0xf] }
 0x14b   : > { %v3011_v25 = vsel %vm770_vm4, %v3002_v61, %v3010_v12  ;;  %v3289_v34 = vshrl.u32 %v3210_v10, 16  ;;  %v3252_v36 = vor.u32 %v3251_v26, %v3248_v20  ;;  %v3292_v38 = vshll.u32 %v3210_v10, 16  ;;  %v6577_v4 = vpop.f32.mrb[17].mxu1  ;;  %v3214_v10 = vld [vmem:[#allocation2 + $0x88] sm:$0xf0] }
 0x14c   : > { %5508 = vmatmul.mubr.bf16.gmra.mrb[108].mxu0 %v3011_v25  ;;  %v3297_v13 = vshrl.u32 %v3212_v3, 16  ;;  %v3300_v39 = vshll.u32 %v3212_v3, 16  ;;  %v3136_v42 = vsel %vm1490_vm6, %v3134_v32, %v3135_v33  ;;  %v3131_v44 = vrot.slane %v3065_v37, 4  ;;  %v3216_v12 = vld [vmem:[#allocation2 + $0x98] sm:$0x1f]  ;;  %v6579_v20 = vpop.f32.mrb[18].mxu1 }
 0x14d   : > { %5645 = vmatprep.mubr.bf16.mxu0 %v3270_v63  ;;  %5549 = vmatmul.mubr.bf16.vlgmr.msra.gmra.mrb[112].mxu1 %v3127_v14  ;;  %v3291_v43 = vrot.slane %v3289_v34, 4  ;;  %v3132_v45 = vrot.slane %v3067_v23, 4  ;;  %v3253_v47 = vsel %vm1603_vm8, %v3244_v31, %v3252_v36  ;;  %v3294_v48 = vrot.slane %v3292_v38, 5  ;;  %v6641_v14 = vpop.f32.mrb[17].mxu0  ;;  %v3069_v19 = vld [vmem:[#allocation2 + $0x80] sm:$0xf0] }
 0x14e   : > { %5556 = vmatprep.mubr.bf16.mxu1 %v3136_v42  ;;  %v3299_v49 = vrot.slane %v3297_v13, 4  ;;  %v3302_v54 = vrot.slane %v3300_v39, 5  ;;  %v3272_v60 = vshrl.u32 %v3209_v21, 16  ;;  %v3275_v63 = vshll.u32 %v3209_v21, 16  ;;  %v3071_v31 = vld [vmem:[#allocation2 + $0x90] sm:$0xf] }
 0x14f   : > { %v3133_v59 = vsel %vm1490_vm6, %v3131_v44, %v3132_v45  ;;  %v3280_v0 = vshrl.u32 %v3211_v40, 16  ;;  %v3295_v61 = vor.u32 %v3294_v48, %v3291_v43  ;;  %v3283_v8 = vshll.u32 %v3211_v40, 16  ;;  %v3213_v38 = vld [vmem:[#allocation2 + $0x80] sm:$0xf0] }
 0x150   : > { %v3303_v7 = vor.u32 %v3302_v54, %v3299_v49  ;;  %v8282_v9 = vadd.f32 %v6531_v24, %v6530_v55  ;;  %v3274_v15 = vrot.slane %v3272_v60, 4  ;;  %v3277_v3 = vrot.slane %v3275_v63, 5  ;;  %v6643_v55 = vpop.f32.mrb[18].mxu0  ;;  %v6580_v24 = vpop.f32.mrb[19].mxu1 }
 0x151   : > { %v3282_v37 = vrot.slane %v3280_v0, 4  ;;  %v8284_v18 = vadd.f32 %v6555_v29, %v6554_v17  ;;  %v3285_v25 = vrot.slane %v3283_v8, 5  ;;  %v8287_v26 = vadd.f32 %v6534_v57, %v6533_v30  ;;  %v6644_v17 = vpop.f32.mrb[19].mxu0  ;;  %v3215_v30 = vld [vmem:[#allocation2 + $0x90] sm:$0x1f]  ;;  %v8291_v57 = vpop.f32.mrb[20].mxu1 }
 0x152   : > { %v3304_v23 = vsel %vm1603_vm8, %v3295_v61, %v3303_v7  ;;  %v8289_v21 = vadd.f32 %v6558_v41, %v6557_v35  ;;  %v3278_v32 = vor.u32 %v3277_v3, %v3274_v15  ;;  %v3140_v33 = vrot.slane %v3070_v56, 4  ;;  %v8294_v44 = vpop.f32.mrb[20].mxu0  ;;  %v8297_v54 = vpop.f32.mrb[21].mxu1 }
 0x153   : > { %v3141_v34 = vrot.slane %v3072_v1, 4  ;;  %v3323_v36 = vshrl.u32 %v3214_v10, 16  ;;  %v3286_v29 = vor.u32 %v3285_v25, %v3282_v37  ;;  %v3326_v13 = vshll.u32 %v3214_v10, 16  ;;  %v8300_v0 = vpop.f32.mrb[21].mxu0  ;;  %v3074_v10 = vld [vmem:[#allocation2 + $0xa8] sm:$0xf0] }
 0x154   : > { %5646 = vmatmul.mubr.bf16.vlgmr.msra.gmra.mrb[112].mxu0 %v3253_v47  ;;  %v3331_v39 = vshrl.u32 %v3216_v12, 16  ;;  %v3334_v40 = vshll.u32 %v3216_v12, 16  ;;  %v3137_v42 = vrot.slane %v3069_v19, 4  ;;  %v3138_v43 = vrot.slane %v3071_v31, 4  ;;  %v3076_v12 = vld [vmem:[#allocation2 + $0xb8] sm:$0xf] }
 0x155   : > { %5653 = vmatprep.mubr.bf16.mxu0 %v3304_v23  ;;  %5557 = vmatmul.mubr.bf16.gmra.mrb[116].mxu1 %v3133_v59  ;;  %v3142_v35 = vsel %vm1490_vm6, %v3140_v33, %v3141_v34  ;;  %v3325_v41 = vrot.slane %v3323_v36, 4  ;;  %v3287_v45 = vsel %vm1603_vm8, %v3278_v32, %v3286_v29  ;;  %v3328_v47 = vrot.slane %v3326_v13, 5  ;;  %v8303_v15 = vpop.f32.mrb[22].mxu1  ;;  %v3218_v25 = vld [vmem:[#allocation2 + $0xa8] sm:$0xf0]  ;;  %v8306_v31 = vpop.f32.mrb[22].mxu0 }
 0x156   : > { %5564 = vmatprep.mubr.bf16.mxu1 %v3142_v35  ;;  %v3333_v48 = vrot.slane %v3331_v39, 4  ;;  %v3336_v49 = vrot.slane %v3334_v40, 5  ;;  %v3139_v56 = vsel %vm1490_vm6, %v3137_v42, %v3138_v43  ;;  %v3306_v59 = vshrl.u32 %v3213_v38, 16 }
 0x157   : > { %v3309_v60 = vshll.u32 %v3213_v38, 16  ;;  %v3314_v63 = vshrl.u32 %v3215_v30, 16  ;;  %v3329_v1 = vor.u32 %v3328_v47, %v3325_v41  ;;  %v3317_v7 = vshll.u32 %v3215_v30, 16  ;;  %v3220_v38 = vld [vmem:[#allocation2 + $0xb8] sm:$0x1f] }
 0x158   : > { %v3337_v61 = vor.u32 %v3336_v49, %v3333_v48  ;;  %v6578_v8 = vadd.f32 %v6577_v4, %v8276_v46  ;;  %v3308_v3 = vrot.slane %v3306_v59, 4  ;;  %v6642_v23 = vadd.f32 %v6641_v14, %v8279_v58  ;;  %v6586_v46 = vpop.f32.mrb[23].mxu1  ;;  %v8310_v4 = vpop.f32.mrb[23].mxu0  ;;  %v3073_v30 = vld [vmem:[#allocation2 + $0xa0] sm:$0xf0] }
 0x159   : > { %v3311_v37 = vrot.slane %v3309_v60, 5  ;;  %v3316_v19 = vrot.slane %v3314_v63, 4  ;;  %v3319_v33 = vrot.slane %v3317_v7, 5  ;;  %v6581_v36 = vadd.f32 %v6580_v24, %v6579_v20  ;;  %v3217_v20 = vld [vmem:[#allocation2 + $0xa0] sm:$0xf0]  ;;  %v8315_v24 = vpop.f32.mrb[24].mxu1 }
 0x15a   : > { %v3338_v32 = vsel %vm1603_vm8, %v3329_v1, %v3337_v61  ;;  %v4969_v34 = vadd.f32 %v6578_v8, %v8134_v2  ;;  %v6645_v13 = vadd.f32 %v6644_v17, %v6643_v55  ;;  %v3146_v39 = vrot.slane %v3074_v10, 4  ;;  %v3075_v2 = vld [vmem:[#allocation2 + $0xb0] sm:$0xf]  ;;  %v8323_v61 = vpop.f32.mrb[25].mxu1 }
 0x15b   : > { %v3312_v29 = vor.u32 %v3311_v37, %v3308_v3  ;;  %v3147_v40 = vrot.slane %v3076_v12, 4  ;;  %v3320_v58 = vor.u32 %v3319_v33, %v3316_v19  ;;  %v4972_v35 = vadd.f32 %v6581_v36, %v8172_v53  ;;  %v3219_v17 = vld [vmem:[#allocation2 + $0xb0] sm:$0x1f]  ;;  %v8318_v47 = vpop.f32.mrb[24].mxu0  ;;  %v8327_v37 = vpop.f32.mrb[26].mxu1 }
 0x15c   : > { %5654 = vmatmul.mubr.bf16.gmra.mrb[116].mxu0 %v3287_v45  ;;  %v8312_v14 = vadd.f32 %v6642_v23, %v4969_v34  ;;  %v3357_v41 = vshrl.u32 %v3218_v25, 16  ;;  %v3360_v43 = vshll.u32 %v3218_v25, 16  ;;  %v3365_v45 = vshrl.u32 %v3220_v38, 16  ;;  %v8325_v7 = vpop.f32.mrb[25].mxu0  ;;  %v3078_v34 = vld [vmem:[#allocation2 + $0xc8] sm:$0xf0] }
 0x15d   : > { %5661 = vmatprep.mubr.bf16.mxu0 %v3338_v32  ;;  %5565 = vmatmul.mubr.bf16.gmra.mrb[120].mxu1 %v3139_v56  ;;  %v3148_v42 = vsel %vm1490_vm6, %v3146_v39, %v3147_v40  ;;  %v3368_v55 = vshll.u32 %v3220_v38, 16  ;;  %v3321_v48 = vsel %vm1603_vm8, %v3312_v29, %v3320_v58  ;;  %v8321_v49 = vadd.f32 %v6645_v13, %v4972_v35  ;;  %v8329_v19 = vpop.f32.mrb[26].mxu0  ;;  %v3080_v36 = vld [vmem:[#allocation2 + $0xd8] sm:$0xf]  ;;  %v8334_v38 = vpop.f32.mrb[27].mxu1 }
 0x15e   : > { %5572 = vmatprep.mubr.bf16.mxu1 %v3148_v42  ;;  %v3359_v56 = vrot.slane %v3357_v41, 4  ;;  %v3143_v53 = vrot.slane %v3073_v30, 4  ;;  %v3362_v59 = vrot.slane %v3360_v43, 5  ;;  %v3367_v60 = vrot.slane %v3365_v45, 4  ;;  %v8336_v29 = vpop.f32.mrb[27].mxu0 }
 0x15f   : > { %v3370_v63 = vrot.slane %v3368_v55, 5  ;;  %v3144_v1 = vrot.slane %v3075_v2, 4  ;;  %v3340_v8 = vshrl.u32 %v3217_v20, 16  ;;  %v3343_v10 = vshll.u32 %v3217_v20, 16  ;;  %v3222_v58 = vld [vmem:[#allocation2 + $0xc8] sm:$0xf0] }
 0x160   : > { %v3348_v12 = vshrl.u32 %v3219_v17, 16  ;;  %v3351_v3 = vshll.u32 %v3219_v17, 16  ;;  %v3363_v23 = vor.u32 %v3362_v59, %v3359_v56  ;;  %v6584_v33 = vadd.f32 %v8297_v54, %v8291_v57  ;;  %v3224_v54 = vld [vmem:[#allocation2 + $0xd8] sm:$0x1f]  ;;  %v3077_v20 = vld [vmem:[#allocation2 + $0xc0] sm:$0xf0] }
 0x161   : > { %v3371_v25 = vor.u32 %v3370_v63, %v3367_v60  ;;  %v3145_v32 = vsel %vm1490_vm6, %v3143_v53, %v3144_v1  ;;  %v3342_v13 = vrot.slane %v3340_v8, 4  ;;  %v3345_v39 = vrot.slane %v3343_v10, 5  ;;  %v3079_v17 = vld [vmem:[#allocation2 + $0xd0] sm:$0xf]  ;;  %v8345_v56 = vpop.f32.mrb[28].mxu1 }
 0x162   : > { %v3350_v40 = vrot.slane %v3348_v12, 4  ;;  %v3353_v30 = vrot.slane %v3351_v3, 5  ;;  %v4977_v41 = vadd.f32 %v6584_v33, %v8215_v11  ;;  %v6648_v2 = vadd.f32 %v8300_v0, %v8294_v44  ;;  %v8352_v59 = vpop.f32.mrb[29].mxu1 }
 0x163   : > { %v3372_v35 = vsel %vm1603_vm8, %v3363_v23, %v3371_v25  ;;  %v6587_v57 = vadd.f32 %v6586_v46, %v8303_v15  ;;  %v3346_v42 = vor.u32 %v3345_v39, %v3342_v13  ;;  %v6651_v45 = vadd.f32 %v8310_v4, %v8306_v31  ;;  %v3223_v46 = vld [vmem:[#allocation2 + $0xd0] sm:$0x1f]  ;;  %v8350_v53 = vpop.f32.mrb[28].mxu0  ;;  %v8357_v8 = vpop.f32.mrb[30].mxu1 }
 0x164   : > { %5662 = vmatmul.mubr.bf16.gmra.mrb[120].mxu0 %v3321_v48  ;;  %v3354_v43 = vor.u32 %v3353_v30, %v3350_v40  ;;  %v3152_v55 = vrot.slane %v3078_v34, 4  ;;  %v3221_v48 = vld [vmem:[#allocation2 + $0xc0] sm:$0xf0]  ;;  %v8347_v11 = vadd.f32 %v6648_v2, %v4977_v41  ;;  %v3153_v0 = vrot.slane %v3080_v36, 4  ;;  %v8355_v1 = vpop.f32.mrb[29].mxu0  ;;  %v8364_v25 = vpop.f32.mrb[31].mxu1 }
 0x165   : > { %5669 = vmatprep.mubr.bf16.mxu0 %v3372_v35  ;;  %5573 = vmatmul.mubr.bf16.gmra.mrb[124].mxu1 %v3145_v32  ;;  %v4980_v44 = vadd.f32 %v6587_v57, %v8248_v50  ;;  %v3391_v15 = vshrl.u32 %v3222_v58, 16  ;;  %v3394_v63 = vshll.u32 %v3222_v58, 16  ;;  %v3399_v31 = vshrl.u32 %v3224_v54, 16  ;;  %v8362_v23 = vpop.f32.mrb[30].mxu0 }
 0x166   : > { %v3355_v60 = vsel %vm1603_vm8, %v3346_v42, %v3354_v43  ;;  %v3402_v4 = vshll.u32 %v3224_v54, 16  ;;  %v3154_v50 = vsel %vm1490_vm6, %v3152_v55, %v3153_v0  ;;  %v3149_v3 = vrot.slane %v3077_v20, 4  ;;  %v8366_v13 = vpop.f32.mrb[31].mxu0  ;;  %v8368_v39 = vpop.f32.mrb[32].mxu1  ;;  %v3082_v20 = vld [vmem:[#allocation2 + $0xe8] sm:$0xf0] }
 0x167   : > { %v8359_v10 = vadd.f32 %v6651_v45, %v4980_v44  ;;  %v3393_v12 = vrot.slane %v3391_v15, 4  ;;  %5580 = vmatprep.mubr.bf16.mxu1 %v3154_v50  ;;  %v3396_v32 = vrot.slane %v3394_v63, 5  ;;  %v3401_v33 = vrot.slane %v3399_v31, 4  ;;  %v3084_v42 = vld [vmem:[#allocation2 + $0xf8] sm:$0xf] }
 0x168   : > { %v3404_v34 = vrot.slane %v3402_v4, 5  ;;  %v3150_v36 = vrot.slane %v3079_v17, 4  ;;  %v3374_v40 = vshrl.u32 %v3221_v48, 16  ;;  %v3377_v30 = vshll.u32 %v3221_v48, 16  ;;  %v3226_v44 = vld [vmem:[#allocation2 + $0xe8] sm:$0xf0] }
 0x169   : > { %v3382_v58 = vshrl.u32 %v3223_v46, 16  ;;  %v3385_v35 = vshll.u32 %v3223_v46, 16  ;;  %v3397_v41 = vor.u32 %v3396_v32, %v3393_v12  ;;  %v6590_v54 = vadd.f32 %v8323_v61, %v8315_v24  ;;  %v3228_v24 = vld [vmem:[#allocation2 + $0xf8] sm:$0x1f]  ;;  %v3081_v61 = vld [vmem:[#allocation2 + $0xe0] sm:$0xf0] }
 0x16a   : > { %v3405_v2 = vor.u32 %v3404_v34, %v3401_v33  ;;  %v3151_v57 = vsel %vm1490_vm6, %v3149_v3, %v3150_v36  ;;  %v3376_v43 = vrot.slane %v3374_v40, 4  ;;  %v3379_v45 = vrot.slane %v3377_v30, 5  ;;  %v3225_v33 = vld [vmem:[#allocation2 + $0xe0] sm:$0xf0] }
 0x16b   : > { %v3384_v55 = vrot.slane %v3382_v58, 4  ;;  %v3387_v17 = vrot.slane %v3385_v35, 5  ;;  %v4985_v48 = vadd.f32 %v6590_v54, %v8265_v16  ;;  %v6654_v15 = vadd.f32 %v8325_v7, %v8318_v47  ;;  %v3083_v16 = vld [vmem:[#allocation2 + $0xf0] sm:$0xf] }
 0x16c   : > { %5670 = vmatmul.mubr.bf16.gmra.mrb[124].mxu0 %v3355_v60  ;;  %v3406_v0 = vsel %vm1603_vm8, %v3397_v41, %v3405_v2  ;;  %v6593_v46 = vadd.f32 %v8334_v38, %v8327_v37  ;;  %v8379_v63 = vpop.f32.mrb[32].mxu0  ;;  %v8381_v60 = vpop.f32.mrb[33].mxu1  ;;  %v3380_v31 = vor.u32 %v3379_v45, %v3376_v43  ;;  %v6657_v50 = vadd.f32 %v8336_v29, %v8329_v19  ;;  %v3227_v58 = vld [vmem:[#allocation2 + $0xf0] sm:$0x1f]  ;;  %v3086_v45 = vld [vmem:[#allocation2 + $0x108] sm:$0xf0] }
 0x16d   : > { %5581 = vmatmul.mubr.bf16.gmra.mrb[128].mxu1 %v3151_v57  ;;  %5677 = vmatprep.mubr.bf16.mxu0 %v3406_v0  ;;  %v3388_v4 = vor.u32 %v3387_v17, %v3384_v55  ;;  %v3158_v12 = vrot.slane %v3082_v20, 4  ;;  %v8385_v3 = vpop.f32.mrb[33].mxu0  ;;  %v8387_v47 = vpop.f32.mrb[34].mxu1  ;;  %v8389_v7 = vadd.f32 %v6654_v15, %v4985_v48  ;;  %v3159_v38 = vrot.slane %v3084_v42, 4  ;;  %v3088_v48 = vld [vmem:[#allocation2 + $0x118] sm:$0xf] }
 0x16e   : > { %v4988_v37 = vadd.f32 %v6593_v46, %v8271_v27  ;;  %v3425_v32 = vshrl.u32 %v3226_v44, 16  ;;  %v8392_v34 = vpop.f32.mrb[34].mxu0  ;;  %v8394_v36 = vpop.f32.mrb[35].mxu1  ;;  %v3428_v19 = vshll.u32 %v3226_v44, 16  ;;  %v3433_v29 = vshrl.u32 %v3228_v24, 16 }
 0x16f   : > { %8754 = vst [vmem:[#allocation4_spill] sm:$0xff] %v8389_v7  ;;  %v3389_v40 = vsel %vm1603_vm8, %v3380_v31, %v3388_v4  ;;  %v3436_v30 = vshll.u32 %v3228_v24, 16  ;;  %v8397_v35 = vpop.f32.mrb[35].mxu0  ;;  %v3160_v2 = vsel %vm1490_vm6, %v3158_v12, %v3159_v38  ;;  %v3155_v57 = vrot.slane %v3081_v61, 4  ;;  %v3230_v61 = vld [vmem:[#allocation2 + $0x108] sm:$0xf0] }
 0x170   : > { %v8399_v41 = vadd.f32 %v6657_v50, %v4988_v37  ;;  %v3427_v27 = vrot.slane %v3425_v32, 4  ;;  %5588 = vmatprep.mubr.bf16.mxu1 %v3160_v2  ;;  %v3430_v54 = vrot.slane %v3428_v19, 5  ;;  %v3435_v20 = vrot.slane %v3433_v29, 4  ;;  %v3232_v4 = vld [vmem:[#allocation2 + $0x118] sm:$0x1f]  ;;  %v8405_v50 = vpop.f32.mrb[36].mxu1 }
 0x171   : > { %v3438_v42 = vrot.slane %v3436_v30, 5  ;;  %v3156_v43 = vrot.slane %v3083_v16, 4  ;;  %v3408_v55 = vshrl.u32 %v3225_v33, 16  ;;  %v3411_v17 = vshll.u32 %v3225_v33, 16  ;;  %v8409_v33 = vpop.f32.mrb[37].mxu1 }
 0x172   : > { %8755 = vst [vmem:[#allocation5_spill] sm:$0xff] %v8399_v41  ;;  %v3416_v44 = vshrl.u32 %v3227_v58, 16  ;;  %v3419_v0 = vshll.u32 %v3227_v58, 16  ;;  %v3431_v15 = vor.u32 %v3430_v54, %v3427_v27  ;;  %v6596_v31 = vadd.f32 %v8352_v59, %v8345_v56  ;;  %v3085_v30 = vld [vmem:[#allocation2 + $0x100] sm:$0xf0]  ;;  %v8419_v2 = vpop.f32.mrb[38].mxu1 }
 0x173   : > { %v3439_v46 = vor.u32 %v3438_v42, %v3435_v20  ;;  %v3157_v24 = vsel %vm1490_vm6, %v3155_v57, %v3156_v43  ;;  %v3410_v16 = vrot.slane %v3408_v55, 4  ;;  %v3413_v37 = vrot.slane %v3411_v17, 5  ;;  %v3087_v58 = vld [vmem:[#allocation2 + $0x110] sm:$0xf]  ;;  %v8425_v43 = vpop.f32.mrb[39].mxu1 }
 0x174   : > { %5678 = vmatmul.mubr.bf16.gmra.mrb[128].mxu0 %v3389_v40  ;;  %v8407_v12 = vpop.f32.mrb[36].mxu0  ;;  %v3418_v38 = vrot.slane %v3416_v44, 4  ;;  %v3421_v32 = vrot.slane %v3419_v0, 5  ;;  %v4993_v29 = vadd.f32 %v6596_v31, %v8282_v9  ;;  %v6660_v56 = vadd.f32 %v8355_v1, %v8350_v53  ;;  %v3229_v9 = vld [vmem:[#allocation2 + $0x100] sm:$0xf0] }
 0x175   : > { %5589 = vmatmul.mubr.bf16.gmra.mrb[132].mxu1 %v3157_v24  ;;  %v8411_v40 = vpop.f32.mrb[37].mxu0  ;;  %v3440_v19 = vsel %vm1603_vm8, %v3431_v15, %v3439_v46  ;;  %v6599_v59 = vadd.f32 %v8364_v25, %v8357_v8  ;;  %v3414_v57 = vor.u32 %v3413_v37, %v3410_v16  ;;  %v6663_v20 = vadd.f32 %v8366_v13, %v8362_v23  ;;  %v3231_v17 = vld [vmem:[#allocation2 + $0x110] sm:$0x1f] }
 0x176   : > { %v8421_v27 = vpop.f32.mrb[38].mxu0  ;;  %5685 = vmatprep.mubr.bf16.mxu0 %v3440_v19  ;;  %v3422_v54 = vor.u32 %v3421_v32, %v3418_v38  ;;  %v3164_v42 = vrot.slane %v3086_v45, 4  ;;  %v8429_v1 = vadd.f32 %v6660_v56, %v4993_v29  ;;  %v3165_v25 = vrot.slane %v3088_v48, 4  ;;  %v8432_v44 = vpop.f32.mrb[40].mxu1 }
 0x177   : > { %v8427_v53 = vpop.f32.mrb[39].mxu0  ;;  %v4996_v8 = vadd.f32 %v6599_v59, %v8287_v26  ;;  %v3459_v55 = vshrl.u32 %v3230_v61, 16  ;;  %v3462_v23 = vshll.u32 %v3230_v61, 16  ;;  %v3467_v13 = vshrl.u32 %v3232_v4, 16  ;;  %v8437_v46 = vpop.f32.mrb[41].mxu1 }
 0x178   : > { %8756 = vst [vmem:[#allocation6_spill] sm:$0xff] %v8429_v1  ;;  %v3423_v15 = vsel %vm1603_vm8, %v3414_v57, %v3422_v54  ;;  %v3470_v45 = vshll.u32 %v3232_v4, 16  ;;  %v3166_v26 = vsel %vm1490_vm6, %v3164_v42, %v3165_v25  ;;  %v3161_v16 = vrot.slane %v3085_v30, 4  ;;  %v8444_v37 = vpop.f32.mrb[42].mxu1  ;;  %v3090_v4 = vld [vmem:[#allocation2 + $0x128] sm:$0xf0] }
 0x179   : > { %v8441_v31 = vadd.f32 %v6663_v20, %v4996_v8  ;;  %v3461_v48 = vrot.slane %v3459_v55, 4  ;;  %5596 = vmatprep.mubr.bf16.mxu1 %v3166_v26  ;;  %v3464_v32 = vrot.slane %v3462_v23, 5  ;;  %v3469_v19 = vrot.slane %v3467_v13, 4  ;;  %v8448_v56 = vpop.f32.mrb[43].mxu1  ;;  %v3092_v30 = vld [vmem:[#allocation2 + $0x138] sm:$0xf] }
 0x17a   : > { %v3472_v61 = vrot.slane %v3470_v45, 5  ;;  %v3162_v29 = vrot.slane %v3087_v58, 4  ;;  %v3442_v57 = vshrl.u32 %v3229_v9, 16  ;;  %v3445_v54 = vshll.u32 %v3229_v9, 16  ;;  %v829_v45 = vld [vmem:[#allocation2 + $0x138] sm:$0x10] }
 0x17b   : > { %8757 = vst [vmem:[#allocation7_spill] sm:$0xff] %v8441_v31  ;;  %v3450_v20 = vshrl.u32 %v3231_v17, 16  ;;  %v3453_v42 = vshll.u32 %v3231_v17, 16  ;;  %v3465_v55 = vor.u32 %v3464_v32, %v3461_v48  ;;  %v6602_v58 = vadd.f32 %v8381_v60, %v8368_v39  ;;  %v3234_v26 = vld [vmem:[#allocation2 + $0x128] sm:$0xf0] }
 0x17c   : > { %v8434_v0 = vpop.f32.mrb[40].mxu0  ;;  %5686 = vmatmul.mubr.bf16.gmra.mrb[132].mxu0 %v3423_v15  ;;  %v3473_v23 = vor.u32 %v3472_v61, %v3469_v19  ;;  %v3163_v13 = vsel %vm1490_vm6, %v3161_v16, %v3162_v29  ;;  %v3444_v9 = vrot.slane %v3442_v57, 4  ;;  %v3447_v17 = vrot.slane %v3445_v54, 5  ;;  %v3089_v19 = vld [vmem:[#allocation2 + $0x120] sm:$0xf0] }
 0x17d   : > { %v8439_v24 = vpop.f32.mrb[41].mxu0  ;;  %5597 = vmatmul.mubr.bf16.gmra.mrb[136].mxu1 %v3163_v13  ;;  %v3452_v1 = vrot.slane %v3450_v20, 4  ;;  %v3455_v41 = vrot.slane %v3453_v42, 5  ;;  %v5001_v32 = vadd.f32 %v6602_v58, %v8149_v62  ;;  %v6666_v39 = vadd.f32 %v8385_v3, %v8379_v63  ;;  %v3091_v61 = vld [vmem:[#allocation2 + $0x130] sm:$0xf] }
 0x17e   : > { %v8446_v38 = vpop.f32.mrb[42].mxu0  ;;  %v8452_v8 = vpop.f32.mrb[44].mxu1  ;;  %v3474_v16 = vsel %vm1603_vm8, %v3465_v55, %v3473_v23  ;;  %v6605_v60 = vadd.f32 %v8394_v36, %v8387_v47  ;;  %v3448_v54 = vor.u32 %v3447_v17, %v3444_v9  ;;  %v6669_v42 = vadd.f32 %v8397_v35, %v8392_v34  ;;  %v826_v62 = vld [vmem:[#allocation2 + $0x130] sm:$0x10]  ;;  %v3233_v58 = vld [vmem:[#allocation2 + $0x120] sm:$0xf0] }
 0x17f   : > { %v8450_v59 = vpop.f32.mrb[43].mxu0  ;;  %v8459_v31 = vpop.f32.mrb[45].mxu1  ;;  %5693 = vmatprep.mubr.bf16.mxu0 %v3474_v16  ;;  %v3456_v20 = vor.u32 %v3455_v41, %v3452_v1  ;;  %v3170_v55 = vrot.slane %v3090_v4, 4  ;;  %v8483_v3 = vadd.f32 %v6666_v39, %v5001_v32  ;;  %v3171_v36 = vrot.slane %v3092_v30, 4 }
 0x180   : > { %v8463_v7 = vpop.f32.mrb[46].mxu1  ;;  %v5004_v47 = vadd.f32 %v6605_v60, %v8178_v5  ;;  %v830_v13 = vsel %vm7686_vm7, 0, %v829_v45  ;;  %v3493_v35 = vshrl.u32 %v3234_v26, 16  ;;  %v3496_v1 = vshll.u32 %v3234_v26, 16 }
 0x181   : > { %v8473_v29 = vpop.f32.mrb[47].mxu1  ;;  %v3457_v34 = vsel %vm1603_vm8, %v3448_v54, %v3456_v20  ;;  %831 = vst [vmem:[#allocation2 + $0x138] sm:$0x10] %v830_v13  ;;  %v3167_v4 = vrot.slane %v3089_v19, 4  ;;  %v3172_v30 = vsel %vm1490_vm6, %v3170_v55, %v3171_v36  ;;  %v3168_v45 = vrot.slane %v3091_v61, 4 }
 0x182   : > { %v8497_v5 = vadd.f32 %v6669_v42, %v5004_v47  ;;  %v827_v32 = vsel %vm7686_vm7, 0, %v826_v62  ;;  %5604 = vmatprep.mubr.bf16.mxu1 %v3172_v30  ;;  %v8506_v26 = vrot.slane %v3493_v35, 4  ;;  %v8508_v19 = vrot.slane %v3496_v1, 5 }
 0x183   : > { %828 = vst [vmem:[#allocation2 + $0x130] sm:$0x10] %v827_v32  ;;  %v3476_v54 = vshrl.u32 %v3233_v58, 16  ;;  %v3479_v20 = vshll.u32 %v3233_v58, 16  ;;  %v3169_v6 = vsel %vm1490_vm6, %v3167_v4, %v3168_v45  ;;  %v6608_v61 = vadd.f32 %v8409_v33, %v8405_v50 }
 0x184   : > { %v8454_v25 = vpop.f32.mrb[44].mxu0  ;;  %5694 = vmatmul.mubr.bf16.gmra.mrb[136].mxu0 %v3457_v34  ;;  %v6672_v62 = vadd.f32 %v8411_v40, %v8407_v12  ;;  %v6611_v47 = vadd.f32 %v8425_v43, %v8419_v2  ;;  %v3499_v58 = vor.u32 %v8508_v19, %v8506_v26  ;;  %v6675_v50 = vadd.f32 %v8427_v53, %v8421_v27 }
 0x185   : > { %v8461_v15 = vpop.f32.mrb[45].mxu0  ;;  %5605 = vmatmul.mubr.bf16.gmra.mrb[140].mxu1 %v3169_v6  ;;  %v8525_v34 = vrot.slane %v3476_v54, 4  ;;  %v8527_v35 = vrot.slane %v3479_v20, 5  ;;  %v5009_v40 = vadd.f32 %v6608_v61, %v8223_v52  ;;  %v6614_v43 = vadd.f32 %v8437_v46, %v8432_v44 }
 0x186   : > { %v8465_v48 = vpop.f32.mrb[46].mxu0  ;;  %v8479_v23 = vpop.f32.mrb[48].mxu1  ;;  %v5012_v2 = vadd.f32 %v6611_v47, %v8250_v51  ;;  %v6678_v1 = vadd.f32 %v8439_v24, %v8434_v0  ;;  %v6617_v27 = vadd.f32 %v8448_v56, %v8444_v37  ;;  %v6681_v53 = vadd.f32 %v8450_v59, %v8446_v38 }
 0x187   : > { %v8475_v57 = vpop.f32.mrb[47].mxu0  ;;  %v8488_v9 = vpop.f32.mrb[49].mxu1  ;;  %v3482_v45 = vor.u32 %v8527_v35, %v8525_v34  ;;  %v6620_v52 = vadd.f32 %v8459_v31, %v8452_v8  ;;  %v8549_v46 = vadd.f32 %v6672_v62, %v5009_v40  ;;  %v5017_v24 = vadd.f32 %v6614_v43, %v8268_v22 }
 0x188   : > { %v8493_v17 = vpop.f32.mrb[50].mxu1  ;;  %v3236_v44 = vld [vmem:[#allocation2 + $0x138] sm:$0x1f]  ;;  %v8551_v0 = vadd.f32 %v6675_v50, %v5012_v2  ;;  %v6684_v26 = vadd.f32 %v8461_v15, %v8454_v25  ;;  %v5020_v38 = vadd.f32 %v6617_v27, %v8273_v28  ;;  %v6623_v61 = vadd.f32 %v8473_v29, %v8463_v7 }
 0x189   : > { %v8502_v39 = vpop.f32.mrb[51].mxu1  ;;  %v3501_v56 = vshrl.u32 %v3236_v44, 16  ;;  %v3504_v54 = vshll.u32 %v3236_v44, 16  ;;  %v5025_v31 = vadd.f32 %v6620_v52, %v8284_v18  ;;  %v8558_v6 = vadd.f32 %v6678_v1, %v5017_v24 }
 0x18a   : > { %v3235_v20 = vld [vmem:[#allocation2 + $0x130] sm:$0x1f]  ;;  %v6687_v22 = vadd.f32 %v8475_v57, %v8465_v48  ;;  %v6706_v25 = vadd.f32 %v8488_v9, %v8479_v23  ;;  %v8566_v50 = vadd.f32 %v6681_v53, %v5020_v38  ;;  %v5028_v2 = vadd.f32 %v6623_v61, %v8289_v21  ;;  %v8759_v61 = vld [vmem:[#allocation5_spill] sm:$0xff] }
 0x18b   : > { %v3503_v47 = vrot.slane %v3501_v56, 4  ;;  %v3506_v28 = vrot.slane %v3504_v54, 5  ;;  %v3484_v34 = vshrl.u32 %v3235_v20, 16  ;;  %v3487_v18 = vshll.u32 %v3235_v20, 16  ;;  %v8758_v20 = vld [vmem:[#allocation4_spill] sm:$0xff] }
 0x18c   : > { %v8481_v63 = vpop.f32.mrb[48].mxu0  ;;  %v8568_v40 = vadd.f32 %v6684_v26, %v5025_v31  ;;  %v5163_v7 = vadd.f32 %v6706_v25, %v8312_v14  ;;  %v8574_v27 = vadd.f32 %v6687_v22, %v5028_v2  ;;  %v6709_v53 = vadd.f32 %v8502_v39, %v8493_v17 }
 0x18d   : > { %v8490_v41 = vpop.f32.mrb[49].mxu0  ;;  %v3507_v48 = vor.u32 %v3506_v28, %v3503_v47  ;;  %v3486_v57 = vrot.slane %v3484_v34, 4  ;;  %v3489_v43 = vrot.slane %v3487_v18, 5 }
 0x18e   : > { %v8495_v16 = vpop.f32.mrb[50].mxu0  ;;  %v8510_v42 = vpop.f32.mrb[52].mxu1  ;;  %v6770_v23 = vadd.f32 %v8490_v41, %v8481_v63  ;;  %v5166_v54 = vadd.f32 %v6709_v53, %v8321_v49 }
 0x18f   : > { %v8504_v60 = vpop.f32.mrb[51].mxu0  ;;  %v6711_v36 = vpop.f32.mrb[53].mxu1  ;;  %v3508_v24 = vsel %vm1603_vm8, %v3499_v58, %v3507_v48  ;;  %v3490_v26 = vor.u32 %v3489_v43, %v3486_v57 }
 0x190   : > { %v8531_v33 = vpop.f32.mrb[54].mxu1  ;;  %v6773_v52 = vadd.f32 %v8504_v60, %v8495_v16  ;;  %v6712_v21 = vadd.f32 %v6711_v36, %v8510_v42  ;;  %v8582_v56 = vadd.f32 %v6770_v23, %v5163_v7  ;;  %5701 = vmatprep.mubr.bf16.mxu0 %v3508_v24 }
 0x191   : > { %v6714_v4 = vpop.f32.mrb[55].mxu1  ;;  %v3491_v42 = vsel %vm1603_vm8, %v3482_v45, %v3490_v26 }
 0x192   : > { %v5171_v17 = vadd.f32 %v6712_v21, %v8347_v11  ;;  %v6715_v16 = vadd.f32 %v6714_v4, %v8531_v33  ;;  %5702 = vmatmul.mubr.bf16.gmra.mrb[140].mxu0 %v3491_v42  ;;  %v8591_v31 = vadd.f32 %v6773_v52, %v5166_v54 }
 0x194   : > { %v8512_v55 = vpop.f32.mrb[52].mxu0 }
 0x195   : > { %v8521_v13 = vpop.f32.mrb[53].mxu0 }
 0x196   : > { %v8533_v12 = vpop.f32.mrb[54].mxu0  ;;  %v6716_v51 = vpop.f32.mrb[56].mxu1  ;;  %v6776_v63 = vadd.f32 %v8521_v13, %v8512_v55  ;;  %v5174_v13 = vadd.f32 %v6715_v16, %v8359_v10 }
 0x197   : > { %v6778_v30 = vpop.f32.mrb[55].mxu0  ;;  %v6717_v19 = vpop.f32.mrb[57].mxu1 }
 0x198   : > { %v6719_v59 = vpop.f32.mrb[58].mxu1  ;;  %v6779_v39 = vadd.f32 %v6778_v30, %v8533_v12  ;;  %v6718_v36 = vadd.f32 %v6717_v19, %v6716_v51  ;;  %v8593_v55 = vadd.f32 %v6776_v63, %v5171_v17 }
 0x199   : > { %v6720_v15 = vpop.f32.mrb[59].mxu1 }
 0x19a   : > { %v6721_v38 = vadd.f32 %v6720_v15, %v6719_v59  ;;  %v5179_v11 = vadd.f32 %v6718_v36, %v8758_v20  ;;  %v8598_v30 = vadd.f32 %v6779_v39, %v5174_v13  ;;  %v8760_v59 = vld [vmem:[#allocation6_spill] sm:$0xff] }
 0x19c   : > { %v6780_v32 = vpop.f32.mrb[56].mxu0  ;;  %v5182_v33 = vadd.f32 %v6721_v38, %v8759_v61 }
 0x19d   : > { %v6781_v37 = vpop.f32.mrb[57].mxu0 }
 0x19e   : > { %v6783_v8 = vpop.f32.mrb[58].mxu0  ;;  %v6722_v35 = vpop.f32.mrb[60].mxu1  ;;  %v6782_v58 = vadd.f32 %v6781_v37, %v6780_v32 }
 0x19f   : > { %v6784_v62 = vpop.f32.mrb[59].mxu0  ;;  %v6723_v29 = vpop.f32.mrb[61].mxu1 }
 0x1a0   : > { %v6725_v1 = vpop.f32.mrb[62].mxu1  ;;  %v6785_v49 = vadd.f32 %v6784_v62, %v6783_v8  ;;  %v6724_v4 = vadd.f32 %v6723_v29, %v6722_v35  ;;  %v8600_v19 = vadd.f32 %v6782_v58, %v5179_v11  ;;  %v8761_v8 = vld [vmem:[#allocation7_spill] sm:$0xff] }
 0x1a1   : > { %v6726_v44 = vpop.f32.mrb[63].mxu1 }
 0x1a2   : > { %v6727_v45 = vadd.f32 %v6726_v44, %v6725_v1  ;;  %v8602_v37 = vadd.f32 %v6785_v49, %v5182_v33  ;;  %v5187_v22 = vadd.f32 %v6724_v4, %v8760_v59 }
 0x1a4   : > { %v6786_v9 = vpop.f32.mrb[60].mxu0  ;;  %v5190_v15 = vadd.f32 %v6727_v45, %v8761_v8 }
 0x1a5   : > { %v6787_v14 = vpop.f32.mrb[61].mxu0 }
 0x1a6   : > { %v6789_v41 = vpop.f32.mrb[62].mxu0  ;;  %v6788_v12 = vadd.f32 %v6787_v14, %v6786_v9  ;;  %v6728_v32 = vpop.f32.mrb[64].mxu1 }
 0x1a7   : > { %v6790_v60 = vpop.f32.mrb[63].mxu0  ;;  %v6729_v10 = vpop.f32.mrb[65].mxu1 }
 0x1a8   : > { %v6791_v51 = vadd.f32 %v6790_v60, %v6789_v41  ;;  %v6730_v62 = vadd.f32 %v6729_v10, %v6728_v32  ;;  %v6731_v28 = vpop.f32.mrb[66].mxu1  ;;  %v8606_v34 = vadd.f32 %v6788_v12, %v5187_v22 }
 0x1a9   : > { %v6732_v2 = vpop.f32.mrb[67].mxu1 }
 0x1aa   : > { %v8608_v7 = vadd.f32 %v6791_v51, %v5190_v15  ;;  %v5195_v29 = vadd.f32 %v6730_v62, %v8483_v3  ;;  %v6733_v48 = vadd.f32 %v6732_v2, %v6731_v28 }
 0x1ac   : > { %v6792_v25 = vpop.f32.mrb[64].mxu0  ;;  %v5198_v9 = vadd.f32 %v6733_v48, %v8497_v5 }
 0x1ad   : > { %v6793_v47 = vpop.f32.mrb[65].mxu0 }
 0x1ae   : > { %v6794_v18 = vadd.f32 %v6793_v47, %v6792_v25  ;;  %v6795_v35 = vpop.f32.mrb[66].mxu0  ;;  %v6734_v52 = vpop.f32.mrb[68].mxu1 }
 0x1af   : > { %v6796_v57 = vpop.f32.mrb[67].mxu0  ;;  %v6735_v14 = vpop.f32.mrb[69].mxu1 }
 0x1b0   : > { %v6797_v43 = vadd.f32 %v6796_v57, %v6795_v35  ;;  %v8611_v23 = vadd.f32 %v6794_v18, %v5195_v29  ;;  %v6736_v26 = vadd.f32 %v6735_v14, %v6734_v52  ;;  %v6737_v63 = vpop.f32.mrb[70].mxu1 }
 0x1b1   : > { %v6738_v54 = vpop.f32.mrb[71].mxu1 }
 0x1b2   : > { %v8614_v1 = vadd.f32 %v6797_v43, %v5198_v9  ;;  %v5203_v17 = vadd.f32 %v6736_v26, %v8549_v46  ;;  %v6739_v16 = vadd.f32 %v6738_v54, %v6737_v63 }
 0x1b4   : > { %v6798_v53 = vpop.f32.mrb[68].mxu0  ;;  %v5206_v5 = vadd.f32 %v6739_v16, %v8551_v0 }
 0x1b5   : > { %v6799_v21 = vpop.f32.mrb[69].mxu0 }
 0x1b6   : > { %v6800_v44 = vadd.f32 %v6799_v21, %v6798_v53  ;;  %v6801_v24 = vpop.f32.mrb[70].mxu0  ;;  %v6740_v58 = vpop.f32.mrb[72].mxu1 }
 0x1b7   : > { %v6802_v41 = vpop.f32.mrb[71].mxu0  ;;  %v6741_v49 = vpop.f32.mrb[73].mxu1 }
 0x1b8   : > { %v6803_v3 = vadd.f32 %v6802_v41, %v6801_v24  ;;  %v8617_v39 = vadd.f32 %v6800_v44, %v5203_v17  ;;  %v6742_v11 = vadd.f32 %v6741_v49, %v6740_v58  ;;  %v6743_v61 = vpop.f32.mrb[74].mxu1 }
 0x1b9   : > { %v6744_v4 = vpop.f32.mrb[75].mxu1 }
 0x1ba   : > { %v8620_v42 = vadd.f32 %v6803_v3, %v5206_v5  ;;  %v5211_v46 = vadd.f32 %v6742_v11, %v8558_v6  ;;  %v6745_v12 = vadd.f32 %v6744_v4, %v6743_v61 }
 0x1bc   : > { %v6804_v60 = vpop.f32.mrb[72].mxu0  ;;  %v5214_v0 = vadd.f32 %v6745_v12, %v8566_v50 }
 0x1bd   : > { %v6805_v36 = vpop.f32.mrb[73].mxu0 }
 0x1be   : > { %v6806_v38 = vadd.f32 %v6805_v36, %v6804_v60  ;;  %v6807_v13 = vpop.f32.mrb[74].mxu0 }
 0x1bf   : > { %v6808_v20 = vpop.f32.mrb[75].mxu0  ;;  %v6746_v10 = vpop.f32.mrb[76].mxu1 }
 0x1c0   : > { %v6809_v33 = vadd.f32 %v6808_v20, %v6807_v13  ;;  %v8623_v45 = vadd.f32 %v6806_v38, %v5211_v46  ;;  %v6747_v15 = vpop.f32.mrb[77].mxu1 }
 0x1c1   : > { %v6748_v47 = vadd.f32 %v6747_v15, %v6746_v10  ;;  %v6749_v28 = vpop.f32.mrb[78].mxu1 }
 0x1c2   : > { %v8626_v51 = vadd.f32 %v6809_v33, %v5214_v0  ;;  %v6750_v18 = vpop.f32.mrb[79].mxu1 }
 0x1c3   : > { %v5219_v6 = vadd.f32 %v6748_v47, %v8568_v40  ;;  %v6751_v35 = vadd.f32 %v6750_v18, %v6749_v28 }
 0x1c4   : > { %v6810_v32 = vpop.f32.mrb[76].mxu0 }
 0x1c5   : > { %v6811_v59 = vpop.f32.mrb[77].mxu0  ;;  %v5222_v50 = vadd.f32 %v6751_v35, %v8574_v27 }
 0x1c6   : > { %v6812_v22 = vadd.f32 %v6811_v59, %v6810_v32  ;;  %v6813_v25 = vpop.f32.mrb[78].mxu0 }
 0x1c7   : > { %v6814_v8 = vpop.f32.mrb[79].mxu0  ;;  %v6832_v48 = vpop.f32.mrb[80].mxu1 }
 0x1c8   : > { %v6815_v62 = vadd.f32 %v6814_v8, %v6813_v25  ;;  %v8629_v2 = vadd.f32 %v6812_v22, %v5219_v6  ;;  %v6833_v43 = vpop.f32.mrb[81].mxu1 }
 0x1c9   : > { %v6834_v9 = vadd.f32 %v6833_v43, %v6832_v48  ;;  %v6835_v52 = vpop.f32.mrb[82].mxu1 }
 0x1ca   : > { %v8632_v29 = vadd.f32 %v6815_v62, %v5222_v50  ;;  %v6836_v44 = vpop.f32.mrb[83].mxu1 }
 0x1cb   : > { %v5357_v24 = vadd.f32 %v6834_v9, %v8582_v56  ;;  %v6837_v26 = vadd.f32 %v6836_v44, %v6835_v52 }
 0x1cc   : > { %v6896_v57 = vpop.f32.mrb[80].mxu0 }
 0x1cd   : > { %v6897_v53 = vpop.f32.mrb[81].mxu0  ;;  %v5360_v27 = vadd.f32 %v6837_v26, %v8591_v31 }
 0x1ce   : > { %v6898_v21 = vadd.f32 %v6897_v53, %v6896_v57  ;;  %v6899_v14 = vpop.f32.mrb[82].mxu0 }
 0x1cf   : > { %v6900_v40 = vpop.f32.mrb[83].mxu0  ;;  %v6838_v3 = vpop.f32.mrb[84].mxu1 }
 0x1d0   : > { %v6901_v63 = vadd.f32 %v6900_v40, %v6899_v14  ;;  %v8635_v41 = vadd.f32 %v6898_v21, %v5357_v24  ;;  %v6839_v17 = vpop.f32.mrb[85].mxu1 }
 0x1d1   : > { %v6840_v5 = vadd.f32 %v6839_v17, %v6838_v3  ;;  %v6841_v60 = vpop.f32.mrb[86].mxu1 }
 0x1d2   : > { %v8638_v54 = vadd.f32 %v6901_v63, %v5360_v27  ;;  %v6842_v58 = vpop.f32.mrb[87].mxu1 }
 0x1d3   : > { %v5365_v38 = vadd.f32 %v6840_v5, %v8593_v55  ;;  %v6843_v49 = vadd.f32 %v6842_v58, %v6841_v60 }
 0x1d4   : > { %v6902_v16 = vpop.f32.mrb[84].mxu0 }
 0x1d5   : > { %v6903_v36 = vpop.f32.mrb[85].mxu0  ;;  %v5368_v61 = vadd.f32 %v6843_v49, %v8598_v30 }
 0x1d6   : > { %v6904_v13 = vadd.f32 %v6903_v36, %v6902_v16  ;;  %v6905_v56 = vpop.f32.mrb[86].mxu0 }
 0x1d7   : > { %v6906_v20 = vpop.f32.mrb[87].mxu0 }
 0x1d8   : > { %v8641_v11 = vadd.f32 %v6904_v13, %v5365_v38  ;;  %v6907_v31 = vadd.f32 %v6906_v20, %v6905_v56 }
 0x1da   : > { %v8644_v33 = vadd.f32 %v6907_v31, %v5368_v61 }
 0x1db   : > { %v6844_v4 = vpop.f32.mrb[88].mxu1 }
 0x1dc   : > { %v6845_v46 = vpop.f32.mrb[89].mxu1 }
 0x1dd   : > { %v6846_v12 = vadd.f32 %v6845_v46, %v6844_v4  ;;  %v6847_v0 = vpop.f32.mrb[90].mxu1 }
 0x1de   : > { %v6908_v32 = vpop.f32.mrb[88].mxu0  ;;  %v6848_v59 = vpop.f32.mrb[91].mxu1 }
 0x1df   : > { %v5373_v22 = vadd.f32 %v6846_v12, %v8600_v19  ;;  %v6909_v55 = vpop.f32.mrb[89].mxu0  ;;  %v6849_v25 = vadd.f32 %v6848_v59, %v6847_v0 }
 0x1e0   : > { %v6910_v10 = vadd.f32 %v6909_v55, %v6908_v32  ;;  %v6911_v8 = vpop.f32.mrb[90].mxu0 }
 0x1e1   : > { %v5376_v15 = vadd.f32 %v6849_v25, %v8602_v37  ;;  %v6912_v62 = vpop.f32.mrb[91].mxu0 }
 0x1e2   : > { %v8648_v47 = vadd.f32 %v6910_v10, %v5373_v22  ;;  %v6913_v30 = vadd.f32 %v6912_v62, %v6911_v8 }
 0x1e4   : > { %v8650_v28 = vadd.f32 %v6913_v30, %v5376_v15 }
 0x1e5   : > { %v6850_v18 = vpop.f32.mrb[92].mxu1 }
 0x1e6   : > { %v6851_v6 = vpop.f32.mrb[93].mxu1 }
 0x1e7   : > { %v6852_v35 = vadd.f32 %v6851_v6, %v6850_v18  ;;  %v6853_v50 = vpop.f32.mrb[94].mxu1 }
 0x1e8   : > { %v6914_v48 = vpop.f32.mrb[92].mxu0  ;;  %v6854_v57 = vpop.f32.mrb[95].mxu1 }
 0x1e9   : > { %v5381_v19 = vadd.f32 %v6852_v35, %v8606_v34  ;;  %v6915_v43 = vpop.f32.mrb[93].mxu0  ;;  %v6855_v9 = vadd.f32 %v6854_v57, %v6853_v50 }
 0x1ea   : > { %v6916_v53 = vadd.f32 %v6915_v43, %v6914_v48  ;;  %v6917_v52 = vpop.f32.mrb[94].mxu0 }
 0x1eb   : > { %v5384_v37 = vadd.f32 %v6855_v9, %v8608_v7  ;;  %v6918_v21 = vpop.f32.mrb[95].mxu0 }
 0x1ec   : > { %v8654_v14 = vadd.f32 %v6916_v53, %v5381_v19  ;;  %v6919_v44 = vadd.f32 %v6918_v21, %v6917_v52 }
 0x1ee   : > { %v8656_v24 = vadd.f32 %v6919_v44, %v5384_v37 }
 0x1f0   : > { %v6856_v26 = vpop.f32.mrb[96].mxu1 }
 0x1f1   : > { %v6857_v40 = vpop.f32.mrb[97].mxu1 }
 0x1f2   : > { %v6858_v63 = vadd.f32 %v6857_v40, %v6856_v26  ;;  %v6859_v27 = vpop.f32.mrb[98].mxu1 }
 0x1f3   : > { %v6920_v3 = vpop.f32.mrb[96].mxu0  ;;  %v6860_v17 = vpop.f32.mrb[99].mxu1 }
 0x1f4   : > { %v5389_v34 = vadd.f32 %v6858_v63, %v8611_v23  ;;  %v6921_v16 = vpop.f32.mrb[97].mxu0  ;;  %v6861_v5 = vadd.f32 %v6860_v17, %v6859_v27 }
 0x1f5   : > { %v6922_v60 = vadd.f32 %v6921_v16, %v6920_v3  ;;  %v6923_v36 = vpop.f32.mrb[98].mxu0 }
 0x1f6   : > { %v5392_v7 = vadd.f32 %v6861_v5, %v8614_v1  ;;  %v6924_v58 = vpop.f32.mrb[99].mxu0 }
 0x1f7   : > { %v8660_v38 = vadd.f32 %v6922_v60, %v5389_v34  ;;  %v6925_v13 = vadd.f32 %v6924_v58, %v6923_v36 }
 0x1f9   : > { %v8662_v56 = vadd.f32 %v6925_v13, %v5392_v7 }
 0x1fb   : > { %v6862_v49 = vpop.f32.mrb[100].mxu1 }
 0x1fc   : > { %v6863_v20 = vpop.f32.mrb[101].mxu1 }
 0x1fd   : > { %v6864_v31 = vadd.f32 %v6863_v20, %v6862_v49  ;;  %v6865_v4 = vpop.f32.mrb[102].mxu1 }
 0x1fe   : > { %v6926_v61 = vpop.f32.mrb[100].mxu0  ;;  %v6866_v12 = vpop.f32.mrb[103].mxu1 }
 0x1ff   : > { %v6927_v46 = vpop.f32.mrb[101].mxu0  ;;  %v5397_v23 = vadd.f32 %v6864_v31, %v8617_v39  ;;  %v6867_v59 = vadd.f32 %v6866_v12, %v6865_v4 }
 0x200   : > { %v6928_v0 = vadd.f32 %v6927_v46, %v6926_v61  ;;  %v6929_v32 = vpop.f32.mrb[102].mxu0 }
 0x201   : > { %v6930_v22 = vpop.f32.mrb[103].mxu0  ;;  %v5400_v55 = vadd.f32 %v6867_v59, %v8620_v42 }
 0x202   : > { %v8665_v1 = vadd.f32 %v6928_v0, %v5397_v23  ;;  %v6931_v25 = vadd.f32 %v6930_v22, %v6929_v32 }
 0x204   : > { %v8668_v10 = vadd.f32 %v6931_v25, %v5400_v55 }
 0x207   : > { %v6868_v8 = vpop.f32.mrb[104].mxu1 }
 0x208   : > { %v6869_v15 = vpop.f32.mrb[105].mxu1 }
 0x209   : > { %v6870_v62 = vadd.f32 %v6869_v15, %v6868_v8  ;;  %v6871_v30 = vpop.f32.mrb[106].mxu1 }
 0x20a   : > { %v6872_v18 = vpop.f32.mrb[107].mxu1  ;;  %v6932_v6 = vpop.f32.mrb[104].mxu0 }
 0x20b   : > { %v5405_v35 = vadd.f32 %v6870_v62, %v8623_v45  ;;  %v6873_v39 = vadd.f32 %v6872_v18, %v6871_v30  ;;  %v6933_v50 = vpop.f32.mrb[105].mxu0 }
 0x20c   : > { %v6934_v48 = vadd.f32 %v6933_v50, %v6932_v6  ;;  %v6935_v57 = vpop.f32.mrb[106].mxu0 }
 0x20d   : > { %v5408_v19 = vadd.f32 %v6873_v39, %v8626_v51  ;;  %v6936_v43 = vpop.f32.mrb[107].mxu0 }
 0x20e   : > { %v8672_v9 = vadd.f32 %v6934_v48, %v5405_v35  ;;  %v6937_v42 = vadd.f32 %v6936_v43, %v6935_v57 }
 0x210   : > { %v8674_v53 = vadd.f32 %v6937_v42, %v5408_v19 }
 0x218   : > { %v6874_v52 = vpop.f32.mrb[108].mxu1 }
 0x219   : > { %v6875_v37 = vpop.f32.mrb[109].mxu1 }
 0x21a   : > { %v6876_v21 = vadd.f32 %v6875_v37, %v6874_v52  ;;  %v6877_v44 = vpop.f32.mrb[110].mxu1 }
 0x21b   : > { %v6878_v26 = vpop.f32.mrb[111].mxu1 }
 0x21c   : > { %v5413_v40 = vadd.f32 %v6876_v21, %v8629_v2  ;;  %v6879_v45 = vadd.f32 %v6878_v26, %v6877_v44 }
 0x21e   : > { %v5416_v63 = vadd.f32 %v6879_v45, %v8632_v29 }
 0x21f   : > { %v6938_v27 = vpop.f32.mrb[108].mxu0 }
 0x220   : > { %v6939_v3 = vpop.f32.mrb[109].mxu0  ;;  %v6960_v17 = vpop.f32.mrb[112].mxu1 }
 0x221   : > { %v6940_v51 = vadd.f32 %v6939_v3, %v6938_v27  ;;  %v6941_v34 = vpop.f32.mrb[110].mxu0  ;;  %v6961_v16 = vpop.f32.mrb[113].mxu1 }
 0x222   : > { %v6942_v5 = vpop.f32.mrb[111].mxu0  ;;  %v6962_v60 = vadd.f32 %v6961_v16, %v6960_v17  ;;  %v6963_v36 = vpop.f32.mrb[114].mxu1 }
 0x223   : > { %v8678_v7 = vadd.f32 %v6940_v51, %v5413_v40  ;;  %v6943_v58 = vadd.f32 %v6942_v5, %v6941_v34  ;;  %v6964_v13 = vpop.f32.mrb[115].mxu1 }
 0x224   : > { %v5551_v49 = vadd.f32 %v6962_v60, %v8635_v41  ;;  %v6965_v20 = vadd.f32 %v6964_v13, %v6963_v36 }
 0x225   : > { %v8681_v2 = vadd.f32 %v6943_v58, %v5416_v63 }
 0x226   : > { %v5554_v29 = vadd.f32 %v6965_v20, %v8638_v54 }
 0x227   : > { %v7024_v61 = vpop.f32.mrb[112].mxu0 }
 0x228   : > { %v7025_v31 = vpop.f32.mrb[113].mxu0  ;;  %v6966_v4 = vpop.f32.mrb[116].mxu1 }
 0x229   : > { %v7026_v46 = vadd.f32 %v7025_v31, %v7024_v61  ;;  %v7027_v12 = vpop.f32.mrb[114].mxu0  ;;  %v6967_v23 = vpop.f32.mrb[117].mxu1 }
 0x22a   : > { %v7028_v0 = vpop.f32.mrb[115].mxu0  ;;  %v6968_v32 = vadd.f32 %v6967_v23, %v6966_v4  ;;  %v6969_v59 = vpop.f32.mrb[118].mxu1 }
 0x22b   : > { %v5648_v22 = vadd.f32 %v7026_v46, %v5551_v49  ;;  %v7029_v55 = vadd.f32 %v7028_v0, %v7027_v12  ;;  %v6970_v25 = vpop.f32.mrb[119].mxu1 }
 0x22c   : > { %v5559_v41 = vadd.f32 %v6968_v32, %v8641_v11  ;;  %v6971_v8 = vadd.f32 %v6970_v25, %v6969_v59 }
 0x22d   : > { %v5651_v15 = vadd.f32 %v7029_v55, %v5554_v29  ;;  %v5812_v62 = vmul.f32 %v5648_v22, %v5648_v22 }
 0x22e   : > { %v5562_v54 = vadd.f32 %v6971_v8, %v8644_v33 }
 0x22f   : > { %v6452_v30 = vpack.c.bf16 %v5651_v15, %v5648_v22  ;;  %v5790_v18 = vadd.f32 %v5651_v15, %v5648_v22  ;;  %v5813_v6 = vmul.f32 %v5651_v15, %v5651_v15  ;;  %v7030_v35 = vpop.f32.mrb[116].mxu0 }
 0x230   : > { %v7031_v39 = vpop.f32.mrb[117].mxu0  ;;  %v6972_v50 = vpop.f32.mrb[120].mxu1 }
 0x231   : > { %6453 = vst [vmem:[%s8689_s28] sm:$0xff] %v6452_v30   ;;  %v5828_v48 = vadd.f32 %v5813_v6, %v5812_v62  ;;  %v7032_v11 = vadd.f32 %v7031_v39, %v7030_v35  ;;  %v7033_v57 = vpop.f32.mrb[118].mxu0  ;;  %v6973_v19 = vpop.f32.mrb[121].mxu1 }
 0x232   : > { %v7034_v43 = vpop.f32.mrb[119].mxu0  ;;  %v6974_v42 = vadd.f32 %v6973_v19, %v6972_v50  ;;  %v6975_v52 = vpop.f32.mrb[122].mxu1 }
 0x233   : > { %v5656_v37 = vadd.f32 %v7032_v11, %v5559_v41  ;;  %v7035_v21 = vadd.f32 %v7034_v43, %v7033_v57  ;;  %v6976_v44 = vpop.f32.mrb[123].mxu1 }
 0x234   : > { %v5567_v33 = vadd.f32 %v6974_v42, %v8648_v47  ;;  %v6977_v26 = vadd.f32 %v6976_v44, %v6975_v52 }
 0x235   : > { %v5791_v40 = vadd.f32 %v5790_v18, %v5656_v37  ;;  %v5814_v45 = vmul.f32 %v5656_v37, %v5656_v37  ;;  %v5659_v63 = vadd.f32 %v7035_v21, %v5562_v54 }
 0x236   : > { %v5570_v27 = vadd.f32 %v6977_v26, %v8650_v28 }
 0x237   : > { %v5829_v3 = vadd.f32 %v5828_v48, %v5814_v45  ;;  %v6457_v17 = vpack.c.bf16 %v5659_v63, %v5656_v37  ;;  %v5792_v51 = vadd.f32 %v5791_v40, %v5659_v63  ;;  %v5815_v34 = vmul.f32 %v5659_v63, %v5659_v63  ;;  %v7036_v16 = vpop.f32.mrb[120].mxu0 }
 0x238   : > { %v7037_v5 = vpop.f32.mrb[121].mxu0  ;;  %v6978_v60 = vpop.f32.mrb[124].mxu1 }
 0x239   : > { %6489 = vst [vmem:[%s8689_s28 + $0x8] sm:$0xff] %v6457_v17   ;;  %v5830_v36 = vadd.f32 %v5829_v3, %v5815_v34  ;;  %v7038_v58 = vadd.f32 %v7037_v5, %v7036_v16  ;;  %v7039_v13 = vpop.f32.mrb[122].mxu0  ;;  %v6979_v49 = vpop.f32.mrb[125].mxu1 }
 0x23a   : > { %v7040_v20 = vpop.f32.mrb[123].mxu0  ;;  %v6980_v47 = vadd.f32 %v6979_v49, %v6978_v60  ;;  %v6981_v29 = vpop.f32.mrb[126].mxu1 }
 0x23b   : > { %v5664_v61 = vadd.f32 %v7038_v58, %v5567_v33  ;;  %v7041_v31 = vadd.f32 %v7040_v20, %v7039_v13  ;;  %v6982_v4 = vpop.f32.mrb[127].mxu1 }
 0x23c   : > { %v5575_v28 = vadd.f32 %v6980_v47, %v8654_v14  ;;  %v6983_v46 = vadd.f32 %v6982_v4, %v6981_v29 }
 0x23d   : > { %v5793_v12 = vadd.f32 %v5792_v51, %v5664_v61  ;;  %v5816_v23 = vmul.f32 %v5664_v61, %v5664_v61  ;;  %v5667_v0 = vadd.f32 %v7041_v31, %v5570_v27 }
 0x23e   : > { %v5578_v32 = vadd.f32 %v6983_v46, %v8656_v24 }
 0x23f   : > { %v5831_v59 = vadd.f32 %v5830_v36, %v5816_v23  ;;  %v6462_v22 = vpack.c.bf16 %v5667_v0, %v5664_v61  ;;  %v5794_v55 = vadd.f32 %v5793_v12, %v5667_v0  ;;  %v5817_v25 = vmul.f32 %v5667_v0, %v5667_v0  ;;  %v7042_v41 = vpop.f32.mrb[124].mxu0 }
 0x240   : > { %v7043_v8 = vpop.f32.mrb[125].mxu0  ;;  %v6984_v15 = vpop.f32.mrb[128].mxu1 }
 0x241   : > { %6490 = vst [vmem:[%s8689_s28 + $0x10] sm:$0xff] %v6462_v22   ;;  %v5832_v54 = vadd.f32 %v5831_v59, %v5817_v25  ;;  %v7044_v62 = vadd.f32 %v7043_v8, %v7042_v41  ;;  %v7045_v30 = vpop.f32.mrb[126].mxu0  ;;  %v6985_v18 = vpop.f32.mrb[129].mxu1 }
 0x242   : > { %v7046_v6 = vpop.f32.mrb[127].mxu0  ;;  %v6986_v14 = vadd.f32 %v6985_v18, %v6984_v15  ;;  %v6987_v35 = vpop.f32.mrb[130].mxu1 }
 0x243   : > { %v5672_v39 = vadd.f32 %v7044_v62, %v5575_v28  ;;  %v7047_v50 = vadd.f32 %v7046_v6, %v7045_v30  ;;  %v6988_v48 = vpop.f32.mrb[131].mxu1 }
 0x244   : > { %v5583_v24 = vadd.f32 %v6986_v14, %v8660_v38  ;;  %v6989_v11 = vadd.f32 %v6988_v48, %v6987_v35 }
 0x245   : > { %v5795_v57 = vadd.f32 %v5794_v55, %v5672_v39  ;;  %v5818_v19 = vmul.f32 %v5672_v39, %v5672_v39  ;;  %v5675_v43 = vadd.f32 %v7047_v50, %v5578_v32 }
 0x246   : > { %v5586_v42 = vadd.f32 %v6989_v11, %v8662_v56 }
 0x247   : > { %v5833_v52 = vadd.f32 %v5832_v54, %v5818_v19  ;;  %v6467_v37 = vpack.c.bf16 %v5675_v43, %v5672_v39  ;;  %v5796_v21 = vadd.f32 %v5795_v57, %v5675_v43  ;;  %v5819_v44 = vmul.f32 %v5675_v43, %v5675_v43  ;;  %v7048_v33 = vpop.f32.mrb[128].mxu0 }
 0x248   : > { %v7049_v26 = vpop.f32.mrb[129].mxu0  ;;  %v6990_v40 = vpop.f32.mrb[132].mxu1 }
 0x249   : > { %6491 = vst [vmem:[%s8689_s28 + $0x18] sm:$0xff] %v6467_v37   ;;  %v5834_v45 = vadd.f32 %v5833_v52, %v5819_v44  ;;  %v7050_v63 = vadd.f32 %v7049_v26, %v7048_v33  ;;  %v7051_v27 = vpop.f32.mrb[130].mxu0  ;;  %v6991_v3 = vpop.f32.mrb[133].mxu1 }
 0x24a   : > { %v7052_v17 = vpop.f32.mrb[131].mxu0  ;;  %v6992_v38 = vadd.f32 %v6991_v3, %v6990_v40  ;;  %v6993_v51 = vpop.f32.mrb[134].mxu1 }
 0x24b   : > { %v5680_v34 = vadd.f32 %v7050_v63, %v5583_v24  ;;  %v7053_v16 = vadd.f32 %v7052_v17, %v7051_v27  ;;  %v6994_v5 = vpop.f32.mrb[135].mxu1 }
 0x24c   : > { %v5591_v56 = vadd.f32 %v6992_v38, %v8665_v1  ;;  %v6995_v60 = vadd.f32 %v6994_v5, %v6993_v51 }
 0x24d   : > { %v5797_v36 = vadd.f32 %v5796_v21, %v5680_v34  ;;  %v5820_v58 = vmul.f32 %v5680_v34, %v5680_v34  ;;  %v5683_v13 = vadd.f32 %v7053_v16, %v5586_v42 }
 0x24e   : > { %v5594_v49 = vadd.f32 %v6995_v60, %v8668_v10 }
 0x24f   : > { %v5835_v20 = vadd.f32 %v5834_v45, %v5820_v58  ;;  %v6472_v47 = vpack.c.bf16 %v5683_v13, %v5680_v34  ;;  %v5798_v29 = vadd.f32 %v5797_v36, %v5683_v13  ;;  %v5821_v61 = vmul.f32 %v5683_v13, %v5683_v13  ;;  %v7054_v31 = vpop.f32.mrb[132].mxu0 }
 0x250   : > { %v7055_v4 = vpop.f32.mrb[133].mxu0  ;;  %v6996_v23 = vpop.f32.mrb[136].mxu1 }
 0x251   : > { %6492 = vst [vmem:[%s8689_s28 + $0x20] sm:$0xff] %v6472_v47   ;;  %v5836_v28 = vadd.f32 %v5835_v20, %v5821_v61  ;;  %v7056_v46 = vadd.f32 %v7055_v4, %v7054_v31  ;;  %v7057_v12 = vpop.f32.mrb[134].mxu0  ;;  %v6997_v32 = vpop.f32.mrb[137].mxu1 }
 0x252   : > { %v7058_v0 = vpop.f32.mrb[135].mxu0  ;;  %v6998_v22 = vadd.f32 %v6997_v32, %v6996_v23  ;;  %v6999_v55 = vpop.f32.mrb[138].mxu1 }
 0x253   : > { %v5688_v1 = vadd.f32 %v7056_v46, %v5591_v56  ;;  %v7059_v59 = vadd.f32 %v7058_v0, %v7057_v12  ;;  %v7000_v25 = vpop.f32.mrb[139].mxu1 }
 0x254   : > { %v5599_v15 = vadd.f32 %v6998_v22, %v8672_v9  ;;  %v7001_v54 = vadd.f32 %v7000_v25, %v6999_v55 }
 0x255   : > { %v5799_v10 = vadd.f32 %v5798_v29, %v5688_v1  ;;  %v5822_v41 = vmul.f32 %v5688_v1, %v5688_v1  ;;  %v5691_v8 = vadd.f32 %v7059_v59, %v5594_v49 }
 0x256   : > { %v5602_v39 = vadd.f32 %v7001_v54, %v8674_v53 }
 0x257   : > { %v5837_v62 = vadd.f32 %v5836_v28, %v5822_v41  ;;  %v6477_v30 = vpack.c.bf16 %v5691_v8, %v5688_v1  ;;  %v5800_v18 = vadd.f32 %v5799_v10, %v5691_v8  ;;  %v5823_v6 = vmul.f32 %v5691_v8, %v5691_v8  ;;  %v7060_v14 = vpop.f32.mrb[136].mxu0 }
 0x258   : > { %v7061_v35 = vpop.f32.mrb[137].mxu0  ;;  %v7002_v11 = vpop.f32.mrb[140].mxu1 }
 0x259   : > { %6493 = vst [vmem:[%s8689_s28 + $0x28] sm:$0xff] %v6477_v30   ;;  %v5838_v50 = vadd.f32 %v5837_v62, %v5823_v6  ;;  %v7062_v48 = vadd.f32 %v7061_v35, %v7060_v14  ;;  %v7063_v24 = vpop.f32.mrb[138].mxu0  ;;  %v7003_v19 = vpop.f32.mrb[141].mxu1 }
 0x25a   : > { %v7064_v57 = vpop.f32.mrb[139].mxu0  ;;  %v7004_v9 = vadd.f32 %v7003_v19, %v7002_v11  ;;  %v7005_v52 = vpop.f32.mrb[142].mxu1 }
 0x25b   : > { %v5696_v43 = vadd.f32 %v7062_v48, %v5599_v15  ;;  %v7065_v42 = vadd.f32 %v7064_v57, %v7063_v24  ;;  %v7006_v37 = vpop.f32.mrb[143].mxu1 }
 0x25c   : > { %v5607_v26 = vadd.f32 %v7004_v9, %v8678_v7  ;;  %v7007_v40 = vadd.f32 %v7006_v37, %v7005_v52 }
 0x25d   : > { %v5801_v21 = vadd.f32 %v5800_v18, %v5696_v43  ;;  %v5824_v44 = vmul.f32 %v5696_v43, %v5696_v43  ;;  %v5699_v33 = vadd.f32 %v7065_v42, %v5602_v39 }
 0x25e   : > { %v5610_v3 = vadd.f32 %v7007_v40, %v8681_v2 }
 0x25f   : > { %v5839_v53 = vadd.f32 %v5838_v50, %v5824_v44  ;;  %v6482_v45 = vpack.c.bf16 %v5699_v33, %v5696_v43  ;;  %v5802_v63 = vadd.f32 %v5801_v21, %v5699_v33  ;;  %v5825_v27 = vmul.f32 %v5699_v33, %v5699_v33 }
 0x261   : > { %6494 = vst [vmem:[%s8689_s28 + $0x30] sm:$0xff] %v6482_v45   ;;  %v5840_v17 = vadd.f32 %v5839_v53, %v5825_v27 }
 0x265   : > { %v7066_v38 = vpop.f32.mrb[140].mxu0 }
 0x266   : > { %v7067_v51 = vpop.f32.mrb[141].mxu0 }
 0x267   : > { %v7068_v34 = vadd.f32 %v7067_v51, %v7066_v38  ;;  %v7069_v16 = vpop.f32.mrb[142].mxu0 }
 0x268   : > { %v7070_v5 = vpop.f32.mrb[143].mxu0 }
 0x269   : > { %v5704_v56 = vadd.f32 %v7068_v34, %v5607_v26  ;;  %v7071_v7 = vadd.f32 %v7070_v5, %v7069_v16 }
 0x26b   : > { %v5803_v60 = vadd.f32 %v5802_v63, %v5704_v56  ;;  %v5826_v36 = vmul.f32 %v5704_v56, %v5704_v56  ;;  %v5707_v58 = vadd.f32 %v7071_v7, %v5610_v3 }
 0x26d   : > { %v5841_v13 = vadd.f32 %v5840_v17, %v5826_v36  ;;  %v6487_v49 = vpack.c.bf16 %v5707_v58, %v5704_v56  ;;  %v5804_v20 = vadd.f32 %v5803_v60, %v5707_v58  ;;  %v5827_v2 = vmul.f32 %v5707_v58, %v5707_v58 }
 0x26f   : > { %6495 = vst [vmem:[%s8689_s28 + $0x38] sm:$0xff] %v6487_v49   ;;  %v5805_v47 = vrot.slane %v5804_v20, 4  ;;  %v5842_v29 = vadd.f32 %v5841_v13, %v5827_v2 }
 0x271   : > { %v5806_v61 = vadd.f32 %v5805_v47, %v5804_v20  ;;  %v5843_v31 = vrot.slane %v5842_v29, 4 }
 0x273   : > { %v5807_v4 = vrot.slane %v5806_v61, 2  ;;  %v5844_v28 = vadd.f32 %v5843_v31, %v5842_v29 }
 0x275   : > { %v5808_v46 = vadd.f32 %v5807_v4, %v5806_v61  ;;  %v5845_v12 = vrot.slane %v5844_v28, 2 }
 0x277   : > { %v5809_v23 = vrot.slane %v5808_v46, 1  ;;  %v5846_v0 = vadd.f32 %v5845_v12, %v5844_v28 }
 0x279   : > { %v5810_v32 = vadd.f32 %v5809_v23, %v5808_v46  ;;  %v5847_v1 = vrot.slane %v5846_v0, 1 }
 0x27b   : > { %5811 = vst [vmem:[%s696_s24] sm:$0xff] %v5810_v32  ;;  %v5848_v59 = vadd.f32 %v5847_v1, %v5846_v0 }
 0x27d   : > { %5849 = vst [vmem:[%s704_s25] sm:$0xff] %v5848_v59 }
 0x27e PF: > { %s20_s13 = sadd.s32 1, %s7342_s13   ;;  %s8762_s30 = smov %s7334_s11 }
 0x27f   : > { %p17_p12 = scmp.ge.s32.totalorder %s20_s13, 6   ;;  %s8763_s10 = smov %s7338_s12 }
 0x280   : > { %s8764_s11 = smov %s8767_s14  ;;  %s8765_s12 = smov %s8771_s15 }
 0x281   :  { %19 = sbr.rel (!%p17_p12) target bundleno = 3 (0x3), region = 120 }

</bundles_post_ra>
